<compile_context>
chip_gen: v6e
topology: v6e:2x2x1
jax: 0.10.0
libtpu: 0.0.40
codegen_flags: <defaults>
</compile_context>

<pallas_src>
import math
import numpy as np

import jax
import jax.numpy as jnp
from jax.experimental import pallas as pl
from jax.experimental.pallas import tpu as pltpu

EPS = 1e-5  # nn.BatchNorm2d default eps


# ---------------------------------------------------------------------------
# The single fused Pallas kernel
# ---------------------------------------------------------------------------
def _decoder_kernel(x_ref, w1_ref, b1_ref, w2s_ref, b2s_ref, s0_ref,
                    wk1_ref, wk2_ref, wk3_ref,
                    r1_ref, r1t_ref, r2_ref, r2t_ref,
                    g1_ref, be1_ref, cb1_ref,
                    g2_ref, be2_ref, cb2_ref, cb3_ref,
                    s1s_ref, s2s_ref, s3g_ref, m1_ref, m2_ref,
                    o_ref,
                    xp1_ref, xp2_ref, xp3_ref):
    f32 = jnp.float32
    B = x_ref.shape[0]

    # ---------------- decoder_lin: Linear(D,128)+ReLU, Linear(128,288)+ReLU ----
    h1 = jnp.dot(x_ref[...], w1_ref[...], preferred_element_type=f32) + b1_ref[...]
    h1 = jnp.maximum(h1, 0.0)

    # Second Linear fused with Unflatten->(32,3,3)->NHWC and with the zero-insert
    # + padding of deconv1: w2s[i] already writes columns in deconv1's padded,
    # upsampled lane layout (wp1, cin); s0[i] scatters rows to b*9 + 2 + 2*i.
    xp1 = None
    for i in range(3):
        h2_i = jnp.dot(h1, w2s_ref[i], preferred_element_type=f32) + b2s_ref[i]
        h2_i = jnp.maximum(h2_i, 0.0)
        contrib = jnp.dot(s0_ref[i], h2_i, preferred_element_type=f32)
        xp1 = contrib if xp1 is None else xp1 + contrib
    xp1_ref[...] = xp1            # (B*9, 9*32): padded/upsampled NHWC input of deconv1

    def deconv_bn_relu(xp_ref, wk_ref, rows_in, m_ref, r_ref, rt_ref,
                       g_ref, be_ref, cb_ref, n_valid):
        # Banded-Toeplitz transposed conv: one matmul per kernel row (kh) with
        # row-shifted accumulation, then training-mode BatchNorm2d + ReLU.
        # Invalid lanes (zero-insert / padding columns of the next layer) and
        # invalid rows (cross-batch-block garbage) are kept exactly at 0 / masked.
        xp = xp_ref[...]
        rows_out = rows_in - 2
        y0 = jnp.dot(xp, wk_ref[0], preferred_element_type=f32)
        y1 = jnp.dot(xp, wk_ref[1], preferred_element_type=f32)
        y2 = jnp.dot(xp, wk_ref[2], preferred_element_type=f32)
        a = y0[0:rows_out, :] + y1[1:rows_out + 1, :] + y2[2:rows_out + 2, :]

        # One-pass batch statistics over the valid (b, oh, ow) positions:
        # mask-row matmul sums valid rows; r groups the (wp, c) lanes per channel.
        m = m_ref[...]                                                   # (1, rows_out)
        s1_l = jnp.dot(m, a, preferred_element_type=f32)                 # (1, lanes)
        s2_l = jnp.dot(m, a * a, preferred_element_type=f32)             # (1, lanes)
        s1_c = jnp.dot(s1_l, r_ref[...], preferred_element_type=f32)     # (1, C)
        s2_c = jnp.dot(s2_l, r_ref[...], preferred_element_type=f32)     # (1, C)
        mean_y = s1_c / n_valid
        var = jnp.maximum(s2_c / n_valid - mean_y * mean_y, 0.0)         # biased var (PyTorch BN)
        mean_c = mean_y + cb_ref[...]            # conv bias shifts the batch mean
        scale_c = g_ref[...] * jax.lax.rsqrt(var + EPS)
        shift_c = be_ref[...] - mean_c * scale_c

        # Expand per-channel affine (and the conv bias) to the interleaved lane
        # layout; invalid lanes get scale=shift=bias=0 and stay exactly zero.
        scale_l = jnp.dot(scale_c, rt_ref[...], preferred_element_type=f32)
        shift_l = jnp.dot(shift_c, rt_ref[...], preferred_element_type=f32)
        cb_l = jnp.dot(cb_ref[...], rt_ref[...], preferred_element_type=f32)
        z = (a + cb_l) * scale_l + shift_l
        return jnp.maximum(z, 0.0)

    # deconv1 (32->16, s=2) + BN(16) + ReLU; scatter (H zero-insert) into xp2.
    a1 = deconv_bn_relu(xp1_ref, wk1_ref, B * 9, m1_ref, r1_ref, r1t_ref,
                        g1_ref, be1_ref, cb1_ref, float(B * 7 * 7))
    xp2_ref[...] = jnp.dot(s1s_ref[...], a1, preferred_element_type=f32)   # (B*16, 16*16)

    # deconv2 (16->8, s=2, p=1, op=1) + BN(8) + ReLU; scatter into xp3.
    a2 = deconv_bn_relu(xp2_ref, wk2_ref, B * 16, m2_ref, r2_ref, r2t_ref,
                        g2_ref, be2_ref, cb2_ref, float(B * 14 * 14))
    xp3_ref[...] = jnp.dot(s2s_ref[...], a2, preferred_element_type=f32)   # (B*30, 30*8)

    # deconv3 (8->1, s=2, p=1, op=1) + bias + sigmoid.  Output is lane-dense:
    # rows = (b, oh), lanes = ow  ->  (B*28, 28).
    xp3 = xp3_ref[...]
    rows_out = B * 30 - 2
    y0 = jnp.dot(xp3, wk3_ref[0], preferred_element_type=f32)
    y1 = jnp.dot(xp3, wk3_ref[1], preferred_element_type=f32)
    y2 = jnp.dot(xp3, wk3_ref[2], preferred_element_type=f32)
    a3 = y0[0:rows_out, :] + y1[1:rows_out + 1, :] + y2[2:rows_out + 2, :]
    out = jnp.dot(s3g_ref[...], a3, preferred_element_type=f32) + cb3_ref[...]
    o_ref[...] = jax.nn.sigmoid(out)


# ---------------------------------------------------------------------------
# Offline (parameter-only) preprocessing: fold permutations / zero-insert into
# the weights so the kernel only ever does matmuls + elementwise on VMEM data.
# ---------------------------------------------------------------------------
def prepare_operands(params):
    f32 = np.float32
    p = {k: np.asarray(v, f32) for k, v in params.items()}
    ops = {}

    # Linear 1 (PyTorch stores (out, in)):
    ops["w1"] = jnp.asarray(p["w1"].T)                 # (D, 128)
    ops["b1"] = jnp.asarray(p["b1"][None, :])          # (1, 128)

    # Linear 2 folded with Unflatten (c,i,j order) -> NHWC and deconv1's W-axis
    # zero-insert/pad: column layout of w2s[i] is (wp1 = 2 + 2j, c).
    w2 = p["w2"].reshape(32, 3, 3, 128)                # [c, i, j, k]
    b2 = p["b2"].reshape(32, 3, 3)                     # [c, i, j]
    w2s = np.zeros((3, 128, 9, 32), f32)
    b2s = np.zeros((3, 1, 9, 32), f32)
    for i in range(3):
        for j in range(3):
            w2s[i, :, 2 + 2 * j, :] = w2[:, i, j, :].T
            b2s[i, 0, 2 + 2 * j, :] = b2[:, i, j]
    ops["w2s"] = jnp.asarray(w2s.reshape(3, 128, 9 * 32))
    ops["b2s"] = jnp.asarray(b2s.reshape(3, 1, 9 * 32))

    # Banded-Toeplitz matrices for each ConvTranspose2d.  Row layout = current
    # layer's padded/upsampled (wp, cin) lanes; column layout = NEXT layer's
    # padded/upsampled (wp_next = 1 + 2*ow, cout) lanes (dense ow for the last).
    def banded(w_t, wp_in, n_ow, out_groups, pos):
        cin, cout = w_t.shape[0], w_t.shape[1]
        wc = np.flip(w_t, axis=(2, 3)).transpose(2, 3, 0, 1)      # [kh, kw, ci, co]
        wk = np.zeros((3, wp_in, cin, out_groups, cout), f32)
        for kh in range(3):
            for ow in range(n_ow):
                for kw in range(3):
                    wk[kh, ow + kw, :, pos(ow), :] = wc[kh, kw]
        return jnp.asarray(wk.reshape(3, wp_in * cin, out_groups * cout))

    ops["wk1"] = banded(p["wt1"], 9, 7, 16, lambda ow: 1 + 2 * ow)     # (3, 288, 256)
    ops["wk2"] = banded(p["wt2"], 16, 14, 30, lambda ow: 1 + 2 * ow)   # (3, 256, 240)
    ops["wk3"] = banded(p["wt3"], 30, 28, 28, lambda ow: ow)           # (3, 240, 28)

    # Lane -> channel grouping matrices for the BN statistics (and their
    # transposes to expand per-channel affine back to the interleaved lanes).
    def group_mat(out_groups, cout, n_ow, pos):
        r = np.zeros((out_groups, cout, cout), f32)
        for ow in range(n_ow):
            r[pos(ow)] = np.eye(cout, dtype=f32)
        return r.reshape(out_groups * cout, cout)

    r1 = group_mat(16, 16, 7, lambda ow: 1 + 2 * ow)   # (256, 16)
    r2 = group_mat(30, 8, 14, lambda ow: 1 + 2 * ow)   # (240, 8)
    ops["r1"], ops["r1t"] = jnp.asarray(r1), jnp.asarray(r1.T)
    ops["r2"], ops["r2t"] = jnp.asarray(r2), jnp.asarray(r2.T)

    # BatchNorm affine + conv biases.
    ops["g1"] = jnp.asarray(p["g1"][None, :]);  ops["be1"] = jnp.asarray(p["be1"][None, :])
    ops["g2"] = jnp.asarray(p["g2"][None, :]);  ops["be2"] = jnp.asarray(p["be2"][None, :])
    ops["cb1"] = jnp.asarray(p["cb1"][None, :])
    ops["cb2"] = jnp.asarray(p["cb2"][None, :])
    ops["cb3"] = jnp.asarray(p["cb3"].reshape(1, 1))
    return ops


def _batch_matrices(B):
    """Batch-size-dependent 0/1 scatter/gather matrices and row-validity masks
    (trace-time constants; folded by XLA)."""
    f32 = np.float32
    s0 = np.zeros((3, B * 9, B), f32)
    for i in range(3):
        for b in range(B):
            s0[i, b * 9 + 2 + 2 * i, b] = 1.0
    s1s = np.zeros((B * 16, B * 9 - 2), f32)          # layer1 out -> xp2 rows (H zero-insert)
    for b in range(B):
        for oh in range(7):
            s1s[b * 16 + 1 + 2 * oh, b * 9 + oh] = 1.0
    s2s = np.zeros((B * 30, B * 16 - 2), f32)         # layer2 out -> xp3 rows
    for b in range(B):
        for oh in range(14):
            s2s[b * 30 + 1 + 2 * oh, b * 16 + oh] = 1.0
    s3g = np.zeros((B * 28, B * 30 - 2), f32)         # gather valid rows of the final layer
    for b in range(B):
        for oh in range(28):
            s3g[b * 28 + oh, b * 30 + oh] = 1.0
    m1 = np.zeros((1, B * 9 - 2), f32)
    for r in range(B * 9 - 2):
        if r % 9 < 7:
            m1[0, r] = 1.0
    m2 = np.zeros((1, B * 16 - 2), f32)
    for r in range(B * 16 - 2):
        if r % 16 < 14:
            m2[0, r] = 1.0
    return tuple(jnp.asarray(a) for a in (s0, s1s, s2s, s3g, m1, m2))


def decoder_forward(x, ops):
    B = x.shape[0]
    s0, s1s, s2s, s3g, m1, m2 = _batch_matrices(B)
    args = (x, ops["w1"], ops["b1"], ops["w2s"], ops["b2s"], s0,
            ops["wk1"], ops["wk2"], ops["wk3"],
            ops["r1"], ops["r1t"], ops["r2"], ops["r2t"],
            ops["g1"], ops["be1"], ops["cb1"],
            ops["g2"], ops["be2"], ops["cb2"], ops["cb3"],
            s1s, s2s, s3g, m1, m2)
    out2d = pl.pallas_call(
        _decoder_kernel,
        out_shape=jax.ShapeDtypeStruct((B * 28, 28), jnp.float32),
        in_specs=[pl.BlockSpec(memory_space=pltpu.MemorySpace.VMEM)] * len(args),
        out_specs=pl.BlockSpec(memory_space=pltpu.MemorySpace.VMEM),
        scratch_shapes=[
            pltpu.VMEM((B * 9, 9 * 32), jnp.float32),    # padded/upsampled input of deconv1
            pltpu.VMEM((B * 16, 16 * 16), jnp.float32),  # ... of deconv2
            pltpu.VMEM((B * 30, 30 * 8), jnp.float32),   # ... of deconv3
        ],
    )(*args)
    return out2d.reshape(B, 1, 28, 28)                   # NCHW, free reshape


# ---------------------------------------------------------------------------
# Deterministic parameter init (PyTorch layouts)
# ---------------------------------------------------------------------------
def _uniform(key, shape, fan_in):
    b = 1.0 / math.sqrt(fan_in)
    return jax.random.uniform(key, shape, jnp.float32, -b, b)


def init_params(key, encoded_space_dim):
    ks = jax.random.split(key, 10)
    D = encoded_space_dim
    p = {}
    p["w1"], p["b1"] = _uniform(ks[0], (128, D), D), _uniform(ks[1], (128,), D)
    p["w2"], p["b2"] = _uniform(ks[2], (288, 128), 128), _uniform(ks[3], (288,), 128)
    # ConvTranspose2d weights in PyTorch layout (Cin, Cout, K, K)
    p["wt1"], p["cb1"] = _uniform(ks[4], (32, 16, 3, 3), 32 * 9), _uniform(ks[5], (16,), 32 * 9)
    p["wt2"], p["cb2"] = _uniform(ks[6], (16, 8, 3, 3), 16 * 9), _uniform(ks[7], (8,), 16 * 9)
    p["wt3"], p["cb3"] = _uniform(ks[8], (8, 1, 3, 3), 8 * 9), _uniform(ks[9], (1,), 8 * 9)
    # BatchNorm2d affine (PyTorch defaults).  Training-mode batch statistics are
    # used in the kernel, matching the nn.Module's default forward behavior.
    p["g1"], p["be1"] = jnp.ones((16,), jnp.float32), jnp.zeros((16,), jnp.float32)
    p["g2"], p["be2"] = jnp.ones((8,), jnp.float32), jnp.zeros((8,), jnp.float32)
    return p


if __name__ == "__main__":
    key = jax.random.PRNGKey(0)
    pkey, xkey = jax.random.split(key)
    encoded_space_dim, fc2_input_dim = 4, 128   # fc2_input_dim unused by the module's forward
    B = 8
    params = init_params(pkey, encoded_space_dim)
    ops = prepare_operands(params)
    x = jax.random.normal(xkey, (B, encoded_space_dim), jnp.float32)

    fwd = jax.jit(lambda xx: decoder_forward(xx, ops))
    out = jax.block_until_ready(fwd(x))

    assert out.shape == (B, 1, 28, 28), out.shape
    assert bool(jnp.all(jnp.isfinite(out)))
    assert bool(jnp.all((out >= 0.0) & (out <= 1.0)))   # sigmoid range
    print("KERNEL_OK")
</pallas_src>

<mosaic_0001>
module attributes {stable_mosaic.version = 11 : i64} {
  func.func @_decoder_kernel(%arg0: memref<8x4xf32, #tpu.memory_space<vmem>>, %arg1: memref<4x128xf32, #tpu.memory_space<vmem>>, %arg2: memref<1x128xf32, #tpu.memory_space<vmem>>, %arg3: memref<3x128x288xf32, #tpu.memory_space<vmem>>, %arg4: memref<3x1x288xf32, #tpu.memory_space<vmem>>, %arg5: memref<3x72x8xf32, #tpu.memory_space<vmem>>, %arg6: memref<3x288x256xf32, #tpu.memory_space<vmem>>, %arg7: memref<3x256x240xf32, #tpu.memory_space<vmem>>, %arg8: memref<3x240x28xf32, #tpu.memory_space<vmem>>, %arg9: memref<256x16xf32, #tpu.memory_space<vmem>>, %arg10: memref<16x256xf32, #tpu.memory_space<vmem>>, %arg11: memref<240x8xf32, #tpu.memory_space<vmem>>, %arg12: memref<8x240xf32, #tpu.memory_space<vmem>>, %arg13: memref<1x16xf32, #tpu.memory_space<vmem>>, %arg14: memref<1x16xf32, #tpu.memory_space<vmem>>, %arg15: memref<1x16xf32, #tpu.memory_space<vmem>>, %arg16: memref<1x8xf32, #tpu.memory_space<vmem>>, %arg17: memref<1x8xf32, #tpu.memory_space<vmem>>, %arg18: memref<1x8xf32, #tpu.memory_space<vmem>>, %arg19: memref<1x1xf32, #tpu.memory_space<vmem>>, %arg20: memref<128x70xf32, #tpu.memory_space<vmem>>, %arg21: memref<240x126xf32, #tpu.memory_space<vmem>>, %arg22: memref<224x238xf32, #tpu.memory_space<vmem>>, %arg23: memref<1x70xf32, #tpu.memory_space<vmem>>, %arg24: memref<1x126xf32, #tpu.memory_space<vmem>>, %arg25: memref<224x28xf32, #tpu.memory_space<vmem>>, %arg26: memref<72x288xf32, #tpu.memory_space<vmem>>, %arg27: memref<128x256xf32, #tpu.memory_space<vmem>>, %arg28: memref<240x240xf32, #tpu.memory_space<vmem>>) attributes {dimension_semantics = [], scalar_prefetch = 0 : i64, scratch_operands = 3 : i64, tpu.core_type = #tpu.core_type<tc>} {
    %c0 = arith.constant 0 : index
    %c0_0 = arith.constant 0 : index
    %0 = vector.load %arg0[%c0, %c0_0] : memref<8x4xf32, #tpu.memory_space<vmem>>, vector<8x4xf32>
    %c0_1 = arith.constant 0 : index
    %c0_2 = arith.constant 0 : index
    %1 = vector.load %arg1[%c0_1, %c0_2] : memref<4x128xf32, #tpu.memory_space<vmem>>, vector<4x128xf32>
    %cst = arith.constant dense<0.000000e+00> : vector<8x128xf32>
    %2 = tpu.matmul %0, %1, %cst {dimension_numbers = #tpu.dot_dimension_numbers<[1], [0], [0], [1], [0, 0, 1, 1], [], []>} : vector<8x4xf32>, vector<4x128xf32>, vector<8x128xf32> -> vector<8x128xf32>
    %c0_3 = arith.constant 0 : index
    %c0_4 = arith.constant 0 : index
    %3 = vector.load %arg2[%c0_3, %c0_4] : memref<1x128xf32, #tpu.memory_space<vmem>>, vector<1x128xf32>
    %4 = vector.broadcast %3 : vector<1x128xf32> to vector<8x128xf32>
    %5 = arith.addf %2, %4 : vector<8x128xf32>
    %cst_5 = arith.constant 0.000000e+00 : f32
    %6 = vector.broadcast %cst_5 : f32 to vector<8x128xf32>
    %7 = arith.maximumf %5, %6 : vector<8x128xf32>
    %c0_6 = arith.constant 0 : index
    %c0_7 = arith.constant 0 : index
    %c0_8 = arith.constant 0 : index
    %8 = vector.load %arg3[%c0_6, %c0_7, %c0_8] : memref<3x128x288xf32, #tpu.memory_space<vmem>>, vector<1x128x288xf32>
    %9 = vector.shape_cast %8 : vector<1x128x288xf32> to vector<128x288xf32>
    %cst_9 = arith.constant dense<0.000000e+00> : vector<8x288xf32>
    %10 = tpu.matmul %7, %9, %cst_9 {dimension_numbers = #tpu.dot_dimension_numbers<[1], [0], [0], [1], [0, 0, 1, 1], [], []>} : vector<8x128xf32>, vector<128x288xf32>, vector<8x288xf32> -> vector<8x288xf32>
    %c0_10 = arith.constant 0 : index
    %c0_11 = arith.constant 0 : index
    %c0_12 = arith.constant 0 : index
    %11 = vector.load %arg4[%c0_10, %c0_11, %c0_12] : memref<3x1x288xf32, #tpu.memory_space<vmem>>, vector<1x1x288xf32>
    %12 = vector.shape_cast %11 : vector<1x1x288xf32> to vector<1x288xf32>
    %13 = vector.broadcast %12 : vector<1x288xf32> to vector<8x288xf32>
    %14 = arith.addf %10, %13 : vector<8x288xf32>
    %cst_13 = arith.constant 0.000000e+00 : f32
    %15 = vector.broadcast %cst_13 : f32 to vector<8x288xf32>
    %16 = arith.maximumf %14, %15 : vector<8x288xf32>
    %c0_14 = arith.constant 0 : index
    %c0_15 = arith.constant 0 : index
    %c0_16 = arith.constant 0 : index
    %17 = vector.load %arg5[%c0_14, %c0_15, %c0_16] : memref<3x72x8xf32, #tpu.memory_space<vmem>>, vector<1x72x8xf32>
    %18 = vector.shape_cast %17 : vector<1x72x8xf32> to vector<72x8xf32>
    %cst_17 = arith.constant dense<0.000000e+00> : vector<72x288xf32>
    %19 = tpu.matmul %18, %16, %cst_17 {dimension_numbers = #tpu.dot_dimension_numbers<[1], [0], [0], [1], [0, 0, 1, 1], [], []>} : vector<72x8xf32>, vector<8x288xf32>, vector<72x288xf32> -> vector<72x288xf32>
    %c1 = arith.constant 1 : index
    %c0_18 = arith.constant 0 : index
    %c0_19 = arith.constant 0 : index
    %20 = vector.load %arg3[%c1, %c0_18, %c0_19] : memref<3x128x288xf32, #tpu.memory_space<vmem>>, vector<1x128x288xf32>
    %21 = vector.shape_cast %20 : vector<1x128x288xf32> to vector<128x288xf32>
    %cst_20 = arith.constant dense<0.000000e+00> : vector<8x288xf32>
    %22 = tpu.matmul %7, %21, %cst_20 {dimension_numbers = #tpu.dot_dimension_numbers<[1], [0], [0], [1], [0, 0, 1, 1], [], []>} : vector<8x128xf32>, vector<128x288xf32>, vector<8x288xf32> -> vector<8x288xf32>
    %c1_21 = arith.constant 1 : index
    %c0_22 = arith.constant 0 : index
    %c0_23 = arith.constant 0 : index
    %23 = vector.load %arg4[%c1_21, %c0_22, %c0_23] : memref<3x1x288xf32, #tpu.memory_space<vmem>>, vector<1x1x288xf32>
    %24 = vector.shape_cast %23 : vector<1x1x288xf32> to vector<1x288xf32>
    %25 = vector.broadcast %24 : vector<1x288xf32> to vector<8x288xf32>
    %26 = arith.addf %22, %25 : vector<8x288xf32>
    %cst_24 = arith.constant 0.000000e+00 : f32
    %27 = vector.broadcast %cst_24 : f32 to vector<8x288xf32>
    %28 = arith.maximumf %26, %27 : vector<8x288xf32>
    %c1_25 = arith.constant 1 : index
    %c0_26 = arith.constant 0 : index
    %c0_27 = arith.constant 0 : index
    %29 = vector.load %arg5[%c1_25, %c0_26, %c0_27] : memref<3x72x8xf32, #tpu.memory_space<vmem>>, vector<1x72x8xf32>
    %30 = vector.shape_cast %29 : vector<1x72x8xf32> to vector<72x8xf32>
    %cst_28 = arith.constant dense<0.000000e+00> : vector<72x288xf32>
    %31 = tpu.matmul %30, %28, %cst_28 {dimension_numbers = #tpu.dot_dimension_numbers<[1], [0], [0], [1], [0, 0, 1, 1], [], []>} : vector<72x8xf32>, vector<8x288xf32>, vector<72x288xf32> -> vector<72x288xf32>
    %32 = arith.addf %19, %31 : vector<72x288xf32>
    %c2 = arith.constant 2 : index
    %c0_29 = arith.constant 0 : index
    %c0_30 = arith.constant 0 : index
    %33 = vector.load %arg3[%c2, %c0_29, %c0_30] : memref<3x128x288xf32, #tpu.memory_space<vmem>>, vector<1x128x288xf32>
    %34 = vector.shape_cast %33 : vector<1x128x288xf32> to vector<128x288xf32>
    %cst_31 = arith.constant dense<0.000000e+00> : vector<8x288xf32>
    %35 = tpu.matmul %7, %34, %cst_31 {dimension_numbers = #tpu.dot_dimension_numbers<[1], [0], [0], [1], [0, 0, 1, 1], [], []>} : vector<8x128xf32>, vector<128x288xf32>, vector<8x288xf32> -> vector<8x288xf32>
    %c2_32 = arith.constant 2 : index
    %c0_33 = arith.constant 0 : index
    %c0_34 = arith.constant 0 : index
    %36 = vector.load %arg4[%c2_32, %c0_33, %c0_34] : memref<3x1x288xf32, #tpu.memory_space<vmem>>, vector<1x1x288xf32>
    %37 = vector.shape_cast %36 : vector<1x1x288xf32> to vector<1x288xf32>
    %38 = vector.broadcast %37 : vector<1x288xf32> to vector<8x288xf32>
    %39 = arith.addf %35, %38 : vector<8x288xf32>
    %cst_35 = arith.constant 0.000000e+00 : f32
    %40 = vector.broadcast %cst_35 : f32 to vector<8x288xf32>
    %41 = arith.maximumf %39, %40 : vector<8x288xf32>
    %c2_36 = arith.constant 2 : index
    %c0_37 = arith.constant 0 : index
    %c0_38 = arith.constant 0 : index
    %42 = vector.load %arg5[%c2_36, %c0_37, %c0_38] : memref<3x72x8xf32, #tpu.memory_space<vmem>>, vector<1x72x8xf32>
    %43 = vector.shape_cast %42 : vector<1x72x8xf32> to vector<72x8xf32>
    %cst_39 = arith.constant dense<0.000000e+00> : vector<72x288xf32>
    %44 = tpu.matmul %43, %41, %cst_39 {dimension_numbers = #tpu.dot_dimension_numbers<[1], [0], [0], [1], [0, 0, 1, 1], [], []>} : vector<72x8xf32>, vector<8x288xf32>, vector<72x288xf32> -> vector<72x288xf32>
    %45 = arith.addf %32, %44 : vector<72x288xf32>
    %c0_40 = arith.constant 0 : index
    %c0_41 = arith.constant 0 : index
    %46 = vector.load %arg26[%c0_40, %c0_41] : memref<72x288xf32, #tpu.memory_space<vmem>>, vector<72x288xf32>
    tpu.vector_store %arg26[%c0_40, %c0_41], %45 {strides = array<i32>} : memref<72x288xf32, #tpu.memory_space<vmem>>, vector<72x288xf32>,
    %c0_42 = arith.constant 0 : index
    %c0_43 = arith.constant 0 : index
    %47 = vector.load %arg26[%c0_42, %c0_43] : memref<72x288xf32, #tpu.memory_space<vmem>>, vector<72x288xf32>
    %c0_44 = arith.constant 0 : index
    %c0_45 = arith.constant 0 : index
    %c0_46 = arith.constant 0 : index
    %48 = vector.load %arg6[%c0_44, %c0_45, %c0_46] : memref<3x288x256xf32, #tpu.memory_space<vmem>>, vector<1x288x256xf32>
    %49 = vector.shape_cast %48 : vector<1x288x256xf32> to vector<288x256xf32>
    %cst_47 = arith.constant dense<0.000000e+00> : vector<72x256xf32>
    %50 = tpu.matmul %47, %49, %cst_47 {dimension_numbers = #tpu.dot_dimension_numbers<[1], [0], [0], [1], [0, 0, 1, 1], [], []>} : vector<72x288xf32>, vector<288x256xf32>, vector<72x256xf32> -> vector<72x256xf32>
    %c1_48 = arith.constant 1 : index
    %c0_49 = arith.constant 0 : index
    %c0_50 = arith.constant 0 : index
    %51 = vector.load %arg6[%c1_48, %c0_49, %c0_50] : memref<3x288x256xf32, #tpu.memory_space<vmem>>, vector<1x288x256xf32>
    %52 = vector.shape_cast %51 : vector<1x288x256xf32> to vector<288x256xf32>
    %cst_51 = arith.constant dense<0.000000e+00> : vector<72x256xf32>
    %53 = tpu.matmul %47, %52, %cst_51 {dimension_numbers = #tpu.dot_dimension_numbers<[1], [0], [0], [1], [0, 0, 1, 1], [], []>} : vector<72x288xf32>, vector<288x256xf32>, vector<72x256xf32> -> vector<72x256xf32>
    %c2_52 = arith.constant 2 : index
    %c0_53 = arith.constant 0 : index
    %c0_54 = arith.constant 0 : index
    %54 = vector.load %arg6[%c2_52, %c0_53, %c0_54] : memref<3x288x256xf32, #tpu.memory_space<vmem>>, vector<1x288x256xf32>
    %55 = vector.shape_cast %54 : vector<1x288x256xf32> to vector<288x256xf32>
    %cst_55 = arith.constant dense<0.000000e+00> : vector<72x256xf32>
    %56 = tpu.matmul %47, %55, %cst_55 {dimension_numbers = #tpu.dot_dimension_numbers<[1], [0], [0], [1], [0, 0, 1, 1], [], []>} : vector<72x288xf32>, vector<288x256xf32>, vector<72x256xf32> -> vector<72x256xf32>
    %57 = vector.extract_strided_slice %50 {offsets = [0, 0], sizes = [70, 256], strides = [1, 1]} : vector<72x256xf32> to vector<70x256xf32>
    %58 = vector.extract_strided_slice %53 {offsets = [1, 0], sizes = [70, 256], strides = [1, 1]} : vector<72x256xf32> to vector<70x256xf32>
    %59 = arith.addf %57, %58 : vector<70x256xf32>
    %60 = vector.extract_strided_slice %56 {offsets = [2, 0], sizes = [70, 256], strides = [1, 1]} : vector<72x256xf32> to vector<70x256xf32>
    %61 = arith.addf %59, %60 : vector<70x256xf32>
    %c0_56 = arith.constant 0 : index
    %c0_57 = arith.constant 0 : index
    %62 = vector.load %arg23[%c0_56, %c0_57] : memref<1x70xf32, #tpu.memory_space<vmem>>, vector<1x70xf32>
    %cst_58 = arith.constant dense<0.000000e+00> : vector<1x256xf32>
    %63 = tpu.matmul %62, %61, %cst_58 {dimension_numbers = #tpu.dot_dimension_numbers<[1], [0], [0], [1], [0, 0, 1, 1], [], []>} : vector<1x70xf32>, vector<70x256xf32>, vector<1x256xf32> -> vector<1x256xf32>
    %64 = arith.mulf %61, %61 : vector<70x256xf32>
    %cst_59 = arith.constant dense<0.000000e+00> : vector<1x256xf32>
    %65 = tpu.matmul %62, %64, %cst_59 {dimension_numbers = #tpu.dot_dimension_numbers<[1], [0], [0], [1], [0, 0, 1, 1], [], []>} : vector<1x70xf32>, vector<70x256xf32>, vector<1x256xf32> -> vector<1x256xf32>
    %c0_60 = arith.constant 0 : index
    %c0_61 = arith.constant 0 : index
    %66 = vector.load %arg9[%c0_60, %c0_61] : memref<256x16xf32, #tpu.memory_space<vmem>>, vector<256x16xf32>
    %cst_62 = arith.constant dense<0.000000e+00> : vector<1x16xf32>
    %67 = tpu.matmul %63, %66, %cst_62 {dimension_numbers = #tpu.dot_dimension_numbers<[1], [0], [0], [1], [0, 0, 1, 1], [], []>} : vector<1x256xf32>, vector<256x16xf32>, vector<1x16xf32> -> vector<1x16xf32>
    %c0_63 = arith.constant 0 : index
    %c0_64 = arith.constant 0 : index
    %68 = vector.load %arg9[%c0_63, %c0_64] : memref<256x16xf32, #tpu.memory_space<vmem>>, vector<256x16xf32>
    %cst_65 = arith.constant dense<0.000000e+00> : vector<1x16xf32>
    %69 = tpu.matmul %65, %68, %cst_65 {dimension_numbers = #tpu.dot_dimension_numbers<[1], [0], [0], [1], [0, 0, 1, 1], [], []>} : vector<1x256xf32>, vector<256x16xf32>, vector<1x16xf32> -> vector<1x16xf32>
    %cst_66 = arith.constant 3.920000e+02 : f32
    %70 = vector.broadcast %cst_66 : f32 to vector<1x16xf32>
    %71 = arith.divf %67, %70 : vector<1x16xf32>
    %cst_67 = arith.constant 3.920000e+02 : f32
    %72 = vector.broadcast %cst_67 : f32 to vector<1x16xf32>
    %73 = arith.divf %69, %72 : vector<1x16xf32>
    %74 = arith.mulf %71, %71 : vector<1x16xf32>
    %75 = arith.subf %73, %74 : vector<1x16xf32>
    %cst_68 = arith.constant 0.000000e+00 : f32
    %76 = vector.broadcast %cst_68 : f32 to vector<1x16xf32>
    %77 = arith.maximumf %75, %76 : vector<1x16xf32>
    %c0_69 = arith.constant 0 : index
    %c0_70 = arith.constant 0 : index
    %78 = vector.load %arg15[%c0_69, %c0_70] : memref<1x16xf32, #tpu.memory_space<vmem>>, vector<1x16xf32>
    %79 = arith.addf %71, %78 : vector<1x16xf32>
    %c0_71 = arith.constant 0 : index
    %c0_72 = arith.constant 0 : index
    %80 = vector.load %arg13[%c0_71, %c0_72] : memref<1x16xf32, #tpu.memory_space<vmem>>, vector<1x16xf32>
    %cst_73 = arith.constant 9.99999974E-6 : f32
    %81 = vector.broadcast %cst_73 : f32 to vector<1x16xf32>
    %82 = arith.addf %77, %81 : vector<1x16xf32>
    %83 = math.rsqrt %82 : vector<1x16xf32>
    %84 = arith.mulf %80, %83 : vector<1x16xf32>
    %c0_74 = arith.constant 0 : index
    %c0_75 = arith.constant 0 : index
    %85 = vector.load %arg14[%c0_74, %c0_75] : memref<1x16xf32, #tpu.memory_space<vmem>>, vector<1x16xf32>
    %86 = arith.mulf %79, %84 : vector<1x16xf32>
    %87 = arith.subf %85, %86 : vector<1x16xf32>
    %c0_76 = arith.constant 0 : index
    %c0_77 = arith.constant 0 : index
    %88 = vector.load %arg10[%c0_76, %c0_77] : memref<16x256xf32, #tpu.memory_space<vmem>>, vector<16x256xf32>
    %cst_78 = arith.constant dense<0.000000e+00> : vector<1x256xf32>
    %89 = tpu.matmul %84, %88, %cst_78 {dimension_numbers = #tpu.dot_dimension_numbers<[1], [0], [0], [1], [0, 0, 1, 1], [], []>} : vector<1x16xf32>, vector<16x256xf32>, vector<1x256xf32> -> vector<1x256xf32>
    %c0_79 = arith.constant 0 : index
    %c0_80 = arith.constant 0 : index
    %90 = vector.load %arg10[%c0_79, %c0_80] : memref<16x256xf32, #tpu.memory_space<vmem>>, vector<16x256xf32>
    %cst_81 = arith.constant dense<0.000000e+00> : vector<1x256xf32>
    %91 = tpu.matmul %87, %90, %cst_81 {dimension_numbers = #tpu.dot_dimension_numbers<[1], [0], [0], [1], [0, 0, 1, 1], [], []>} : vector<1x16xf32>, vector<16x256xf32>, vector<1x256xf32> -> vector<1x256xf32>
    %c0_82 = arith.constant 0 : index
    %c0_83 = arith.constant 0 : index
    %92 = vector.load %arg15[%c0_82, %c0_83] : memref<1x16xf32, #tpu.memory_space<vmem>>, vector<1x16xf32>
    %c0_84 = arith.constant 0 : index
    %c0_85 = arith.constant 0 : index
    %93 = vector.load %arg10[%c0_84, %c0_85] : memref<16x256xf32, #tpu.memory_space<vmem>>, vector<16x256xf32>
    %cst_86 = arith.constant dense<0.000000e+00> : vector<1x256xf32>
    %94 = tpu.matmul %92, %93, %cst_86 {dimension_numbers = #tpu.dot_dimension_numbers<[1], [0], [0], [1], [0, 0, 1, 1], [], []>} : vector<1x16xf32>, vector<16x256xf32>, vector<1x256xf32> -> vector<1x256xf32>
    %95 = vector.broadcast %94 : vector<1x256xf32> to vector<70x256xf32>
    %96 = arith.addf %61, %95 : vector<70x256xf32>
    %97 = vector.broadcast %89 : vector<1x256xf32> to vector<70x256xf32>
    %98 = arith.mulf %96, %97 : vector<70x256xf32>
    %99 = vector.broadcast %91 : vector<1x256xf32> to vector<70x256xf32>
    %100 = arith.addf %98, %99 : vector<70x256xf32>
    %cst_87 = arith.constant 0.000000e+00 : f32
    %101 = vector.broadcast %cst_87 : f32 to vector<70x256xf32>
    %102 = arith.maximumf %100, %101 : vector<70x256xf32>
    %c0_88 = arith.constant 0 : index
    %c0_89 = arith.constant 0 : index
    %103 = vector.load %arg20[%c0_88, %c0_89] : memref<128x70xf32, #tpu.memory_space<vmem>>, vector<128x70xf32>
    %cst_90 = arith.constant dense<0.000000e+00> : vector<128x256xf32>
    %104 = tpu.matmul %103, %102, %cst_90 {dimension_numbers = #tpu.dot_dimension_numbers<[1], [0], [0], [1], [0, 0, 1, 1], [], []>} : vector<128x70xf32>, vector<70x256xf32>, vector<128x256xf32> -> vector<128x256xf32>
    %c0_91 = arith.constant 0 : index
    %c0_92 = arith.constant 0 : index
    %105 = vector.load %arg27[%c0_91, %c0_92] : memref<128x256xf32, #tpu.memory_space<vmem>>, vector<128x256xf32>
    tpu.vector_store %arg27[%c0_91, %c0_92], %104 {strides = array<i32>} : memref<128x256xf32, #tpu.memory_space<vmem>>, vector<128x256xf32>,
    %c0_93 = arith.constant 0 : index
    %c0_94 = arith.constant 0 : index
    %106 = vector.load %arg27[%c0_93, %c0_94] : memref<128x256xf32, #tpu.memory_space<vmem>>, vector<128x256xf32>
    %c0_95 = arith.constant 0 : index
    %c0_96 = arith.constant 0 : index
    %c0_97 = arith.constant 0 : index
    %107 = vector.load %arg7[%c0_95, %c0_96, %c0_97] : memref<3x256x240xf32, #tpu.memory_space<vmem>>, vector<1x256x240xf32>
    %108 = vector.shape_cast %107 : vector<1x256x240xf32> to vector<256x240xf32>
    %cst_98 = arith.constant dense<0.000000e+00> : vector<128x240xf32>
    %109 = tpu.matmul %106, %108, %cst_98 {dimension_numbers = #tpu.dot_dimension_numbers<[1], [0], [0], [1], [0, 0, 1, 1], [], []>} : vector<128x256xf32>, vector<256x240xf32>, vector<128x240xf32> -> vector<128x240xf32>
    %c1_99 = arith.constant 1 : index
    %c0_100 = arith.constant 0 : index
    %c0_101 = arith.constant 0 : index
    %110 = vector.load %arg7[%c1_99, %c0_100, %c0_101] : memref<3x256x240xf32, #tpu.memory_space<vmem>>, vector<1x256x240xf32>
    %111 = vector.shape_cast %110 : vector<1x256x240xf32> to vector<256x240xf32>
    %cst_102 = arith.constant dense<0.000000e+00> : vector<128x240xf32>
    %112 = tpu.matmul %106, %111, %cst_102 {dimension_numbers = #tpu.dot_dimension_numbers<[1], [0], [0], [1], [0, 0, 1, 1], [], []>} : vector<128x256xf32>, vector<256x240xf32>, vector<128x240xf32> -> vector<128x240xf32>
    %c2_103 = arith.constant 2 : index
    %c0_104 = arith.constant 0 : index
    %c0_105 = arith.constant 0 : index
    %113 = vector.load %arg7[%c2_103, %c0_104, %c0_105] : memref<3x256x240xf32, #tpu.memory_space<vmem>>, vector<1x256x240xf32>
    %114 = vector.shape_cast %113 : vector<1x256x240xf32> to vector<256x240xf32>
    %cst_106 = arith.constant dense<0.000000e+00> : vector<128x240xf32>
    %115 = tpu.matmul %106, %114, %cst_106 {dimension_numbers = #tpu.dot_dimension_numbers<[1], [0], [0], [1], [0, 0, 1, 1], [], []>} : vector<128x256xf32>, vector<256x240xf32>, vector<128x240xf32> -> vector<128x240xf32>
    %116 = vector.extract_strided_slice %109 {offsets = [0, 0], sizes = [126, 240], strides = [1, 1]} : vector<128x240xf32> to vector<126x240xf32>
    %117 = vector.extract_strided_slice %112 {offsets = [1, 0], sizes = [126, 240], strides = [1, 1]} : vector<128x240xf32> to vector<126x240xf32>
    %118 = arith.addf %116, %117 : vector<126x240xf32>
    %119 = vector.extract_strided_slice %115 {offsets = [2, 0], sizes = [126, 240], strides = [1, 1]} : vector<128x240xf32> to vector<126x240xf32>
    %120 = arith.addf %118, %119 : vector<126x240xf32>
    %c0_107 = arith.constant 0 : index
    %c0_108 = arith.constant 0 : index
    %121 = vector.load %arg24[%c0_107, %c0_108] : memref<1x126xf32, #tpu.memory_space<vmem>>, vector<1x126xf32>
    %cst_109 = arith.constant dense<0.000000e+00> : vector<1x240xf32>
    %122 = tpu.matmul %121, %120, %cst_109 {dimension_numbers = #tpu.dot_dimension_numbers<[1], [0], [0], [1], [0, 0, 1, 1], [], []>} : vector<1x126xf32>, vector<126x240xf32>, vector<1x240xf32> -> vector<1x240xf32>
    %123 = arith.mulf %120, %120 : vector<126x240xf32>
    %cst_110 = arith.constant dense<0.000000e+00> : vector<1x240xf32>
    %124 = tpu.matmul %121, %123, %cst_110 {dimension_numbers = #tpu.dot_dimension_numbers<[1], [0], [0], [1], [0, 0, 1, 1], [], []>} : vector<1x126xf32>, vector<126x240xf32>, vector<1x240xf32> -> vector<1x240xf32>
    %c0_111 = arith.constant 0 : index
    %c0_112 = arith.constant 0 : index
    %125 = vector.load %arg11[%c0_111, %c0_112] : memref<240x8xf32, #tpu.memory_space<vmem>>, vector<240x8xf32>
    %cst_113 = arith.constant dense<0.000000e+00> : vector<1x8xf32>
    %126 = tpu.matmul %122, %125, %cst_113 {dimension_numbers = #tpu.dot_dimension_numbers<[1], [0], [0], [1], [0, 0, 1, 1], [], []>} : vector<1x240xf32>, vector<240x8xf32>, vector<1x8xf32> -> vector<1x8xf32>
    %c0_114 = arith.constant 0 : index
    %c0_115 = arith.constant 0 : index
    %127 = vector.load %arg11[%c0_114, %c0_115] : memref<240x8xf32, #tpu.memory_space<vmem>>, vector<240x8xf32>
    %cst_116 = arith.constant dense<0.000000e+00> : vector<1x8xf32>
    %128 = tpu.matmul %124, %127, %cst_116 {dimension_numbers = #tpu.dot_dimension_numbers<[1], [0], [0], [1], [0, 0, 1, 1], [], []>} : vector<1x240xf32>, vector<240x8xf32>, vector<1x8xf32> -> vector<1x8xf32>
    %cst_117 = arith.constant 1.568000e+03 : f32
    %129 = vector.broadcast %cst_117 : f32 to vector<1x8xf32>
    %130 = arith.divf %126, %129 : vector<1x8xf32>
    %cst_118 = arith.constant 1.568000e+03 : f32
    %131 = vector.broadcast %cst_118 : f32 to vector<1x8xf32>
    %132 = arith.divf %128, %131 : vector<1x8xf32>
    %133 = arith.mulf %130, %130 : vector<1x8xf32>
    %134 = arith.subf %132, %133 : vector<1x8xf32>
    %cst_119 = arith.constant 0.000000e+00 : f32
    %135 = vector.broadcast %cst_119 : f32 to vector<1x8xf32>
    %136 = arith.maximumf %134, %135 : vector<1x8xf32>
    %c0_120 = arith.constant 0 : index
    %c0_121 = arith.constant 0 : index
    %137 = vector.load %arg18[%c0_120, %c0_121] : memref<1x8xf32, #tpu.memory_space<vmem>>, vector<1x8xf32>
    %138 = arith.addf %130, %137 : vector<1x8xf32>
    %c0_122 = arith.constant 0 : index
    %c0_123 = arith.constant 0 : index
    %139 = vector.load %arg16[%c0_122, %c0_123] : memref<1x8xf32, #tpu.memory_space<vmem>>, vector<1x8xf32>
    %cst_124 = arith.constant 9.99999974E-6 : f32
    %140 = vector.broadcast %cst_124 : f32 to vector<1x8xf32>
    %141 = arith.addf %136, %140 : vector<1x8xf32>
    %142 = math.rsqrt %141 : vector<1x8xf32>
    %143 = arith.mulf %139, %142 : vector<1x8xf32>
    %c0_125 = arith.constant 0 : index
    %c0_126 = arith.constant 0 : index
    %144 = vector.load %arg17[%c0_125, %c0_126] : memref<1x8xf32, #tpu.memory_space<vmem>>, vector<1x8xf32>
    %145 = arith.mulf %138, %143 : vector<1x8xf32>
    %146 = arith.subf %144, %145 : vector<1x8xf32>
    %c0_127 = arith.constant 0 : index
    %c0_128 = arith.constant 0 : index
    %147 = vector.load %arg12[%c0_127, %c0_128] : memref<8x240xf32, #tpu.memory_space<vmem>>, vector<8x240xf32>
    %cst_129 = arith.constant dense<0.000000e+00> : vector<1x240xf32>
    %148 = tpu.matmul %143, %147, %cst_129 {dimension_numbers = #tpu.dot_dimension_numbers<[1], [0], [0], [1], [0, 0, 1, 1], [], []>} : vector<1x8xf32>, vector<8x240xf32>, vector<1x240xf32> -> vector<1x240xf32>
    %c0_130 = arith.constant 0 : index
    %c0_131 = arith.constant 0 : index
    %149 = vector.load %arg12[%c0_130, %c0_131] : memref<8x240xf32, #tpu.memory_space<vmem>>, vector<8x240xf32>
    %cst_132 = arith.constant dense<0.000000e+00> : vector<1x240xf32>
    %150 = tpu.matmul %146, %149, %cst_132 {dimension_numbers = #tpu.dot_dimension_numbers<[1], [0], [0], [1], [0, 0, 1, 1], [], []>} : vector<1x8xf32>, vector<8x240xf32>, vector<1x240xf32> -> vector<1x240xf32>
    %c0_133 = arith.constant 0 : index
    %c0_134 = arith.constant 0 : index
    %151 = vector.load %arg18[%c0_133, %c0_134] : memref<1x8xf32, #tpu.memory_space<vmem>>, vector<1x8xf32>
    %c0_135 = arith.constant 0 : index
    %c0_136 = arith.constant 0 : index
    %152 = vector.load %arg12[%c0_135, %c0_136] : memref<8x240xf32, #tpu.memory_space<vmem>>, vector<8x240xf32>
    %cst_137 = arith.constant dense<0.000000e+00> : vector<1x240xf32>
    %153 = tpu.matmul %151, %152, %cst_137 {dimension_numbers = #tpu.dot_dimension_numbers<[1], [0], [0], [1], [0, 0, 1, 1], [], []>} : vector<1x8xf32>, vector<8x240xf32>, vector<1x240xf32> -> vector<1x240xf32>
    %154 = vector.broadcast %153 : vector<1x240xf32> to vector<126x240xf32>
    %155 = arith.addf %120, %154 : vector<126x240xf32>
    %156 = vector.broadcast %148 : vector<1x240xf32> to vector<126x240xf32>
    %157 = arith.mulf %155, %156 : vector<126x240xf32>
    %158 = vector.broadcast %150 : vector<1x240xf32> to vector<126x240xf32>
    %159 = arith.addf %157, %158 : vector<126x240xf32>
    %cst_138 = arith.constant 0.000000e+00 : f32
    %160 = vector.broadcast %cst_138 : f32 to vector<126x240xf32>
    %161 = arith.maximumf %159, %160 : vector<126x240xf32>
    %c0_139 = arith.constant 0 : index
    %c0_140 = arith.constant 0 : index
    %162 = vector.load %arg21[%c0_139, %c0_140] : memref<240x126xf32, #tpu.memory_space<vmem>>, vector<240x126xf32>
    %cst_141 = arith.constant dense<0.000000e+00> : vector<240x240xf32>
    %163 = tpu.matmul %162, %161, %cst_141 {dimension_numbers = #tpu.dot_dimension_numbers<[1], [0], [0], [1], [0, 0, 1, 1], [], []>} : vector<240x126xf32>, vector<126x240xf32>, vector<240x240xf32> -> vector<240x240xf32>
    %c0_142 = arith.constant 0 : index
    %c0_143 = arith.constant 0 : index
    %164 = vector.load %arg28[%c0_142, %c0_143] : memref<240x240xf32, #tpu.memory_space<vmem>>, vector<240x240xf32>
    tpu.vector_store %arg28[%c0_142, %c0_143], %163 {strides = array<i32>} : memref<240x240xf32, #tpu.memory_space<vmem>>, vector<240x240xf32>,
    %c0_144 = arith.constant 0 : index
    %c0_145 = arith.constant 0 : index
    %165 = vector.load %arg28[%c0_144, %c0_145] : memref<240x240xf32, #tpu.memory_space<vmem>>, vector<240x240xf32>
    %c0_146 = arith.constant 0 : index
    %c0_147 = arith.constant 0 : index
    %c0_148 = arith.constant 0 : index
    %166 = vector.load %arg8[%c0_146, %c0_147, %c0_148] : memref<3x240x28xf32, #tpu.memory_space<vmem>>, vector<1x240x28xf32>
    %167 = vector.shape_cast %166 : vector<1x240x28xf32> to vector<240x28xf32>
    %cst_149 = arith.constant dense<0.000000e+00> : vector<240x28xf32>
    %168 = tpu.matmul %165, %167, %cst_149 {dimension_numbers = #tpu.dot_dimension_numbers<[1], [0], [0], [1], [0, 0, 1, 1], [], []>} : vector<240x240xf32>, vector<240x28xf32>, vector<240x28xf32> -> vector<240x28xf32>
    %c1_150 = arith.constant 1 : index
    %c0_151 = arith.constant 0 : index
    %c0_152 = arith.constant 0 : index
    %169 = vector.load %arg8[%c1_150, %c0_151, %c0_152] : memref<3x240x28xf32, #tpu.memory_space<vmem>>, vector<1x240x28xf32>
    %170 = vector.shape_cast %169 : vector<1x240x28xf32> to vector<240x28xf32>
    %cst_153 = arith.constant dense<0.000000e+00> : vector<240x28xf32>
    %171 = tpu.matmul %165, %170, %cst_153 {dimension_numbers = #tpu.dot_dimension_numbers<[1], [0], [0], [1], [0, 0, 1, 1], [], []>} : vector<240x240xf32>, vector<240x28xf32>, vector<240x28xf32> -> vector<240x28xf32>
    %c2_154 = arith.constant 2 : index
    %c0_155 = arith.constant 0 : index
    %c0_156 = arith.constant 0 : index
    %172 = vector.load %arg8[%c2_154, %c0_155, %c0_156] : memref<3x240x28xf32, #tpu.memory_space<vmem>>, vector<1x240x28xf32>
    %173 = vector.shape_cast %172 : vector<1x240x28xf32> to vector<240x28xf32>
    %cst_157 = arith.constant dense<0.000000e+00> : vector<240x28xf32>
    %174 = tpu.matmul %165, %173, %cst_157 {dimension_numbers = #tpu.dot_dimension_numbers<[1], [0], [0], [1], [0, 0, 1, 1], [], []>} : vector<240x240xf32>, vector<240x28xf32>, vector<240x28xf32> -> vector<240x28xf32>
    %175 = vector.extract_strided_slice %168 {offsets = [0, 0], sizes = [238, 28], strides = [1, 1]} : vector<240x28xf32> to vector<238x28xf32>
    %176 = vector.extract_strided_slice %171 {offsets = [1, 0], sizes = [238, 28], strides = [1, 1]} : vector<240x28xf32> to vector<238x28xf32>
    %177 = arith.addf %175, %176 : vector<238x28xf32>
    %178 = vector.extract_strided_slice %174 {offsets = [2, 0], sizes = [238, 28], strides = [1, 1]} : vector<240x28xf32> to vector<238x28xf32>
    %179 = arith.addf %177, %178 : vector<238x28xf32>
    %c0_158 = arith.constant 0 : index
    %c0_159 = arith.constant 0 : index
    %180 = vector.load %arg22[%c0_158, %c0_159] : memref<224x238xf32, #tpu.memory_space<vmem>>, vector<224x238xf32>
    %cst_160 = arith.constant dense<0.000000e+00> : vector<224x28xf32>
    %181 = tpu.matmul %180, %179, %cst_160 {dimension_numbers = #tpu.dot_dimension_numbers<[1], [0], [0], [1], [0, 0, 1, 1], [], []>} : vector<224x238xf32>, vector<238x28xf32>, vector<224x28xf32> -> vector<224x28xf32>
    %c0_161 = arith.constant 0 : index
    %c0_162 = arith.constant 0 : index
    %182 = vector.load %arg19[%c0_161, %c0_162] : memref<1x1xf32, #tpu.memory_space<vmem>>, vector<1x1xf32>
    %183 = vector.broadcast %182 : vector<1x1xf32> to vector<224x28xf32>
    %184 = arith.addf %181, %183 : vector<224x28xf32>
    %185 = arith.negf %184 : vector<224x28xf32>
    %186 = math.exp %185 : vector<224x28xf32>
    %cst_163 = arith.constant 1.000000e+00 : f32
    %187 = vector.broadcast %cst_163 : f32 to vector<224x28xf32>
    %188 = arith.addf %187, %186 : vector<224x28xf32>
    %189 = arith.divf %187, %188 : vector<224x28xf32>
    %c0_164 = arith.constant 0 : index
    %c0_165 = arith.constant 0 : index
    %190 = vector.load %arg25[%c0_164, %c0_165] : memref<224x28xf32, #tpu.memory_space<vmem>>, vector<224x28xf32>
    tpu.vector_store %arg25[%c0_164, %c0_165], %189 {strides = array<i32>} : memref<224x28xf32, #tpu.memory_space<vmem>>, vector<224x28xf32>,
    return
  }
}

</mosaic_0001>

<bundles_post_ra>
// kernel: _lambda_.1
= control target key start
LH: loop header
LB: loop body
LE: loop exit
PB: predicated region body
PF: predicated region fallthrough
CT: control target
= control target key end

     0   :  { %s12523_s0 = inlined_call_operand.vmem [shape: f32[8,4], index: 0, kind: input, shape index: {}]   ;;  %s12524_s1 = inlined_call_operand.hbm [shape: f32[4,128], index: 1, kind: input, shape index: {}]   ;;  %s12525_s2 = inlined_call_operand.vmem [shape: f32[1,128], index: 2, kind: input, shape index: {}]   ;;  %s12526_s3 = inlined_call_operand.hbm [shape: f32[3,128,288], index: 3, kind: input, shape index: {}]   ;;  %s12527_s4 = inlined_call_operand.hbm [shape: f32[3,1,288], index: 4, kind: input, shape index: {}]   ;;  %s12528_s5 = inlined_call_operand.hbm [shape: f32[3,72,8], index: 5, kind: input, shape index: {}]   ;;  %s12529_s6 = inlined_call_operand.hbm [shape: f32[3,288,256], index: 6, kind: input, shape index: {}]   ;;  %s12530_s7 = inlined_call_operand.hbm [shape: f32[3,256,240], index: 7, kind: input, shape index: {}]   ;;  %s12531_s8 = inlined_call_operand.hbm [shape: f32[3,240,28], index: 8, kind: input, shape index: {}]   ;;  %s12532_s9 = inlined_call_operand.hbm [shape: f32[256,16], index: 9, kind: input, shape index: {}]   ;;  %s12533_s10 = inlined_call_operand.vmem [shape: f32[16,256], index: 10, kind: input, shape index: {}]   ;;  %s12534_s11 = inlined_call_operand.hbm [shape: f32[240,8], index: 11, kind: input, shape index: {}]   ;;  %s12535_s12 = inlined_call_operand.vmem [shape: f32[8,240], index: 12, kind: input, shape index: {}]   ;;  %s12536_s13 = inlined_call_operand.vmem [shape: f32[1,16], index: 13, kind: input, shape index: {}]   ;;  %s12537_s14 = inlined_call_operand.vmem [shape: f32[1,16], index: 14, kind: input, shape index: {}]   ;;  %s12538_s15 = inlined_call_operand.vmem [shape: f32[1,16], index: 15, kind: input, shape index: {}]   ;;  %s12539_s16 = inlined_call_operand.vmem [shape: f32[1,8], index: 16, kind: input, shape index: {}]   ;;  %s12540_s17 = inlined_call_operand.vmem [shape: f32[1,8], index: 17, kind: input, shape index: {}]   ;;  %s12541_s18 = inlined_call_operand.vmem [shape: f32[1,8], index: 18, kind: input, shape index: {}]   ;;  %s12542_s19 = inlined_call_operand.<no memory space> [shape: f32[1,1], index: 19, kind: input, shape index: {}]   ;;  %s12543_s20 = inlined_call_operand.hbm [shape: f32[128,70], index: 20, kind: input, shape index: {}]   ;;  %s12544_s21 = inlined_call_operand.hbm [shape: f32[240,126], index: 21, kind: input, shape index: {}]   ;;  %s12545_s22 = inlined_call_operand.hbm [shape: f32[224,238], index: 22, kind: input, shape index: {}]   ;;  %s12546_s23 = inlined_call_operand.hbm [shape: f32[1,70], index: 23, kind: input, shape index: {}]   ;;  %s12547_s24 = inlined_call_operand.hbm [shape: f32[1,126], index: 24, kind: input, shape index: {}]   ;;  %s12548_s25 = inlined_call_operand.hbm [shape: f32[224,28], index: 25, kind: output, shape index: {}]  }
   0x1   :  { %12630 = sst [smem:[#allocation105_spill]] %s12523_s0  ;;  %v30_v0 = vstv %s12542_s19 }
   0x2   :  { %12631 = sst [smem:[#allocation106_spill]] %s12524_s1  ;;  %31 = vst [vmem:[#allocation5] sm:$0x1] %v30_v0 }
   0x3   :  { %12632 = sst [smem:[#allocation107_spill]] %s12525_s2 }
   0x4   :  { %12633 = sst [smem:[#allocation108_spill]] %s12526_s3 }
   0x5   :  { %12634 = sst [smem:[#allocation109_spill]] %s12527_s4 }
   0x6   :  { %12635 = sst [smem:[#allocation110_spill]] %s12528_s5 }
   0x7   :  { %12636 = sst [smem:[#allocation111_spill]] %s12529_s6 }
   0x8   :  { %12637 = sst [smem:[#allocation112_spill]] %s12530_s7 }
   0x9   :  { %12638 = sst [smem:[#allocation113_spill]] %s12531_s8 }
   0xa   :  { %12639 = sst [smem:[#allocation114_spill]] %s12532_s9 }
   0xb   :  { %12640 = sst [smem:[#allocation115_spill]] %s12548_s25 }
   0xc   :  { %32 = vsyncpa [#allocation7], 0 }
   0xd   :  { %33 = vsyncpa [#allocation10], 0 }
   0xe   :  { %34 = vsyncpa [#allocation13], 0 }
   0xf   :  { %35 = vsyncpa [#allocation16], 0 }
  0x10   :  { %36 = vsyncpa [#allocation19], 0 }
  0x11   :  { %37 = vsyncpa [#allocation22], 0 }
  0x12   :  { %38 = vsyncpa [#allocation25], 0 }
  0x13   :  { %39 = vsyncpa [#allocation28], 0 }
  0x14   :  { %40 = vsyncpa [#allocation8], 0  ;;  %s9046_s6 = smov [#allocation9]  }
  0x15   :  { %s60_s30 = sshll.u32 %s9046_s6, 4  ;;  %s61_s30 = int_to_ptr.vmem [resolvable:$true] %s60_s30 }
  0x16   :  { %s8736_s7 = scalar_lea.vmem %s61_s30, 18432  ;;  %p8741_p1 = scmp.lt.s32.totalorder %s61_s30, %s61_s30 }
  0x17   :  { %p8737_p0 = scmp.ne.s32.totalorder %s61_s30, %s8736_s7  ;;  %p8742_p2 = scmp.lt.s32.totalorder %s8736_s7, %s8736_s7 }
  0x19   :  { %p8743_p3 = por %p8742_p2, %p8741_p1 }
  0x1b   :  { %p8744_p4 = pnand %p8743_p3, %p8737_p0 }
  0x1d   :  { %8747 = shalt.err (!%p8744_p4)
}
  0x1e   :  { %s9047_s19 = smov 384   ;;  %s9048_s3 = smov 24  }
  0x1f   :  { %s12641_s8 = sld [smem:[#allocation108_spill]]  ;;  %s9049_s27 = smov [#allocation12]  }
  0x20   :  { %s84_s4 = sshll.u32 %s9049_s27, 4  ;;  %s85_s4 = int_to_ptr.vmem [resolvable:$true] %s84_s4 }
  0x21   :  { %s8756_s28 = scalar_lea.vmem %s85_s4, 3456  ;;  %p8761_p6 = scmp.lt.s32.totalorder %s85_s4, %s85_s4 }
  0x22   :  { %p8757_p5 = scmp.ne.s32.totalorder %s85_s4, %s8756_s28  ;;  %p8762_p7 = scmp.lt.s32.totalorder %s8756_s28, %s8756_s28 }
  0x24   :  { %p8763_p8 = por %p8762_p7, %p8761_p6 }
  0x25   :  { %66 = dma.hbm_to_vmem [thread:$0]  %s12641_s8, 18432, %s61_s30, [#allocation10], %s9047_s19, %s9047_s19, %s9048_s3  }
  0x26   :  { %p8764_p9 = pnand %p8763_p8, %p8757_p5 }
  0x28   :  { %8767 = shalt.err (!%p8764_p9)
}
  0x29   :  { %s12549_s9 = smov 128   ;;  %s9051_s5 = smov 8  }
  0x2a   :  { %s12642_s2 = sld [smem:[#allocation110_spill]]  ;;  %s9052_s6 = smov [#allocation15]  }
  0x2b   :  { %s108_s30 = sshll.u32 %s9052_s6, 4  ;;  %s9053_s7 = smov [#allocation18]   ;;  %s109_s30 = int_to_ptr.vmem [resolvable:$true] %s108_s30 }
  0x2c   :  { %s132_s19 = sshll.u32 %s9053_s7, 4  ;;  %s8776_s3 = scalar_lea.vmem %s109_s30, 24576  ;;  %s133_s19 = int_to_ptr.vmem [resolvable:$true] %s132_s19 }
  0x2d   :  { %p8777_p10 = scmp.ne.s32.totalorder %s109_s30, %s8776_s3  ;;  %p8781_p11 = scmp.lt.s32.totalorder %s109_s30, %s109_s30 }
  0x2e   :  { %p8782_p12 = scmp.lt.s32.totalorder %s8776_s3, %s8776_s3 }
  0x30   :  { %90 = dma.hbm_to_vmem [thread:$0]  %s12642_s2, 3456, %s85_s4, [#allocation13], %s12549_s9, %s12549_s9, %s9051_s5  }
  0x31   :  { %p8783_p13 = por %p8782_p12, %p8781_p11 }
  0x33   :  { %p8784_p0 = pnand %p8783_p13, %p8777_p10 }
  0x35   :  { %8787 = shalt.err (!%p8784_p0)
}
  0x36   :  { %s9054_s26 = smov 256   ;;  %s9055_s1 = smov 16  }
  0x37   :  { %s12643_s4 = sld [smem:[#allocation112_spill]]  ;;  %s8796_s28 = scalar_lea.vmem %s133_s19, 4096 }
  0x38   :  { %p8797_p1 = scmp.ne.s32.totalorder %s133_s19, %s8796_s28  ;;  %p8801_p2 = scmp.lt.s32.totalorder %s133_s19, %s133_s19 }
  0x39   :  { %p8802_p3 = scmp.lt.s32.totalorder %s8796_s28, %s8796_s28 }
  0x3b   :  { %p8803_p4 = por %p8802_p3, %p8801_p2 }
  0x3d   :  { %114 = dma.hbm_to_vmem [thread:$0]  %s12643_s4, 24576, %s109_s30, [#allocation16], %s9054_s26, %s9054_s26, %s9055_s1  }
  0x3e   :  { %p8804_p5 = pnand %p8803_p4, %p8797_p1 }
  0x40   :  { %8807 = shalt.err (!%p8804_p5)
}
  0x41   :  { %s12644_s2 = sld [smem:[#allocation114_spill]]  ;;  %s9056_s6 = smov [#allocation21]  }
  0x42   :  { %s174_s7 = sshll.u32 %s9056_s6, 4  ;;  %s9057_s3 = smov [#allocation24]   ;;  %s175_s7 = int_to_ptr.vmem [resolvable:$true] %s174_s7 }
  0x43   :  { %s198_s25 = sshll.u32 %s9057_s3, 4  ;;  %s8816_s30 = scalar_lea.vmem %s175_s7, 2048  ;;  %s199_s25 = int_to_ptr.vmem [resolvable:$true] %s198_s25 }
  0x44   :  { %p8817_p6 = scmp.ne.s32.totalorder %s175_s7, %s8816_s30  ;;  %p8821_p7 = scmp.lt.s32.totalorder %s175_s7, %s175_s7 }
  0x45   :  { %p8822_p8 = scmp.lt.s32.totalorder %s8816_s30, %s8816_s30 }
  0x47   :  { %138 = dma.hbm_to_vmem [thread:$0]  %s12644_s2, 4096, %s133_s19, [#allocation19], %s12549_s9, %s12549_s9, %s9051_s5  }
  0x48   :  { %p8823_p9 = por %p8822_p8, %p8821_p7 }
  0x4a   :  { %p8824_p10 = pnand %p8823_p9, %p8817_p6 }
  0x4c   :  { %8827 = shalt.err (!%p8824_p10)
}
  0x4d   :  { %180 = dma.hbm_to_vmem [thread:$0]  %s12543_s20, 2048, %s175_s7, [#allocation22], %s12549_s9, %s12549_s9, %s9051_s5  }
  0x4e   :  { %s8836_s19 = scalar_lea.vmem %s199_s25, 7168  ;;  %p8841_p12 = scmp.lt.s32.totalorder %s199_s25, %s199_s25 }
  0x4f   :  { %p8837_p11 = scmp.ne.s32.totalorder %s199_s25, %s8836_s19  ;;  %p8842_p13 = scmp.lt.s32.totalorder %s8836_s19, %s8836_s19 }
  0x51   :  { %p8843_p0 = por %p8842_p13, %p8841_p12 }
  0x53   :  { %p8844_p1 = pnand %p8843_p0, %p8837_p11 }
  0x55   :  { %8847 = shalt.err (!%p8844_p1)
}
  0x56   :  { %204 = dma.hbm_to_vmem [thread:$0]  %s12545_s22, 7168, %s199_s25, [#allocation25], %s9054_s26, %s9054_s26, %s9055_s1  }
  0x57   :  { %s9058_s0 = smov [#allocation6]   ;;  %s9059_s2 = smov [#allocation11]  }
  0x58   :  { %s49_s29 = sshll.u32 %s9058_s0, 4  ;;  %s72_s6 = sshll.u32 %s9059_s2, 4  ;;  %s50_s29 = int_to_ptr.vmem [resolvable:$true] %s49_s29  ;;  %s73_s6 = int_to_ptr.vmem [resolvable:$true] %s72_s6 }
  0x59   :  { %s8856_s20 = scalar_lea.vmem %s50_s29, 64  ;;  %p8861_p3 = scmp.lt.s32.totalorder %s50_s29, %s50_s29 }
  0x5a   :  { %p8857_p2 = scmp.ne.s32.totalorder %s50_s29, %s8856_s20  ;;  %p8862_p4 = scmp.lt.s32.totalorder %s8856_s20, %s8856_s20 }
  0x5c   :  { %p8863_p5 = por %p8862_p4, %p8861_p3 }
  0x5e   :  { %p8864_p6 = pnand %p8863_p5, %p8857_p2 }
  0x60   :  { %8867 = shalt.err (!%p8864_p6)
}
  0x61   :  { %s12645_s30 = sld [smem:[#allocation106_spill]]  ;;  %s8876_s8 = scalar_lea.vmem %s73_s6, 144 }
  0x62   :  { %p8877_p7 = scmp.ne.s32.totalorder %s73_s6, %s8876_s8  ;;  %s8880_s22 = scalar_lea.vmem %s73_s6, 160 }
  0x63   :  { %p8881_p8 = scmp.lt.s32.totalorder %s73_s6, %s73_s6  ;;  %p8882_p9 = scmp.lt.s32.totalorder %s8880_s22, %s8876_s8 }
  0x65   :  { %p8883_p10 = por %p8882_p9, %p8881_p8 }
  0x67   :  { %52 = dma.hbm_to_vmem [thread:$0]  %s12645_s30, 64, %s50_s29, [#allocation7]  }
  0x68   :  { %p8884_p11 = pnand %p8883_p10, %p8877_p7 }
  0x6a   :  { %8887 = shalt.err (!%p8884_p11)
}
  0x6b   :  { %s9060_s25 = smov 48   ;;  %s9061_s27 = smov 3  }
  0x6c   :  { %s12646_s28 = sld [smem:[#allocation109_spill]]  ;;  %s9062_s0 = smov [#allocation14]  }
  0x6d   :  { %s96_s2 = sshll.u32 %s9062_s0, 4  ;;  %s9063_s20 = smov [#allocation17]   ;;  %s97_s2 = int_to_ptr.vmem [resolvable:$true] %s96_s2 }
  0x6e   :  { %s120_s9 = sshll.u32 %s9063_s20, 4  ;;  %s8896_s29 = scalar_lea.vmem %s97_s2, 27648  ;;  %s121_s9 = int_to_ptr.vmem [resolvable:$true] %s120_s9 }
  0x6f   :  { %p8897_p12 = scmp.ne.s32.totalorder %s97_s2, %s8896_s29  ;;  %p8901_p13 = scmp.lt.s32.totalorder %s97_s2, %s97_s2 }
  0x70   :  { %p8902_p0 = scmp.lt.s32.totalorder %s8896_s29, %s8896_s29 }
  0x72   :  { %78 = dma.hbm_to_vmem [thread:$0]  %s12646_s28, 144, %s73_s6, [#allocation10], %s9060_s25, %s9060_s25, %s9061_s27  }
  0x73   :  { %p8903_p1 = por %p8902_p0, %p8901_p13 }
  0x75   :  { %p8904_p2 = pnand %p8903_p1, %p8897_p12 }
  0x77   :  { %8907 = shalt.err (!%p8904_p2)
}
  0x78   :  { %s12647_s30 = sld [smem:[#allocation111_spill]]  ;;  %s8916_s6 = scalar_lea.vmem %s121_s9, 11520 }
  0x79   :  { %p8917_p3 = scmp.ne.s32.totalorder %s121_s9, %s8916_s6  ;;  %p8921_p4 = scmp.lt.s32.totalorder %s121_s9, %s121_s9 }
  0x7a   :  { %p8922_p5 = scmp.lt.s32.totalorder %s8916_s6, %s8916_s6 }
  0x7c   :  { %p8923_p6 = por %p8922_p5, %p8921_p4 }
  0x7e   :  { %102 = dma.hbm_to_vmem [thread:$0]  %s12647_s30, 27648, %s97_s2, [#allocation13], %s9054_s26, %s9054_s26, %s9055_s1  }
  0x7f   :  { %p8924_p7 = pnand %p8923_p6, %p8917_p3 }
  0x81   :  { %8927 = shalt.err (!%p8924_p7)
}
  0x82   :  { %s12648_s8 = smov 128   ;;  %s12649_s27 = sld [smem:[#allocation113_spill]] }
  0x83   :  { %s9064_s19 = smov [#allocation20]   ;;  %s9065_s28 = smov [#allocation23]  }
  0x84   :  { %s146_s4 = sshll.u32 %s9064_s19, 4  ;;  %s186_s0 = sshll.u32 %s9065_s28, 4  ;;  %s147_s4 = int_to_ptr.vmem [resolvable:$true] %s146_s4  ;;  %s187_s0 = int_to_ptr.vmem [resolvable:$true] %s186_s0 }
  0x85   :  { %s8936_s26 = scalar_lea.vmem %s147_s4, 3840  ;;  %p8941_p9 = scmp.lt.s32.totalorder %s147_s4, %s147_s4 }
  0x86   :  { %p8937_p8 = scmp.ne.s32.totalorder %s147_s4, %s8936_s26  ;;  %p8942_p10 = scmp.lt.s32.totalorder %s8936_s26, %s8936_s26 }
  0x88   :  { %126 = dma.hbm_to_vmem [thread:$0]  %s12649_s27, 11520, %s121_s9, [#allocation16], %s12648_s8, %s12648_s8, %s9051_s5  }
  0x89   :  { %p8943_p11 = por %p8942_p10, %p8941_p9 }
  0x8b   :  { %p8944_p12 = pnand %p8943_p11, %p8937_p8 }
  0x8d   :  { %8947 = shalt.err (!%p8944_p12)
}
  0x8e   :  { %152 = dma.hbm_to_vmem [thread:$0]  %s12534_s11, 3840, %s147_s4, [#allocation19], %s12648_s8, %s12648_s8, %s9051_s5  }
  0x8f   :  { %s8956_s9 = scalar_lea.vmem %s187_s0, 3840  ;;  %p8961_p0 = scmp.lt.s32.totalorder %s187_s0, %s187_s0 }
  0x90   :  { %p8957_p13 = scmp.ne.s32.totalorder %s187_s0, %s8956_s9  ;;  %p8962_p1 = scmp.lt.s32.totalorder %s8956_s9, %s8956_s9 }
  0x92   :  { %p8963_p2 = por %p8962_p1, %p8961_p0 }
  0x94   :  { %p8964_p3 = pnand %p8963_p2, %p8957_p13 }
  0x96   :  { %8967 = shalt.err (!%p8964_p3)
}
  0x97   :  { %192 = dma.hbm_to_vmem [thread:$0]  %s12544_s21, 3840, %s187_s0, [#allocation22], %s12648_s8, %s12648_s8, %s9051_s5  }
  0x98   :  { %s9066_s7 = smov [#allocation26]   ;;  %s9067_s30 = smov [#allocation27]  }
  0x99   :  { %s211_s3 = sshll.u32 %s9066_s7, 4  ;;  %s221_s6 = sshll.u32 %s9067_s30, 4  ;;  %s212_s3 = int_to_ptr.vmem [resolvable:$true] %s211_s3  ;;  %s222_s6 = int_to_ptr.vmem [resolvable:$true] %s221_s6 }
  0x9a   :  { %s8976_s11 = scalar_lea.vmem %s212_s3, 16  ;;  %s8980_s22 = scalar_lea.vmem %s212_s3, 32 }
  0x9b   :  { %p8977_p4 = scmp.ne.s32.totalorder %s212_s3, %s8976_s11  ;;  %p8981_p5 = scmp.lt.s32.totalorder %s212_s3, %s212_s3 }
  0x9c   :  { %p8982_p6 = scmp.lt.s32.totalorder %s8980_s22, %s8976_s11 }
  0x9e   :  { %p8983_p7 = por %p8982_p6, %p8981_p5 }
  0xa0   :  { %p8984_p8 = pnand %p8983_p7, %p8977_p4 }
  0xa2   :  { %8987 = shalt.err (!%p8984_p8)
}
  0xa3   :  { %214 = dma.hbm_to_vmem [thread:$0]  %s12546_s23, 16, %s212_s3, [#allocation25]  }
  0xa4   :  { %s8996_s19 = scalar_lea.vmem %s222_s6, 16  ;;  %s9000_s21 = scalar_lea.vmem %s222_s6, 32 }
  0xa5   :  { %p8997_p9 = scmp.ne.s32.totalorder %s222_s6, %s8996_s19  ;;  %p9001_p10 = scmp.lt.s32.totalorder %s222_s6, %s222_s6 }
  0xa6   :  { %p9002_p11 = scmp.lt.s32.totalorder %s9000_s21, %s8996_s19 }
  0xa8   :  { %p9003_p12 = por %p9002_p11, %p9001_p10 }
  0xaa   :  { %p9004_p13 = pnand %p9003_p12, %p8997_p9 }
  0xac   :  { %9007 = shalt.err (!%p9004_p13)
}
  0xad   :  { %224 = dma.hbm_to_vmem [thread:$0]  %s12547_s24, 16, %s222_s6, [#allocation28]  }
  0xae   :  { %9028 = dma.done.wait [#allocation7], 64  }
  0xaf   :  { %9029 = vsyncadd [#allocation7], 4294967232 }
  0xb0   :  { %9030 = dma.done.wait [#allocation10], 18576  }
  0xb1   :  { %9031 = vsyncadd [#allocation10], 4294948720 }
  0xb2   :  { %9032 = dma.done.wait [#allocation13], 31104  }
  0xb3   :  { %9033 = vsyncadd [#allocation13], 4294936192 }
  0xb4   :  { %9034 = dma.done.wait [#allocation16], 36096  }
  0xb5   :  { %9035 = vsyncadd [#allocation16], 4294931200 }
  0xb6   :  { %9036 = dma.done.wait [#allocation19], 7936  }
  0xb7   :  { %9037 = vsyncadd [#allocation19], 4294959360 }
  0xb8   :  { %9038 = dma.done.wait [#allocation22], 5888  }
  0xb9   :  { %9039 = vsyncadd [#allocation22], 4294961408 }
  0xba   :  { %9040 = dma.done.wait [#allocation25], 7184  }
  0xbb   :  { %9041 = vsyncadd [#allocation25], 4294960112 }
  0xbc   :  { %9042 = dma.done.wait [#allocation28], 16  }
  0xbd   :  { %9043 = vsyncadd [#allocation28], 4294967280  ;;  %v12551_v1 = vmov 0.0   ;;  %vm9069_vm0 = vmmov 0   ;;  %vm280_vm1 = vcmask 1043456   ;;  %vm276_vm2 = vcmask 31744  }
  0xbe   :  { %8388 = vmatprep.subr.mxu0 %v12551_v1  ;;  %8390 = vmatprep.mubr.msk.f32.mxu0 %vm9069_vm0, %v12551_v1  ;;  %v268_v2 = vld [vmem:[#allocation6] sm:$0xf]  ;;  %s12650_s0 = sld [smem:[#allocation105_spill]]  ;;  %v401_v4 = vld [vmem:[#allocation9 + $0x170] sm:$0xff]  ;;  %v400_v5 = vld [vmem:[#allocation9 + $0x168] sm:$0xff]  ;;  %vm794_vm3 = vcmask 64512  }
  0xbf   :  { %484 = vmatprep.mubr.f32.mxu1 %v12551_v1  ;;  %8389 = vmatpush3.msk.msra.mxu0 %vm280_vm1, %v268_v2  ;;  %v398_v6 = vld [vmem:[#allocation9 + $0x158] sm:$0xff]  ;;  %v397_v8 = vld [vmem:[#allocation9 + $0x150] sm:$0xff]  ;;  %v395_v9 = vld [vmem:[#allocation9 + $0x140] sm:$0xff]  ;;  %s12651_s2 = sld [smem:[#allocation107_spill]]  ;;  %vm1813_vm4 = vcmask 261120   ;;  %vm2843_vm5 = vcmask 1046528  }
  0xc0   :  { %420 = vmatprep.subr.mxu1 %v401_v4  ;;  %v621_v7 = vld [vmem:[#allocation9 + $0x2f8] sm:$0xff]  ;;  %8428 = vmatprep.subr.mxu0 %v12551_v1  ;;  %v618_v10 = vld [vmem:[#allocation9 + $0x2e0] sm:$0xff]  ;;  %v392_v12 = vld [vmem:[#allocation9 + $0x128] sm:$0xff]  ;;  %vm2932_vm6 = vcmask 1045504   ;;  %vm3004_vm7 = vcmask 572416   ;;  %vm3371_vm8 = vcmask 130048  }
  0xc1   :  { %421 = vmatpush1.msra.mxu1 %v400_v5  ;;  %v394_v11 = vld [vmem:[#allocation9 + $0x138] sm:$0xff]  ;;  %v615_v13 = vld [vmem:[#allocation9 + $0x2c8] sm:$0xff]  ;;  %v391_v14 = vld [vmem:[#allocation9 + $0x120] sm:$0xff]  ;;  %vm4979_vm9 = vcmask 1031168   ;;  %vm5199_vm10 = vcmask 916480   ;;  %vm7419_vm11 = vcmask 900096  }
  0xc2   :  { %422 = vmatprep.subr.mxu1 %v398_v6  ;;  %v389_v15 = vld [vmem:[#allocation9 + $0x110] sm:$0xff]  ;;  %v388_v17 = vld [vmem:[#allocation9 + $0x108] sm:$0xff]  ;;  %v386_v18 = vld [vmem:[#allocation9 + $0xf8] sm:$0xff]  ;;  %vm7880_vm12 = vcmask 228352  }
  0xc3   :  { %423 = vmatpush1.msra.mxu1 %v397_v8  ;;  %v612_v16 = vld [vmem:[#allocation9 + $0x2b0] sm:$0xff]  ;;  %v609_v19 = vld [vmem:[#allocation9 + $0x298] sm:$0xff]  ;;  %v383_v21 = vld [vmem:[#allocation9 + $0xe0] sm:$0xff] }
  0xc4   :  { %v267_v3 = vld [vmem:[%s12650_s0] sm:$0xff]  ;;  %424 = vmatprep.subr.mxu1 %v395_v9  ;;  %v385_v20 = vld [vmem:[#allocation9 + $0xf0] sm:$0xff]  ;;  %v382_v23 = vld [vmem:[#allocation9 + $0xd8] sm:$0xff] }
  0xc5   :  { %8391 = vmatmul.mubr.msk.f32.vlgmr.msra.gmra.mxu0 %vm276_vm2, %v267_v3  ;;  %425 = vmatpush1.msra.mxu1 %v394_v11  ;;  %v606_v22 = vld [vmem:[#allocation9 + $0x280] sm:$0xff]  ;;  %v380_v24 = vld [vmem:[#allocation9 + $0xc8] sm:$0xff]  ;;  %v377_v27 = vld [vmem:[#allocation9 + $0xb0] sm:$0xff] }
  0xc6   :  { %8429 = vmatpush3.msra.mxu0 %v621_v7  ;;  %426 = vmatprep.subr.mxu1 %v392_v12  ;;  %v603_v25 = vld [vmem:[#allocation9 + $0x268] sm:$0xff]  ;;  %v379_v26 = vld [vmem:[#allocation9 + $0xc0] sm:$0xff]  ;;  %v600_v28 = vld [vmem:[#allocation9 + $0x250] sm:$0xff] }
  0xc7   :  { %8430 = vmatprep.subr.mxu0 %v12551_v1  ;;  %427 = vmatpush1.msra.mxu1 %v391_v14  ;;  %v376_v29 = vld [vmem:[#allocation9 + $0xa8] sm:$0xff]  ;;  %v374_v30 = vld [vmem:[#allocation9 + $0x98] sm:$0xff]  ;;  %v373_v32 = vld [vmem:[#allocation9 + $0x90] sm:$0xff] }
  0xc8   :  { %8431 = vmatpush3.msra.mxu0 %v618_v10  ;;  %428 = vmatprep.subr.mxu1 %v389_v15  ;;  %v597_v31 = vld [vmem:[#allocation9 + $0x238] sm:$0xff]  ;;  %v371_v33 = vld [vmem:[#allocation9 + $0x80] sm:$0xff]  ;;  %v368_v36 = vld [vmem:[#allocation9 + $0x68] sm:$0xff] }
  0xc9   :  { %8432 = vmatprep.subr.mxu0 %v12551_v1  ;;  %429 = vmatpush1.msra.mxu1 %v388_v17  ;;  %v594_v34 = vld [vmem:[#allocation9 + $0x220] sm:$0xff]  ;;  %v370_v35 = vld [vmem:[#allocation9 + $0x78] sm:$0xff]  ;;  %v591_v37 = vld [vmem:[#allocation9 + $0x208] sm:$0xff] }
  0xca   :  { %8433 = vmatpush3.msra.mxu0 %v615_v13  ;;  %430 = vmatprep.subr.mxu1 %v386_v18  ;;  %v367_v38 = vld [vmem:[#allocation9 + $0x60] sm:$0xff]  ;;  %v365_v39 = vld [vmem:[#allocation9 + $0x50] sm:$0xff]  ;;  %v364_v41 = vld [vmem:[#allocation9 + $0x48] sm:$0xff] }
  0xcb   :  { %8434 = vmatprep.subr.mxu0 %v12551_v1  ;;  %431 = vmatpush1.msra.mxu1 %v385_v20  ;;  %v588_v40 = vld [vmem:[#allocation9 + $0x1f0] sm:$0xff]  ;;  %v362_v42 = vld [vmem:[#allocation9 + $0x38] sm:$0xff]  ;;  %v359_v45 = vld [vmem:[#allocation9 + $0x20] sm:$0xff] }
  0xcc   :  { %8435 = vmatpush3.msra.mxu0 %v612_v16  ;;  %432 = vmatprep.subr.mxu1 %v383_v21  ;;  %v585_v43 = vld [vmem:[#allocation9 + $0x1d8] sm:$0xff]  ;;  %v361_v44 = vld [vmem:[#allocation9 + $0x30] sm:$0xff]  ;;  %v582_v46 = vld [vmem:[#allocation9 + $0x1c0] sm:$0xff] }
  0xcd   :  { %8436 = vmatprep.subr.mxu0 %v12551_v1  ;;  %433 = vmatpush1.msra.mxu1 %v382_v23  ;;  %v358_v47 = vld [vmem:[#allocation9 + $0x18] sm:$0xff]  ;;  %v356_v48 = vld [vmem:[#allocation9 + $0x8] sm:$0xff]  ;;  %v355_v50 = vld [vmem:[#allocation9] sm:$0xff] }
  0xce   :  { %8437 = vmatpush3.msra.mxu0 %v609_v19  ;;  %434 = vmatprep.subr.mxu1 %v380_v24  ;;  %v579_v49 = vld [vmem:[#allocation9 + $0x1a8] sm:$0xff]  ;;  %v576_v51 = vld [vmem:[#allocation9 + $0x190] sm:$0xff]  ;;  %v7933_v52 = vld [vmem:[%s12651_s2] ss:$0 sm:$0xff] }
  0xcf   :  { %8438 = vmatprep.subr.mxu0 %v12551_v1  ;;  %435 = vmatpush1.msra.mxu1 %v379_v26  ;;  %v402_v57 = vld [vmem:[#allocation9 + $0x178] sm:$0xff]  ;;  %v399_v58 = vld [vmem:[#allocation9 + $0x160] sm:$0xff]  ;;  %v396_v59 = vld [vmem:[#allocation9 + $0x148] sm:$0xff] }
  0xd0   :  { %8439 = vmatpush3.msra.mxu0 %v606_v22  ;;  %436 = vmatprep.subr.mxu1 %v377_v27  ;;  %v393_v60 = vld [vmem:[#allocation9 + $0x130] sm:$0xff]  ;;  %v390_v61 = vld [vmem:[#allocation9 + $0x118] sm:$0xff]  ;;  %v387_v62 = vld [vmem:[#allocation9 + $0x100] sm:$0xff] }
  0xd1   :  { %8440 = vmatprep.subr.mxu0 %v12551_v1  ;;  %437 = vmatpush1.msra.mxu1 %v376_v29  ;;  %v384_v63 = vld [vmem:[#allocation9 + $0xe8] sm:$0xff]  ;;  %v381_v0 = vld [vmem:[#allocation9 + $0xd0] sm:$0xff]  ;;  %v378_v2 = vld [vmem:[#allocation9 + $0xb8] sm:$0xff] }
  0xd2   :  { %8441 = vmatpush3.msra.mxu0 %v603_v25  ;;  %438 = vmatprep.subr.mxu1 %v374_v30  ;;  %v375_v3 = vld [vmem:[#allocation9 + $0xa0] sm:$0xff]  ;;  %v372_v4 = vld [vmem:[#allocation9 + $0x88] sm:$0xff]  ;;  %v369_v5 = vld [vmem:[#allocation9 + $0x70] sm:$0xff] }
  0xd3   :  { %8442 = vmatprep.subr.mxu0 %v12551_v1  ;;  %439 = vmatpush1.msra.mxu1 %v373_v32  ;;  %v366_v6 = vld [vmem:[#allocation9 + $0x58] sm:$0xff]  ;;  %v363_v7 = vld [vmem:[#allocation9 + $0x40] sm:$0xff]  ;;  %v360_v8 = vld [vmem:[#allocation9 + $0x28] sm:$0xff] }
  0xd4   :  { %8443 = vmatpush3.msra.mxu0 %v600_v28  ;;  %440 = vmatprep.subr.mxu1 %v371_v33  ;;  %v357_v9 = vld [vmem:[#allocation9 + $0x10] sm:$0xff]  ;;  %v619_v11 = vld [vmem:[#allocation9 + $0x2e8] sm:$0xff]  ;;  %v617_v12 = vld [vmem:[#allocation9 + $0x2d8] sm:$0xff] }
  0xd5   :  { %8444 = vmatprep.subr.mxu0 %v12551_v1  ;;  %441 = vmatpush1.msra.mxu1 %v370_v35  ;;  %v620_v10 = vld [vmem:[#allocation9 + $0x2f0] sm:$0xff]  ;;  %v614_v14 = vld [vmem:[#allocation9 + $0x2c0] sm:$0xff]  ;;  %v613_v15 = vld [vmem:[#allocation9 + $0x2b8] sm:$0xff] }
  0xd6   :  { %8445 = vmatpush3.msra.mxu0 %v597_v31  ;;  %442 = vmatprep.subr.mxu1 %v368_v36  ;;  %v616_v13 = vld [vmem:[#allocation9 + $0x2d0] sm:$0xff]  ;;  %v611_v16 = vld [vmem:[#allocation9 + $0x2a8] sm:$0xff]  ;;  %v610_v17 = vld [vmem:[#allocation9 + $0x2a0] sm:$0xff] }
  0xd7   :  { %8446 = vmatprep.subr.mxu0 %v12551_v1  ;;  %443 = vmatpush1.msra.mxu1 %v367_v38  ;;  %v608_v18 = vld [vmem:[#allocation9 + $0x290] sm:$0xff]  ;;  %v607_v19 = vld [vmem:[#allocation9 + $0x288] sm:$0xff]  ;;  %v605_v20 = vld [vmem:[#allocation9 + $0x278] sm:$0xff] }
  0xd8   :  { %8447 = vmatpush3.msra.mxu0 %v594_v34  ;;  %444 = vmatprep.subr.mxu1 %v365_v39  ;;  %v604_v21 = vld [vmem:[#allocation9 + $0x270] sm:$0xff]  ;;  %v602_v22 = vld [vmem:[#allocation9 + $0x260] sm:$0xff]  ;;  %v601_v23 = vld [vmem:[#allocation9 + $0x258] sm:$0xff] }
  0xd9   :  { %8448 = vmatprep.subr.mxu0 %v12551_v1  ;;  %445 = vmatpush1.msra.mxu1 %v364_v41  ;;  %v599_v24 = vld [vmem:[#allocation9 + $0x248] sm:$0xff]  ;;  %v598_v25 = vld [vmem:[#allocation9 + $0x240] sm:$0xff]  ;;  %v596_v26 = vld [vmem:[#allocation9 + $0x230] sm:$0xff] }
  0xda   :  { %8449 = vmatpush3.msra.mxu0 %v591_v37  ;;  %446 = vmatprep.subr.mxu1 %v362_v42  ;;  %v595_v27 = vld [vmem:[#allocation9 + $0x228] sm:$0xff]  ;;  %v593_v28 = vld [vmem:[#allocation9 + $0x218] sm:$0xff]  ;;  %v592_v29 = vld [vmem:[#allocation9 + $0x210] sm:$0xff]  ;;  %v405_v42 = vlaneseq }
  0xdb   :  { %8450 = vmatprep.subr.mxu0 %v12551_v1  ;;  %447 = vmatpush1.msra.mxu1 %v361_v44  ;;  %v590_v30 = vld [vmem:[#allocation9 + $0x200] sm:$0xff]  ;;  %v589_v31 = vld [vmem:[#allocation9 + $0x1f8] sm:$0xff]  ;;  %v587_v32 = vld [vmem:[#allocation9 + $0x1e8] sm:$0xff] }
  0xdc   :  { %8451 = vmatpush3.msra.mxu0 %v588_v40  ;;  %8460 = vmatprep.mubr.msk.f32.mxu0 %vm9069_vm0, %v12551_v1  ;;  %v586_v33 = vld [vmem:[#allocation9 + $0x1e0] sm:$0xff]  ;;  %v584_v34 = vld [vmem:[#allocation9 + $0x1d0] sm:$0xff]  ;;  %v583_v35 = vld [vmem:[#allocation9 + $0x1c8] sm:$0xff] }
  0xdd   :  { %8452 = vmatprep.subr.mxu0 %v12551_v1  ;;  %448 = vmatprep.subr.mxu1 %v359_v45  ;;  %v581_v36 = vld [vmem:[#allocation9 + $0x1b8] sm:$0xff]  ;;  %v580_v37 = vld [vmem:[#allocation9 + $0x1b0] sm:$0xff]  ;;  %v578_v38 = vld [vmem:[#allocation9 + $0x1a0] sm:$0xff] }
  0xde   :  { %8453 = vmatpush3.msra.mxu0 %v585_v43  ;;  %449 = vmatpush1.msra.mxu1 %v358_v47  ;;  %v577_v39 = vld [vmem:[#allocation9 + $0x198] sm:$0xff]  ;;  %v575_v40 = vld [vmem:[#allocation9 + $0x188] sm:$0xff]  ;;  %v574_v41 = vld [vmem:[#allocation9 + $0x180] sm:$0xff]  ;;  %v9331_v43 = vshrl.u32 %v405_v42, 7 }
  0xdf   :  { %8454 = vmatprep.subr.mxu0 %v12551_v1  ;;  %450 = vmatprep.subr.mxu1 %v356_v48  ;;  %v9336_v45 = vld [vmem:[#allocation11 + $0x3] sm:$0x7] }
  0xe0   :  { %8455 = vmatpush3.msra.mxu0 %v582_v46  ;;  %451 = vmatpush1.msra.mxu1 %v355_v50  ;;  %v9334_v44 = vsub.s32 2, %v9331_v43 }
  0xe1   :  { %8456 = vmatprep.subr.mxu0 %v12551_v1  ;;  %8393 = vmatprep.subr.mxu1 %v12551_v1 }
  0xe2   :  { %8457 = vmatpush3.msra.mxu0 %v579_v49  ;;  %v636_v46 = vrot.slane %v9336_v45, %v9334_v44 }
  0xe3   :  { %8458 = vmatprep.subr.mxu0 %v12551_v1 }
  0xe4   :  { %8459 = vmatpush3.msra.mxu0 %v576_v51  ;;  %v9340_v51 = vld [vmem:[#allocation12 + $0x48] sm:$0xff] }
  0xe5   :  { %8463 = vmatprep.subr.mxu0 %v12551_v1 }
 0x185   :  { %v350_v53 = vpop.f32.mrf.mxu0 }
 0x186   :  { %v351_v54 = vadd.f32 %v7933_v52, %v350_v53  ;;  %v9347_v52 = vld [vmem:[#allocation12 + $0x50] sm:$0xff]  ;;  %v9353_v53 = vld [vmem:[#allocation12 + $0x58] sm:$0xff] }
 0x187   :  { %v8392_v55 = vpop.f32.mrf.mxu0 }
 0x188   :  { %v9304_v56 = vmax.f32 %v351_v54, 0.0  ;;  %v9359_v54 = vld [vmem:[#allocation12 + $0x60] sm:$0xff]  ;;  %v9365_v55 = vld [vmem:[#allocation12 + $0x68] sm:$0xff] }
 0x18a   :  { %485 = vmatmul.mubr.f32.vlgmr.msra.gmra.mxu1 %v9304_v56  ;;  %8461 = vmatmul.mubr.f32.vlgmr.msra.gmra.mxu0 %v9304_v56 }
 0x18b   :  { %8394 = vmatpush3.msra.mxu1 %v402_v57  ;;  %8425 = vmatprep.mubr.msk.f32.mxu1 %vm9069_vm0, %v12551_v1  ;;  %v9371_v57 = vld [vmem:[#allocation12 + $0x70] sm:$0xff] }
 0x18c   :  { %8395 = vmatprep.subr.mxu1 %v12551_v1  ;;  %8465 = vmatprep.mubr.msk.f32.mxu0 %vm9069_vm0, %v12551_v1 }
 0x18d   :  { %8396 = vmatpush3.msra.mxu1 %v399_v58 }
 0x18e   :  { %8397 = vmatprep.subr.mxu1 %v12551_v1 }
 0x18f   :  { %8398 = vmatpush3.msra.mxu1 %v396_v59  ;;  %v9379_v59 = vld [vmem:[#allocation12 + $0x78] sm:$0xff] }
 0x190   :  { %8399 = vmatprep.subr.mxu1 %v12551_v1 }
 0x191   :  { %8400 = vmatpush3.msra.mxu1 %v393_v60  ;;  %v9381_v60 = vld [vmem:[#allocation11] sm:$0x7] }
 0x192   :  { %8401 = vmatprep.subr.mxu1 %v12551_v1 }
 0x193   :  { %8402 = vmatpush3.msra.mxu1 %v390_v61  ;;  %v416_v61 = vrot.slane %v9381_v60, %v9334_v44 }
 0x194   :  { %8403 = vmatprep.subr.mxu1 %v12551_v1 }
 0x195   :  { %8404 = vmatpush3.msra.mxu1 %v387_v62 }
 0x196   :  { %8405 = vmatprep.subr.mxu1 %v12551_v1 }
 0x197   :  { %8406 = vmatpush3.msra.mxu1 %v384_v63  ;;  %v9391_v63 = vld [vmem:[#allocation12 + $0x80] sm:$0xff] }
 0x198   :  { %8407 = vmatprep.subr.mxu1 %v12551_v1 }
 0x199   :  { %8408 = vmatpush3.msra.mxu1 %v381_v0 }
 0x19a   :  { %8409 = vmatprep.subr.mxu1 %v12551_v1 }
 0x19b   :  { %8410 = vmatpush3.msra.mxu1 %v378_v2 }
 0x19c   :  { %8411 = vmatprep.subr.mxu1 %v12551_v1 }
 0x19d   :  { %8412 = vmatpush3.msra.mxu1 %v375_v3 }
 0x19e   :  { %8413 = vmatprep.subr.mxu1 %v12551_v1 }
 0x19f   :  { %8414 = vmatpush3.msra.mxu1 %v372_v4 }
 0x1a0   :  { %8415 = vmatprep.subr.mxu1 %v12551_v1 }
 0x1a1   :  { %8416 = vmatpush3.msra.mxu1 %v369_v5  ;;  %v9397_v5 = vld [vmem:[#allocation12 + $0x88] sm:$0xff] }
 0x1a2   :  { %8417 = vmatprep.subr.mxu1 %v12551_v1 }
 0x1a3   :  { %8418 = vmatpush3.msra.mxu1 %v366_v6  ;;  %v9404_v6 = vld [vmem:[#allocation12] sm:$0xff] }
 0x1a4   :  { %8419 = vmatprep.subr.mxu1 %v12551_v1 }
 0x1a5   :  { %8420 = vmatpush3.msra.mxu1 %v363_v7  ;;  %v1355_v7 = vld [vmem:[#allocation9 + $0x478] sm:$0xff] }
 0x1a6   :  { %8421 = vmatprep.subr.mxu1 %v12551_v1 }
 0x1a7   :  { %8422 = vmatpush3.msra.mxu1 %v360_v8  ;;  %v1352_v8 = vld [vmem:[#allocation9 + $0x460] sm:$0xff] }
 0x1a8   :  { %8423 = vmatprep.subr.mxu1 %v12551_v1 }
 0x1a9   :  { %8424 = vmatpush3.msra.mxu1 %v357_v9  ;;  %v9410_v9 = vld [vmem:[#allocation12 + $0x8] sm:$0xff] }
 0x1aa   :  { %8426 = vmatmul.mubr.f32.vlgmr.msra.gmra.mxu1 %v9304_v56  ;;  %640 = vmatprep.subr.mxu1 %v620_v10  ;;  %v1349_v10 = vld [vmem:[#allocation9 + $0x448] sm:$0xff] }
 0x1ab   :  { %641 = vmatpush1.msra.mxu1 %v619_v11  ;;  %704 = vmatprep.mubr.f32.mxu1 %v12551_v1  ;;  %v1346_v11 = vld [vmem:[#allocation9 + $0x430] sm:$0xff] }
 0x1ac   :  { %642 = vmatprep.subr.mxu1 %v617_v12  ;;  %v9418_v12 = vld [vmem:[#allocation12 + $0x10] sm:$0xff] }
 0x1ad   :  { %643 = vmatpush1.msra.mxu1 %v616_v13  ;;  %v1343_v13 = vld [vmem:[#allocation9 + $0x418] sm:$0xff] }
 0x1ae   :  { %644 = vmatprep.subr.mxu1 %v614_v14  ;;  %v1340_v14 = vld [vmem:[#allocation9 + $0x400] sm:$0xff] }
 0x1af   :  { %645 = vmatpush1.msra.mxu1 %v613_v15  ;;  %v9426_v15 = vld [vmem:[#allocation12 + $0x18] sm:$0xff] }
 0x1b0   :  { %646 = vmatprep.subr.mxu1 %v611_v16  ;;  %v1337_v16 = vld [vmem:[#allocation9 + $0x3e8] sm:$0xff] }
 0x1b1   :  { %647 = vmatpush1.msra.mxu1 %v610_v17  ;;  %v1334_v17 = vld [vmem:[#allocation9 + $0x3d0] sm:$0xff] }
 0x1b2   :  { %648 = vmatprep.subr.mxu1 %v608_v18  ;;  %v9434_v18 = vld [vmem:[#allocation12 + $0x20] sm:$0xff] }
 0x1b3   :  { %649 = vmatpush1.msra.mxu1 %v607_v19  ;;  %v1331_v19 = vld [vmem:[#allocation9 + $0x3b8] sm:$0xff] }
 0x1b4   :  { %650 = vmatprep.subr.mxu1 %v605_v20  ;;  %v1328_v20 = vld [vmem:[#allocation9 + $0x3a0] sm:$0xff] }
 0x1b5   :  { %651 = vmatpush1.msra.mxu1 %v604_v21  ;;  %v9441_v21 = vsub.s32 1, %v9331_v43 }
 0x1b6   :  { %652 = vmatprep.subr.mxu1 %v602_v22  ;;  %v9445_v22 = vld [vmem:[#allocation12 + $0x28] sm:$0xff] }
 0x1b7   :  { %653 = vmatpush1.msra.mxu1 %v601_v23  ;;  %v9448_v23 = vsub.s32 0, %v9331_v43 }
 0x1b8   :  { %654 = vmatprep.subr.mxu1 %v599_v24  ;;  %v1325_v24 = vld [vmem:[#allocation9 + $0x388] sm:$0xff] }
 0x1b9   :  { %655 = vmatpush1.msra.mxu1 %v598_v25  ;;  %12652 = vst [vmem:[#allocation39_spill] sm:$0xff] %v9448_v23  ;;  %v628_v25 = vrot.slane %v9336_v45, %v9448_v23 }
 0x1ba   :  { %656 = vmatprep.subr.mxu1 %v596_v26  ;;  %v1322_v26 = vld [vmem:[#allocation9 + $0x370] sm:$0xff] }
 0x1bb   :  { %657 = vmatpush1.msra.mxu1 %v595_v27  ;;  %v412_v27 = vrot.slane %v9381_v60, %v9441_v21 }
 0x1bc   :  { %658 = vmatprep.subr.mxu1 %v593_v28  ;;  %v632_v28 = vrot.slane %v9336_v45, %v9441_v21  ;;  %v9482_v45 = vld [vmem:[#allocation12 + $0x40] sm:$0xff] }
 0x1bd   :  { %659 = vmatpush1.msra.mxu1 %v592_v29  ;;  %v9462_v29 = vld [vmem:[#allocation12 + $0x30] sm:$0xff] }
 0x1be   :  { %660 = vmatprep.subr.mxu1 %v590_v30  ;;  %v408_v30 = vrot.slane %v9381_v60, %v9448_v23  ;;  %v1338_v60 = vld [vmem:[#allocation9 + $0x3f0] sm:$0xff] }
 0x1bf   :  { %661 = vmatpush1.msra.mxu1 %v589_v31 }
 0x1c0   :  { %662 = vmatprep.subr.mxu1 %v587_v32  ;;  %v1319_v32 = vld [vmem:[#allocation9 + $0x358] sm:$0xff] }
 0x1c1   :  { %663 = vmatpush1.msra.mxu1 %v586_v33 }
 0x1c2   :  { %664 = vmatprep.subr.mxu1 %v584_v34 }
 0x1c3   :  { %665 = vmatpush1.msra.mxu1 %v583_v35  ;;  %v1316_v35 = vld [vmem:[#allocation9 + $0x340] sm:$0xff] }
 0x1c4   :  { %666 = vmatprep.subr.mxu1 %v581_v36 }
 0x1c5   :  { %667 = vmatpush1.msra.mxu1 %v580_v37 }
 0x1c6   :  { %668 = vmatprep.subr.mxu1 %v578_v38  ;;  %v9473_v38 = vld [vmem:[#allocation12 + $0x38] sm:$0xff] }
 0x1c7   :  { %669 = vmatpush1.msra.mxu1 %v577_v39 }
 0x1c8   :  { %670 = vmatprep.subr.mxu1 %v575_v40 }
 0x1c9   :  { %671 = vmatpush1.msra.mxu1 %v574_v41  ;;  %v1313_v41 = vld [vmem:[#allocation9 + $0x328] sm:$0xff] }
 0x1ca   :  { %705 = vmatmul.mubr.f32.vlgmr.msra.gmra.mxu1 %v9304_v56 }
 0x1cb   :  { %886 = vmatprep.mubr.f32.mxu1 %v12551_v1 }
 0x24a   :  { %v777_v47 = vpop.f32.mrf.mxu0  ;;  %v9373_v58 = vpop.f32.mrf.mxu1 }
 0x24b   :  { %v778_v48 = vadd.f32 %v777_v47, %v636_v46  ;;  %v487_v39 = vadd.f32 %v9373_v58, %v408_v30  ;;  %v1310_v47 = vld [vmem:[#allocation9 + $0x310] sm:$0xff]  ;;  %v1341_v58 = vld [vmem:[#allocation9 + $0x408] sm:$0xff] }
 0x24c   :  { %v8462_v49 = vpop.f32.mrf.mxu0  ;;  %v9385_v62 = vpop.f32.mrf.mxu1 }
 0x24d   :  { %v783_v50 = vmax.f32 %v778_v48, 0.0  ;;  %v489_v36 = vadd.f32 %v9385_v62, %v412_v27  ;;  %v561_v46 = vmax.f32 %v487_v39, 0.0  ;;  %v1354_v48 = vld [vmem:[#allocation9 + $0x470] sm:$0xff]  ;;  %v1353_v49 = vld [vmem:[#allocation9 + $0x468] sm:$0xff]  ;;  %v1335_v62 = vld [vmem:[#allocation9 + $0x3d8] sm:$0xff] }
 0x24f   :  { %8464 = vmatpush3.msra.mxu0 %v783_v50  ;;  %v562_v43 = vmax.f32 %v489_v36, 0.0  ;;  %v1351_v50 = vld [vmem:[#allocation9 + $0x458] sm:$0xff] }
 0x250   :  { %8466 = vmatmul.mubr.msk.f32.vlgmr.msra.gmra.mxu0 %vm794_vm3, %v9340_v51  ;;  %8492 = vmatprep.subr.mxu0 %v12551_v1 }
 0x251   :  { %8468 = vmatprep.mubr.msk.f32.mxu0 %vm9069_vm0, %v12551_v1 }
 0x254   :  { %8469 = vmatmul.mubr.msk.f32.gmra.mxu0 %vm794_vm3, %v9347_v52 }
 0x255   :  { %8471 = vmatprep.mubr.msk.f32.mxu0 %vm9069_vm0, %v12551_v1 }
 0x258   :  { %8472 = vmatmul.mubr.msk.f32.gmra.mxu0 %vm794_vm3, %v9353_v53 }
 0x259   :  { %8474 = vmatprep.mubr.msk.f32.mxu0 %vm9069_vm0, %v12551_v1 }
 0x25c   :  { %8475 = vmatmul.mubr.msk.f32.gmra.mxu0 %vm794_vm3, %v9359_v54 }
 0x25d   :  { %8477 = vmatprep.mubr.msk.f32.mxu0 %vm9069_vm0, %v12551_v1 }
 0x260   :  { %8478 = vmatmul.mubr.msk.f32.gmra.mxu0 %vm794_vm3, %v9365_v55 }
 0x261   :  { %8480 = vmatprep.mubr.msk.f32.mxu0 %vm9069_vm0, %v12551_v1 }
 0x264   :  { %8481 = vmatmul.mubr.msk.f32.gmra.mxu0 %vm794_vm3, %v9371_v57 }
 0x265   :  { %8483 = vmatprep.mubr.msk.f32.mxu0 %vm9069_vm0, %v12551_v1 }
 0x268   :  { %8484 = vmatmul.mubr.msk.f32.gmra.mxu0 %vm794_vm3, %v9379_v59 }
 0x269   :  { %8486 = vmatprep.mubr.msk.f32.mxu0 %vm9069_vm0, %v12551_v1 }
 0x26a   :  { %v557_v0 = vpop.f32.mrf.mxu1 }
 0x26b   :  { %v558_v2 = vadd.f32 %v557_v0, %v416_v61  ;;  %v1336_v61 = vld [vmem:[#allocation9 + $0x3e0] sm:$0xff] }
 0x26c   :  { %v8427_v3 = vpop.f32.mrf.mxu1  ;;  %8487 = vmatmul.mubr.msk.f32.gmra.mxu0 %vm794_vm3, %v9391_v63  ;;  %v1332_v0 = vld [vmem:[#allocation9 + $0x3c0] sm:$0xff] }
 0x26d   :  { %v563_v4 = vmax.f32 %v558_v2, 0.0  ;;  %8489 = vmatprep.mubr.msk.f32.mxu0 %vm9069_vm0, %v12551_v1  ;;  %v1330_v2 = vld [vmem:[#allocation9 + $0x3b0] sm:$0xff]  ;;  %v1329_v3 = vld [vmem:[#allocation9 + $0x3a8] sm:$0xff] }
 0x26f   :  { %8493 = vmatpush3.msra.mxu0 %v563_v4  ;;  %v1327_v4 = vld [vmem:[#allocation9 + $0x398] sm:$0xff] }
 0x270   :  { %8490 = vmatmul.mubr.msk.f32.gmra.mxu0 %vm794_vm3, %v9397_v5  ;;  %8521 = vmatprep.subr.mxu0 %v12551_v1 }
 0x271   :  { %8494 = vmatprep.mubr.msk.f32.mxu0 %vm9069_vm0, %v12551_v1 }
 0x274   :  { %8495 = vmatmul.mubr.msk.f32.vlgmr.msra.gmra.mxu0 %vm794_vm3, %v9404_v6 }
 0x275   :  { %8497 = vmatprep.mubr.msk.f32.mxu0 %vm9069_vm0, %v12551_v1  ;;  %8522 = vmatpush3.msra.mxu0 %v1355_v7  ;;  %v1323_v7 = vld [vmem:[#allocation9 + $0x378] sm:$0xff] }
 0x276   :  { %8523 = vmatprep.subr.mxu0 %v12551_v1 }
 0x277   :  { %8524 = vmatpush3.msra.mxu0 %v1352_v8  ;;  %v1321_v8 = vld [vmem:[#allocation9 + $0x368] sm:$0xff] }
 0x278   :  { %8498 = vmatmul.mubr.msk.f32.gmra.mxu0 %vm794_vm3, %v9410_v9  ;;  %8525 = vmatprep.subr.mxu0 %v12551_v1 }
 0x279   :  { %8500 = vmatprep.mubr.msk.f32.mxu0 %vm9069_vm0, %v12551_v1  ;;  %8526 = vmatpush3.msra.mxu0 %v1349_v10  ;;  %v1318_v10 = vld [vmem:[#allocation9 + $0x350] sm:$0xff] }
 0x27a   :  { %8527 = vmatprep.subr.mxu0 %v12551_v1 }
 0x27b   :  { %8528 = vmatpush3.msra.mxu0 %v1346_v11  ;;  %v1317_v11 = vld [vmem:[#allocation9 + $0x348] sm:$0xff] }
 0x27c   :  { %8501 = vmatmul.mubr.msk.f32.gmra.mxu0 %vm794_vm3, %v9418_v12  ;;  %8529 = vmatprep.subr.mxu0 %v12551_v1 }
 0x27d   :  { %8503 = vmatprep.mubr.msk.f32.mxu0 %vm9069_vm0, %v12551_v1  ;;  %8530 = vmatpush3.msra.mxu0 %v1343_v13  ;;  %v1314_v13 = vld [vmem:[#allocation9 + $0x330] sm:$0xff] }
 0x27e   :  { %8531 = vmatprep.subr.mxu0 %v12551_v1 }
 0x27f   :  { %8532 = vmatpush3.msra.mxu0 %v1340_v14  ;;  %v1312_v14 = vld [vmem:[#allocation9 + $0x320] sm:$0xff] }
 0x280   :  { %8504 = vmatmul.mubr.msk.f32.gmra.mxu0 %vm794_vm3, %v9426_v15  ;;  %8533 = vmatprep.subr.mxu0 %v12551_v1 }
 0x281   :  { %8506 = vmatprep.mubr.msk.f32.mxu0 %vm9069_vm0, %v12551_v1  ;;  %8534 = vmatpush3.msra.mxu0 %v1337_v16  ;;  %v1309_v16 = vld [vmem:[#allocation9 + $0x308] sm:$0xff] }
 0x282   :  { %8535 = vmatprep.subr.mxu0 %v12551_v1 }
 0x283   :  { %8536 = vmatpush3.msra.mxu0 %v1334_v17  ;;  %v1308_v17 = vld [vmem:[#allocation9 + $0x300] sm:$0xff] }
 0x284   :  { %8507 = vmatmul.mubr.msk.f32.gmra.mxu0 %vm794_vm3, %v9434_v18  ;;  %8537 = vmatprep.subr.mxu0 %v12551_v1 }
 0x285   :  { %8509 = vmatprep.mubr.msk.f32.mxu0 %vm9069_vm0, %v12551_v1  ;;  %8538 = vmatpush3.msra.mxu0 %v1331_v19 }
 0x286   :  { %8539 = vmatprep.subr.mxu0 %v12551_v1 }
 0x287   :  { %8540 = vmatpush3.msra.mxu0 %v1328_v20 }
 0x288   :  { %8510 = vmatmul.mubr.msk.f32.gmra.mxu0 %vm794_vm3, %v9445_v22  ;;  %8541 = vmatprep.subr.mxu0 %v12551_v1 }
 0x289   :  { %8512 = vmatprep.mubr.msk.f32.mxu0 %vm9069_vm0, %v12551_v1  ;;  %8542 = vmatpush3.msra.mxu0 %v1325_v24 }
 0x28a   :  { %v706_v31 = vpop.f32.mrf.mxu1  ;;  %8543 = vmatprep.subr.mxu0 %v12551_v1 }
 0x28b   :  { %8544 = vmatpush3.msra.mxu0 %v1322_v26  ;;  %v707_v33 = vadd.f32 %v706_v31, %v628_v25 }
 0x28c   :  { %v708_v34 = vpop.f32.mrf.mxu1  ;;  %8513 = vmatmul.mubr.msk.f32.gmra.mxu0 %vm794_vm3, %v9462_v29  ;;  %8545 = vmatprep.subr.mxu0 %v12551_v1 }
 0x28d   :  { %v709_v37 = vadd.f32 %v708_v34, %v632_v28  ;;  %8515 = vmatprep.mubr.msk.f32.mxu0 %vm9069_vm0, %v12551_v1  ;;  %8546 = vmatpush3.msra.mxu0 %v1319_v32  ;;  %v781_v42 = vmax.f32 %v707_v33, 0.0 }
 0x28e   :  { %8547 = vmatprep.subr.mxu0 %v12551_v1 }
 0x28f   :  { %v782_v40 = vmax.f32 %v709_v37, 0.0  ;;  %8548 = vmatpush3.msra.mxu0 %v1316_v35 }
 0x290   :  { %8516 = vmatmul.mubr.msk.f32.gmra.mxu0 %vm794_vm3, %v9473_v38  ;;  %8549 = vmatprep.subr.mxu0 %v12551_v1 }
 0x291   :  { %852 = vmatprep.subr.mxu1 %v782_v40  ;;  %8518 = vmatprep.mubr.msk.f32.mxu0 %vm9069_vm0, %v12551_v1 }
 0x292   :  { %853 = vmatpush1.msra.mxu1 %v781_v42  ;;  %8550 = vmatpush3.msra.mxu0 %v1313_v41 }
 0x293   :  { %7936 = vmatmul.mubr.msk.f32.vlgmr.msra.gmra.mxu1 %vm794_vm3, %v9340_v51  ;;  %1108 = vmatprep.subr.mxu1 %v562_v43  ;;  %v1350_v51 = vld [vmem:[#allocation9 + $0x450] sm:$0xff] }
 0x294   :  { %1109 = vmatpush1.msra.mxu1 %v561_v46  ;;  %8519 = vmatmul.mubr.msk.f32.gmra.mxu0 %vm794_vm3, %v9482_v45 }
 0x295   :  { %892 = vmatprep.mubr.f32.mxu1 %v12551_v1  ;;  %8551 = vmatprep.subr.mxu0 %v12551_v1 }
 0x296   :  { %8552 = vmatpush3.msra.mxu0 %v1310_v47  ;;  %8553 = vmatprep.mubr.msk.f32.mxu0 %vm9069_vm0, %v12551_v1 }
 0x297   :  { %7937 = vmatmul.mubr.msk.f32.gmra.mxu1 %vm794_vm3, %v9347_v52  ;;  %1374 = vmatprep.subr.mxu1 %v1354_v48  ;;  %v1348_v52 = vld [vmem:[#allocation9 + $0x440] sm:$0xff] }
 0x298   :  { %8554 = vmatmul.mubr.f32.vlgmr.msra.gmra.mxu0 %v9304_v56  ;;  %898 = vmatprep.mubr.f32.mxu1 %v12551_v1 }
 0x299   :  { %8556 = vmatprep.subr.mxu0 %v12551_v1  ;;  %8558 = vmatprep.mubr.msk.f32.mxu0 %vm9069_vm0, %v12551_v1 }
 0x29b   :  { %7938 = vmatmul.mubr.msk.f32.gmra.mxu1 %vm794_vm3, %v9353_v53  ;;  %v1347_v53 = vld [vmem:[#allocation9 + $0x438] sm:$0xff] }
 0x29c   :  { %904 = vmatprep.mubr.f32.mxu1 %v12551_v1 }
 0x29f   :  { %7939 = vmatmul.mubr.msk.f32.gmra.mxu1 %vm794_vm3, %v9359_v54  ;;  %v1345_v54 = vld [vmem:[#allocation9 + $0x428] sm:$0xff] }
 0x2a0   :  { %910 = vmatprep.mubr.f32.mxu1 %v12551_v1 }
 0x2a3   :  { %7940 = vmatmul.mubr.msk.f32.gmra.mxu1 %vm794_vm3, %v9365_v55  ;;  %v1344_v55 = vld [vmem:[#allocation9 + $0x420] sm:$0xff] }
 0x2a4   :  { %916 = vmatprep.mubr.f32.mxu1 %v12551_v1 }
 0x2a7   :  { %7941 = vmatmul.mubr.msk.f32.gmra.mxu1 %vm794_vm3, %v9371_v57  ;;  %v1342_v57 = vld [vmem:[#allocation9 + $0x410] sm:$0xff] }
 0x2a8   :  { %922 = vmatprep.mubr.f32.mxu1 %v12551_v1 }
 0x2ab   :  { %7942 = vmatmul.mubr.msk.f32.gmra.mxu1 %vm794_vm3, %v9379_v59  ;;  %v1339_v59 = vld [vmem:[#allocation9 + $0x3f8] sm:$0xff] }
 0x2ac   :  { %928 = vmatprep.mubr.f32.mxu1 %v12551_v1 }
 0x2af   :  { %7943 = vmatmul.mubr.msk.f32.gmra.mxu1 %vm794_vm3, %v9391_v63  ;;  %v1333_v63 = vld [vmem:[#allocation9 + $0x3c8] sm:$0xff] }
 0x2b0   :  { %934 = vmatprep.mubr.f32.mxu1 %v12551_v1 }
 0x2b3   :  { %7944 = vmatmul.mubr.msk.f32.gmra.mxu1 %vm794_vm3, %v9397_v5  ;;  %v1326_v5 = vld [vmem:[#allocation9 + $0x390] sm:$0xff] }
 0x2b4   :  { %1142 = vmatprep.mubr.f32.mxu1 %v12551_v1 }
 0x2b7   :  { %7954 = vmatmul.mubr.msk.f32.vlgmr.msra.gmra.mxu1 %vm794_vm3, %v9404_v6  ;;  %v1324_v6 = vld [vmem:[#allocation9 + $0x380] sm:$0xff] }
 0x2b8   :  { %1148 = vmatprep.mubr.f32.mxu1 %v12551_v1  ;;  %1375 = vmatpush1.msra.mxu1 %v1353_v49 }
 0x2b9   :  { %1376 = vmatprep.subr.mxu1 %v1351_v50 }
 0x2ba   :  { %1377 = vmatpush1.msra.mxu1 %v1350_v51 }
 0x2bb   :  { %7955 = vmatmul.mubr.msk.f32.gmra.mxu1 %vm794_vm3, %v9410_v9  ;;  %1378 = vmatprep.subr.mxu1 %v1348_v52  ;;  %v1320_v9 = vld [vmem:[#allocation9 + $0x360] sm:$0xff] }
 0x2bc   :  { %1154 = vmatprep.mubr.f32.mxu1 %v12551_v1  ;;  %1379 = vmatpush1.msra.mxu1 %v1347_v53 }
 0x2bd   :  { %1380 = vmatprep.subr.mxu1 %v1345_v54 }
 0x2be   :  { %1381 = vmatpush1.msra.mxu1 %v1344_v55 }
 0x2bf   :  { %7956 = vmatmul.mubr.msk.f32.gmra.mxu1 %vm794_vm3, %v9418_v12  ;;  %1382 = vmatprep.subr.mxu1 %v1342_v57  ;;  %v1315_v12 = vld [vmem:[#allocation9 + $0x338] sm:$0xff] }
 0x2c0   :  { %1160 = vmatprep.mubr.f32.mxu1 %v12551_v1  ;;  %1383 = vmatpush1.msra.mxu1 %v1341_v58 }
 0x2c1   :  { %1384 = vmatprep.subr.mxu1 %v1339_v59 }
 0x2c2   :  { %1385 = vmatpush1.msra.mxu1 %v1338_v60 }
 0x2c3   :  { %7957 = vmatmul.mubr.msk.f32.gmra.mxu1 %vm794_vm3, %v9426_v15  ;;  %1386 = vmatprep.subr.mxu1 %v1336_v61  ;;  %v1311_v15 = vld [vmem:[#allocation9 + $0x318] sm:$0xff] }
 0x2c4   :  { %1166 = vmatprep.mubr.f32.mxu1 %v12551_v1  ;;  %1387 = vmatpush1.msra.mxu1 %v1335_v62 }
 0x2c5   :  { %1388 = vmatprep.subr.mxu1 %v1333_v63  ;;  %v9565_v63 = vld [vmem:[#allocation11 + $0x6] sm:$0x7] }
 0x2c6   :  { %1389 = vmatpush1.msra.mxu1 %v1332_v0 }
 0x2c7   :  { %7958 = vmatmul.mubr.msk.f32.gmra.mxu1 %vm794_vm3, %v9434_v18  ;;  %1390 = vmatprep.subr.mxu1 %v1330_v2 }
 0x2c8   :  { %1172 = vmatprep.mubr.f32.mxu1 %v12551_v1  ;;  %1391 = vmatpush1.msra.mxu1 %v1329_v3 }
 0x2c9   :  { %1392 = vmatprep.subr.mxu1 %v1327_v4 }
 0x2ca   :  { %1393 = vmatpush1.msra.mxu1 %v1326_v5  ;;  %v1370_v5 = vrot.slane %v9565_v63, %v9334_v44  ;;  %v9583_v44 = vld [vmem:[#allocation12 + $0x98] sm:$0xff] }
 0x2cb   :  { %7959 = vmatmul.mubr.msk.f32.gmra.mxu1 %vm794_vm3, %v9445_v22  ;;  %1394 = vmatprep.subr.mxu1 %v1324_v6 }
 0x2cc   :  { %1178 = vmatprep.mubr.f32.mxu1 %v12551_v1  ;;  %1395 = vmatpush1.msra.mxu1 %v1323_v7 }
 0x2cd   :  { %1396 = vmatprep.subr.mxu1 %v1321_v8 }
 0x2ce   :  { %1397 = vmatpush1.msra.mxu1 %v1320_v9 }
 0x2cf   :  { %7960 = vmatmul.mubr.msk.f32.gmra.mxu1 %vm794_vm3, %v9462_v29  ;;  %1398 = vmatprep.subr.mxu1 %v1318_v10 }
 0x2d0   :  { %1184 = vmatprep.mubr.f32.mxu1 %v12551_v1  ;;  %1399 = vmatpush1.msra.mxu1 %v1317_v11 }
 0x2d1   :  { %1400 = vmatprep.subr.mxu1 %v1315_v12 }
 0x2d2   :  { %1401 = vmatpush1.msra.mxu1 %v1314_v13 }
 0x2d3   :  { %7961 = vmatmul.mubr.msk.f32.gmra.mxu1 %vm794_vm3, %v9473_v38  ;;  %1402 = vmatprep.subr.mxu1 %v1312_v14  ;;  %v9575_v14 = vld [vmem:[#allocation12 + $0x90] sm:$0xff] }
 0x2d4   :  { %1190 = vmatprep.mubr.f32.mxu1 %v12551_v1  ;;  %1403 = vmatpush1.msra.mxu1 %v1311_v15 }
 0x2d5   :  { %1404 = vmatprep.subr.mxu1 %v1309_v16 }
 0x2d6   :  { %1405 = vmatpush1.msra.mxu1 %v1308_v17 }
 0x2d7   :  { %7962 = vmatmul.mubr.msk.f32.gmra.mxu1 %vm794_vm3, %v9482_v45 }
 0x2d8   :  { %1438 = vmatprep.mubr.f32.mxu1 %v12551_v1 }
 0x2db   :  { %1439 = vmatmul.mubr.f32.vlgmr.msra.gmra.mxu1 %v9304_v56 }
 0x2dc   :  { %1619 = vmatprep.mubr.f32.mxu1 %v12551_v1 }
 0x310   :  { %v1007_v18 = vpop.f32.mrf.mxu0 }
 0x312   :  { %v8467_v19 = vpop.f32.mrf.mxu0 }
 0x313   :  { %v9591_v19 = vld [vmem:[#allocation12 + $0xa0] sm:$0xff] }
 0x314   :  { %v1012_v20 = vpop.f32.mrf.mxu0 }
 0x316   :  { %v8470_v22 = vpop.f32.mrf.mxu0 }
 0x318   :  { %v1017_v24 = vpop.f32.mrf.mxu0 }
 0x31a   :  { %v8473_v25 = vpop.f32.mrf.mxu0 }
 0x31c   :  { %v1022_v26 = vpop.f32.mrf.mxu0 }
 0x31e   :  { %v8476_v27 = vpop.f32.mrf.mxu0 }
 0x31f   :  { %v9607_v27 = vld [vmem:[#allocation12 + $0xb0] sm:$0xff] }
 0x320   :  { %v1027_v28 = vpop.f32.mrf.mxu0 }
 0x322   :  { %v8479_v29 = vpop.f32.mrf.mxu0 }
 0x324   :  { %v1032_v30 = vpop.f32.mrf.mxu0 }
 0x326   :  { %v8482_v31 = vpop.f32.mrf.mxu0 }
 0x328   :  { %v1037_v32 = vpop.f32.mrf.mxu0 }
 0x32a   :  { %v8485_v33 = vpop.f32.mrf.mxu0 }
 0x32b   :  { %v9623_v33 = vld [vmem:[#allocation12 + $0xc0] sm:$0xff] }
 0x32c   :  { %v1042_v34 = vpop.f32.mrf.mxu0 }
 0x32e   :  { %v8488_v35 = vpop.f32.mrf.mxu0 }
 0x330   :  { %v1047_v36 = vpop.f32.mrf.mxu0 }
 0x332   :  { %v8491_v56 = vpop.f32.mrf.mxu0 }
 0x334   :  { %v1263_v37 = vpop.f32.mrf.mxu0 }
 0x335   :  { %v9549_v38 = vadd.f32 %v1263_v37, %v1007_v18 }
 0x336   :  { %v8496_v39 = vpop.f32.mrf.mxu0 }
 0x338   :  { %v1268_v40 = vpop.f32.mrf.mxu0 }
 0x339   :  { %v9551_v41 = vadd.f32 %v1268_v40, %v1012_v20  ;;  %v9641_v40 = vld [vmem:[#allocation12 + $0xd0] sm:$0xff] }
 0x33a   :  { %v8499_v42 = vpop.f32.mrf.mxu0 }
 0x33c   :  { %v1273_v43 = vpop.f32.mrf.mxu0 }
 0x33d   :  { %v9553_v45 = vadd.f32 %v1273_v43, %v1017_v24  ;;  %v9599_v24 = vld [vmem:[#allocation12 + $0xa8] sm:$0xff] }
 0x33e   :  { %v8502_v46 = vpop.f32.mrf.mxu0 }
 0x340   :  { %v1278_v47 = vpop.f32.mrf.mxu0 }
 0x341   :  { %v9555_v48 = vadd.f32 %v1278_v47, %v1022_v26 }
 0x342   :  { %v8505_v49 = vpop.f32.mrf.mxu0 }
 0x344   :  { %v1283_v50 = vpop.f32.mrf.mxu0 }
 0x345   :  { %v9557_v51 = vadd.f32 %v1283_v50, %v1027_v28 }
 0x346   :  { %v8508_v52 = vpop.f32.mrf.mxu0 }
 0x348   :  { %v1288_v53 = vpop.f32.mrf.mxu0 }
 0x349   :  { %v9559_v54 = vadd.f32 %v1288_v53, %v1032_v30  ;;  %v9615_v30 = vld [vmem:[#allocation12 + $0xb8] sm:$0xff] }
 0x34a   :  { %v8511_v55 = vpop.f32.mrf.mxu0 }
 0x34c   :  { %v1293_v57 = vpop.f32.mrf.mxu0 }
 0x34d   :  { %v9561_v58 = vadd.f32 %v1293_v57, %v1037_v32 }
 0x34e   :  { %v8514_v59 = vpop.f32.mrf.mxu0 }
 0x350   :  { %v1298_v60 = vpop.f32.mrf.mxu0 }
 0x351   :  { %v9563_v61 = vadd.f32 %v1298_v60, %v1042_v34 }
 0x352   :  { %v8517_v62 = vpop.f32.mrf.mxu0 }
 0x353   :  { %v888_v0 = vpop.f32.mrf.mxu1 }
 0x354   :  { %v1303_v2 = vpop.f32.mrf.mxu0 }
 0x355   :  { %v9567_v3 = vpop.f32.mrf.mxu1  ;;  %v9569_v4 = vadd.f32 %v1303_v2, %v1047_v36  ;;  %v9631_v36 = vld [vmem:[#allocation12 + $0xc8] sm:$0xff] }
 0x356   :  { %v8520_v6 = vpop.f32.mrf.mxu0 }
 0x357   :  { %v894_v7 = vpop.f32.mrf.mxu1 }
 0x358   :  { %v1511_v8 = vpop.f32.mrf.mxu0 }
 0x359   :  { %v9573_v9 = vpop.f32.mrf.mxu1  ;;  %v1512_v10 = vadd.f32 %v1511_v8, %v1370_v5 }
 0x35a   :  { %v8555_v11 = vpop.f32.mrf.mxu0 }
 0x35b   :  { %v1517_v12 = vmax.f32 %v1512_v10, 0.0  ;;  %v900_v13 = vpop.f32.mrf.mxu1 }
 0x35d   :  { %v9577_v15 = vpop.f32.mrf.mxu1  ;;  %8557 = vmatpush3.msra.mxu0 %v1517_v12 }
 0x35e   :  { %8559 = vmatmul.mubr.msk.f32.vlgmr.msra.gmra.mxu0 %vm794_vm3, %v9575_v14 }
 0x35f   :  { %v906_v16 = vpop.f32.mrf.mxu1  ;;  %8561 = vmatprep.mubr.msk.f32.mxu0 %vm9069_vm0, %v12551_v1 }
 0x361   :  { %v9585_v17 = vpop.f32.mrf.mxu1 }
 0x362   :  { %8562 = vmatmul.mubr.msk.f32.gmra.mxu0 %vm794_vm3, %v9583_v44 }
 0x363   :  { %v912_v18 = vpop.f32.mrf.mxu1  ;;  %8564 = vmatprep.mubr.msk.f32.mxu0 %vm9069_vm0, %v12551_v1 }
 0x365   :  { %v9593_v20 = vpop.f32.mrf.mxu1 }
 0x366   :  { %8565 = vmatmul.mubr.msk.f32.gmra.mxu0 %vm794_vm3, %v9591_v19 }
 0x367   :  { %v918_v22 = vpop.f32.mrf.mxu1  ;;  %8567 = vmatprep.mubr.msk.f32.mxu0 %vm9069_vm0, %v12551_v1 }
 0x369   :  { %v9601_v25 = vpop.f32.mrf.mxu1 }
 0x36a   :  { %8568 = vmatmul.mubr.msk.f32.gmra.mxu0 %vm794_vm3, %v9599_v24 }
 0x36b   :  { %v924_v26 = vpop.f32.mrf.mxu1  ;;  %8570 = vmatprep.mubr.msk.f32.mxu0 %vm9069_vm0, %v12551_v1 }
 0x36d   :  { %v9609_v28 = vpop.f32.mrf.mxu1 }
 0x36e   :  { %8571 = vmatmul.mubr.msk.f32.gmra.mxu0 %vm794_vm3, %v9607_v27 }
 0x36f   :  { %v930_v29 = vpop.f32.mrf.mxu1  ;;  %8573 = vmatprep.mubr.msk.f32.mxu0 %vm9069_vm0, %v12551_v1 }
 0x371   :  { %v9617_v31 = vpop.f32.mrf.mxu1 }
 0x372   :  { %8574 = vmatmul.mubr.msk.f32.gmra.mxu0 %vm794_vm3, %v9615_v30 }
 0x373   :  { %v936_v32 = vpop.f32.mrf.mxu1  ;;  %8576 = vmatprep.mubr.msk.f32.mxu0 %vm9069_vm0, %v12551_v1 }
 0x375   :  { %v9625_v34 = vpop.f32.mrf.mxu1 }
 0x376   :  { %8577 = vmatmul.mubr.msk.f32.gmra.mxu0 %vm794_vm3, %v9623_v33 }
 0x377   :  { %v1144_v35 = vpop.f32.mrf.mxu1  ;;  %8579 = vmatprep.mubr.msk.f32.mxu0 %vm9069_vm0, %v12551_v1 }
 0x378   :  { %v9633_v56 = vadd.f32 %v1144_v35, %v888_v0 }
 0x379   :  { %v9635_v37 = vpop.f32.mrf.mxu1 }
 0x37a   :  { %8580 = vmatmul.mubr.msk.f32.gmra.mxu0 %vm794_vm3, %v9631_v36 }
 0x37b   :  { %v1150_v39 = vpop.f32.mrf.mxu1  ;;  %8582 = vmatprep.mubr.msk.f32.mxu0 %vm9069_vm0, %v12551_v1 }
 0x37c   :  { %v9643_v42 = vadd.f32 %v1150_v39, %v894_v7 }
 0x37d   :  { %v9645_v43 = vpop.f32.mrf.mxu1 }
 0x37e   :  { %8583 = vmatmul.mubr.msk.f32.gmra.mxu0 %vm794_vm3, %v9641_v40 }
 0x37f   :  { %v1156_v46 = vpop.f32.mrf.mxu1  ;;  %2148 = vmatprep.mubr.f32.mxu0 %v12551_v1 }
 0x380   :  { %v9650_v47 = vadd.f32 %v1156_v46, %v900_v13 }
 0x381   :  { %v9652_v49 = vpop.f32.mrf.mxu1 }
 0x383   :  { %v1162_v50 = vpop.f32.mrf.mxu1 }
 0x384   :  { %v9654_v52 = vadd.f32 %v1162_v50, %v906_v16  ;;  %v1362_v16 = vrot.slane %v9565_v63, %v9448_v23  ;;  %v1937_v50 = vld [vmem:[#allocation14 + $0x238] sm:$0xff]  ;;  %v10097_v23 = vld [vmem:[#allocation18 + $0xb0] sm:$0xff] }
 0x385   :  { %v9656_v53 = vpop.f32.mrf.mxu1  ;;  %2108 = vmatprep.subr.mxu0 %v1937_v50  ;;  %v1886_v50 = vld [vmem:[#allocation14 + $0xa0] sm:$0xff]  ;;  %12675 = vst [vmem:[#allocation62_spill] sm:$0xff] %v10097_v23 }
 0x387   :  { %v1168_v55 = vpop.f32.mrf.mxu1 }
 0x388   :  { %v9658_v57 = vadd.f32 %v1168_v55, %v912_v18  ;;  %v1366_v18 = vrot.slane %v9565_v63, %v9441_v21  ;;  %v1936_v55 = vld [vmem:[#allocation14 + $0x230] sm:$0xff]  ;;  %v1933_v21 = vld [vmem:[#allocation14 + $0x218] sm:$0xff] }
 0x389   :  { %v9660_v59 = vpop.f32.mrf.mxu1  ;;  %2109 = vmatpush1.msra.mxu0 %v1936_v55  ;;  %v1932_v63 = vld [vmem:[#allocation14 + $0x210] sm:$0xff]  ;;  %v1885_v55 = vld [vmem:[#allocation14 + $0x98] sm:$0xff] }
 0x38b   :  { %v1174_v60 = vpop.f32.mrf.mxu1 }
 0x38c   :  { %v9662_v62 = vadd.f32 %v1174_v60, %v918_v22  ;;  %v1934_v60 = vld [vmem:[#allocation14 + $0x220] sm:$0xff] }
 0x38d   :  { %v9664_v0 = vpop.f32.mrf.mxu1 }
 0x38f   :  { %v1180_v2 = vpop.f32.mrf.mxu1 }
 0x390   :  { %v9666_v5 = vadd.f32 %v1180_v2, %v924_v26  ;;  %v1931_v2 = vld [vmem:[#allocation14 + $0x208] sm:$0xff] }
 0x391   :  { %v9668_v6 = vpop.f32.mrf.mxu1 }
 0x393   :  { %v1186_v7 = vpop.f32.mrf.mxu1 }
 0x394   :  { %v9670_v8 = vadd.f32 %v1186_v7, %v930_v29  ;;  %v1930_v7 = vld [vmem:[#allocation14 + $0x200] sm:$0xff] }
 0x395   :  { %v9672_v10 = vpop.f32.mrf.mxu1 }
 0x397   :  { %v1192_v11 = vpop.f32.mrf.mxu1 }
 0x398   :  { %v9674_v12 = vadd.f32 %v1192_v11, %v936_v32  ;;  %v1935_v32 = vld [vmem:[#allocation14 + $0x228] sm:$0xff]  ;;  %v1897_v11 = vld [vmem:[#allocation14 + $0xf8] sm:$0xff] }
 0x399   :  { %v9676_v13 = vpop.f32.mrf.mxu1  ;;  %2110 = vmatprep.subr.mxu0 %v1935_v32  ;;  %v1883_v32 = vld [vmem:[#allocation14 + $0x88] sm:$0xff] }
 0x39a   :  { %2111 = vmatpush1.msra.mxu0 %v1934_v60  ;;  %v1882_v60 = vld [vmem:[#allocation14 + $0x80] sm:$0xff] }
 0x39b   :  { %v1440_v22 = vpop.f32.mrf.mxu1  ;;  %2112 = vmatprep.subr.mxu0 %v1933_v21  ;;  %v1881_v21 = vld [vmem:[#allocation14 + $0x78] sm:$0xff] }
 0x39c   :  { %v1441_v26 = vadd.f32 %v1440_v22, %v1362_v16  ;;  %2113 = vmatpush1.msra.mxu0 %v1932_v63  ;;  %v1896_v16 = vld [vmem:[#allocation14 + $0xf0] sm:$0xff]  ;;  %v1894_v22 = vld [vmem:[#allocation14 + $0xe0] sm:$0xff]  ;;  %v1879_v63 = vld [vmem:[#allocation14 + $0x68] sm:$0xff] }
 0x39d   :  { %v1442_v35 = vpop.f32.mrf.mxu1  ;;  %2114 = vmatprep.subr.mxu0 %v1931_v2  ;;  %v1878_v2 = vld [vmem:[#allocation14 + $0x60] sm:$0xff] }
 0x39e   :  { %v1443_v39 = vadd.f32 %v1442_v35, %v1366_v18  ;;  %v1515_v29 = vmax.f32 %v1441_v26, 0.0  ;;  %2115 = vmatpush1.msra.mxu0 %v1930_v7  ;;  %v1895_v18 = vld [vmem:[#allocation14 + $0xe8] sm:$0xff]  ;;  %v1892_v26 = vld [vmem:[#allocation14 + $0xd0] sm:$0xff]  ;;  %v1877_v7 = vld [vmem:[#allocation14 + $0x58] sm:$0xff] }
 0x39f   :  { %v1891_v35 = vld [vmem:[#allocation14 + $0xc8] sm:$0xff] }
 0x3a0   :  { %v1516_v46 = vmax.f32 %v1443_v39, 0.0  ;;  %v1890_v39 = vld [vmem:[#allocation14 + $0xc0] sm:$0xff] }
 0x3a2   :  { %1585 = vmatprep.subr.mxu1 %v1516_v46  ;;  %v1889_v46 = vld [vmem:[#allocation14 + $0xb8] sm:$0xff] }
 0x3a3   :  { %1586 = vmatpush1.msra.mxu1 %v1515_v29  ;;  %v1887_v29 = vld [vmem:[#allocation14 + $0xa8] sm:$0xff] }
 0x3a4   :  { %7972 = vmatmul.mubr.msk.f32.vlgmr.msra.gmra.mxu1 %vm794_vm3, %v9575_v14  ;;  %v2235_v14 = vld [vmem:[#allocation14 + $0x338] sm:$0xff]  ;;  %1965 = vmatprep.subr.mxu1 %v1897_v11  ;;  %v1875_v11 = vld [vmem:[#allocation14 + $0x48] sm:$0xff] }
 0x3a5   :  { %1625 = vmatprep.mubr.f32.mxu1 %v12551_v1  ;;  %2276 = vmatprep.subr.mxu0 %v2235_v14  ;;  %v1874_v14 = vld [vmem:[#allocation14 + $0x40] sm:$0xff] }
 0x3a6   :  { %1966 = vmatpush1.msra.mxu1 %v1896_v16  ;;  %v1873_v16 = vld [vmem:[#allocation14 + $0x38] sm:$0xff] }
 0x3a7   :  { %1967 = vmatprep.subr.mxu1 %v1895_v18  ;;  %v1871_v18 = vld [vmem:[#allocation14 + $0x28] sm:$0xff] }
 0x3a8   :  { %7973 = vmatmul.mubr.msk.f32.gmra.mxu1 %vm794_vm3, %v9583_v44  ;;  %v1893_v44 = vld [vmem:[#allocation14 + $0xd8] sm:$0xff] }
 0x3a9   :  { %1631 = vmatprep.mubr.f32.mxu1 %v12551_v1  ;;  %1968 = vmatpush1.msra.mxu1 %v1894_v22  ;;  %v1870_v22 = vld [vmem:[#allocation14 + $0x20] sm:$0xff] }
 0x3aa   :  { %1969 = vmatprep.subr.mxu1 %v1893_v44  ;;  %v1869_v44 = vld [vmem:[#allocation14 + $0x18] sm:$0xff] }
 0x3ab   :  { %1970 = vmatpush1.msra.mxu1 %v1892_v26  ;;  %v1868_v26 = vld [vmem:[#allocation14 + $0x10] sm:$0xff] }
 0x3ac   :  { %7974 = vmatmul.mubr.msk.f32.gmra.mxu1 %vm794_vm3, %v9591_v19  ;;  %1971 = vmatprep.subr.mxu1 %v1891_v35  ;;  %v1888_v19 = vld [vmem:[#allocation14 + $0xb0] sm:$0xff]  ;;  %v1866_v35 = vld [vmem:[#allocation14] sm:$0xff] }
 0x3ad   :  { %1637 = vmatprep.mubr.f32.mxu1 %v12551_v1  ;;  %1972 = vmatpush1.msra.mxu1 %v1890_v39  ;;  %v1929_v39 = vld [vmem:[#allocation14 + $0x1f8] sm:$0xff] }
 0x3ae   :  { %1973 = vmatprep.subr.mxu1 %v1889_v46  ;;  %v1928_v46 = vld [vmem:[#allocation14 + $0x1f0] sm:$0xff] }
 0x3af   :  { %1974 = vmatpush1.msra.mxu1 %v1888_v19  ;;  %v1927_v19 = vld [vmem:[#allocation14 + $0x1e8] sm:$0xff] }
 0x3b0   :  { %7975 = vmatmul.mubr.msk.f32.gmra.mxu1 %vm794_vm3, %v9599_v24  ;;  %1975 = vmatprep.subr.mxu1 %v1887_v29  ;;  %v1884_v24 = vld [vmem:[#allocation14 + $0x90] sm:$0xff]  ;;  %v1926_v29 = vld [vmem:[#allocation14 + $0x1e0] sm:$0xff] }
 0x3b1   :  { %1643 = vmatprep.mubr.f32.mxu1 %v12551_v1  ;;  %1976 = vmatpush1.msra.mxu1 %v1886_v50  ;;  %v1925_v50 = vld [vmem:[#allocation14 + $0x1d8] sm:$0xff] }
 0x3b2   :  { %1977 = vmatprep.subr.mxu1 %v1885_v55  ;;  %v1923_v55 = vld [vmem:[#allocation14 + $0x1c8] sm:$0xff] }
 0x3b3   :  { %1978 = vmatpush1.msra.mxu1 %v1884_v24  ;;  %v1922_v24 = vld [vmem:[#allocation14 + $0x1c0] sm:$0xff] }
 0x3b4   :  { %7976 = vmatmul.mubr.msk.f32.gmra.mxu1 %vm794_vm3, %v9607_v27  ;;  %1979 = vmatprep.subr.mxu1 %v1883_v32  ;;  %v1880_v27 = vld [vmem:[#allocation14 + $0x70] sm:$0xff]  ;;  %v1921_v32 = vld [vmem:[#allocation14 + $0x1b8] sm:$0xff] }
 0x3b5   :  { %1649 = vmatprep.mubr.f32.mxu1 %v12551_v1  ;;  %1980 = vmatpush1.msra.mxu1 %v1882_v60  ;;  %v1920_v60 = vld [vmem:[#allocation14 + $0x1b0] sm:$0xff] }
 0x3b6   :  { %1981 = vmatprep.subr.mxu1 %v1881_v21  ;;  %v1919_v21 = vld [vmem:[#allocation14 + $0x1a8] sm:$0xff] }
 0x3b7   :  { %1982 = vmatpush1.msra.mxu1 %v1880_v27  ;;  %v1918_v27 = vld [vmem:[#allocation14 + $0x1a0] sm:$0xff] }
 0x3b8   :  { %7977 = vmatmul.mubr.msk.f32.gmra.mxu1 %vm794_vm3, %v9615_v30  ;;  %1983 = vmatprep.subr.mxu1 %v1879_v63  ;;  %v1876_v30 = vld [vmem:[#allocation14 + $0x50] sm:$0xff]  ;;  %v1917_v63 = vld [vmem:[#allocation14 + $0x198] sm:$0xff] }
 0x3b9   :  { %1655 = vmatprep.mubr.f32.mxu1 %v12551_v1  ;;  %1984 = vmatpush1.msra.mxu1 %v1878_v2  ;;  %v1916_v2 = vld [vmem:[#allocation14 + $0x190] sm:$0xff] }
 0x3ba   :  { %1985 = vmatprep.subr.mxu1 %v1877_v7  ;;  %v1915_v7 = vld [vmem:[#allocation14 + $0x188] sm:$0xff] }
 0x3bb   :  { %1986 = vmatpush1.msra.mxu1 %v1876_v30  ;;  %v1914_v30 = vld [vmem:[#allocation14 + $0x180] sm:$0xff] }
 0x3bc   :  { %7978 = vmatmul.mubr.msk.f32.gmra.mxu1 %vm794_vm3, %v9623_v33  ;;  %1987 = vmatprep.subr.mxu1 %v1875_v11  ;;  %v1872_v33 = vld [vmem:[#allocation14 + $0x30] sm:$0xff]  ;;  %v1913_v11 = vld [vmem:[#allocation14 + $0x178] sm:$0xff] }
 0x3bd   :  { %1661 = vmatprep.mubr.f32.mxu1 %v12551_v1  ;;  %1988 = vmatpush1.msra.mxu1 %v1874_v14  ;;  %v1912_v14 = vld [vmem:[#allocation14 + $0x170] sm:$0xff] }
 0x3be   :  { %1989 = vmatprep.subr.mxu1 %v1873_v16  ;;  %v1911_v16 = vld [vmem:[#allocation14 + $0x168] sm:$0xff] }
 0x3bf   :  { %1990 = vmatpush1.msra.mxu1 %v1872_v33  ;;  %v1910_v33 = vld [vmem:[#allocation14 + $0x160] sm:$0xff] }
 0x3c0   :  { %7979 = vmatmul.mubr.msk.f32.gmra.mxu1 %vm794_vm3, %v9631_v36  ;;  %1991 = vmatprep.subr.mxu1 %v1871_v18  ;;  %v1867_v36 = vld [vmem:[#allocation14 + $0x8] sm:$0xff]  ;;  %v1909_v18 = vld [vmem:[#allocation14 + $0x158] sm:$0xff] }
 0x3c1   :  { %1667 = vmatprep.mubr.f32.mxu1 %v12551_v1  ;;  %1992 = vmatpush1.msra.mxu1 %v1870_v22  ;;  %v1908_v22 = vld [vmem:[#allocation14 + $0x150] sm:$0xff] }
 0x3c2   :  { %1993 = vmatprep.subr.mxu1 %v1869_v44  ;;  %v1907_v44 = vld [vmem:[#allocation14 + $0x148] sm:$0xff] }
 0x3c3   :  { %1994 = vmatpush1.msra.mxu1 %v1868_v26  ;;  %v1906_v26 = vld [vmem:[#allocation14 + $0x140] sm:$0xff] }
 0x3c4   :  { %7980 = vmatmul.mubr.msk.f32.gmra.mxu1 %vm794_vm3, %v9641_v40  ;;  %1995 = vmatprep.subr.mxu1 %v1867_v36  ;;  %v1924_v40 = vld [vmem:[#allocation14 + $0x1d0] sm:$0xff]  ;;  %v1905_v36 = vld [vmem:[#allocation14 + $0x138] sm:$0xff] }
 0x3c5   :  { %1996 = vmatpush1.msra.mxu1 %v1866_v35  ;;  %v1904_v35 = vld [vmem:[#allocation14 + $0x130] sm:$0xff] }
 0x3c6   :  { %1997 = vmatprep.subr.mxu1 %v1929_v39  ;;  %v1903_v39 = vld [vmem:[#allocation14 + $0x128] sm:$0xff] }
 0x3c7   :  { %1998 = vmatpush2.msra.mxu1 %v1928_v46  ;;  %v1902_v46 = vld [vmem:[#allocation14 + $0x120] sm:$0xff] }
 0x3c8   :  { %1999 = vmatprep.subr.mxu1 %v1927_v19  ;;  %v1901_v19 = vld [vmem:[#allocation14 + $0x118] sm:$0xff] }
 0x3c9   :  { %2000 = vmatpush2.msra.mxu1 %v1926_v29  ;;  %v1900_v29 = vld [vmem:[#allocation14 + $0x110] sm:$0xff] }
 0x3ca   :  { %2001 = vmatprep.subr.mxu1 %v1925_v50  ;;  %v1899_v50 = vld [vmem:[#allocation14 + $0x108] sm:$0xff] }
 0x3cb   :  { %2002 = vmatpush2.msra.mxu1 %v1924_v40  ;;  %v1898_v40 = vld [vmem:[#allocation14 + $0x100] sm:$0xff] }
 0x3cc   :  { %2003 = vmatprep.subr.mxu1 %v1923_v55  ;;  %v2275_v55 = vld [vmem:[#allocation14 + $0x478] sm:$0xff] }
 0x3cd   :  { %2004 = vmatpush2.msra.mxu1 %v1922_v24 }
 0x3ce   :  { %2005 = vmatprep.subr.mxu1 %v1921_v32 }
 0x3cf   :  { %2006 = vmatpush2.msra.mxu1 %v1920_v60 }
 0x3d0   :  { %2007 = vmatprep.subr.mxu1 %v1919_v21 }
 0x3d1   :  { %2008 = vmatpush2.msra.mxu1 %v1918_v27 }
 0x3d2   :  { %2009 = vmatprep.subr.mxu1 %v1917_v63 }
 0x3d3   :  { %2010 = vmatpush2.msra.mxu1 %v1916_v2 }
 0x3d4   :  { %2011 = vmatprep.subr.mxu1 %v1915_v7 }
 0x3d5   :  { %2012 = vmatpush2.msra.mxu1 %v1914_v30  ;;  %v2234_v30 = vld [vmem:[#allocation14 + $0x330] sm:$0xff] }
 0x3d6   :  { %2013 = vmatprep.subr.mxu1 %v1913_v11 }
 0x3d7   :  { %2014 = vmatpush2.msra.mxu1 %v1912_v14 }
 0x3d8   :  { %2015 = vmatprep.subr.mxu1 %v1911_v16  ;;  %v2233_v16 = vld [vmem:[#allocation14 + $0x328] sm:$0xff] }
 0x3d9   :  { %2016 = vmatpush2.msra.mxu1 %v1910_v33 }
 0x3da   :  { %2017 = vmatprep.subr.mxu1 %v1909_v18 }
 0x3db   :  { %2018 = vmatpush2.msra.mxu1 %v1908_v22 }
 0x3dc   :  { %2019 = vmatprep.subr.mxu1 %v1907_v44 }
 0x3dd   :  { %2020 = vmatpush2.msra.mxu1 %v1906_v26  ;;  %v2229_v26 = vld [vmem:[#allocation14 + $0x308] sm:$0xff] }
 0x3de   :  { %2021 = vmatprep.subr.mxu1 %v1905_v36  ;;  %v2228_v36 = vld [vmem:[#allocation14 + $0x300] sm:$0xff] }
 0x3df   :  { %2022 = vmatpush2.msra.mxu1 %v1904_v35 }
 0x3e0   :  { %2023 = vmatprep.subr.mxu1 %v1903_v39  ;;  %v2227_v39 = vld [vmem:[#allocation14 + $0x2f8] sm:$0xff] }
 0x3e1   :  { %2024 = vmatpush2.msra.mxu1 %v1902_v46  ;;  %v2226_v46 = vld [vmem:[#allocation14 + $0x2f0] sm:$0xff] }
 0x3e2   :  { %2025 = vmatprep.subr.mxu1 %v1901_v19 }
 0x3e3   :  { %2026 = vmatpush2.msra.mxu1 %v1900_v29 }
 0x3e4   :  { %2027 = vmatprep.subr.mxu1 %v1899_v50  ;;  %v2225_v50 = vld [vmem:[#allocation14 + $0x2e8] sm:$0xff] }
 0x3e5   :  { %2028 = vmatpush2.msra.mxu1 %v1898_v40  ;;  %v2224_v40 = vld [vmem:[#allocation14 + $0x2e0] sm:$0xff] }
 0x3e6   :  { %2419 = vmatprep.subr.mxu1 %v2275_v55 }
 0x41e   :  { %v1740_v24 = vpop.f32.mrf.mxu0 }
 0x41f   :  { %v1786_v32 = vadd.f32 %v1740_v24, %v9549_v38  ;;  %v2232_v38 = vld [vmem:[#allocation14 + $0x320] sm:$0xff]  ;;  %v2223_v24 = vld [vmem:[#allocation14 + $0x2d8] sm:$0xff] }
 0x420   :  { %v8560_v60 = vpop.f32.mrf.mxu0 }
 0x421   :  { %1814 = vst.msk [vmem:[#allocation2 + $0x10] sm:$0xff] %vm1813_vm4, %v1786_v32  ;;  %v2222_v32 = vld [vmem:[#allocation14 + $0x2d0] sm:$0xff] }
 0x422   :  { %v1745_v21 = vpop.f32.mrf.mxu0 }
 0x423   :  { %v1789_v27 = vadd.f32 %v1745_v21, %v9551_v41  ;;  %v2231_v41 = vld [vmem:[#allocation14 + $0x318] sm:$0xff] }
 0x424   :  { %v8563_v63 = vpop.f32.mrf.mxu0 }
 0x425   :  { %1817 = vst.msk [vmem:[#allocation2 + $0x28] sm:$0xff] %vm1813_vm4, %v1789_v27  ;;  %v2221_v27 = vld [vmem:[#allocation14 + $0x2c8] sm:$0xff]  ;;  %v2220_v63 = vld [vmem:[#allocation14 + $0x2c0] sm:$0xff] }
 0x426   :  { %v1750_v2 = vpop.f32.mrf.mxu0 }
 0x427   :  { %v1792_v7 = vadd.f32 %v1750_v2, %v9553_v45  ;;  %v2230_v45 = vld [vmem:[#allocation14 + $0x310] sm:$0xff] }
 0x428   :  { %v8566_v11 = vpop.f32.mrf.mxu0  ;;  %v9713_v14 = vld [vmem:[#allocation2 + $0x10] sm:$0xff] }
 0x429   :  { %1820 = vst.msk [vmem:[#allocation2 + $0x40] sm:$0xff] %vm1813_vm4, %v1792_v7  ;;  %7990 = vmatmul.mubr.msk.f32.vlgmr.msra.gmra.mxu0 %vm1813_vm4, %v9713_v14  ;;  %v2219_v7 = vld [vmem:[#allocation14 + $0x2b8] sm:$0xff] }
 0x42a   :  { %v1755_v33 = vpop.f32.mrf.mxu0  ;;  %2154 = vmatprep.mubr.f32.mxu0 %v12551_v1  ;;  %2277 = vmatpush1.msra.mxu0 %v2234_v30  ;;  %v2218_v30 = vld [vmem:[#allocation14 + $0x2b0] sm:$0xff] }
 0x42b   :  { %v1795_v18 = vadd.f32 %v1755_v33, %v9555_v48  ;;  %2278 = vmatprep.subr.mxu0 %v2233_v16  ;;  %v2216_v33 = vld [vmem:[#allocation14 + $0x2a0] sm:$0xff] }
 0x42c   :  { %v8569_v22 = vpop.f32.mrf.mxu0  ;;  %v9720_v44 = vld [vmem:[#allocation2 + $0x28] sm:$0xff]  ;;  %2279 = vmatpush1.msra.mxu0 %v2232_v38 }
 0x42d   :  { %1823 = vst.msk [vmem:[#allocation2 + $0x58] sm:$0xff] %vm1813_vm4, %v1795_v18  ;;  %7991 = vmatmul.mubr.msk.f32.gmra.mxu0 %vm1813_vm4, %v9720_v44  ;;  %2280 = vmatprep.subr.mxu0 %v2231_v41  ;;  %v2217_v38 = vld [vmem:[#allocation14 + $0x2a8] sm:$0xff]  ;;  %v2215_v18 = vld [vmem:[#allocation14 + $0x298] sm:$0xff] }
 0x42e   :  { %v1760_v35 = vpop.f32.mrf.mxu0  ;;  %2160 = vmatprep.mubr.f32.mxu0 %v12551_v1  ;;  %2281 = vmatpush1.msra.mxu0 %v2230_v45  ;;  %v2214_v45 = vld [vmem:[#allocation14 + $0x290] sm:$0xff] }
 0x42f   :  { %v1798_v48 = vadd.f32 %v1760_v35, %v9557_v51  ;;  %2282 = vmatprep.subr.mxu0 %v2229_v26  ;;  %v2212_v35 = vld [vmem:[#allocation14 + $0x280] sm:$0xff] }
 0x430   :  { %v8572_v19 = vpop.f32.mrf.mxu0  ;;  %v9727_v29 = vld [vmem:[#allocation2 + $0x40] sm:$0xff]  ;;  %2283 = vmatpush1.msra.mxu0 %v2228_v36 }
 0x431   :  { %1826 = vst.msk [vmem:[#allocation2 + $0x70] sm:$0xff] %vm1813_vm4, %v1798_v48  ;;  %7992 = vmatmul.mubr.msk.f32.gmra.mxu0 %vm1813_vm4, %v9727_v29  ;;  %2284 = vmatprep.subr.mxu0 %v2227_v39  ;;  %v2213_v36 = vld [vmem:[#allocation14 + $0x288] sm:$0xff]  ;;  %v2211_v48 = vld [vmem:[#allocation14 + $0x278] sm:$0xff] }
 0x432   :  { %v1765_v55 = vpop.f32.mrf.mxu0  ;;  %2166 = vmatprep.mubr.f32.mxu0 %v12551_v1  ;;  %2285 = vmatpush1.msra.mxu0 %v2226_v46  ;;  %v2210_v46 = vld [vmem:[#allocation14 + $0x270] sm:$0xff] }
 0x433   :  { %v1801_v51 = vadd.f32 %v1765_v55, %v9559_v54  ;;  %2286 = vmatprep.subr.mxu0 %v2225_v50  ;;  %v2209_v50 = vld [vmem:[#allocation14 + $0x268] sm:$0xff]  ;;  %v2208_v55 = vld [vmem:[#allocation14 + $0x260] sm:$0xff] }
 0x434   :  { %v8575_v60 = vpop.f32.mrf.mxu0  ;;  %v9734_v21 = vld [vmem:[#allocation2 + $0x58] sm:$0xff]  ;;  %2287 = vmatpush1.msra.mxu0 %v2224_v40 }
 0x435   :  { %1829 = vst.msk [vmem:[#allocation2 + $0x88] sm:$0xff] %vm1813_vm4, %v1801_v51  ;;  %7993 = vmatmul.mubr.msk.f32.gmra.mxu0 %vm1813_vm4, %v9734_v21  ;;  %2288 = vmatprep.subr.mxu0 %v2223_v24  ;;  %v2207_v24 = vld [vmem:[#allocation14 + $0x258] sm:$0xff]  ;;  %v2204_v60 = vld [vmem:[#allocation14 + $0x240] sm:$0xff] }
 0x436   :  { %v1770_v2 = vpop.f32.mrf.mxu0  ;;  %2172 = vmatprep.mubr.f32.mxu0 %v12551_v1  ;;  %2289 = vmatpush1.msra.mxu0 %v2222_v32  ;;  %v2205_v32 = vld [vmem:[#allocation14 + $0x248] sm:$0xff] }
 0x437   :  { %v1804_v54 = vadd.f32 %v1770_v2, %v9561_v58  ;;  %2290 = vmatprep.subr.mxu0 %v2221_v27  ;;  %v2267_v27 = vld [vmem:[#allocation14 + $0x438] sm:$0xff] }
 0x438   :  { %v8578_v11 = vpop.f32.mrf.mxu0  ;;  %v9741_v16 = vld [vmem:[#allocation2 + $0x70] sm:$0xff]  ;;  %2291 = vmatpush1.msra.mxu0 %v2220_v63 }
 0x439   :  { %1832 = vst.msk [vmem:[#allocation2 + $0xa0] sm:$0xff] %vm1813_vm4, %v1804_v54  ;;  %7994 = vmatmul.mubr.msk.f32.gmra.mxu0 %vm1813_vm4, %v9741_v16  ;;  %2292 = vmatprep.subr.mxu0 %v2219_v7  ;;  %v2266_v63 = vld [vmem:[#allocation14 + $0x430] sm:$0xff]  ;;  %v2265_v7 = vld [vmem:[#allocation14 + $0x428] sm:$0xff]  ;;  %v2264_v54 = vld [vmem:[#allocation14 + $0x420] sm:$0xff] }
 0x43a   :  { %v1775_v41 = vpop.f32.mrf.mxu0  ;;  %2178 = vmatprep.mubr.f32.mxu0 %v12551_v1  ;;  %2293 = vmatpush1.msra.mxu0 %v2218_v30  ;;  %v2263_v30 = vld [vmem:[#allocation14 + $0x418] sm:$0xff]  ;;  %v2262_v11 = vld [vmem:[#allocation14 + $0x410] sm:$0xff] }
 0x43b   :  { %v1807_v58 = vadd.f32 %v1775_v41, %v9563_v61  ;;  %2294 = vmatprep.subr.mxu0 %v2217_v38  ;;  %v2261_v38 = vld [vmem:[#allocation14 + $0x408] sm:$0xff]  ;;  %v2259_v41 = vld [vmem:[#allocation14 + $0x3f8] sm:$0xff] }
 0x43c   :  { %v8581_v22 = vpop.f32.mrf.mxu0  ;;  %v9748_v26 = vld [vmem:[#allocation2 + $0x88] sm:$0xff]  ;;  %2295 = vmatpush1.msra.mxu0 %v2216_v33  ;;  %v2260_v33 = vld [vmem:[#allocation14 + $0x400] sm:$0xff] }
 0x43d   :  { %1835 = vst.msk [vmem:[#allocation2 + $0xb8] sm:$0xff] %vm1813_vm4, %v1807_v58  ;;  %7995 = vmatmul.mubr.msk.f32.gmra.mxu0 %vm1813_vm4, %v9748_v26  ;;  %2296 = vmatprep.subr.mxu0 %v2215_v18  ;;  %v2258_v18 = vld [vmem:[#allocation14 + $0x3f0] sm:$0xff]  ;;  %v2257_v58 = vld [vmem:[#allocation14 + $0x3e8] sm:$0xff]  ;;  %v2255_v22 = vld [vmem:[#allocation14 + $0x3d8] sm:$0xff] }
 0x43e   :  { %v1780_v39 = vpop.f32.mrf.mxu0  ;;  %2184 = vmatprep.mubr.f32.mxu0 %v12551_v1  ;;  %2297 = vmatpush1.msra.mxu0 %v2214_v45  ;;  %v2256_v45 = vld [vmem:[#allocation14 + $0x3e0] sm:$0xff] }
 0x43f   :  { %v1810_v61 = vadd.f32 %v1780_v39, %v9569_v4  ;;  %2298 = vmatprep.subr.mxu0 %v2213_v36  ;;  %v2206_v4 = vld [vmem:[#allocation14 + $0x250] sm:$0xff]  ;;  %v2252_v39 = vld [vmem:[#allocation14 + $0x3c0] sm:$0xff] }
 0x440   :  { %v9755_v19 = vld [vmem:[#allocation2 + $0xa0] sm:$0xff]  ;;  %2299 = vmatpush1.msra.mxu0 %v2212_v35  ;;  %v8584_v40 = vpop.f32.mrf.mxu0  ;;  %v2254_v36 = vld [vmem:[#allocation14 + $0x3d0] sm:$0xff] }
 0x441   :  { %1838 = vst.msk [vmem:[#allocation2 + $0xd0] sm:$0xff] %vm1813_vm4, %v1810_v61  ;;  %7996 = vmatmul.mubr.msk.f32.gmra.mxu0 %vm1813_vm4, %v9755_v19  ;;  %2300 = vmatprep.subr.mxu0 %v2211_v48  ;;  %v2253_v35 = vld [vmem:[#allocation14 + $0x3c8] sm:$0xff]  ;;  %v2251_v48 = vld [vmem:[#allocation14 + $0x3b8] sm:$0xff]  ;;  %v2250_v61 = vld [vmem:[#allocation14 + $0x3b0] sm:$0xff] }
 0x442   :  { %2190 = vmatprep.mubr.f32.mxu0 %v12551_v1  ;;  %2301 = vmatpush1.msra.mxu0 %v2210_v46  ;;  %v2249_v46 = vld [vmem:[#allocation14 + $0x3a8] sm:$0xff]  ;;  %v2247_v40 = vld [vmem:[#allocation14 + $0x398] sm:$0xff] }
 0x443   :  { %2302 = vmatprep.subr.mxu0 %v2209_v50  ;;  %v2248_v50 = vld [vmem:[#allocation14 + $0x3a0] sm:$0xff] }
 0x444   :  { %v9761_v51 = vld [vmem:[#allocation2 + $0xb8] sm:$0xff]  ;;  %2303 = vmatpush1.msra.mxu0 %v2208_v55  ;;  %v2246_v55 = vld [vmem:[#allocation14 + $0x390] sm:$0xff] }
 0x445   :  { %7997 = vmatmul.mubr.msk.f32.gmra.mxu0 %vm1813_vm4, %v9761_v51  ;;  %2304 = vmatprep.subr.mxu0 %v2207_v24  ;;  %v2245_v24 = vld [vmem:[#allocation14 + $0x388] sm:$0xff] }
 0x446   :  { %2196 = vmatprep.mubr.f32.mxu0 %v12551_v1  ;;  %2305 = vmatpush1.msra.mxu0 %v2206_v4  ;;  %v2244_v4 = vld [vmem:[#allocation14 + $0x380] sm:$0xff] }
 0x447   :  { %2306 = vmatprep.subr.mxu0 %v2205_v32  ;;  %v2243_v32 = vld [vmem:[#allocation14 + $0x378] sm:$0xff] }
 0x448   :  { %v9766_v2 = vld [vmem:[#allocation2 + $0xd0] sm:$0xff]  ;;  %2307 = vmatpush1.msra.mxu0 %v2204_v60 }
 0x449   :  { %7998 = vmatmul.mubr.msk.f32.gmra.mxu0 %vm1813_vm4, %v9766_v2  ;;  %2308 = vmatprep.subr.mxu0 %v2267_v27  ;;  %v2242_v60 = vld [vmem:[#allocation14 + $0x370] sm:$0xff]  ;;  %v2241_v27 = vld [vmem:[#allocation14 + $0x368] sm:$0xff] }
 0x44a   :  { %2309 = vmatpush2.msra.mxu0 %v2266_v63  ;;  %v2240_v63 = vld [vmem:[#allocation14 + $0x360] sm:$0xff] }
 0x44b   :  { %2310 = vmatprep.subr.mxu0 %v2265_v7  ;;  %v2239_v7 = vld [vmem:[#allocation14 + $0x358] sm:$0xff] }
 0x44c   :  { %2311 = vmatpush2.msra.mxu0 %v2264_v54  ;;  %v2238_v54 = vld [vmem:[#allocation14 + $0x350] sm:$0xff] }
 0x44d   :  { %2312 = vmatprep.subr.mxu0 %v2263_v30 }
 0x44e   :  { %2313 = vmatpush2.msra.mxu0 %v2262_v11  ;;  %v2237_v11 = vld [vmem:[#allocation14 + $0x348] sm:$0xff] }
 0x44f   :  { %2314 = vmatprep.subr.mxu0 %v2261_v38  ;;  %v1147_v38 = vadd.f32 %v9635_v37, %v9567_v3  ;;  %v2273_v3 = vld [vmem:[#allocation14 + $0x468] sm:$0xff] }
 0x450   :  { %2315 = vmatpush2.msra.mxu0 %v2260_v33 }
 0x451   :  { %2316 = vmatprep.subr.mxu0 %v2259_v41  ;;  %v2236_v41 = vld [vmem:[#allocation14 + $0x340] sm:$0xff] }
 0x452   :  { %2317 = vmatpush2.msra.mxu0 %v2258_v18 }
 0x453   :  { %2318 = vmatprep.subr.mxu0 %v2257_v58 }
 0x454   :  { %2319 = vmatpush2.msra.mxu0 %v2256_v45 }
 0x455   :  { %2320 = vmatprep.subr.mxu0 %v2255_v22  ;;  %v2274_v22 = vld [vmem:[#allocation14 + $0x470] sm:$0xff] }
 0x456   :  { %2321 = vmatpush2.msra.mxu0 %v2254_v36  ;;  %v2586_v36 = vld [vmem:[#allocation14 + $0x6b8] sm:$0xff] }
 0x457   :  { %2322 = vmatprep.subr.mxu0 %v2253_v35  ;;  %v1153_v35 = vadd.f32 %v9645_v43, %v9573_v9  ;;  %v2272_v9 = vld [vmem:[#allocation14 + $0x460] sm:$0xff]  ;;  %v1159_v43 = vadd.f32 %v9652_v49, %v9577_v15  ;;  %v2270_v15 = vld [vmem:[#allocation14 + $0x450] sm:$0xff]  ;;  %v1165_v49 = vadd.f32 %v9656_v53, %v9585_v17  ;;  %v1171_v53 = vadd.f32 %v9660_v59, %v9593_v20 }
 0x458   :  { %2323 = vmatpush2.msra.mxu0 %v2252_v39  ;;  %v2268_v17 = vld [vmem:[#allocation14 + $0x440] sm:$0xff]  ;;  %v1177_v20 = vadd.f32 %v9664_v0, %v9601_v25 }
 0x459   :  { %2324 = vmatprep.subr.mxu0 %v2251_v48 }
 0x45a   :  { %2325 = vmatpush2.msra.mxu0 %v2250_v61 }
 0x45b   :  { %2326 = vmatprep.subr.mxu0 %v2249_v46 }
 0x45c   :  { %2327 = vmatpush2.msra.mxu0 %v2248_v50  ;;  %v2271_v50 = vld [vmem:[#allocation14 + $0x458] sm:$0xff] }
 0x45d   :  { %2328 = vmatprep.subr.mxu0 %v2247_v40  ;;  %v2583_v40 = vld [vmem:[#allocation14 + $0x6a0] sm:$0xff] }
 0x45e   :  { %2329 = vmatpush2.msra.mxu0 %v2246_v55 }
 0x45f   :  { %2330 = vmatprep.subr.mxu0 %v2245_v24 }
 0x460   :  { %2331 = vmatpush2.msra.mxu0 %v2244_v4 }
 0x461   :  { %2332 = vmatprep.subr.mxu0 %v2243_v32 }
 0x462   :  { %2333 = vmatpush2.msra.mxu0 %v2242_v60  ;;  %v2269_v60 = vld [vmem:[#allocation14 + $0x448] sm:$0xff] }
 0x463   :  { %2334 = vmatprep.subr.mxu0 %v2241_v27  ;;  %v2581_v27 = vld [vmem:[#allocation14 + $0x690] sm:$0xff] }
 0x464   :  { %v1621_v30 = vpop.f32.mrf.mxu1  ;;  %2335 = vmatpush2.msra.mxu0 %v2240_v63 }
 0x465   :  { %v9773_v33 = vadd.f32 %v1621_v30, %v9633_v56  ;;  %2336 = vmatprep.subr.mxu0 %v2239_v7  ;;  %v2585_v56 = vld [vmem:[#allocation14 + $0x6b0] sm:$0xff] }
 0x466   :  { %v1623_v18 = vpop.f32.mrf.mxu1  ;;  %2337 = vmatpush2.msra.mxu0 %v2238_v54 }
 0x467   :  { %v9775_v58 = vadd.f32 %v1623_v18, %v1147_v38  ;;  %2338 = vmatprep.subr.mxu0 %v2237_v11  ;;  %v2546_v11 = vld [vmem:[#allocation14 + $0x578] sm:$0xff]  ;;  %v2579_v38 = vld [vmem:[#allocation14 + $0x680] sm:$0xff] }
 0x468   :  { %v1627_v45 = vpop.f32.mrf.mxu1  ;;  %2339 = vmatpush2.msra.mxu0 %v2236_v41 }
 0x469   :  { %v9780_v39 = vadd.f32 %v1627_v45, %v9643_v42  ;;  %2029 = vmatprep.mubr.f32.mxu1 %v9775_v58  ;;  %2340 = vmatprep.mubr.f32.mxu0 %v9775_v58  ;;  %v2584_v42 = vld [vmem:[#allocation14 + $0x6a8] sm:$0xff] }
 0x46a   :  { %v1629_v37 = vpop.f32.mrf.mxu1  ;;  %2030 = vmatmul.mubr.f32.vlgmr.msra.gmra.mxu1 %v9773_v33  ;;  %2341 = vmatmul.mubr.f32.vlgmr.msra.gmra.mxu0 %v9773_v33 }
 0x46b   :  { %v9786_v48 = vadd.f32 %v1629_v37, %v1153_v35  ;;  %2420 = vmatpush1.msra.mxu1 %v2274_v22  ;;  %2730 = vmatprep.subr.mxu0 %v2586_v36  ;;  %v1183_v35 = vadd.f32 %v9668_v6, %v9609_v28 }
 0x46c   :  { %v1633_v61 = vpop.f32.mrf.mxu1  ;;  %2421 = vmatprep.subr.mxu1 %v2273_v3  ;;  %2731 = vmatpush1.msra.mxu0 %v2585_v56  ;;  %v1189_v56 = vadd.f32 %v9672_v10, %v9617_v31 }
 0x46d   :  { %v9791_v46 = vadd.f32 %v1633_v61, %v9650_v47  ;;  %2035 = vmatprep.mubr.f32.mxu1 %v9786_v48  ;;  %2346 = vmatprep.mubr.f32.mxu0 %v9786_v48  ;;  %v2582_v47 = vld [vmem:[#allocation14 + $0x698] sm:$0xff]  ;;  %v1195_v61 = vadd.f32 %v9676_v13, %v9625_v34  ;;  %v2545_v34 = vld [vmem:[#allocation14 + $0x570] sm:$0xff]  ;;  %v2543_v13 = vld [vmem:[#allocation14 + $0x560] sm:$0xff] }
 0x46e   :  { %v1635_v55 = vpop.f32.mrf.mxu1  ;;  %2036 = vmatmul.mubr.f32.gmra.mxu1 %v9780_v39  ;;  %2347 = vmatmul.mubr.f32.gmra.mxu0 %v9780_v39 }
 0x46f   :  { %v9797_v24 = vadd.f32 %v1635_v55, %v1159_v43  ;;  %2422 = vmatpush1.msra.mxu1 %v2272_v9  ;;  %2732 = vmatprep.subr.mxu0 %v2584_v42  ;;  %v2542_v9 = vld [vmem:[#allocation14 + $0x558] sm:$0xff]  ;;  %v2541_v42 = vld [vmem:[#allocation14 + $0x550] sm:$0xff]  ;;  %v2540_v43 = vld [vmem:[#allocation14 + $0x548] sm:$0xff] }
 0x470   :  { %v1639_v4 = vpop.f32.mrf.mxu1  ;;  %2423 = vmatprep.subr.mxu1 %v2271_v50  ;;  %2733 = vmatpush1.msra.mxu0 %v2583_v40  ;;  %v2539_v50 = vld [vmem:[#allocation14 + $0x540] sm:$0xff]  ;;  %v2537_v40 = vld [vmem:[#allocation14 + $0x530] sm:$0xff]  ;;  %v2536_v55 = vld [vmem:[#allocation14 + $0x528] sm:$0xff] }
 0x471   :  { %v9802_v32 = vadd.f32 %v1639_v4, %v9654_v52  ;;  %2041 = vmatprep.mubr.f32.mxu1 %v9797_v24  ;;  %2352 = vmatprep.mubr.f32.mxu0 %v9797_v24  ;;  %v2580_v52 = vld [vmem:[#allocation14 + $0x688] sm:$0xff]  ;;  %v2535_v4 = vld [vmem:[#allocation14 + $0x520] sm:$0xff] }
 0x472   :  { %v1641_v63 = vpop.f32.mrf.mxu1  ;;  %2042 = vmatmul.mubr.f32.gmra.mxu1 %v9791_v46  ;;  %2353 = vmatmul.mubr.f32.gmra.mxu0 %v9791_v46 }
 0x473   :  { %v9808_v7 = vadd.f32 %v1641_v63, %v1165_v49  ;;  %2424 = vmatpush1.msra.mxu1 %v2270_v15  ;;  %2734 = vmatprep.subr.mxu0 %v2582_v47  ;;  %v2534_v15 = vld [vmem:[#allocation14 + $0x518] sm:$0xff]  ;;  %v2532_v47 = vld [vmem:[#allocation14 + $0x508] sm:$0xff]  ;;  %v2531_v49 = vld [vmem:[#allocation14 + $0x500] sm:$0xff] }
 0x474   :  { %v1645_v54 = vpop.f32.mrf.mxu1  ;;  %2425 = vmatprep.subr.mxu1 %v2269_v60  ;;  %2735 = vmatpush1.msra.mxu0 %v2581_v27  ;;  %v2530_v60 = vld [vmem:[#allocation14 + $0x4f8] sm:$0xff]  ;;  %v2528_v27 = vld [vmem:[#allocation14 + $0x4e8] sm:$0xff]  ;;  %v2527_v63 = vld [vmem:[#allocation14 + $0x4e0] sm:$0xff] }
 0x475   :  { %v9813_v30 = vadd.f32 %v1645_v54, %v9658_v57  ;;  %2047 = vmatprep.mubr.f32.mxu1 %v9808_v7  ;;  %2358 = vmatprep.mubr.f32.mxu0 %v9808_v7  ;;  %v2526_v54 = vld [vmem:[#allocation14 + $0x4d8] sm:$0xff] }
 0x476   :  { %v1647_v41 = vpop.f32.mrf.mxu1  ;;  %2048 = vmatmul.mubr.f32.gmra.mxu1 %v9802_v32  ;;  %2359 = vmatmul.mubr.f32.gmra.mxu0 %v9802_v32 }
 0x477   :  { %v9819_v18 = vadd.f32 %v1647_v41, %v1171_v53  ;;  %2426 = vmatpush1.msra.mxu1 %v2268_v17  ;;  %2736 = vmatprep.subr.mxu0 %v2580_v52  ;;  %v2524_v17 = vld [vmem:[#allocation14 + $0x4c8] sm:$0xff]  ;;  %v2523_v52 = vld [vmem:[#allocation14 + $0x4c0] sm:$0xff]  ;;  %v2522_v53 = vld [vmem:[#allocation14 + $0x4b8] sm:$0xff] }
 0x478   :  { %v1651_v45 = vpop.f32.mrf.mxu1  ;;  %2587 = vmatprep.subr.mxu1 %v2546_v11  ;;  %2737 = vmatpush1.msra.mxu0 %v2579_v38  ;;  %v2520_v11 = vld [vmem:[#allocation14 + $0x4a8] sm:$0xff]  ;;  %v2519_v38 = vld [vmem:[#allocation14 + $0x4a0] sm:$0xff]  ;;  %v2518_v41 = vld [vmem:[#allocation14 + $0x498] sm:$0xff] }
 0x479   :  { %v9824_v57 = vadd.f32 %v1651_v45, %v9662_v62  ;;  %2053 = vmatprep.mubr.f32.mxu1 %v9819_v18  ;;  %2364 = vmatprep.mubr.f32.mxu0 %v9819_v18  ;;  %v2516_v45 = vld [vmem:[#allocation14 + $0x488] sm:$0xff] }
 0x47a   :  { %v1653_v59 = vpop.f32.mrf.mxu1  ;;  %2054 = vmatmul.mubr.f32.gmra.mxu1 %v9813_v30  ;;  %2365 = vmatmul.mubr.f32.gmra.mxu0 %v9813_v30 }
 0x47b   :  { %v9830_v22 = vadd.f32 %v1653_v59, %v1177_v20  ;;  %v2515_v20 = vld [vmem:[#allocation14 + $0x480] sm:$0xff]  ;;  %v2578_v59 = vld [vmem:[#allocation14 + $0x678] sm:$0xff] }
 0x47c   :  { %v1657_v36 = vpop.f32.mrf.mxu1 }
 0x47d   :  { %v9835_v25 = vadd.f32 %v1657_v36, %v9666_v5  ;;  %2059 = vmatprep.mubr.f32.mxu1 %v9830_v22  ;;  %2370 = vmatprep.mubr.f32.mxu0 %v9830_v22  ;;  %v2576_v36 = vld [vmem:[#allocation14 + $0x668] sm:$0xff] }
 0x47e   :  { %v1659_v62 = vpop.f32.mrf.mxu1  ;;  %2060 = vmatmul.mubr.f32.gmra.mxu1 %v9824_v57  ;;  %2371 = vmatmul.mubr.f32.gmra.mxu0 %v9824_v57 }
 0x47f   :  { %v9841_v0 = vadd.f32 %v1659_v62, %v1183_v35  ;;  %v2575_v35 = vld [vmem:[#allocation14 + $0x660] sm:$0xff]  ;;  %v2574_v62 = vld [vmem:[#allocation14 + $0x658] sm:$0xff] }
 0x480   :  { %v1663_v3 = vpop.f32.mrf.mxu1 }
 0x481   :  { %v9846_v28 = vadd.f32 %v1663_v3, %v9670_v8  ;;  %2065 = vmatprep.mubr.f32.mxu1 %v9841_v0  ;;  %2376 = vmatprep.mubr.f32.mxu0 %v9841_v0  ;;  %v2572_v3 = vld [vmem:[#allocation14 + $0x648] sm:$0xff] }
 0x482   :  { %v1665_v5 = vpop.f32.mrf.mxu1  ;;  %2066 = vmatmul.mubr.f32.gmra.mxu1 %v9835_v25  ;;  %2377 = vmatmul.mubr.f32.gmra.mxu0 %v9835_v25 }
 0x483   :  { %v9852_v6 = vadd.f32 %v1665_v5, %v1189_v56  ;;  %v2571_v56 = vld [vmem:[#allocation14 + $0x640] sm:$0xff]  ;;  %v2570_v5 = vld [vmem:[#allocation14 + $0x638] sm:$0xff] }
 0x484   :  { %v1669_v37 = vpop.f32.mrf.mxu1 }
 0x485   :  { %v9857_v31 = vadd.f32 %v1669_v37, %v9674_v12  ;;  %2071 = vmatprep.mubr.f32.mxu1 %v9852_v6  ;;  %2382 = vmatprep.mubr.f32.mxu0 %v9852_v6  ;;  %v2544_v12 = vld [vmem:[#allocation14 + $0x568] sm:$0xff]  ;;  %v2569_v37 = vld [vmem:[#allocation14 + $0x630] sm:$0xff] }
 0x486   :  { %v1671_v8 = vpop.f32.mrf.mxu1  ;;  %2072 = vmatmul.mubr.f32.gmra.mxu1 %v9846_v28  ;;  %2383 = vmatmul.mubr.f32.gmra.mxu0 %v9846_v28 }
 0x487   :  { %v9863_v10 = vadd.f32 %v1671_v8, %v1195_v61  ;;  %v2568_v61 = vld [vmem:[#allocation14 + $0x628] sm:$0xff]  ;;  %v2567_v8 = vld [vmem:[#allocation14 + $0x620] sm:$0xff] }
 0x489   :  { %2077 = vmatprep.mubr.f32.mxu1 %v9863_v10  ;;  %2388 = vmatprep.mubr.f32.mxu0 %v9863_v10 }
 0x48a   :  { %2078 = vmatmul.mubr.f32.gmra.mxu1 %v9857_v31  ;;  %2389 = vmatmul.mubr.f32.gmra.mxu0 %v9857_v31 }
 0x48b   :  { %2459 = vmatprep.mubr.f32.mxu1 %v12551_v1  ;;  %2770 = vmatprep.mubr.f32.mxu0 %v12551_v1 }
 0x48e   :  { %7999 = vmatmul.mubr.msk.f32.vlgmr.msra.gmra.mxu1 %vm1813_vm4, %v9713_v14  ;;  %8008 = vmatmul.mubr.msk.f32.vlgmr.msra.gmra.mxu0 %vm1813_vm4, %v9713_v14  ;;  %v2538_v14 = vld [vmem:[#allocation14 + $0x538] sm:$0xff] }
 0x48f   :  { %2588 = vmatpush1.msra.mxu1 %v2545_v34  ;;  %2465 = vmatprep.mubr.f32.mxu1 %v12551_v1  ;;  %v2565_v34 = vld [vmem:[#allocation14 + $0x610] sm:$0xff] }
 0x490   :  { %2589 = vmatprep.subr.mxu1 %v2544_v12  ;;  %2776 = vmatprep.mubr.f32.mxu0 %v12551_v1  ;;  %v2563_v12 = vld [vmem:[#allocation14 + $0x600] sm:$0xff] }
 0x491   :  { %2590 = vmatpush1.msra.mxu1 %v2543_v13  ;;  %v2562_v13 = vld [vmem:[#allocation14 + $0x5f8] sm:$0xff] }
 0x492   :  { %2591 = vmatprep.subr.mxu1 %v2542_v9  ;;  %8000 = vmatmul.mubr.msk.f32.gmra.mxu1 %vm1813_vm4, %v9720_v44  ;;  %v2561_v9 = vld [vmem:[#allocation14 + $0x5f0] sm:$0xff] }
 0x493   :  { %2592 = vmatpush1.msra.mxu1 %v2541_v42  ;;  %8009 = vmatmul.mubr.msk.f32.gmra.mxu0 %vm1813_vm4, %v9720_v44  ;;  %v2533_v44 = vld [vmem:[#allocation14 + $0x510] sm:$0xff]  ;;  %v2560_v42 = vld [vmem:[#allocation14 + $0x5e8] sm:$0xff] }
 0x494   :  { %2593 = vmatprep.subr.mxu1 %v2540_v43  ;;  %2471 = vmatprep.mubr.f32.mxu1 %v12551_v1  ;;  %v2559_v43 = vld [vmem:[#allocation14 + $0x5e0] sm:$0xff] }
 0x495   :  { %2594 = vmatpush1.msra.mxu1 %v2539_v50  ;;  %2782 = vmatprep.mubr.f32.mxu0 %v12551_v1  ;;  %v2558_v50 = vld [vmem:[#allocation14 + $0x5d8] sm:$0xff] }
 0x496   :  { %2595 = vmatprep.subr.mxu1 %v2538_v14  ;;  %8001 = vmatmul.mubr.msk.f32.gmra.mxu1 %vm1813_vm4, %v9727_v29  ;;  %v2557_v14 = vld [vmem:[#allocation14 + $0x5d0] sm:$0xff] }
 0x497   :  { %2596 = vmatpush1.msra.mxu1 %v2537_v40  ;;  %8010 = vmatmul.mubr.msk.f32.gmra.mxu0 %vm1813_vm4, %v9727_v29  ;;  %v2529_v29 = vld [vmem:[#allocation14 + $0x4f0] sm:$0xff]  ;;  %v2556_v40 = vld [vmem:[#allocation14 + $0x5c8] sm:$0xff] }
 0x498   :  { %2597 = vmatprep.subr.mxu1 %v2536_v55  ;;  %2477 = vmatprep.mubr.f32.mxu1 %v12551_v1  ;;  %v2555_v55 = vld [vmem:[#allocation14 + $0x5c0] sm:$0xff] }
 0x499   :  { %2598 = vmatpush1.msra.mxu1 %v2535_v4  ;;  %2788 = vmatprep.mubr.f32.mxu0 %v12551_v1  ;;  %v2554_v4 = vld [vmem:[#allocation14 + $0x5b8] sm:$0xff] }
 0x49a   :  { %2599 = vmatprep.subr.mxu1 %v2534_v15  ;;  %8002 = vmatmul.mubr.msk.f32.gmra.mxu1 %vm1813_vm4, %v9734_v21  ;;  %v2553_v15 = vld [vmem:[#allocation14 + $0x5b0] sm:$0xff] }
 0x49b   :  { %2600 = vmatpush1.msra.mxu1 %v2533_v44  ;;  %8011 = vmatmul.mubr.msk.f32.gmra.mxu0 %vm1813_vm4, %v9734_v21  ;;  %v2525_v21 = vld [vmem:[#allocation14 + $0x4d0] sm:$0xff]  ;;  %v2552_v44 = vld [vmem:[#allocation14 + $0x5a8] sm:$0xff] }
 0x49c   :  { %2601 = vmatprep.subr.mxu1 %v2532_v47  ;;  %2483 = vmatprep.mubr.f32.mxu1 %v12551_v1  ;;  %v2551_v47 = vld [vmem:[#allocation14 + $0x5a0] sm:$0xff] }
 0x49d   :  { %2602 = vmatpush1.msra.mxu1 %v2531_v49  ;;  %2794 = vmatprep.mubr.f32.mxu0 %v12551_v1  ;;  %v2550_v49 = vld [vmem:[#allocation14 + $0x598] sm:$0xff] }
 0x49e   :  { %2603 = vmatprep.subr.mxu1 %v2530_v60  ;;  %8003 = vmatmul.mubr.msk.f32.gmra.mxu1 %vm1813_vm4, %v9741_v16  ;;  %v2549_v60 = vld [vmem:[#allocation14 + $0x590] sm:$0xff] }
 0x49f   :  { %2604 = vmatpush1.msra.mxu1 %v2529_v29  ;;  %8012 = vmatmul.mubr.msk.f32.gmra.mxu0 %vm1813_vm4, %v9741_v16  ;;  %v2521_v16 = vld [vmem:[#allocation14 + $0x4b0] sm:$0xff]  ;;  %v2548_v29 = vld [vmem:[#allocation14 + $0x588] sm:$0xff] }
 0x4a0   :  { %2605 = vmatprep.subr.mxu1 %v2528_v27  ;;  %2489 = vmatprep.mubr.f32.mxu1 %v12551_v1  ;;  %v2547_v27 = vld [vmem:[#allocation14 + $0x580] sm:$0xff] }
 0x4a1   :  { %2606 = vmatpush1.msra.mxu1 %v2527_v63  ;;  %2800 = vmatprep.mubr.f32.mxu0 %v12551_v1 }
 0x4a2   :  { %2607 = vmatprep.subr.mxu1 %v2526_v54  ;;  %8004 = vmatmul.mubr.msk.f32.gmra.mxu1 %vm1813_vm4, %v9748_v26 }
 0x4a3   :  { %2608 = vmatpush1.msra.mxu1 %v2525_v21  ;;  %8013 = vmatmul.mubr.msk.f32.gmra.mxu0 %vm1813_vm4, %v9748_v26  ;;  %v2517_v26 = vld [vmem:[#allocation14 + $0x490] sm:$0xff] }
 0x4a4   :  { %2609 = vmatprep.subr.mxu1 %v2524_v17  ;;  %2495 = vmatprep.mubr.f32.mxu1 %v12551_v1 }
 0x4a5   :  { %2610 = vmatpush1.msra.mxu1 %v2523_v52  ;;  %2806 = vmatprep.mubr.f32.mxu0 %v12551_v1 }
 0x4a6   :  { %2611 = vmatprep.subr.mxu1 %v2522_v53  ;;  %8005 = vmatmul.mubr.msk.f32.gmra.mxu1 %vm1813_vm4, %v9755_v19 }
 0x4a7   :  { %2612 = vmatpush1.msra.mxu1 %v2521_v16  ;;  %8014 = vmatmul.mubr.msk.f32.gmra.mxu0 %vm1813_vm4, %v9755_v19  ;;  %v2577_v19 = vld [vmem:[#allocation14 + $0x670] sm:$0xff] }
 0x4a8   :  { %2613 = vmatprep.subr.mxu1 %v2520_v11  ;;  %2501 = vmatprep.mubr.f32.mxu1 %v12551_v1 }
 0x4a9   :  { %2614 = vmatpush1.msra.mxu1 %v2519_v38  ;;  %2812 = vmatprep.mubr.f32.mxu0 %v12551_v1 }
 0x4aa   :  { %2615 = vmatprep.subr.mxu1 %v2518_v41  ;;  %8006 = vmatmul.mubr.msk.f32.gmra.mxu1 %vm1813_vm4, %v9761_v51 }
 0x4ab   :  { %2616 = vmatpush1.msra.mxu1 %v2517_v26  ;;  %8015 = vmatmul.mubr.msk.f32.gmra.mxu0 %vm1813_vm4, %v9761_v51  ;;  %v2573_v51 = vld [vmem:[#allocation14 + $0x650] sm:$0xff] }
 0x4ac   :  { %2617 = vmatprep.subr.mxu1 %v2516_v45  ;;  %2507 = vmatprep.mubr.f32.mxu1 %v12551_v1 }
 0x4ad   :  { %2618 = vmatpush1.msra.mxu1 %v2515_v20  ;;  %2818 = vmatprep.mubr.f32.mxu0 %v12551_v1 }
 0x4ae   :  { %2619 = vmatprep.subr.mxu1 %v2578_v59  ;;  %8007 = vmatmul.mubr.msk.f32.gmra.mxu1 %vm1813_vm4, %v9766_v2 }
 0x4af   :  { %2620 = vmatpush2.msra.mxu1 %v2577_v19  ;;  %8016 = vmatmul.mubr.msk.f32.gmra.mxu0 %vm1813_vm4, %v9766_v2  ;;  %v2566_v2 = vld [vmem:[#allocation14 + $0x618] sm:$0xff] }
 0x4b0   :  { %2621 = vmatprep.subr.mxu1 %v2576_v36  ;;  %2651 = vmatprep.mubr.f32.mxu1 %v9775_v58  ;;  %v2564_v58 = vld [vmem:[#allocation14 + $0x608] sm:$0xff] }
 0x4b1   :  { %2622 = vmatpush2.msra.mxu1 %v2575_v35  ;;  %3078 = vmatprep.mubr.f32.mxu0 %v12551_v1 }
 0x4b2   :  { %2623 = vmatprep.subr.mxu1 %v2574_v62 }
 0x4b3   :  { %2624 = vmatpush2.msra.mxu1 %v2573_v51 }
 0x4b4   :  { %2625 = vmatprep.subr.mxu1 %v2572_v3 }
 0x4b5   :  { %2626 = vmatpush2.msra.mxu1 %v2571_v56 }
 0x4b6   :  { %2627 = vmatprep.subr.mxu1 %v2570_v5 }
 0x4b7   :  { %2628 = vmatpush2.msra.mxu1 %v2569_v37 }
 0x4b8   :  { %2629 = vmatprep.subr.mxu1 %v2568_v61 }
 0x4b9   :  { %2630 = vmatpush2.msra.mxu1 %v2567_v8 }
 0x4ba   :  { %2631 = vmatprep.subr.mxu1 %v2566_v2 }
 0x4bb   :  { %2632 = vmatpush2.msra.mxu1 %v2565_v34 }
 0x4bc   :  { %2633 = vmatprep.subr.mxu1 %v2564_v58 }
 0x4bd   :  { %2634 = vmatpush2.msra.mxu1 %v2563_v12 }
 0x4be   :  { %2635 = vmatprep.subr.mxu1 %v2562_v13 }
 0x4bf   :  { %2636 = vmatpush2.msra.mxu1 %v2561_v9 }
 0x4c0   :  { %2637 = vmatprep.subr.mxu1 %v2560_v42 }
 0x4c1   :  { %2638 = vmatpush2.msra.mxu1 %v2559_v43 }
 0x4c2   :  { %2639 = vmatprep.subr.mxu1 %v2558_v50 }
 0x4c3   :  { %2640 = vmatpush2.msra.mxu1 %v2557_v14 }
 0x4c4   :  { %2641 = vmatprep.subr.mxu1 %v2556_v40 }
 0x4c5   :  { %2642 = vmatpush2.msra.mxu1 %v2555_v55 }
 0x4c6   :  { %2643 = vmatprep.subr.mxu1 %v2554_v4 }
 0x4c7   :  { %2644 = vmatpush2.msra.mxu1 %v2553_v15 }
 0x4c8   :  { %2645 = vmatprep.subr.mxu1 %v2552_v44 }
 0x4c9   :  { %2646 = vmatpush2.msra.mxu1 %v2551_v47 }
 0x4ca   :  { %2647 = vmatprep.subr.mxu1 %v2550_v49 }
 0x4cb   :  { %2648 = vmatpush2.msra.mxu1 %v2549_v60 }
 0x4cc   :  { %2649 = vmatprep.subr.mxu1 %v2548_v29 }
 0x4cd   :  { %2650 = vmatpush2.msra.mxu1 %v2547_v27 }
 0x4ce   :  { %2652 = vmatmul.mubr.f32.vlgmr.msra.gmra.mxu1 %v9773_v33 }
 0x4cf   :  { %2657 = vmatprep.mubr.f32.mxu1 %v9786_v48 }
 0x4d2   :  { %2658 = vmatmul.mubr.f32.gmra.mxu1 %v9780_v39 }
 0x4d3   :  { %2663 = vmatprep.mubr.f32.mxu1 %v9797_v24 }
 0x4d6   :  { %2664 = vmatmul.mubr.f32.gmra.mxu1 %v9791_v46 }
 0x4d7   :  { %2669 = vmatprep.mubr.f32.mxu1 %v9808_v7 }
 0x4da   :  { %2670 = vmatmul.mubr.f32.gmra.mxu1 %v9802_v32 }
 0x4db   :  { %2675 = vmatprep.mubr.f32.mxu1 %v9819_v18 }
 0x4de   :  { %2676 = vmatmul.mubr.f32.gmra.mxu1 %v9813_v30 }
 0x4df   :  { %2681 = vmatprep.mubr.f32.mxu1 %v9830_v22 }
 0x4e2   :  { %2682 = vmatmul.mubr.f32.gmra.mxu1 %v9824_v57 }
 0x4e3   :  { %2687 = vmatprep.mubr.f32.mxu1 %v9841_v0 }
 0x4e6   :  { %2688 = vmatmul.mubr.f32.gmra.mxu1 %v9835_v25 }
 0x4e7   :  { %2693 = vmatprep.mubr.f32.mxu1 %v9852_v6 }
 0x4e9   :  { %v2150_v33 = vpop.f32.mrf.mxu0 }
 0x4ea   :  { %2694 = vmatmul.mubr.f32.gmra.mxu1 %v9846_v28 }
 0x4eb   :  { %v9940_v39 = vpop.f32.mrf.mxu0  ;;  %2699 = vmatprep.mubr.f32.mxu1 %v9863_v10 }
 0x4ed   :  { %v2156_v48 = vpop.f32.mrf.mxu0 }
 0x4ee   :  { %2700 = vmatmul.mubr.f32.gmra.mxu1 %v9857_v31 }
 0x4ef   :  { %v9944_v46 = vpop.f32.mrf.mxu0 }
 0x4f1   :  { %v2162_v24 = vpop.f32.mrf.mxu0 }
 0x4f3   :  { %v9946_v32 = vpop.f32.mrf.mxu0 }
 0x4f5   :  { %v2168_v7 = vpop.f32.mrf.mxu0 }
 0x4f7   :  { %v9948_v30 = vpop.f32.mrf.mxu0 }
 0x4f9   :  { %v2174_v18 = vpop.f32.mrf.mxu0 }
 0x4fb   :  { %v9950_v57 = vpop.f32.mrf.mxu0 }
 0x4fd   :  { %v2180_v22 = vpop.f32.mrf.mxu0 }
 0x4ff   :  { %v9952_v25 = vpop.f32.mrf.mxu0 }
 0x501   :  { %v2186_v0 = vpop.f32.mrf.mxu0 }
 0x503   :  { %v9954_v28 = vpop.f32.mrf.mxu0 }
 0x505   :  { %v2192_v6 = vpop.f32.mrf.mxu0 }
 0x507   :  { %v9956_v10 = vpop.f32.mrf.mxu0 }
 0x509   :  { %v2198_v31 = vpop.f32.mrf.mxu0 }
 0x50b   :  { %v9958_v63 = vpop.f32.mrf.mxu0 }
 0x52a   :  { %v2031_v54 = vpop.f32.mrf.mxu1  ;;  %v2342_v21 = vpop.f32.mrf.mxu0 }
 0x52b   :  { %v2151_v17 = vadd.f32 %v2150_v33, %v2031_v54 }
 0x52c   :  { %v9960_v52 = vpop.f32.mrf.mxu1  ;;  %v9962_v53 = vpop.f32.mrf.mxu0 }
 0x52e   :  { %v2037_v16 = vpop.f32.mrf.mxu1  ;;  %v2348_v11 = vpop.f32.mrf.mxu0 }
 0x52f   :  { %v2157_v38 = vadd.f32 %v2156_v48, %v2037_v16 }
 0x530   :  { %v9964_v41 = vpop.f32.mrf.mxu1  ;;  %v9966_v26 = vpop.f32.mrf.mxu0 }
 0x532   :  { %v2043_v45 = vpop.f32.mrf.mxu1  ;;  %v2354_v59 = vpop.f32.mrf.mxu0 }
 0x533   :  { %v9968_v20 = vadd.f32 %v2162_v24, %v2043_v45 }
 0x534   :  { %v9970_v19 = vpop.f32.mrf.mxu1  ;;  %v9974_v62 = vpop.f32.mrf.mxu0 }
 0x536   :  { %v2049_v36 = vpop.f32.mrf.mxu1  ;;  %v2360_v5 = vpop.f32.mrf.mxu0 }
 0x537   :  { %v9972_v35 = vadd.f32 %v2168_v7, %v2049_v36  ;;  %v10020_v36 = vld [vmem:[#allocation18 + $0xf8] sm:$0xff] }
 0x538   :  { %v9976_v51 = vpop.f32.mrf.mxu1  ;;  %v9984_v2 = vpop.f32.mrf.mxu0  ;;  %12654 = vst [vmem:[#allocation41_spill] sm:$0xff] %v10020_v36  ;;  %8318 = vmatprep.subr.mxu1 %v10020_v36 }
 0x53a   :  { %v2055_v3 = vpop.f32.mrf.mxu1  ;;  %v2366_v13 = vpop.f32.mrf.mxu0 }
 0x53b   :  { %v9978_v56 = vadd.f32 %v2174_v18, %v2055_v3  ;;  %v10022_v3 = vld [vmem:[#allocation18 + $0x78] sm:$0xff] }
 0x53c   :  { %v9980_v37 = vpop.f32.mrf.mxu1  ;;  %v9994_v50 = vpop.f32.mrf.mxu0  ;;  %12655 = vst [vmem:[#allocation42_spill] sm:$0xff] %v10022_v3  ;;  %8319 = vmatpush3.msra.mxu1 %v10022_v3 }
 0x53e   :  { %v2061_v61 = vpop.f32.mrf.mxu1  ;;  %v10000_v4 = vpop.f32.mrf.mxu0 }
 0x53f   :  { %v9982_v8 = vadd.f32 %v2180_v22, %v2061_v61  ;;  %v10024_v61 = vld [vmem:[#allocation18 + $0xf0] sm:$0xff] }
 0x540   :  { %v9986_v34 = vpop.f32.mrf.mxu1  ;;  %v10004_v49 = vpop.f32.mrf.mxu0  ;;  %12656 = vst [vmem:[#allocation43_spill] sm:$0xff] %v10024_v61  ;;  %8320 = vmatprep.subr.mxu1 %v10024_v61 }
 0x542   :  { %v2067_v58 = vpop.f32.mrf.mxu1  ;;  %v10008_v33 = vpop.f32.mrf.mxu0 }
 0x543   :  { %v9988_v12 = vadd.f32 %v2186_v0, %v2067_v58 }
 0x544   :  { %v9990_v9 = vpop.f32.mrf.mxu1 }
 0x546   :  { %v2073_v42 = vpop.f32.mrf.mxu1 }
 0x547   :  { %v9992_v43 = vadd.f32 %v2192_v6, %v2073_v42  ;;  %v10013_v6 = vpop.f32.mrf.mxu0 }
 0x548   :  { %v9996_v14 = vpop.f32.mrf.mxu1 }
 0x549   :  { %v10026_v58 = vpop.f32.mrf.mxu0 }
 0x54a   :  { %v2079_v40 = vpop.f32.mrf.mxu1 }
 0x54b   :  { %v9998_v55 = vadd.f32 %v2198_v31, %v2079_v40 }
 0x54c   :  { %v10002_v15 = vpop.f32.mrf.mxu1 }
 0x54e   :  { %v2461_v44 = vpop.f32.mrf.mxu1 }
 0x54f   :  { %v2462_v47 = vadd.f32 %v2461_v44, %v2342_v21 }
 0x550   :  { %v10006_v60 = vpop.f32.mrf.mxu1 }
 0x551   :  { %v2844_v24 = vrot.slane %v2462_v47, 1  ;;  %v10039_v47 = vld [vmem:[#allocation18 + $0x68] sm:$0xff] }
 0x552   :  { %v2467_v29 = vpop.f32.mrf.mxu1  ;;  %12660 = vst [vmem:[#allocation47_spill] sm:$0xff] %v10039_v47 }
 0x553   :  { %v2468_v27 = vadd.f32 %v2467_v29, %v2348_v11 }
 0x554   :  { %v10010_v48 = vpop.f32.mrf.mxu1 }
 0x555   :  { %v2845_v7 = vrot.slane %v2468_v27, 1  ;;  %v10045_v27 = vld [vmem:[#allocation18 + $0xe0] sm:$0xff] }
 0x556   :  { %v2473_v18 = vpop.f32.mrf.mxu1  ;;  %12661 = vst [vmem:[#allocation48_spill] sm:$0xff] %v10045_v27 }
 0x557   :  { %v2846_v22 = vsel %vm2843_vm5, %v2844_v24, %v2845_v7  ;;  %v2474_v0 = vadd.f32 %v2473_v18, %v2354_v59  ;;  %v10047_v24 = vpop.f32.mrf.mxu0  ;;  %v10053_v18 = vld [vmem:[#allocation18 + $0x60] sm:$0xff] }
 0x558   :  { %v10015_v31 = vadd.f32 %v2846_v22, %v2151_v17  ;;  %v10017_v54 = vpop.f32.mrf.mxu1  ;;  %v10033_v17 = vld [vmem:[#allocation18 + $0x70] sm:$0xff]  ;;  %12663 = vst [vmem:[#allocation50_spill] sm:$0xff] %v10053_v18 }
 0x559   :  { %v2850_v21 = vrot.slane %v2474_v0, 1  ;;  %12658 = vst [vmem:[#allocation45_spill] sm:$0xff] %v10033_v17  ;;  %8321 = vmatpush3.msra.mxu1 %v10033_v17  ;;  %v10057_v0 = vld [vmem:[#allocation18 + $0xd8] sm:$0xff] }
 0x55a   :  { %12653 = vst [vmem:[#allocation40_spill] sm:$0xff] %v10015_v31  ;;  %v2479_v16 = vpop.f32.mrf.mxu1  ;;  %12664 = vst [vmem:[#allocation51_spill] sm:$0xff] %v10057_v0 }
 0x55b   :  { %v2851_v11 = vsel %vm2843_vm5, %v2845_v7, %v2850_v21  ;;  %v2480_v45 = vadd.f32 %v2479_v16, %v2360_v5  ;;  %v10036_v5 = vld [vmem:[#allocation18 + $0xe8] sm:$0xff]  ;;  %v10068_v16 = vpop.f32.mrf.mxu0 }
 0x55c   :  { %v10028_v59 = vadd.f32 %v2851_v11, %v2157_v38  ;;  %v10030_v42 = vpop.f32.mrf.mxu1  ;;  %12659 = vst [vmem:[#allocation46_spill] sm:$0xff] %v10036_v5  ;;  %8322 = vmatprep.subr.mxu1 %v10036_v5 }
 0x55d   :  { %v2854_v40 = vrot.slane %v2480_v45, 1  ;;  %8323 = vmatpush3.msra.mxu1 %v10039_v47  ;;  %v10074_v45 = vld [vmem:[#allocation18 + $0x50] sm:$0xff]  ;;  %v10085_v1 = vpop.f32.mrf.mxu0 }
 0x55e   :  { %12657 = vst [vmem:[#allocation44_spill] sm:$0xff] %v10028_v59  ;;  %v2485_v44 = vpop.f32.mrf.mxu1  ;;  %8324 = vmatprep.subr.mxu1 %v10045_v27  ;;  %12668 = vst [vmem:[#allocation55_spill] sm:$0xff] %v10074_v45 }
 0x55f   :  { %v2855_v29 = vsel %vm2843_vm5, %v2850_v21, %v2854_v40  ;;  %v10042_v38 = vadd.f32 %v2485_v44, %v2366_v13  ;;  %v10060_v13 = vld [vmem:[#allocation18 + $0x58] sm:$0xff]  ;;  %8325 = vmatpush3.msra.mxu1 %v10053_v18  ;;  %v10077_v44 = vld [vmem:[#allocation18 + $0xc8] sm:$0xff] }
 0x560   :  { %v10050_v7 = vadd.f32 %v2855_v29, %v9968_v20  ;;  %12665 = vst [vmem:[#allocation52_spill] sm:$0xff] %v10060_v13  ;;  %v10066_v20 = vld [vmem:[#allocation18 + $0xd0] sm:$0xff]  ;;  %8326 = vmatprep.subr.mxu1 %v10057_v0  ;;  %12669 = vst [vmem:[#allocation56_spill] sm:$0xff] %v10077_v44  ;;  %v10083_v29 = vld [vmem:[#allocation18 + $0xc0] sm:$0xff] }
 0x561   :  { %v12553_v22 = vrot.slane %v10042_v38, 1  ;;  %12666 = vst [vmem:[#allocation53_spill] sm:$0xff] %v10066_v20  ;;  %8327 = vmatpush3.msra.mxu1 %v10060_v13  ;;  %12671 = vst [vmem:[#allocation58_spill] sm:$0xff] %v10083_v29 }
 0x562   :  { %12662 = vst [vmem:[#allocation49_spill] sm:$0xff] %v10050_v7  ;;  %8328 = vmatprep.subr.mxu1 %v10066_v20  ;;  %v2487_v20 = vpop.f32.mrf.mxu1 }
 0x563   :  { %v2859_v21 = vsel %vm2843_vm5, %v2854_v40, %v12553_v22  ;;  %v10080_v40 = vld [vmem:[#allocation18 + $0x48] sm:$0xff]  ;;  %8329 = vmatpush3.msra.mxu1 %v10074_v45  ;;  %v10094_v22 = vld [vmem:[#allocation18 + $0x38] sm:$0xff]  ;;  %v10099_v45 = vpop.f32.mrf.mxu0 }
 0x564   :  { %v10071_v11 = vadd.f32 %v2859_v21, %v9972_v35  ;;  %12670 = vst [vmem:[#allocation57_spill] sm:$0xff] %v10080_v40  ;;  %8330 = vmatprep.subr.mxu1 %v10077_v44  ;;  %v10088_v35 = vld [vmem:[#allocation18 + $0x40] sm:$0xff]  ;;  %v10091_v21 = vld [vmem:[#allocation18 + $0xb8] sm:$0xff]  ;;  %12674 = vst [vmem:[#allocation61_spill] sm:$0xff] %v10094_v22  ;;  %v2491_v0 = vpop.f32.mrf.mxu1 }
 0x565   :  { %12672 = vst [vmem:[#allocation59_spill] sm:$0xff] %v10088_v35  ;;  %8331 = vmatpush3.msra.mxu1 %v10080_v40  ;;  %12673 = vst [vmem:[#allocation60_spill] sm:$0xff] %v10091_v21  ;;  %v10102_v44 = vld [vmem:[#allocation18 + $0x30] sm:$0xff]  ;;  %v10105_v40 = vld [vmem:[#allocation18 + $0xa8] sm:$0xff]  ;;  %v10113_v13 = vpop.f32.mrf.mxu0 }
 0x566   :  { %12667 = vst [vmem:[#allocation54_spill] sm:$0xff] %v10071_v11  ;;  %8332 = vmatprep.subr.mxu1 %v10083_v29  ;;  %12676 = vst [vmem:[#allocation63_spill] sm:$0xff] %v10099_v45  ;;  %v10108_v29 = vld [vmem:[#allocation18 + $0x28] sm:$0xff]  ;;  %v2493_v27 = vpop.f32.mrf.mxu1 }
 0x567   :  { %8333 = vmatpush3.msra.mxu1 %v10088_v35  ;;  %12677 = vst [vmem:[#allocation64_spill] sm:$0xff] %v10102_v44  ;;  %12678 = vst [vmem:[#allocation65_spill] sm:$0xff] %v10105_v40  ;;  %v10111_v35 = vld [vmem:[#allocation18 + $0xa0] sm:$0xff]  ;;  %v10127_v18 = vpop.f32.mrf.mxu0 }
 0x568   :  { %8334 = vmatprep.subr.mxu1 %v10091_v21  ;;  %12679 = vst [vmem:[#allocation66_spill] sm:$0xff] %v10108_v29  ;;  %12680 = vst [vmem:[#allocation67_spill] sm:$0xff] %v10111_v35  ;;  %v10116_v21 = vld [vmem:[#allocation18 + $0x20] sm:$0xff] }
 0x569   :  { %8335 = vmatpush3.msra.mxu1 %v10094_v22  ;;  %12681 = vst [vmem:[#allocation68_spill] sm:$0xff] %v10113_v13  ;;  %12682 = vst [vmem:[#allocation69_spill] sm:$0xff] %v10116_v21  ;;  %v10119_v22 = vld [vmem:[#allocation18 + $0x98] sm:$0xff] }
 0x56a   :  { %8336 = vmatprep.subr.mxu1 %v10097_v23  ;;  %12683 = vst [vmem:[#allocation70_spill] sm:$0xff] %v10119_v22  ;;  %v10122_v23 = vld [vmem:[#allocation18 + $0x18] sm:$0xff]  ;;  %12686 = vst [vmem:[#allocation73_spill] sm:$0xff] %v10127_v18 }
 0x56b   :  { %8337 = vmatpush3.msra.mxu1 %v10102_v44  ;;  %12684 = vst [vmem:[#allocation71_spill] sm:$0xff] %v10122_v23  ;;  %v10125_v44 = vld [vmem:[#allocation18 + $0x90] sm:$0xff] }
 0x56c   :  { %8338 = vmatprep.subr.mxu1 %v10105_v40  ;;  %12685 = vst [vmem:[#allocation72_spill] sm:$0xff] %v10125_v44  ;;  %v10130_v40 = vld [vmem:[#allocation18 + $0x10] sm:$0xff] }
 0x56d   :  { %8339 = vmatpush3.msra.mxu1 %v10108_v29  ;;  %12687 = vst [vmem:[#allocation74_spill] sm:$0xff] %v10130_v40  ;;  %v2497_v29 = vpop.f32.mrf.mxu1 }
 0x56e   :  { %8340 = vmatprep.subr.mxu1 %v10111_v35  ;;  %v10135_v35 = vpop.f32.mrf.mxu0 }
 0x56f   :  { %8341 = vmatpush3.msra.mxu1 %v10116_v21  ;;  %12688 = vst [vmem:[#allocation75_spill] sm:$0xff] %v10135_v35  ;;  %v2499_v21 = vpop.f32.mrf.mxu1 }
 0x570   :  { %8342 = vmatprep.subr.mxu1 %v10119_v22  ;;  %v10137_v47 = vpop.f32.mrf.mxu0 }
 0x571   :  { %8343 = vmatpush3.msra.mxu1 %v10122_v23  ;;  %12689 = vst [vmem:[#allocation76_spill] sm:$0xff] %v10137_v47  ;;  %v2503_v17 = vpop.f32.mrf.mxu1 }
 0x572   :  { %8344 = vmatprep.subr.mxu1 %v10125_v44  ;;  %v10139_v5 = vpop.f32.mrf.mxu0 }
 0x573   :  { %8345 = vmatpush3.msra.mxu1 %v10130_v40  ;;  %12690 = vst [vmem:[#allocation77_spill] sm:$0xff] %v10139_v5  ;;  %v2505_v22 = vpop.f32.mrf.mxu1 }
 0x574   :  { %v10141_v61 = vpop.f32.mrf.mxu0 }
 0x575   :  { %12691 = vst [vmem:[#allocation78_spill] sm:$0xff] %v10141_v61  ;;  %v2509_v36 = vpop.f32.mrf.mxu1 }
 0x576   :  { %v10143_v3 = vpop.f32.mrf.mxu0 }
 0x577   :  { %12692 = vst [vmem:[#allocation79_spill] sm:$0xff] %v10143_v3  ;;  %v2511_v44 = vpop.f32.mrf.mxu1  ;;  %v2500_v3 = vadd.f32 %v2499_v21, %v10013_v6 }
 0x578   :  { %v10145_v23 = vpop.f32.mrf.mxu0 }
 0x579   :  { %12693 = vst [vmem:[#allocation80_spill] sm:$0xff] %v10145_v23  ;;  %v10185_v23 = vadd.f32 %v9940_v39, %v9960_v52  ;;  %v2171_v39 = vadd.f32 %v9948_v30, %v9976_v51  ;;  %v2504_v52 = vadd.f32 %v2503_v17, %v10026_v58  ;;  %v2510_v30 = vadd.f32 %v2509_v36, %v10068_v16 }
 0x57a   :  { %v10149_v40 = vpop.f32.mrf.mxu0  ;;  %v2868_v58 = vrot.slane %v2500_v3, 1  ;;  %v2195_v3 = vadd.f32 %v9956_v10, %v9996_v14 }
 0x57b   :  { %12695 = vst [vmem:[#allocation82_spill] sm:$0xff] %v10149_v40  ;;  %v2870_v36 = vrot.slane %v2504_v52, 1 }
 0x57c   :  { %v10155_v11 = vpop.f32.mrf.mxu0 }
 0x57e   :  { %v10161_v18 = vpop.f32.mrf.mxu0 }
 0x580   :  { %v10167_v5 = vpop.f32.mrf.mxu0 }
 0x58e   :  { %v10147_v31 = vpop.f32.mrf.mxu1 }
 0x58f   :  { %12694 = vst [vmem:[#allocation81_spill] sm:$0xff] %v10147_v31 }
 0x590   :  { %v10151_v59 = vpop.f32.mrf.mxu1 }
 0x591   :  { %12696 = vst [vmem:[#allocation83_spill] sm:$0xff] %v10151_v59  ;;  %v10173_v59 = vpop.f32.mrf.mxu0 }
 0x592   :  { %v10153_v7 = vpop.f32.mrf.mxu1 }
 0x593   :  { %12697 = vst [vmem:[#allocation84_spill] sm:$0xff] %v10153_v7 }
 0x594   :  { %v10157_v45 = vpop.f32.mrf.mxu1 }
 0x595   :  { %12698 = vst [vmem:[#allocation85_spill] sm:$0xff] %v10157_v45  ;;  %v2488_v45 = vadd.f32 %v2487_v20, %v9994_v50  ;;  %v10194_v50 = vadd.f32 %v9944_v46, %v9964_v41  ;;  %v10211_v46 = vadd.f32 %v10017_v54, %v9974_v62  ;;  %v10220_v62 = vadd.f32 %v9954_v28, %v9990_v9 }
 0x596   :  { %v10159_v13 = vpop.f32.mrf.mxu1  ;;  %v10224_v54 = vadd.f32 %v10010_v48, %v9966_v26  ;;  %v2874_v48 = vrot.slane %v2510_v30, 1 }
 0x597   :  { %12699 = vst [vmem:[#allocation86_spill] sm:$0xff] %v10159_v13  ;;  %v2492_v13 = vadd.f32 %v2491_v0, %v10000_v4  ;;  %v10198_v4 = vadd.f32 %v9946_v32, %v9970_v19  ;;  %v2860_v41 = vrot.slane %v2488_v45, 1 }
 0x598   :  { %v10163_v35 = vpop.f32.mrf.mxu1 }
 0x599   :  { %12700 = vst [vmem:[#allocation87_spill] sm:$0xff] %v10163_v35  ;;  %v2494_v35 = vadd.f32 %v2493_v27, %v10004_v49  ;;  %v10207_v49 = vadd.f32 %v10006_v60, %v9962_v53  ;;  %v2862_v32 = vrot.slane %v2492_v13, 1  ;;  %v2183_v60 = vadd.f32 %v9952_v25, %v9986_v34 }
 0x59a   :  { %v10165_v47 = vpop.f32.mrf.mxu1  ;;  %v12705_v34 = vrot.slane %v10042_v38, 1 }
 0x59b   :  { %12701 = vst [vmem:[#allocation88_spill] sm:$0xff] %v10165_v47  ;;  %v2498_v47 = vadd.f32 %v2497_v29, %v10008_v33  ;;  %v2864_v19 = vrot.slane %v2494_v35, 1  ;;  %v2875_v29 = vsel %vm2843_vm5, %v2870_v36, %v2874_v48 }
 0x59c   :  { %v10169_v31 = vpop.f32.mrf.mxu1  ;;  %v2863_v28 = vsel %vm2843_vm5, %v12705_v34, %v2862_v32  ;;  %v12711_v34 = vld [vmem:[#allocation82_spill] sm:$0xff] }
 0x59d   :  { %12702 = vst [vmem:[#allocation89_spill] sm:$0xff] %v10169_v31  ;;  %v2866_v6 = vrot.slane %v2498_v47, 1  ;;  %v2865_v9 = vsel %vm2843_vm5, %v2860_v41, %v2864_v19  ;;  %v2847_v47 = vrot.slane %v10207_v49, 1  ;;  %v2869_v10 = vsel %vm2843_vm5, %v2864_v19, %v2868_v58  ;;  %v12727_v49 = vld [vmem:[#allocation49_spill] sm:$0xff] }
 0x59e   :  { %v10171_v61 = vpop.f32.mrf.mxu1  ;;  %v10249_v13 = vadd.f32 %v2863_v28, %v9978_v56  ;;  %v2907_v52 = vadd.f32 %v2869_v10, %v2183_v60  ;;  %v12713_v10 = vld [vmem:[#allocation78_spill] sm:$0xff] }
 0x59f   :  { %12703 = vst [vmem:[#allocation90_spill] sm:$0xff] %v10171_v61  ;;  %v2482_v61 = vadd.f32 %v10030_v42, %v9984_v2  ;;  %v2177_v2 = vadd.f32 %v9950_v57, %v9980_v37  ;;  %v2506_v42 = vadd.f32 %v2505_v22, %v10047_v24  ;;  %v2512_v37 = vadd.f32 %v2511_v44, %v10085_v1 }
 0x5a0   :  { %v10175_v7 = vpop.f32.mrf.mxu1  ;;  %v2852_v1 = vrot.slane %v10211_v46, 1  ;;  %v2867_v26 = vsel %vm2843_vm5, %v2862_v32, %v2866_v6  ;;  %v2848_v24 = vrot.slane %v10224_v54, 1  ;;  %v2871_v22 = vsel %vm2843_vm5, %v2866_v6, %v2870_v36  ;;  %v12707_v36 = vld [vmem:[#allocation79_spill] sm:$0xff] }
 0x5a1   :  { %12704 = vst [vmem:[#allocation91_spill] sm:$0xff] %v10175_v7  ;;  %v2814_v7 = vpop.f32.mrf.mxu0  ;;  %v2856_v51 = vrot.slane %v2482_v61, 1  ;;  %v2201_v61 = vadd.f32 %v9958_v63, %v10002_v15  ;;  %v2872_v14 = vrot.slane %v2506_v42, 1  ;;  %v2876_v15 = vrot.slane %v2512_v37, 1 }
 0x5a2   :  { %v10178_v40 = vpop.f32.mrf.mxu1  ;;  %v10252_v20 = vadd.f32 %v2867_v26, %v9982_v8  ;;  %v10254_v44 = vadd.f32 %v2865_v9, %v2177_v2  ;;  %v2912_v6 = vadd.f32 %v2874_v48, %v9998_v55  ;;  %v12712_v48 = vld [vmem:[#allocation88_spill] sm:$0xff] }
 0x5a3   :  { %v2816_v57 = vpop.f32.mrf.mxu0  ;;  %v2861_v17 = vsel %vm2843_vm5, %v2856_v51, %v2860_v41  ;;  %v10243_v38 = vsel %vm2843_vm5, %v2852_v1, %v2856_v51  ;;  %v2908_v41 = vadd.f32 %v2871_v22, %v9988_v12  ;;  %v2877_v32 = vsel %vm2843_vm5, %v2872_v14, %v2876_v15  ;;  %v12714_v22 = vld [vmem:[#allocation87_spill] sm:$0xff] }
 0x5a4   :  { %v10190_v31 = vpop.f32.mrf.mxu1  ;;  %v10246_v0 = vadd.f32 %v2861_v17, %v2171_v39  ;;  %v2873_v39 = vsel %vm2843_vm5, %v2868_v58, %v2872_v14  ;;  %v2913_v42 = vadd.f32 %v2876_v15, %v2201_v61  ;;  %v2803_v58 = vadd.f32 %v10155_v11, %v10178_v40 }
 0x5a5   :  { %v2820_v63 = vpop.f32.mrf.mxu0  ;;  %v2805_v12 = vadd.f32 %v10161_v18, %v10190_v31  ;;  %v2791_v14 = vadd.f32 %v12713_v10, %v12712_v48  ;;  %v2901_v46 = vadd.f32 %v10243_v38, %v10198_v4  ;;  %v12726_v48 = vld [vmem:[#allocation54_spill] sm:$0xff] }
 0x5a6   :  { %v2689_v33 = vpop.f32.mrf.mxu1  ;;  %v12708_v17 = vld [vmem:[#allocation90_spill] sm:$0xff] }
 0x5a7   :  { %v2822_v56 = vpop.f32.mrf.mxu0  ;;  %v2809_v2 = vadd.f32 %v10167_v5, %v2689_v33  ;;  %v12709_v5 = vld [vmem:[#allocation80_spill] sm:$0xff]  ;;  %v2953_v40 = vrot.slane %v2805_v12, 2 }
 0x5a8   :  { %v2691_v53 = vpop.f32.mrf.mxu1  ;;  %v2797_v33 = vadd.f32 %v12709_v5, %v12708_v17  ;;  %v12720_v12 = vld [vmem:[#allocation84_spill] sm:$0xff] }
 0x5a9   :  { %v2811_v19 = vadd.f32 %v10173_v59, %v2691_v53  ;;  %v2911_v59 = vadd.f32 %v2877_v32, %v2195_v3  ;;  %v12706_v53 = vld [vmem:[#allocation89_spill] sm:$0xff]  ;;  %v2955_v28 = vrot.slane %v2809_v2, 2  ;;  %v12716_v32 = vld [vmem:[#allocation86_spill] sm:$0xff]  ;;  %v12719_v2 = vld [vmem:[#allocation75_spill] sm:$0xff] }
 0x5aa   :  { %v2695_v25 = vpop.f32.mrf.mxu1  ;;  %v2793_v55 = vadd.f32 %v12707_v36, %v12706_v53  ;;  %v12722_v53 = vld [vmem:[#allocation83_spill] sm:$0xff]  ;;  %v12723_v36 = vld [vmem:[#allocation68_spill] sm:$0xff] }
 0x5ab   :  { %v2815_v35 = vadd.f32 %v2814_v7, %v2695_v25  ;;  %v2910_v7 = vadd.f32 %v2875_v29, %v9992_v43  ;;  %v12710_v25 = vld [vmem:[#allocation91_spill] sm:$0xff]  ;;  %v2957_v61 = vrot.slane %v2811_v19, 2  ;;  %v2775_v17 = vadd.f32 %v12723_v36, %v12722_v53 }
 0x5ac   :  { %v2697_v27 = vpop.f32.mrf.mxu1  ;;  %v2799_v43 = vadd.f32 %v12711_v34, %v12710_v25  ;;  %v12725_v25 = vld [vmem:[#allocation63_spill] sm:$0xff] }
 0x5ad   :  { %v2817_v16 = vadd.f32 %v2816_v57, %v2697_v27  ;;  %v2959_v37 = vrot.slane %v2815_v35, 2  ;;  %v2909_v27 = vadd.f32 %v2873_v39, %v10220_v62  ;;  %v12718_v39 = vld [vmem:[#allocation85_spill] sm:$0xff] }
 0x5ae   :  { %v2701_v45 = vpop.f32.mrf.mxu1  ;;  %v2949_v29 = vrot.slane %v2799_v43, 2 }
 0x5af   :  { %v2821_v21 = vadd.f32 %v2820_v63, %v2701_v45  ;;  %v2961_v57 = vrot.slane %v2817_v16, 2  ;;  %v2951_v63 = vrot.slane %v2803_v58, 2  ;;  %v2960_v15 = vsel %vm2932_vm6, %v2955_v28, %v2959_v37  ;;  %v12715_v16 = vld [vmem:[#allocation77_spill] sm:$0xff] }
 0x5b0   :  { %v2703_v8 = vpop.f32.mrf.mxu1  ;;  %v2787_v45 = vadd.f32 %v12715_v16, %v12714_v22  ;;  %v12728_v22 = vld [vmem:[#allocation44_spill] sm:$0xff] }
 0x5b1   :  { %v2963_v30 = vrot.slane %v2821_v21, 2  ;;  %v2823_v51 = vadd.f32 %v2822_v56, %v2703_v8  ;;  %v2962_v26 = vsel %vm2932_vm6, %v2957_v61, %v2961_v57  ;;  %v2958_v21 = vsel %vm2932_vm6, %v2953_v40, %v2957_v61  ;;  %v12717_v56 = vld [vmem:[#allocation76_spill] sm:$0xff] }
 0x5b2   :  { %v2785_v19 = vadd.f32 %v12717_v56, %v12716_v32  ;;  %v2947_v8 = vrot.slane %v2797_v33, 2  ;;  %v10300_v62 = vadd.f32 %v2962_v26, %v2909_v27  ;;  %v12724_v33 = vld [vmem:[#allocation81_spill] sm:$0xff] }
 0x5b3   :  { %v2965_v60 = vrot.slane %v2823_v51, 2  ;;  %v2964_v31 = vsel %vm2932_vm6, %v2959_v37, %v2963_v30  ;;  %v10278_v9 = vadd.f32 %v2963_v30, %v2912_v6  ;;  %v2956_v6 = vsel %vm2932_vm6, %v2951_v63, %v2955_v28 }
 0x5b4   :  { %v10291_v35 = vadd.f32 %v2964_v31, %v2910_v7  ;;  %v2781_v30 = vadd.f32 %v12719_v2, %v12718_v39  ;;  %v2945_v51 = vrot.slane %v2793_v55, 2  ;;  %v10304_v7 = vadd.f32 %v2960_v15, %v2908_v41 }
 0x5b5   :  { %v10275_v18 = vadd.f32 %v2965_v60, %v2913_v42  ;;  %v2966_v11 = vsel %vm2932_vm6, %v2961_v57, %v2965_v60  ;;  %v2954_v42 = vsel %vm2932_vm6, %v2949_v29, %v2953_v40  ;;  %v12721_v57 = vld [vmem:[#allocation73_spill] sm:$0xff]  ;;  %v2943_v37 = vrot.slane %v2791_v14, 2 }
 0x5b6   :  { %v10280_v3 = vadd.f32 %v2966_v11, %v2911_v59  ;;  %v2779_v58 = vadd.f32 %v12721_v57, %v12720_v12  ;;  %v2952_v60 = vsel %vm2932_vm6, %v2947_v8, %v2951_v63  ;;  %v10312_v59 = vadd.f32 %v2958_v21, %v2907_v52  ;;  %v3003_v21 = vld [vmem:[#allocation26] sm:$0x1] }
 0x5b7   :  { %8017 = vmatprep.subr.msk.mxu0 %vm2932_vm6, %v10275_v18  ;;  %v2941_v55 = vrot.slane %v2787_v45, 2  ;;  %v10317_v41 = vadd.f32 %v2956_v6, %v10252_v20  ;;  %v2950_v5 = vsel %vm2932_vm6, %v2945_v51, %v2949_v29  ;;  %v2773_v34 = vadd.f32 %v12725_v25, %v12724_v33  ;;  %v12729_v45 = vld [vmem:[#allocation40_spill] sm:$0xff]  ;;  %v12733_v33 = vld [vmem:[#allocation43_spill] sm:$0xff]  ;;  %v12734_v25 = vld [vmem:[#allocation45_spill] sm:$0xff] }
 0x5b8   :  { %8018 = vmatpush1.msk.msra.mxu0 %vm2932_vm6, %v10278_v9  ;;  %v2939_v43 = vrot.slane %v2785_v19, 2  ;;  %v2948_v61 = vsel %vm2932_vm6, %v2943_v37, %v2947_v8  ;;  %v10326_v52 = vadd.f32 %v2954_v42, %v10254_v44  ;;  %v2853_v20 = vsel %vm2843_vm5, %v2848_v24, %v2852_v1 }
 0x5b9   :  { %3030 = vmatprep.subr.mxu0 %v10280_v3  ;;  %v2937_v28 = vrot.slane %v2781_v30, 2  ;;  %v10334_v31 = vadd.f32 %v2952_v60, %v10249_v13  ;;  %v2946_v11 = vsel %vm2932_vm6, %v2941_v55, %v2945_v51  ;;  %v2934_v40 = vrot.slane %v2779_v58, 2 }
 0x5ba   :  { %3031 = vmatpush1.msra.mxu0 %v10291_v35  ;;  %v2944_v26 = vsel %vm2932_vm6, %v2939_v43, %v2943_v37  ;;  %v10341_v44 = vadd.f32 %v2950_v5, %v10246_v0  ;;  %v2849_v1 = vsel %vm2843_vm5, %v2847_v47, %v2848_v24  ;;  %v2936_v13 = vrot.slane %v2775_v17, 2  ;;  %v12732_v5 = vld [vmem:[#allocation42_spill] sm:$0xff] }
 0x5bb   :  { %3032 = vmatprep.subr.mxu0 %v10300_v62  ;;  %v10351_v10 = vadd.f32 %v2948_v61, %v12726_v48  ;;  %v2942_v14 = vsel %vm2932_vm6, %v2937_v28, %v2941_v55  ;;  %v2933_v63 = vrot.slane %v2773_v34, 2  ;;  %v2940_v0 = vsel %vm2932_vm6, %v2934_v40, %v2939_v43  ;;  %v12731_v55 = vld [vmem:[#allocation41_spill] sm:$0xff]  ;;  %v12735_v34 = vld [vmem:[#allocation46_spill] sm:$0xff]  ;;  %v12736_v43 = vld [vmem:[#allocation47_spill] sm:$0xff] }
 0x5bc   :  { %3033 = vmatpush1.msra.mxu0 %v10304_v7  ;;  %v10357_v4 = vadd.f32 %v2946_v11, %v2901_v46  ;;  %v2899_v54 = vadd.f32 %v2853_v20, %v10194_v50  ;;  %v10361_v38 = vadd.f32 %v2944_v26, %v12727_v49  ;;  %v2938_v47 = vsel %vm2932_vm6, %v2936_v13, %v2937_v28  ;;  %v12737_v61 = vld [vmem:[#allocation48_spill] sm:$0xff]  ;;  %v12738_v20 = vld [vmem:[#allocation50_spill] sm:$0xff]  ;;  %v12739_v28 = vld [vmem:[#allocation51_spill] sm:$0xff] }
 0x5bd   :  { %3034 = vmatprep.subr.mxu0 %v10312_v59  ;;  %v2935_v24 = vsel %vm2932_vm6, %v2933_v63, %v2934_v40  ;;  %v2897_v27 = vadd.f32 %v2849_v1, %v10185_v23  ;;  %v10371_v16 = vadd.f32 %v2940_v0, %v12728_v22  ;;  %v3102_v23 = vmul.f32 %v10275_v18, %v10275_v18  ;;  %v12740_v11 = vld [vmem:[#allocation52_spill] sm:$0xff]  ;;  %v12741_v40 = vld [vmem:[#allocation53_spill] sm:$0xff]  ;;  %v12742_v26 = vld [vmem:[#allocation55_spill] sm:$0xff] }
 0x5be   :  { %3035 = vmatpush1.msra.mxu0 %v10317_v41  ;;  %v10367_v15 = vadd.f32 %v2942_v14, %v2899_v54  ;;  %v10378_v29 = vadd.f32 %v2935_v24, %v12729_v45  ;;  %v3101_v32 = vmul.f32 %v10278_v9, %v10278_v9  ;;  %v3100_v56 = vmul.f32 %v10280_v3, %v10280_v3  ;;  %v12743_v46 = vld [vmem:[#allocation56_spill] sm:$0xff]  ;;  %v12744_v1 = vld [vmem:[#allocation57_spill] sm:$0xff]  ;;  %v12745_v13 = vld [vmem:[#allocation58_spill] sm:$0xff] }
 0x5bf   :  { %3036 = vmatprep.subr.mxu0 %v10326_v52  ;;  %v10375_v50 = vadd.f32 %v2938_v47, %v2897_v27  ;;  %v3099_v19 = vmul.f32 %v10291_v35, %v10291_v35  ;;  %v12730_v8 = vmov 0.0   ;;  %v3098_v6 = vmul.f32 %v10300_v62, %v10300_v62  ;;  %v12746_v48 = vld [vmem:[#allocation59_spill] sm:$0xff]  ;;  %v12747_v14 = vld [vmem:[#allocation60_spill] sm:$0xff]  ;;  %v12748_v63 = vld [vmem:[#allocation61_spill] sm:$0xff] }
 0x5c0   :  { %3037 = vmatpush1.msra.mxu0 %v10334_v31  ;;  %v3097_v39 = vmul.f32 %v10304_v7, %v10304_v7  ;;  %v3096_v2 = vmul.f32 %v10312_v59, %v10312_v59  ;;  %v3095_v30 = vmul.f32 %v10317_v41, %v10317_v41  ;;  %v3094_v51 = vmul.f32 %v10326_v52, %v10326_v52  ;;  %v12749_v0 = vld [vmem:[#allocation62_spill] sm:$0xff]  ;;  %v12750_v54 = vld [vmem:[#allocation64_spill] sm:$0xff]  ;;  %v12751_v49 = vld [vmem:[#allocation65_spill] sm:$0xff] }
 0x5c1   :  { %3038 = vmatprep.subr.mxu0 %v10341_v44  ;;  %v3093_v42 = vmul.f32 %v10334_v31, %v10334_v31  ;;  %v3092_v12 = vmul.f32 %v10341_v44, %v10341_v44  ;;  %v3091_v57 = vmul.f32 %v10351_v10, %v10351_v10  ;;  %v3090_v58 = vmul.f32 %v10357_v4, %v10357_v4  ;;  %v12752_v47 = vld [vmem:[#allocation66_spill] sm:$0xff]  ;;  %v12753_v24 = vld [vmem:[#allocation67_spill] sm:$0xff]  ;;  %v12754_v27 = vld [vmem:[#allocation69_spill] sm:$0xff] }
 0x5c2   :  { %3039 = vmatpush1.msra.mxu0 %v10351_v10  ;;  %v3089_v37 = vmul.f32 %v10361_v38, %v10361_v38  ;;  %v3088_v60 = vmul.f32 %v10367_v15, %v10367_v15  ;;  %v3087_v53 = vmul.f32 %v10371_v16, %v10371_v16  ;;  %v3086_v36 = vmul.f32 %v10375_v50, %v10375_v50  ;;  %v12755_v22 = vld [vmem:[#allocation70_spill] sm:$0xff]  ;;  %v12756_v45 = vld [vmem:[#allocation71_spill] sm:$0xff] }
 0x5c3   :  { %3040 = vmatprep.subr.mxu0 %v10357_v4  ;;  %v3085_v17 = vmul.f32 %v10378_v29, %v10378_v29 }
 0x5c4   :  { %3041 = vmatpush1.msra.mxu0 %v10361_v38 }
 0x5c5   :  { %3042 = vmatprep.subr.mxu0 %v10367_v15 }
 0x5c6   :  { %3043 = vmatpush1.msra.mxu0 %v10371_v16 }
 0x5c7   :  { %3044 = vmatprep.subr.mxu0 %v10375_v50 }
 0x5c8   :  { %3045 = vmatpush1.msra.mxu0 %v10378_v29 }
 0x5c9   :  { %8019 = vmatmul.mubr.msk.f32.vlgmr.msra.gmra.mxu0 %vm3004_vm7, %v3003_v21  ;;  %8020 = vmatprep.subr.msk.mxu0 %vm2932_vm6, %v3102_v23  ;;  %v12758_v23 = vld [vmem:[#allocation74_spill] sm:$0xff] }
 0x5ca   :  { %8021 = vmatpush1.msk.msra.mxu0 %vm2932_vm6, %v3101_v32  ;;  %3173 = vmatprep.mubr.f32.mxu0 %v12730_v8  ;;  %v3197_v32 = vld [vmem:[#allocation18 + $0x88] sm:$0xff] }
 0x5cb   :  { %3125 = vmatprep.subr.mxu0 %v3100_v56  ;;  %8346 = vmatprep.subr.mxu1 %v3197_v32  ;;  %v3181_v56 = vld [vmem:[#allocation18 + $0x8] sm:$0xff] }
 0x5cc   :  { %3126 = vmatpush1.msra.mxu0 %v3099_v19  ;;  %8347 = vmatpush3.msra.mxu1 %v3181_v56  ;;  %v3196_v19 = vld [vmem:[#allocation18 + $0x80] sm:$0xff] }
 0x5cd   :  { %3127 = vmatprep.subr.mxu0 %v3098_v6  ;;  %8348 = vmatprep.subr.mxu1 %v3196_v19  ;;  %v3180_v6 = vld [vmem:[#allocation18] sm:$0xff] }
 0x5ce   :  { %3128 = vmatpush1.msra.mxu0 %v3097_v39  ;;  %8349 = vmatpush3.msra.mxu1 %v3180_v6 }
 0x5cf   :  { %3129 = vmatprep.subr.mxu0 %v3096_v2 }
 0x5d0   :  { %3130 = vmatpush1.msra.mxu0 %v3095_v30 }
 0x5d1   :  { %3131 = vmatprep.subr.mxu0 %v3094_v51 }
 0x5d2   :  { %3132 = vmatpush1.msra.mxu0 %v3093_v42  ;;  %v3370_v42 = vld [vmem:[%s12533_s10 + $0x18] sm:$0xff] }
 0x5d3   :  { %3133 = vmatprep.subr.mxu0 %v3092_v12  ;;  %v3369_v12 = vld [vmem:[%s12533_s10 + $0x10] sm:$0xff]  ;;  %3403 = vmatprep.subr.mxu1 %v3370_v42 }
 0x5d4   :  { %3134 = vmatpush1.msra.mxu0 %v3091_v57  ;;  %v3368_v57 = vld [vmem:[%s12533_s10 + $0x8] sm:$0xff] }
 0x5d5   :  { %3135 = vmatprep.subr.mxu0 %v3090_v58  ;;  %v3367_v58 = vld [vmem:[%s12533_s10] sm:$0xff] }
 0x5d6   :  { %3136 = vmatpush1.msra.mxu0 %v3089_v37 }
 0x5d7   :  { %3137 = vmatprep.subr.mxu0 %v3088_v60 }
 0x5d8   :  { %3138 = vmatpush1.msra.mxu0 %v3087_v53 }
 0x5d9   :  { %3139 = vmatprep.subr.mxu0 %v3086_v36 }
 0x5da   :  { %3140 = vmatpush1.msra.mxu0 %v3085_v17 }
 0x5db   :  { %8022 = vmatmul.mubr.msk.f32.vlgmr.msra.gmra.mxu0 %vm3004_vm7, %v3003_v21  ;;  %8353 = vmatprep.subr.mxu0 %v12731_v55  ;;  %v12757_v21 = vld [vmem:[#allocation72_spill] sm:$0xff] }
 0x5dc   :  { %8354 = vmatpush3.msra.mxu0 %v12732_v5 }
 0x5dd   :  { %8355 = vmatprep.subr.mxu0 %v12733_v33 }
 0x5de   :  { %8356 = vmatpush3.msra.mxu0 %v12734_v25 }
 0x5df   :  { %8357 = vmatprep.subr.mxu0 %v12735_v34 }
 0x5e0   :  { %8358 = vmatpush3.msra.mxu0 %v12736_v43 }
 0x5e1   :  { %8359 = vmatprep.subr.mxu0 %v12737_v61 }
 0x5e2   :  { %8360 = vmatpush3.msra.mxu0 %v12738_v20  ;;  %v3358_v20 = vld [vmem:[%s12538_s15] sm:$0x1] }
 0x5e3   :  { %8361 = vmatprep.subr.mxu0 %v12739_v28  ;;  %v3360_v28 = vld [vmem:[%s12536_s13] sm:$0x1] }
 0x5e4   :  { %8362 = vmatpush3.msra.mxu0 %v12740_v11 }
 0x5e5   :  { %8363 = vmatprep.subr.mxu0 %v12741_v40 }
 0x5e6   :  { %8364 = vmatpush3.msra.mxu0 %v12742_v26 }
 0x5e7   :  { %8365 = vmatprep.subr.mxu0 %v12743_v46  ;;  %v3364_v46 = vld [vmem:[%s12537_s14] sm:$0x1] }
 0x5e8   :  { %8366 = vmatpush3.msra.mxu0 %v12744_v1 }
 0x5e9   :  { %8367 = vmatprep.subr.mxu0 %v12745_v13 }
 0x5ea   :  { %8368 = vmatpush3.msra.mxu0 %v12746_v48  ;;  %v4016_v48 = vld [vmem:[#allocation15 + $0xf8] sm:$0xff] }
 0x5eb   :  { %8369 = vmatprep.subr.mxu0 %v12747_v14  ;;  %v4015_v14 = vld [vmem:[#allocation15 + $0xf0] sm:$0xff] }
 0x5ec   :  { %8370 = vmatpush3.msra.mxu0 %v12748_v63  ;;  %v4014_v63 = vld [vmem:[#allocation15 + $0xe8] sm:$0xff] }
 0x5ed   :  { %8371 = vmatprep.subr.mxu0 %v12749_v0  ;;  %v4013_v0 = vld [vmem:[#allocation15 + $0xe0] sm:$0xff] }
 0x5ee   :  { %8372 = vmatpush3.msra.mxu0 %v12750_v54  ;;  %v4012_v54 = vld [vmem:[#allocation15 + $0xd8] sm:$0xff] }
 0x5ef   :  { %8373 = vmatprep.subr.mxu0 %v12751_v49  ;;  %v4011_v49 = vld [vmem:[#allocation15 + $0xd0] sm:$0xff] }
 0x5f0   :  { %8374 = vmatpush3.msra.mxu0 %v12752_v47  ;;  %v4010_v47 = vld [vmem:[#allocation15 + $0xc8] sm:$0xff] }
 0x5f1   :  { %8375 = vmatprep.subr.mxu0 %v12753_v24  ;;  %v4009_v24 = vld [vmem:[#allocation15 + $0xc0] sm:$0xff] }
 0x5f2   :  { %8376 = vmatpush3.msra.mxu0 %v12754_v27  ;;  %v4008_v27 = vld [vmem:[#allocation15 + $0xb8] sm:$0xff] }
 0x5f3   :  { %8377 = vmatprep.subr.mxu0 %v12755_v22  ;;  %v4007_v22 = vld [vmem:[#allocation15 + $0xb0] sm:$0xff] }
 0x5f4   :  { %8378 = vmatpush3.msra.mxu0 %v12756_v45  ;;  %v4006_v45 = vld [vmem:[#allocation15 + $0xa8] sm:$0xff] }
 0x5f5   :  { %8379 = vmatprep.subr.mxu0 %v12757_v21  ;;  %v4005_v21 = vld [vmem:[#allocation15 + $0xa0] sm:$0xff] }
 0x5f6   :  { %8380 = vmatpush3.msra.mxu0 %v12758_v23  ;;  %v4004_v23 = vld [vmem:[#allocation15 + $0x98] sm:$0xff] }
 0x5f7   :  { %8381 = vmatprep.subr.mxu0 %v3197_v32  ;;  %v4003_v32 = vld [vmem:[#allocation15 + $0x90] sm:$0xff] }
 0x5f8   :  { %8382 = vmatpush3.msra.mxu0 %v3181_v56  ;;  %v4002_v56 = vld [vmem:[#allocation15 + $0x88] sm:$0xff] }
 0x5f9   :  { %8383 = vmatprep.subr.mxu0 %v3196_v19  ;;  %v4001_v19 = vld [vmem:[#allocation15 + $0x80] sm:$0xff] }
 0x5fa   :  { %8384 = vmatpush3.msra.mxu0 %v3180_v6  ;;  %v4000_v6 = vld [vmem:[#allocation15 + $0x78] sm:$0xff] }
 0x5fb   :  { %4049 = vmatprep.subr.mxu0 %v4016_v48  ;;  %v12759_v48 = vld [vmem:[#allocation39_spill] sm:$0xff] }
 0x689   :  { %v3080_v39 = vpop.f32.mrf.mxu0 }
 0x68b   :  { %v3082_v2 = vpop.f32.mrf.mxu0 }
 0x68c   :  { %3276 = vmatprep.mubr.f32.mxu1 %v3082_v2  ;;  %v3998_v2 = vld [vmem:[#allocation15 + $0x68] sm:$0xff] }
 0x68d   :  { %3277 = vmatmul.mubr.f32.vlgmr.msra.gmra.mxu1 %v3080_v39  ;;  %v3999_v39 = vld [vmem:[#allocation15 + $0x70] sm:$0xff] }
 0x68e   :  { %3439 = vmatprep.mubr.f32.mxu1 %v12730_v8  ;;  %3404 = vmatpush1.msra.mxu1 %v3369_v12 }
 0x68f   :  { %3405 = vmatprep.subr.mxu1 %v3368_v57 }
 0x690   :  { %3406 = vmatpush1.msra.mxu1 %v3367_v58 }
 0x691   :  { %3477 = vmatprep.subr.mxu1 %v3370_v42 }
 0x69b   :  { %v3175_v30 = vpop.f32.mrf.mxu0 }
 0x69d   :  { %v3177_v51 = vpop.f32.mrf.mxu0 }
 0x69e   :  { %3346 = vmatprep.mubr.f32.mxu0 %v3177_v51  ;;  %v3996_v51 = vld [vmem:[#allocation15 + $0x58] sm:$0xff] }
 0x69f   :  { %3347 = vmatmul.mubr.f32.vlgmr.msra.gmra.mxu0 %v3175_v30  ;;  %v3997_v30 = vld [vmem:[#allocation15 + $0x60] sm:$0xff] }
 0x6a0   :  { %4050 = vmatpush1.msra.mxu0 %v4015_v14 }
 0x6a1   :  { %4051 = vmatprep.subr.mxu0 %v4014_v63  ;;  %v4040_v63 = vld [vmem:[#allocation15 + $0x1b8] sm:$0xff] }
 0x6a2   :  { %4052 = vmatpush1.msra.mxu0 %v4013_v0 }
 0x6a3   :  { %4053 = vmatprep.subr.mxu0 %v4012_v54 }
 0x6a4   :  { %4054 = vmatpush1.msra.mxu0 %v4011_v49  ;;  %v4039_v49 = vld [vmem:[#allocation15 + $0x1b0] sm:$0xff] }
 0x6a5   :  { %4055 = vmatprep.subr.mxu0 %v4010_v47 }
 0x6a6   :  { %4056 = vmatpush1.msra.mxu0 %v4009_v24 }
 0x6a7   :  { %4057 = vmatprep.subr.mxu0 %v4008_v27 }
 0x6a8   :  { %4058 = vmatpush1.msra.mxu0 %v4007_v22 }
 0x6a9   :  { %4059 = vmatprep.subr.mxu0 %v4006_v45  ;;  %v4038_v45 = vld [vmem:[#allocation15 + $0x1a8] sm:$0xff] }
 0x6aa   :  { %4060 = vmatpush1.msra.mxu0 %v4005_v21 }
 0x6ab   :  { %4061 = vmatprep.subr.mxu0 %v4004_v23 }
 0x6ac   :  { %4062 = vmatpush1.msra.mxu0 %v4003_v32  ;;  %v4037_v32 = vld [vmem:[#allocation15 + $0x1a0] sm:$0xff] }
 0x6ad   :  { %4063 = vmatprep.subr.mxu0 %v4002_v56 }
 0x6ae   :  { %4064 = vmatpush1.msra.mxu0 %v4001_v19  ;;  %v4036_v19 = vld [vmem:[#allocation15 + $0x198] sm:$0xff] }
 0x6af   :  { %4065 = vmatprep.subr.mxu0 %v4000_v6 }
 0x6b0   :  { %4066 = vmatpush1.msra.mxu0 %v3999_v39 }
 0x6b1   :  { %4067 = vmatprep.subr.mxu0 %v3998_v2  ;;  %v4035_v2 = vld [vmem:[#allocation15 + $0x190] sm:$0xff] }
 0x6b2   :  { %4068 = vmatpush1.msra.mxu0 %v3997_v30 }
 0x6b3   :  { %4069 = vmatprep.subr.mxu0 %v3996_v51 }
 0x74d   :  { %v8350_v37 = vpop.f32.mrf.mxu1 }
 0x74f   :  { %v8351_v60 = vpop.f32.mrf.mxu1 }
 0x750   :  { %v8352_v53 = vadd.f32 %v8351_v60, %v8350_v37  ;;  %v3991_v37 = vld [vmem:[#allocation15 + $0x30] sm:$0xff]  ;;  %v3990_v60 = vld [vmem:[#allocation15 + $0x28] sm:$0xff] }
 0x752   :  { %v3353_v17 = vmul.f32 0.0025510204, %v8352_v53  ;;  %v3989_v53 = vld [vmem:[#allocation15 + $0x20] sm:$0xff] }
 0x754   :  { %v3355_v33 = vmul.f32 %v3353_v17, %v3353_v17  ;;  %v3359_v40 = vadd.f32 %v3358_v20, %v3353_v17  ;;  %v3987_v17 = vld [vmem:[#allocation15 + $0x10] sm:$0xff] }
 0x75f   :  { %v8385_v36 = vpop.f32.mrf.mxu0 }
 0x761   :  { %v8386_v55 = vpop.f32.mrf.mxu0 }
 0x762   :  { %v8387_v5 = vadd.f32 %v8386_v55, %v8385_v36  ;;  %v3988_v36 = vld [vmem:[#allocation15 + $0x18] sm:$0xff]  ;;  %v3986_v55 = vld [vmem:[#allocation15 + $0x8] sm:$0xff] }
 0x764   :  { %v3354_v25 = vmul.f32 0.0025510204, %v8387_v5 }
 0x766   :  { %v3356_v34 = vsub.f32 %v3354_v25, %v3355_v33  ;;  %v3985_v33 = vld [vmem:[#allocation15] sm:$0xff]  ;;  %v4048_v25 = vld [vmem:[#allocation15 + $0x1f8] sm:$0xff] }
 0x768   :  { %v3357_v43 = vmax.f32 %v3356_v34, 0.0 }
 0x76a   :  { %v3361_v61 = vadd.f32 1e-05, %v3357_v43  ;;  %v4047_v43 = vld [vmem:[#allocation15 + $0x1f0] sm:$0xff] }
 0x76c   :  { %8612 = vrsqrt.f32 %v3361_v61  ;;  %v4046_v61 = vld [vmem:[#allocation15 + $0x1e8] sm:$0xff] }
 0x779   :  { %v8613_v11 = vpop.eup %8612 }
 0x77a   :  { %v3363_v26 = vmul.f32 %v8613_v11, %v3360_v28  ;;  %v4045_v28 = vld [vmem:[#allocation15 + $0x1e0] sm:$0xff]  ;;  %v4044_v11 = vld [vmem:[#allocation15 + $0x1d8] sm:$0xff] }
 0x77c   :  { %8023 = vmatmul.mubr.msk.f32.vlgmr.msra.gmra.mxu1 %vm3371_vm8, %v3363_v26  ;;  %v3365_v1 = vmul.f32 %v3363_v26, %v3359_v40  ;;  %v4043_v26 = vld [vmem:[#allocation15 + $0x1d0] sm:$0xff] }
 0x77d   :  { %3478 = vmatpush1.msra.mxu1 %v3369_v12  ;;  %3513 = vmatprep.mubr.f32.mxu1 %v12730_v8 }
 0x77e   :  { %3479 = vmatprep.subr.mxu1 %v3368_v57  ;;  %v3366_v13 = vsub.f32 %v3364_v46, %v3365_v1  ;;  %v4042_v46 = vld [vmem:[#allocation15 + $0x1c8] sm:$0xff] }
 0x77f   :  { %3480 = vmatpush1.msra.mxu1 %v3367_v58 }
 0x780   :  { %8024 = vmatmul.mubr.msk.f32.vlgmr.msra.gmra.mxu1 %vm3371_vm8, %v3366_v13  ;;  %3551 = vmatprep.subr.mxu1 %v3370_v42  ;;  %v3995_v42 = vld [vmem:[#allocation15 + $0x50] sm:$0xff]  ;;  %v4041_v13 = vld [vmem:[#allocation15 + $0x1c0] sm:$0xff] }
 0x781   :  { %3552 = vmatpush1.msra.mxu1 %v3369_v12  ;;  %3587 = vmatprep.mubr.f32.mxu1 %v12730_v8  ;;  %v3994_v12 = vld [vmem:[#allocation15 + $0x48] sm:$0xff] }
 0x782   :  { %3553 = vmatprep.subr.mxu1 %v3368_v57  ;;  %v3993_v57 = vld [vmem:[#allocation15 + $0x40] sm:$0xff]  ;;  %4070 = vmatpush1.msra.mxu0 %v3995_v42 }
 0x783   :  { %3554 = vmatpush1.msra.mxu1 %v3367_v58  ;;  %v3992_v58 = vld [vmem:[#allocation15 + $0x38] sm:$0xff]  ;;  %4071 = vmatprep.subr.mxu0 %v3994_v12  ;;  %v4034_v12 = vld [vmem:[#allocation15 + $0x188] sm:$0xff] }
 0x784   :  { %8025 = vmatmul.mubr.msk.f32.vlgmr.msra.gmra.mxu1 %vm3371_vm8, %v3358_v20  ;;  %4072 = vmatpush1.msra.mxu0 %v3993_v57 }
 0x785   :  { %3824 = vmatprep.mubr.f32.mxu1 %v12730_v8  ;;  %4073 = vmatprep.subr.mxu0 %v3992_v58 }
 0x786   :  { %4074 = vmatpush1.msra.mxu0 %v3991_v37  ;;  %v4033_v37 = vld [vmem:[#allocation15 + $0x180] sm:$0xff] }
 0x787   :  { %4075 = vmatprep.subr.mxu0 %v3990_v60 }
 0x788   :  { %4076 = vmatpush1.msra.mxu0 %v3989_v53 }
 0x789   :  { %4077 = vmatprep.subr.mxu0 %v3988_v36 }
 0x78a   :  { %4078 = vmatpush1.msra.mxu0 %v3987_v17  ;;  %v4032_v17 = vld [vmem:[#allocation15 + $0x178] sm:$0xff] }
 0x78b   :  { %4079 = vmatprep.subr.mxu0 %v3986_v55 }
 0x78c   :  { %4080 = vmatpush1.msra.mxu0 %v3985_v33 }
 0x78d   :  { %4081 = vmatprep.subr.mxu0 %v4048_v25 }
 0x78e   :  { %4082 = vmatpush2.msra.mxu0 %v4047_v43 }
 0x78f   :  { %4083 = vmatprep.subr.mxu0 %v4046_v61 }
 0x790   :  { %4084 = vmatpush2.msra.mxu0 %v4045_v28 }
 0x791   :  { %4085 = vmatprep.subr.mxu0 %v4044_v11  ;;  %v4031_v11 = vld [vmem:[#allocation15 + $0x170] sm:$0xff] }
 0x792   :  { %4086 = vmatpush2.msra.mxu0 %v4043_v26 }
 0x793   :  { %4087 = vmatprep.subr.mxu0 %v4042_v46  ;;  %v4030_v46 = vld [vmem:[#allocation15 + $0x168] sm:$0xff] }
 0x794   :  { %4088 = vmatpush2.msra.mxu0 %v4041_v13 }
 0x795   :  { %4089 = vmatprep.subr.mxu0 %v4040_v63 }
 0x796   :  { %4090 = vmatpush2.msra.mxu0 %v4039_v49 }
 0x797   :  { %4091 = vmatprep.subr.mxu0 %v4038_v45 }
 0x798   :  { %4092 = vmatpush2.msra.mxu0 %v4037_v32 }
 0x799   :  { %4093 = vmatprep.subr.mxu0 %v4036_v19 }
 0x79a   :  { %4094 = vmatpush2.msra.mxu0 %v4035_v2 }
 0x79b   :  { %4095 = vmatprep.subr.mxu0 %v4034_v12 }
 0x79c   :  { %4096 = vmatpush2.msra.mxu0 %v4033_v37 }
 0x79d   :  { %4097 = vmatprep.subr.mxu0 %v4032_v17 }
 0x79e   :  { %4098 = vmatpush2.msra.mxu0 %v4031_v11  ;;  %v4234_v11 = vld [vmem:[#allocation15 + $0x2b8] sm:$0xff] }
 0x79f   :  { %4099 = vmatprep.subr.mxu0 %v4030_v46  ;;  %v4230_v46 = vld [vmem:[#allocation15 + $0x298] sm:$0xff] }
 0x83c   :  { %v3441_v5 = vpop.f32.mrf.mxu1 }
 0x83d   :  { %v10484_v0 = vrot.slane %v3441_v5, %v12759_v48 }
 0x83e   :  { %v3443_v34 = vpop.f32.mrf.mxu1 }
 0x83f   :  { %v10496_v21 = vrot.slane %v3443_v34, %v12759_v48 }
 0x840   :  { %v3515_v20 = vpop.f32.mrf.mxu1 }
 0x841   :  { %v10507_v6 = vrot.slane %v3515_v20, %v12759_v48 }
 0x842   :  { %v3517_v40 = vpop.f32.mrf.mxu1 }
 0x843   :  { %v10515_v30 = vrot.slane %v3517_v40, %v12759_v48 }
 0x844   :  { %v3589_v1 = vpop.f32.mrf.mxu1 }
 0x845   :  { %v10481_v14 = vrot.slane %v3589_v1, %v12759_v48 }
 0x846   :  { %v3591_v54 = vpop.f32.mrf.mxu1 }
 0x847   :  { %v10487_v47 = vrot.slane %v3591_v54, %v12759_v48  ;;  %v3618_v24 = vadd.f32 %v10481_v14, %v10278_v9  ;;  %v3616_v27 = vadd.f32 %v10481_v14, %v10291_v35  ;;  %v3614_v22 = vadd.f32 %v10481_v14, %v10304_v7  ;;  %v4029_v54 = vld [vmem:[#allocation15 + $0x160] sm:$0xff] }
 0x848   :  { %v3612_v23 = vadd.f32 %v10481_v14, %v10317_v41  ;;  %v3608_v5 = vadd.f32 %v10481_v14, %v10351_v10  ;;  %v3606_v33 = vadd.f32 %v10481_v14, %v10361_v38  ;;  %v3604_v63 = vadd.f32 %v10481_v14, %v10371_v16  ;;  %4100 = vmatpush2.msra.mxu0 %v4029_v54  ;;  %v4226_v54 = vld [vmem:[#allocation15 + $0x278] sm:$0xff] }
 0x849   :  { %v3619_v56 = vadd.f32 %v10487_v47, %v10275_v18  ;;  %v3644_v9 = vmul.f32 %v10484_v0, %v3618_v24  ;;  %v3617_v35 = vadd.f32 %v10487_v47, %v10280_v3  ;;  %v3642_v7 = vmul.f32 %v10484_v0, %v3616_v27  ;;  %v4028_v27 = vld [vmem:[#allocation15 + $0x158] sm:$0xff] }
 0x84a   :  { %v3615_v41 = vadd.f32 %v10487_v47, %v10300_v62  ;;  %v3640_v39 = vmul.f32 %v10484_v0, %v3614_v22  ;;  %v3613_v18 = vadd.f32 %v10487_v47, %v10312_v59  ;;  %v3638_v42 = vmul.f32 %v10484_v0, %v3612_v23  ;;  %4101 = vmatprep.subr.mxu0 %v4028_v27  ;;  %v3695_v27 = vld [vmem:[#allocation21 + $0x28] sm:$0xff] }
 0x84b   :  { %v3645_v3 = vmul.f32 %v10496_v21, %v3619_v56  ;;  %v3643_v51 = vmul.f32 %v10496_v21, %v3617_v35  ;;  %v3670_v62 = vadd.f32 %v10507_v6, %v3644_v9  ;;  %v3668_v57 = vadd.f32 %v10507_v6, %v3642_v7  ;;  %v4026_v35 = vld [vmem:[#allocation15 + $0x148] sm:$0xff] }
 0x84c   :  { %v3641_v58 = vmul.f32 %v10496_v21, %v3615_v41  ;;  %v3610_v59 = vadd.f32 %v10481_v14, %v10334_v31  ;;  %v3639_v36 = vmul.f32 %v10496_v21, %v3613_v18  ;;  %v3666_v55 = vadd.f32 %v10507_v6, %v3640_v39  ;;  %v4025_v18 = vld [vmem:[#allocation15 + $0x140] sm:$0xff] }
 0x84d   :  { %v3671_v60 = vadd.f32 %v10515_v30, %v3645_v3  ;;  %v3669_v53 = vadd.f32 %v10515_v30, %v3643_v51  ;;  %v3664_v34 = vadd.f32 %v10507_v6, %v3638_v42  ;;  %v3611_v43 = vadd.f32 %v10487_v47, %v10326_v52 }
 0x84e   :  { %v3667_v25 = vadd.f32 %v10515_v30, %v3641_v58  ;;  %v3688_v61 = vmax.f32 %v3670_v62, 0.0  ;;  %v3686_v20 = vmax.f32 %v3668_v57, 0.0  ;;  %v3636_v28 = vmul.f32 %v10484_v0, %v3610_v59  ;;  %v4023_v62 = vld [vmem:[#allocation15 + $0x130] sm:$0xff]  ;;  %v4022_v57 = vld [vmem:[#allocation15 + $0x128] sm:$0xff]  ;;  %v4021_v59 = vld [vmem:[#allocation15 + $0x120] sm:$0xff] }
 0x84f   :  { %v3689_v31 = vmax.f32 %v3671_v60, 0.0  ;;  %v3609_v10 = vadd.f32 %v10487_v47, %v10341_v44  ;;  %v3687_v38 = vmax.f32 %v3669_v53, 0.0  ;;  %v3665_v40 = vadd.f32 %v10515_v30, %v3639_v36 }
 0x850   :  { %v3637_v26 = vmul.f32 %v10496_v21, %v3611_v43  ;;  %v3607_v52 = vadd.f32 %v10487_v47, %v10357_v4  ;;  %v3634_v13 = vmul.f32 %v10484_v0, %v3608_v5  ;;  %v3605_v44 = vadd.f32 %v10487_v47, %v10367_v15  ;;  %v4027_v15 = vld [vmem:[#allocation15 + $0x150] sm:$0xff]  ;;  %v4238_v43 = vld [vmem:[#allocation15 + $0x2d8] sm:$0xff] }
 0x851   :  { %8026 = vmatprep.subr.msk.mxu1 %vm2932_vm6, %v3689_v31  ;;  %v3635_v1 = vmul.f32 %v10496_v21, %v3609_v10  ;;  %v3685_v49 = vmax.f32 %v3667_v25, 0.0  ;;  %v3684_v22 = vmax.f32 %v3666_v55, 0.0  ;;  %v3662_v45 = vadd.f32 %v10507_v6, %v3636_v28  ;;  %4102 = vmatpush2.msra.mxu0 %v4027_v15  ;;  %v4242_v31 = vld [vmem:[#allocation15 + $0x2f8] sm:$0xff]  ;;  %v4241_v25 = vld [vmem:[#allocation15 + $0x2f0] sm:$0xff]  ;;  %v4235_v28 = vld [vmem:[#allocation15 + $0x2c0] sm:$0xff] }
 0x852   :  { %8027 = vmatpush1.msk.msra.mxu1 %vm2932_vm6, %v3688_v61  ;;  %v3663_v24 = vadd.f32 %v10515_v30, %v3637_v26  ;;  %v3633_v4 = vmul.f32 %v10496_v21, %v3607_v52  ;;  %v3632_v23 = vmul.f32 %v10484_v0, %v3606_v33  ;;  %v3683_v32 = vmax.f32 %v3665_v40, 0.0  ;;  %4103 = vmatprep.subr.mxu0 %v4026_v35  ;;  %v3690_v33 = vld [vmem:[#allocation21] sm:$0xff]  ;;  %v4237_v61 = vld [vmem:[#allocation15 + $0x2d0] sm:$0xff]  ;;  %v4232_v40 = vld [vmem:[#allocation15 + $0x2a8] sm:$0xff] }
 0x853   :  { %3776 = vmatprep.subr.mxu1 %v3687_v38  ;;  %v3661_v16 = vadd.f32 %v10515_v30, %v3635_v1  ;;  %v3631_v56 = vmul.f32 %v10496_v21, %v3605_v44  ;;  %v3603_v9 = vadd.f32 %v10487_v47, %v10375_v50  ;;  %v3682_v7 = vmax.f32 %v3664_v34, 0.0  ;;  %v4024_v50 = vld [vmem:[#allocation15 + $0x138] sm:$0xff]  ;;  %4104 = vmatpush2.msra.mxu0 %v4025_v18  ;;  %v3691_v34 = vld [vmem:[#allocation21 + $0x8] sm:$0xff]  ;;  %v3692_v10 = vld [vmem:[#allocation21 + $0x10] sm:$0xff] }
 0x854   :  { %3777 = vmatpush1.msra.mxu1 %v3686_v20  ;;  %v3660_v19 = vadd.f32 %v10507_v6, %v3634_v13  ;;  %v3630_v41 = vmul.f32 %v10484_v0, %v3604_v63  ;;  %v3602_v39 = vadd.f32 %v10481_v14, %v10378_v29  ;;  %v3681_v2 = vmax.f32 %v3663_v24, 0.0  ;;  %4105 = vmatprep.subr.mxu0 %v4024_v50  ;;  %v4236_v20 = vld [vmem:[#allocation15 + $0x2c8] sm:$0xff]  ;;  %v4233_v38 = vld [vmem:[#allocation15 + $0x2b0] sm:$0xff]  ;;  %v4231_v26 = vld [vmem:[#allocation15 + $0x2a0] sm:$0xff] }
 0x855   :  { %3778 = vmatprep.subr.mxu1 %v3685_v49  ;;  %v3659_v3 = vadd.f32 %v10515_v30, %v3633_v4  ;;  %v3629_v51 = vmul.f32 %v10496_v21, %v3603_v9  ;;  %v3680_v47 = vmax.f32 %v3662_v45, 0.0  ;;  %v3658_v42 = vadd.f32 %v10507_v6, %v3632_v23  ;;  %4106 = vmatpush2.msra.mxu0 %v4023_v62  ;;  %v3693_v52 = vld [vmem:[#allocation21 + $0x18] sm:$0xff]  ;;  %v4229_v1 = vld [vmem:[#allocation15 + $0x290] sm:$0xff]  ;;  %v4228_v13 = vld [vmem:[#allocation15 + $0x288] sm:$0xff] }
 0x856   :  { %3779 = vmatpush1.msra.mxu1 %v3684_v22  ;;  %v3628_v12 = vmul.f32 %v10484_v0, %v3602_v39  ;;  %v3679_v29 = vmax.f32 %v3661_v16, 0.0  ;;  %v3657_v14 = vadd.f32 %v10515_v30, %v3631_v56  ;;  %v3678_v58 = vmax.f32 %v3660_v19, 0.0  ;;  %4107 = vmatprep.subr.mxu0 %v4022_v57  ;;  %v4227_v44 = vld [vmem:[#allocation15 + $0x280] sm:$0xff]  ;;  %v4225_v49 = vld [vmem:[#allocation15 + $0x270] sm:$0xff]  ;;  %v4224_v24 = vld [vmem:[#allocation15 + $0x268] sm:$0xff] }
 0x857   :  { %3780 = vmatprep.subr.mxu1 %v3683_v32  ;;  %v3656_v21 = vadd.f32 %v10507_v6, %v3630_v41  ;;  %v3677_v37 = vmax.f32 %v3659_v3, 0.0  ;;  %v3655_v60 = vadd.f32 %v10515_v30, %v3629_v51  ;;  %v3676_v0 = vmax.f32 %v3658_v42, 0.0  ;;  %4108 = vmatpush2.msra.mxu0 %v4021_v59  ;;  %v4240_v30 = vld [vmem:[#allocation15 + $0x2e8] sm:$0xff]  ;;  %v3694_v63 = vld [vmem:[#allocation21 + $0x20] sm:$0xff]  ;;  %v4222_v22 = vld [vmem:[#allocation15 + $0x258] sm:$0xff] }
 0x858   :  { %3781 = vmatpush1.msra.mxu1 %v3682_v7  ;;  %v3654_v53 = vadd.f32 %v10507_v6, %v3628_v12  ;;  %v3675_v36 = vmax.f32 %v3657_v14, 0.0  ;;  %v4239_v6 = vld [vmem:[#allocation15 + $0x2e0] sm:$0xff]  ;;  %v4221_v45 = vld [vmem:[#allocation15 + $0x250] sm:$0xff]  ;;  %v4220_v23 = vld [vmem:[#allocation15 + $0x248] sm:$0xff] }
 0x859   :  { %3782 = vmatprep.subr.mxu1 %v3681_v2  ;;  %v3674_v17 = vmax.f32 %v3656_v21, 0.0  ;;  %v3673_v55 = vmax.f32 %v3655_v60, 0.0  ;;  %v4223_v4 = vld [vmem:[#allocation15 + $0x260] sm:$0xff]  ;;  %v3696_v32 = vld [vmem:[#allocation21 + $0x30] sm:$0xff]  ;;  %v4218_v16 = vld [vmem:[#allocation15 + $0x238] sm:$0xff] }
 0x85a   :  { %3783 = vmatpush1.msra.mxu1 %v3680_v47  ;;  %v3672_v5 = vmax.f32 %v3654_v53, 0.0  ;;  %v4219_v15 = vld [vmem:[#allocation15 + $0x240] sm:$0xff]  ;;  %v4217_v56 = vld [vmem:[#allocation15 + $0x230] sm:$0xff]  ;;  %v4216_v9 = vld [vmem:[#allocation15 + $0x228] sm:$0xff] }
 0x85b   :  { %3784 = vmatprep.subr.mxu1 %v3679_v29  ;;  %v4215_v35 = vld [vmem:[#allocation15 + $0x220] sm:$0xff]  ;;  %v3697_v7 = vld [vmem:[#allocation21 + $0x38] sm:$0xff]  ;;  %v4213_v41 = vld [vmem:[#allocation15 + $0x210] sm:$0xff] }
 0x85c   :  { %3785 = vmatpush1.msra.mxu1 %v3678_v58  ;;  %v4214_v19 = vld [vmem:[#allocation15 + $0x218] sm:$0xff]  ;;  %v4212_v39 = vld [vmem:[#allocation15 + $0x208] sm:$0xff]  ;;  %v4211_v18 = vld [vmem:[#allocation15 + $0x200] sm:$0xff] }
 0x85d   :  { %3786 = vmatprep.subr.mxu1 %v3677_v37  ;;  %v3698_v2 = vld [vmem:[#allocation21 + $0x40] sm:$0xff]  ;;  %v4274_v3 = vld [vmem:[#allocation15 + $0x3f8] sm:$0xff]  ;;  %v4273_v51 = vld [vmem:[#allocation15 + $0x3f0] sm:$0xff] }
 0x85e   :  { %3787 = vmatpush1.msra.mxu1 %v3676_v0  ;;  %v4272_v50 = vld [vmem:[#allocation15 + $0x3e8] sm:$0xff]  ;;  %v4271_v47 = vld [vmem:[#allocation15 + $0x3e0] sm:$0xff]  ;;  %v4270_v12 = vld [vmem:[#allocation15 + $0x3d8] sm:$0xff] }
 0x85f   :  { %3788 = vmatprep.subr.mxu1 %v3675_v36  ;;  %v3699_v42 = vld [vmem:[#allocation21 + $0x48] sm:$0xff]  ;;  %v4269_v62 = vld [vmem:[#allocation15 + $0x3d0] sm:$0xff]  ;;  %v4267_v14 = vld [vmem:[#allocation15 + $0x3c0] sm:$0xff] }
 0x860   :  { %3789 = vmatpush1.msra.mxu1 %v3674_v17  ;;  %v4268_v29 = vld [vmem:[#allocation15 + $0x3c8] sm:$0xff]  ;;  %v3700_v57 = vld [vmem:[#allocation21 + $0x50] sm:$0xff]  ;;  %v4266_v58 = vld [vmem:[#allocation15 + $0x3b8] sm:$0xff] }
 0x861   :  { %3790 = vmatprep.subr.mxu1 %v3673_v55  ;;  %v4265_v21 = vld [vmem:[#allocation15 + $0x3b0] sm:$0xff]  ;;  %v4264_v59 = vld [vmem:[#allocation15 + $0x3a8] sm:$0xff]  ;;  %v4263_v37 = vld [vmem:[#allocation15 + $0x3a0] sm:$0xff] }
 0x862   :  { %3791 = vmatpush1.msra.mxu1 %v3672_v5  ;;  %v3701_v60 = vld [vmem:[#allocation21 + $0x58] sm:$0xff]  ;;  %v4261_v53 = vld [vmem:[#allocation15 + $0x390] sm:$0xff]  ;;  %v4260_v36 = vld [vmem:[#allocation15 + $0x388] sm:$0xff] }
 0x863   :  { %8028 = vmatmul.mubr.msk.f32.vlgmr.msra.gmra.mxu1 %vm3004_vm7, %v3690_v33  ;;  %4275 = vmatprep.subr.mxu1 %v4242_v31  ;;  %v4262_v0 = vld [vmem:[#allocation15 + $0x398] sm:$0xff]  ;;  %v4259_v17 = vld [vmem:[#allocation15 + $0x380] sm:$0xff]  ;;  %v4257_v33 = vld [vmem:[#allocation15 + $0x370] sm:$0xff] }
 0x864   :  { %3830 = vmatprep.mubr.f32.mxu1 %v12730_v8  ;;  %4276 = vmatpush1.msra.mxu1 %v4241_v25  ;;  %v3702_v55 = vld [vmem:[#allocation21 + $0x60] sm:$0xff]  ;;  %v4258_v5 = vld [vmem:[#allocation15 + $0x378] sm:$0xff]  ;;  %v4256_v31 = vld [vmem:[#allocation15 + $0x368] sm:$0xff] }
 0x865   :  { %4277 = vmatprep.subr.mxu1 %v4240_v30  ;;  %v4255_v25 = vld [vmem:[#allocation15 + $0x360] sm:$0xff]  ;;  %v3703_v30 = vld [vmem:[#allocation21 + $0x68] sm:$0xff] }
 0x866   :  { %4278 = vmatpush1.msra.mxu1 %v4239_v6  ;;  %v4254_v6 = vld [vmem:[#allocation15 + $0x358] sm:$0xff] }
 0x867   :  { %8029 = vmatmul.mubr.msk.f32.gmra.mxu1 %vm3004_vm7, %v3691_v34  ;;  %4279 = vmatprep.subr.mxu1 %v4238_v43  ;;  %v4253_v34 = vld [vmem:[#allocation15 + $0x350] sm:$0xff]  ;;  %v4252_v43 = vld [vmem:[#allocation15 + $0x348] sm:$0xff] }
 0x868   :  { %3836 = vmatprep.mubr.f32.mxu1 %v12730_v8  ;;  %4280 = vmatpush1.msra.mxu1 %v4237_v61  ;;  %v4251_v61 = vld [vmem:[#allocation15 + $0x340] sm:$0xff] }
 0x869   :  { %4281 = vmatprep.subr.mxu1 %v4236_v20  ;;  %v3704_v20 = vld [vmem:[#allocation21 + $0x70] sm:$0xff] }
 0x86a   :  { %4282 = vmatpush1.msra.mxu1 %v4235_v28  ;;  %v4250_v28 = vld [vmem:[#allocation15 + $0x338] sm:$0xff] }
 0x86b   :  { %8030 = vmatmul.mubr.msk.f32.gmra.mxu1 %vm3004_vm7, %v3692_v10  ;;  %4283 = vmatprep.subr.mxu1 %v4234_v11  ;;  %v4249_v10 = vld [vmem:[#allocation15 + $0x330] sm:$0xff]  ;;  %v4248_v11 = vld [vmem:[#allocation15 + $0x328] sm:$0xff] }
 0x86c   :  { %3842 = vmatprep.mubr.f32.mxu1 %v12730_v8  ;;  %4284 = vmatpush1.msra.mxu1 %v4233_v38  ;;  %v4247_v38 = vld [vmem:[#allocation15 + $0x320] sm:$0xff] }
 0x86d   :  { %4285 = vmatprep.subr.mxu1 %v4232_v40  ;;  %v3705_v40 = vld [vmem:[#allocation21 + $0x78] sm:$0xff] }
 0x86e   :  { %4286 = vmatpush1.msra.mxu1 %v4231_v26  ;;  %v4020_v26 = vld [vmem:[#allocation15 + $0x118] sm:$0xff] }
 0x86f   :  { %8031 = vmatmul.mubr.msk.f32.gmra.mxu1 %vm3004_vm7, %v3693_v52  ;;  %4287 = vmatprep.subr.mxu1 %v4230_v46  ;;  %v4246_v52 = vld [vmem:[#allocation15 + $0x318] sm:$0xff]  ;;  %v4019_v46 = vld [vmem:[#allocation15 + $0x110] sm:$0xff] }
 0x870   :  { %3848 = vmatprep.mubr.f32.mxu1 %v12730_v8  ;;  %4288 = vmatpush1.msra.mxu1 %v4229_v1  ;;  %v4245_v1 = vld [vmem:[#allocation15 + $0x310] sm:$0xff] }
 0x871   :  { %4289 = vmatprep.subr.mxu1 %v4228_v13  ;;  %4109 = vmatprep.subr.mxu0 %v4020_v26  ;;  %v4018_v13 = vld [vmem:[#allocation15 + $0x108] sm:$0xff] }
 0x872   :  { %4290 = vmatpush1.msra.mxu1 %v4227_v44  ;;  %4110 = vmatpush2.msra.mxu0 %v4019_v46  ;;  %v4244_v44 = vld [vmem:[#allocation15 + $0x308] sm:$0xff]  ;;  %v4496_v46 = vld [vmem:[#allocation15 + $0x5d8] sm:$0xff] }
 0x873   :  { %8032 = vmatmul.mubr.msk.f32.gmra.mxu1 %vm3004_vm7, %v3694_v63  ;;  %4291 = vmatprep.subr.mxu1 %v4226_v54  ;;  %v4017_v63 = vld [vmem:[#allocation15 + $0x100] sm:$0xff] }
 0x874   :  { %3854 = vmatprep.mubr.f32.mxu1 %v12730_v8  ;;  %4292 = vmatpush1.msra.mxu1 %v4225_v49  ;;  %v4243_v54 = vld [vmem:[#allocation15 + $0x300] sm:$0xff]  ;;  %v4468_v49 = vld [vmem:[#allocation15 + $0x4f8] sm:$0xff] }
 0x875   :  { %4293 = vmatprep.subr.mxu1 %v4224_v24  ;;  %4111 = vmatprep.subr.mxu0 %v4018_v13  ;;  %v4495_v13 = vld [vmem:[#allocation15 + $0x5d0] sm:$0xff] }
 0x876   :  { %4294 = vmatpush1.msra.mxu1 %v4223_v4  ;;  %4112 = vmatpush2.msra.mxu0 %v4017_v63 }
 0x877   :  { %8033 = vmatmul.mubr.msk.f32.gmra.mxu1 %vm3004_vm7, %v3695_v27  ;;  %4295 = vmatprep.subr.mxu1 %v4222_v22  ;;  %v4467_v27 = vld [vmem:[#allocation15 + $0x4f0] sm:$0xff]  ;;  %v4466_v22 = vld [vmem:[#allocation15 + $0x4e8] sm:$0xff] }
 0x878   :  { %3860 = vmatprep.mubr.f32.mxu1 %v12730_v8  ;;  %4296 = vmatpush1.msra.mxu1 %v4221_v45 }
 0x879   :  { %4297 = vmatprep.subr.mxu1 %v4220_v23  ;;  %4501 = vmatprep.subr.mxu0 %v4468_v49  ;;  %v4465_v23 = vld [vmem:[#allocation15 + $0x4e0] sm:$0xff]  ;;  %v4492_v49 = vld [vmem:[#allocation15 + $0x5b8] sm:$0xff] }
 0x87a   :  { %4298 = vmatpush1.msra.mxu1 %v4219_v15 }
 0x87b   :  { %8034 = vmatmul.mubr.msk.f32.gmra.mxu1 %vm3004_vm7, %v3696_v32  ;;  %4299 = vmatprep.subr.mxu1 %v4218_v16  ;;  %v4464_v32 = vld [vmem:[#allocation15 + $0x4d8] sm:$0xff]  ;;  %v4463_v16 = vld [vmem:[#allocation15 + $0x4d0] sm:$0xff] }
 0x87c   :  { %3866 = vmatprep.mubr.f32.mxu1 %v12730_v8  ;;  %4300 = vmatpush1.msra.mxu1 %v4217_v56 }
 0x87d   :  { %4301 = vmatprep.subr.mxu1 %v4216_v9  ;;  %v4462_v9 = vld [vmem:[#allocation15 + $0x4c8] sm:$0xff] }
 0x87e   :  { %4302 = vmatpush1.msra.mxu1 %v4215_v35  ;;  %v4461_v35 = vld [vmem:[#allocation15 + $0x4c0] sm:$0xff] }
 0x87f   :  { %8035 = vmatmul.mubr.msk.f32.gmra.mxu1 %vm3004_vm7, %v3697_v7  ;;  %4303 = vmatprep.subr.mxu1 %v4214_v19  ;;  %v4460_v19 = vld [vmem:[#allocation15 + $0x4b8] sm:$0xff] }
 0x880   :  { %3872 = vmatprep.mubr.f32.mxu1 %v12730_v8  ;;  %4304 = vmatpush1.msra.mxu1 %v4213_v41 }
 0x881   :  { %4305 = vmatprep.subr.mxu1 %v4212_v39  ;;  %v4459_v39 = vld [vmem:[#allocation15 + $0x4b0] sm:$0xff] }
 0x882   :  { %4306 = vmatpush1.msra.mxu1 %v4211_v18  ;;  %v4458_v18 = vld [vmem:[#allocation15 + $0x4a8] sm:$0xff] }
 0x883   :  { %8036 = vmatmul.mubr.msk.f32.gmra.mxu1 %vm3004_vm7, %v3698_v2  ;;  %4307 = vmatprep.subr.mxu1 %v4274_v3  ;;  %v4457_v3 = vld [vmem:[#allocation15 + $0x4a0] sm:$0xff] }
 0x884   :  { %3878 = vmatprep.mubr.f32.mxu1 %v12730_v8  ;;  %4308 = vmatpush2.msra.mxu1 %v4273_v51  ;;  %v4456_v51 = vld [vmem:[#allocation15 + $0x498] sm:$0xff] }
 0x885   :  { %4309 = vmatprep.subr.mxu1 %v4272_v50 }
 0x886   :  { %4310 = vmatpush2.msra.mxu1 %v4271_v47  ;;  %v4455_v47 = vld [vmem:[#allocation15 + $0x490] sm:$0xff] }
 0x887   :  { %8037 = vmatmul.mubr.msk.f32.gmra.mxu1 %vm3004_vm7, %v3699_v42  ;;  %4311 = vmatprep.subr.mxu1 %v4270_v12  ;;  %v4454_v42 = vld [vmem:[#allocation15 + $0x488] sm:$0xff] }
 0x888   :  { %3884 = vmatprep.mubr.f32.mxu1 %v12730_v8  ;;  %4312 = vmatpush2.msra.mxu1 %v4269_v62  ;;  %v4453_v62 = vld [vmem:[#allocation15 + $0x480] sm:$0xff] }
 0x889   :  { %4313 = vmatprep.subr.mxu1 %v4268_v29  ;;  %v4452_v29 = vld [vmem:[#allocation15 + $0x478] sm:$0xff] }
 0x88a   :  { %4314 = vmatpush2.msra.mxu1 %v4267_v14 }
 0x88b   :  { %8038 = vmatmul.mubr.msk.f32.gmra.mxu1 %vm3004_vm7, %v3700_v57  ;;  %4315 = vmatprep.subr.mxu1 %v4266_v58  ;;  %v4451_v57 = vld [vmem:[#allocation15 + $0x470] sm:$0xff]  ;;  %v4450_v58 = vld [vmem:[#allocation15 + $0x468] sm:$0xff] }
 0x88c   :  { %3890 = vmatprep.mubr.f32.mxu1 %v12730_v8  ;;  %4316 = vmatpush2.msra.mxu1 %v4265_v21 }
 0x88d   :  { %4317 = vmatprep.subr.mxu1 %v4264_v59  ;;  %v4449_v59 = vld [vmem:[#allocation15 + $0x460] sm:$0xff] }
 0x88e   :  { %4318 = vmatpush2.msra.mxu1 %v4263_v37  ;;  %v4448_v37 = vld [vmem:[#allocation15 + $0x458] sm:$0xff] }
 0x88f   :  { %8039 = vmatmul.mubr.msk.f32.gmra.mxu1 %vm3004_vm7, %v3701_v60  ;;  %4319 = vmatprep.subr.mxu1 %v4262_v0  ;;  %v4447_v0 = vld [vmem:[#allocation15 + $0x450] sm:$0xff] }
 0x890   :  { %3896 = vmatprep.mubr.f32.mxu1 %v12730_v8  ;;  %4320 = vmatpush2.msra.mxu1 %v4261_v53  ;;  %v4446_v53 = vld [vmem:[#allocation15 + $0x448] sm:$0xff] }
 0x891   :  { %4321 = vmatprep.subr.mxu1 %v4260_v36 }
 0x892   :  { %4322 = vmatpush2.msra.mxu1 %v4259_v17  ;;  %v4445_v17 = vld [vmem:[#allocation15 + $0x440] sm:$0xff] }
 0x893   :  { %8040 = vmatmul.mubr.msk.f32.gmra.mxu1 %vm3004_vm7, %v3702_v55  ;;  %4323 = vmatprep.subr.mxu1 %v4258_v5  ;;  %v4444_v55 = vld [vmem:[#allocation15 + $0x438] sm:$0xff] }
 0x894   :  { %3902 = vmatprep.mubr.f32.mxu1 %v12730_v8  ;;  %4324 = vmatpush2.msra.mxu1 %v4257_v33  ;;  %v4443_v33 = vld [vmem:[#allocation15 + $0x430] sm:$0xff] }
 0x895   :  { %4325 = vmatprep.subr.mxu1 %v4256_v31  ;;  %v4442_v31 = vld [vmem:[#allocation15 + $0x428] sm:$0xff] }
 0x896   :  { %4326 = vmatpush2.msra.mxu1 %v4255_v25 }
 0x897   :  { %8041 = vmatmul.mubr.msk.f32.gmra.mxu1 %vm3004_vm7, %v3703_v30  ;;  %4327 = vmatprep.subr.mxu1 %v4254_v6  ;;  %v4441_v30 = vld [vmem:[#allocation15 + $0x420] sm:$0xff]  ;;  %v4440_v6 = vld [vmem:[#allocation15 + $0x418] sm:$0xff] }
 0x898   :  { %3908 = vmatprep.mubr.f32.mxu1 %v12730_v8  ;;  %4328 = vmatpush2.msra.mxu1 %v4253_v34 }
 0x899   :  { %4329 = vmatprep.subr.mxu1 %v4252_v43  ;;  %v4439_v43 = vld [vmem:[#allocation15 + $0x410] sm:$0xff] }
 0x89a   :  { %4330 = vmatpush2.msra.mxu1 %v4251_v61  ;;  %v4438_v61 = vld [vmem:[#allocation15 + $0x408] sm:$0xff] }
 0x89b   :  { %8042 = vmatmul.mubr.msk.f32.gmra.mxu1 %vm3004_vm7, %v3704_v20  ;;  %4331 = vmatprep.subr.mxu1 %v4250_v28  ;;  %v4437_v28 = vld [vmem:[#allocation15 + $0x400] sm:$0xff] }
 0x89c   :  { %3914 = vmatprep.mubr.f32.mxu1 %v12730_v8  ;;  %4332 = vmatpush2.msra.mxu1 %v4249_v10  ;;  %v4500_v10 = vld [vmem:[#allocation15 + $0x5f8] sm:$0xff] }
 0x89d   :  { %4333 = vmatprep.subr.mxu1 %v4248_v11 }
 0x89e   :  { %4334 = vmatpush2.msra.mxu1 %v4247_v38  ;;  %v4499_v38 = vld [vmem:[#allocation15 + $0x5f0] sm:$0xff] }
 0x89f   :  { %8043 = vmatmul.mubr.msk.f32.gmra.mxu1 %vm3004_vm7, %v3705_v40  ;;  %4335 = vmatprep.subr.mxu1 %v4246_v52  ;;  %v4498_v40 = vld [vmem:[#allocation15 + $0x5e8] sm:$0xff]  ;;  %v4497_v52 = vld [vmem:[#allocation15 + $0x5e0] sm:$0xff] }
 0x8a0   :  { %4336 = vmatpush2.msra.mxu1 %v4245_v1 }
 0x8a1   :  { %4337 = vmatprep.subr.mxu1 %v4244_v44  ;;  %v4494_v44 = vld [vmem:[#allocation15 + $0x5c8] sm:$0xff] }
 0x8a2   :  { %4338 = vmatpush2.msra.mxu1 %v4243_v54  ;;  %v4493_v54 = vld [vmem:[#allocation15 + $0x5c0] sm:$0xff] }
 0x923   :  { %v10603_v24 = vpop.f32.mrf.mxu1 }
 0x925   :  { %v10605_v4 = vpop.f32.mrf.mxu1 }
 0x926   :  { %4113 = vmatprep.mubr.f32.mxu0 %v10605_v4  ;;  %4339 = vmatprep.mubr.f32.mxu1 %v10605_v4 }
 0x927   :  { %v10609_v45 = vpop.f32.mrf.mxu1  ;;  %4114 = vmatmul.mubr.f32.vlgmr.msra.gmra.mxu0 %v10603_v24  ;;  %4340 = vmatmul.mubr.f32.vlgmr.msra.gmra.mxu1 %v10603_v24 }
 0x928   :  { %4502 = vmatpush1.msra.mxu0 %v4467_v27 }
 0x929   :  { %v10613_v15 = vpop.f32.mrf.mxu1  ;;  %4503 = vmatprep.subr.mxu0 %v4466_v22  ;;  %v4491_v22 = vld [vmem:[#allocation15 + $0x5b0] sm:$0xff] }
 0x92a   :  { %4119 = vmatprep.mubr.f32.mxu0 %v10613_v15  ;;  %4345 = vmatprep.mubr.f32.mxu1 %v10613_v15 }
 0x92b   :  { %4504 = vmatpush1.msra.mxu0 %v4465_v23  ;;  %v10617_v56 = vpop.f32.mrf.mxu1  ;;  %4346 = vmatmul.mubr.f32.gmra.mxu1 %v10609_v45  ;;  %v4490_v23 = vld [vmem:[#allocation15 + $0x5a8] sm:$0xff] }
 0x92c   :  { %4120 = vmatmul.mubr.f32.gmra.mxu0 %v10609_v45  ;;  %4505 = vmatprep.subr.mxu0 %v4464_v32 }
 0x92d   :  { %4506 = vmatpush1.msra.mxu0 %v4463_v16  ;;  %v10621_v7 = vpop.f32.mrf.mxu1  ;;  %v4489_v16 = vld [vmem:[#allocation15 + $0x5a0] sm:$0xff] }
 0x92e   :  { %4507 = vmatprep.subr.mxu0 %v4462_v9  ;;  %4125 = vmatprep.mubr.f32.mxu0 %v10621_v7  ;;  %v4488_v9 = vld [vmem:[#allocation15 + $0x598] sm:$0xff] }
 0x92f   :  { %4351 = vmatprep.mubr.f32.mxu1 %v10621_v7  ;;  %4508 = vmatpush1.msra.mxu0 %v4461_v35  ;;  %v10625_v41 = vpop.f32.mrf.mxu1 }
 0x930   :  { %4126 = vmatmul.mubr.f32.gmra.mxu0 %v10617_v56  ;;  %4352 = vmatmul.mubr.f32.gmra.mxu1 %v10617_v56 }
 0x931   :  { %4509 = vmatprep.subr.mxu0 %v4460_v19  ;;  %v10629_v2 = vpop.f32.mrf.mxu1  ;;  %v4487_v19 = vld [vmem:[#allocation15 + $0x590] sm:$0xff] }
 0x932   :  { %4510 = vmatpush1.msra.mxu0 %v4459_v39  ;;  %4131 = vmatprep.mubr.f32.mxu0 %v10629_v2  ;;  %v4486_v39 = vld [vmem:[#allocation15 + $0x588] sm:$0xff] }
 0x933   :  { %4511 = vmatprep.subr.mxu0 %v4458_v18  ;;  %4357 = vmatprep.mubr.f32.mxu1 %v10629_v2  ;;  %v10633_v50 = vpop.f32.mrf.mxu1 }
 0x934   :  { %4512 = vmatpush1.msra.mxu0 %v4457_v3  ;;  %4358 = vmatmul.mubr.f32.gmra.mxu1 %v10625_v41  ;;  %v4485_v3 = vld [vmem:[#allocation15 + $0x580] sm:$0xff] }
 0x935   :  { %4132 = vmatmul.mubr.f32.gmra.mxu0 %v10625_v41  ;;  %4513 = vmatprep.subr.mxu0 %v4456_v51  ;;  %v10637_v12 = vpop.f32.mrf.mxu1  ;;  %v4484_v51 = vld [vmem:[#allocation15 + $0x578] sm:$0xff] }
 0x936   :  { %4514 = vmatpush1.msra.mxu0 %v4455_v47  ;;  %4137 = vmatprep.mubr.f32.mxu0 %v10637_v12 }
 0x937   :  { %4515 = vmatprep.subr.mxu0 %v4454_v42  ;;  %4363 = vmatprep.mubr.f32.mxu1 %v10637_v12  ;;  %v10641_v14 = vpop.f32.mrf.mxu1  ;;  %v4483_v42 = vld [vmem:[#allocation15 + $0x570] sm:$0xff] }
 0x938   :  { %4516 = vmatpush1.msra.mxu0 %v4453_v62  ;;  %4364 = vmatmul.mubr.f32.gmra.mxu1 %v10633_v50  ;;  %v4482_v62 = vld [vmem:[#allocation15 + $0x568] sm:$0xff] }
 0x939   :  { %4138 = vmatmul.mubr.f32.gmra.mxu0 %v10633_v50  ;;  %4517 = vmatprep.subr.mxu0 %v4452_v29  ;;  %v10645_v21 = vpop.f32.mrf.mxu1 }
 0x93a   :  { %4518 = vmatpush1.msra.mxu0 %v4451_v57  ;;  %4143 = vmatprep.mubr.f32.mxu0 %v10645_v21  ;;  %v4481_v57 = vld [vmem:[#allocation15 + $0x560] sm:$0xff] }
 0x93b   :  { %4519 = vmatprep.subr.mxu0 %v4450_v58  ;;  %4369 = vmatprep.mubr.f32.mxu1 %v10645_v21  ;;  %v10649_v60 = vpop.f32.mrf.mxu1  ;;  %v4480_v58 = vld [vmem:[#allocation15 + $0x558] sm:$0xff] }
 0x93c   :  { %4520 = vmatpush1.msra.mxu0 %v4449_v59  ;;  %4370 = vmatmul.mubr.f32.gmra.mxu1 %v10641_v14 }
 0x93d   :  { %4144 = vmatmul.mubr.f32.gmra.mxu0 %v10641_v14  ;;  %4521 = vmatprep.subr.mxu0 %v4448_v37  ;;  %v10653_v36 = vpop.f32.mrf.mxu1  ;;  %v4479_v37 = vld [vmem:[#allocation15 + $0x550] sm:$0xff] }
 0x93e   :  { %4522 = vmatpush1.msra.mxu0 %v4447_v0  ;;  %4149 = vmatprep.mubr.f32.mxu0 %v10653_v36  ;;  %v4478_v0 = vld [vmem:[#allocation15 + $0x548] sm:$0xff] }
 0x93f   :  { %4523 = vmatprep.subr.mxu0 %v4446_v53  ;;  %4375 = vmatprep.mubr.f32.mxu1 %v10653_v36  ;;  %v10657_v5 = vpop.f32.mrf.mxu1 }
 0x940   :  { %4524 = vmatpush1.msra.mxu0 %v4445_v17  ;;  %4376 = vmatmul.mubr.f32.gmra.mxu1 %v10649_v60  ;;  %v4477_v17 = vld [vmem:[#allocation15 + $0x540] sm:$0xff] }
 0x941   :  { %4150 = vmatmul.mubr.f32.gmra.mxu0 %v10649_v60  ;;  %4525 = vmatprep.subr.mxu0 %v4444_v55  ;;  %v10661_v25 = vpop.f32.mrf.mxu1  ;;  %v4476_v55 = vld [vmem:[#allocation15 + $0x538] sm:$0xff] }
 0x942   :  { %4526 = vmatpush1.msra.mxu0 %v4443_v33  ;;  %4155 = vmatprep.mubr.f32.mxu0 %v10661_v25 }
 0x943   :  { %4527 = vmatprep.subr.mxu0 %v4442_v31  ;;  %4381 = vmatprep.mubr.f32.mxu1 %v10661_v25  ;;  %v10665_v34 = vpop.f32.mrf.mxu1  ;;  %v4475_v31 = vld [vmem:[#allocation15 + $0x530] sm:$0xff] }
 0x944   :  { %4528 = vmatpush1.msra.mxu0 %v4441_v30  ;;  %4382 = vmatmul.mubr.f32.gmra.mxu1 %v10657_v5  ;;  %v4474_v30 = vld [vmem:[#allocation15 + $0x528] sm:$0xff] }
 0x945   :  { %4156 = vmatmul.mubr.f32.gmra.mxu0 %v10657_v5  ;;  %4529 = vmatprep.subr.mxu0 %v4440_v6  ;;  %v10669_v20 = vpop.f32.mrf.mxu1 }
 0x946   :  { %4530 = vmatpush1.msra.mxu0 %v4439_v43  ;;  %4161 = vmatprep.mubr.f32.mxu0 %v10669_v20  ;;  %v4473_v43 = vld [vmem:[#allocation15 + $0x520] sm:$0xff] }
 0x947   :  { %4531 = vmatprep.subr.mxu0 %v4438_v61  ;;  %4387 = vmatprep.mubr.f32.mxu1 %v10669_v20  ;;  %v10673_v11 = vpop.f32.mrf.mxu1  ;;  %v4472_v61 = vld [vmem:[#allocation15 + $0x518] sm:$0xff] }
 0x948   :  { %4532 = vmatpush1.msra.mxu0 %v4437_v28  ;;  %4388 = vmatmul.mubr.f32.gmra.mxu1 %v10665_v34  ;;  %v4471_v28 = vld [vmem:[#allocation15 + $0x510] sm:$0xff] }
 0x949   :  { %4162 = vmatmul.mubr.f32.gmra.mxu0 %v10665_v34  ;;  %4533 = vmatprep.subr.mxu0 %v4500_v10  ;;  %v10677_v26 = vpop.f32.mrf.mxu1  ;;  %v4470_v10 = vld [vmem:[#allocation15 + $0x508] sm:$0xff] }
 0x94a   :  { %4534 = vmatpush2.msra.mxu0 %v4499_v38  ;;  %4167 = vmatprep.mubr.f32.mxu0 %v10677_v26  ;;  %v4469_v38 = vld [vmem:[#allocation15 + $0x500] sm:$0xff] }
 0x94b   :  { %4535 = vmatprep.subr.mxu0 %v4498_v40  ;;  %4393 = vmatprep.mubr.f32.mxu1 %v10677_v26  ;;  %v10681_v1 = vpop.f32.mrf.mxu1 }
 0x94c   :  { %4536 = vmatpush2.msra.mxu0 %v4497_v52  ;;  %4394 = vmatmul.mubr.f32.gmra.mxu1 %v10673_v11 }
 0x94d   :  { %4168 = vmatmul.mubr.f32.gmra.mxu0 %v10673_v11  ;;  %4537 = vmatprep.subr.mxu0 %v4496_v46  ;;  %v10685_v63 = vpop.f32.mrf.mxu1 }
 0x94e   :  { %4538 = vmatpush2.msra.mxu0 %v4495_v13  ;;  %4173 = vmatprep.mubr.f32.mxu0 %v10685_v63 }
 0x94f   :  { %4539 = vmatprep.subr.mxu0 %v4494_v44  ;;  %4399 = vmatprep.mubr.f32.mxu1 %v10685_v63  ;;  %v10689_v27 = vpop.f32.mrf.mxu1 }
 0x950   :  { %4540 = vmatpush2.msra.mxu0 %v4493_v54  ;;  %4400 = vmatmul.mubr.f32.gmra.mxu1 %v10681_v1 }
 0x951   :  { %4174 = vmatmul.mubr.f32.gmra.mxu0 %v10681_v1  ;;  %4541 = vmatprep.subr.mxu0 %v4492_v49  ;;  %v10693_v32 = vpop.f32.mrf.mxu1 }
 0x952   :  { %4542 = vmatpush2.msra.mxu0 %v4491_v22  ;;  %4179 = vmatprep.mubr.f32.mxu0 %v10693_v32 }
 0x953   :  { %4543 = vmatprep.subr.mxu0 %v4490_v23  ;;  %4405 = vmatprep.mubr.f32.mxu1 %v10693_v32  ;;  %v10697_v35 = vpop.f32.mrf.mxu1 }
 0x954   :  { %4544 = vmatpush2.msra.mxu0 %v4489_v16  ;;  %4406 = vmatmul.mubr.f32.gmra.mxu1 %v10689_v27 }
 0x955   :  { %4180 = vmatmul.mubr.f32.gmra.mxu0 %v10689_v27  ;;  %4545 = vmatprep.subr.mxu0 %v4488_v9  ;;  %v10701_v18 = vpop.f32.mrf.mxu1 }
 0x956   :  { %4546 = vmatpush2.msra.mxu0 %v4487_v19  ;;  %4185 = vmatprep.mubr.f32.mxu0 %v10701_v18 }
 0x957   :  { %4547 = vmatprep.subr.mxu0 %v4486_v39  ;;  %4411 = vmatprep.mubr.f32.mxu1 %v10701_v18  ;;  %v10705_v47 = vpop.f32.mrf.mxu1 }
 0x958   :  { %4548 = vmatpush2.msra.mxu0 %v4485_v3  ;;  %4412 = vmatmul.mubr.f32.gmra.mxu1 %v10697_v35 }
 0x959   :  { %4186 = vmatmul.mubr.f32.gmra.mxu0 %v10697_v35  ;;  %4549 = vmatprep.subr.mxu0 %v4484_v51  ;;  %v10709_v29 = vpop.f32.mrf.mxu1 }
 0x95a   :  { %4550 = vmatpush2.msra.mxu0 %v4483_v42  ;;  %4191 = vmatprep.mubr.f32.mxu0 %v10709_v29 }
 0x95b   :  { %4551 = vmatprep.subr.mxu0 %v4482_v62  ;;  %4417 = vmatprep.mubr.f32.mxu1 %v10709_v29  ;;  %v10713_v59 = vpop.f32.mrf.mxu1 }
 0x95c   :  { %4552 = vmatpush2.msra.mxu0 %v4481_v57  ;;  %4418 = vmatmul.mubr.f32.gmra.mxu1 %v10705_v47 }
 0x95d   :  { %4192 = vmatmul.mubr.f32.gmra.mxu0 %v10705_v47  ;;  %4553 = vmatprep.subr.mxu0 %v4480_v58  ;;  %v3912_v53 = vpop.f32.mrf.mxu1 }
 0x95e   :  { %4554 = vmatpush2.msra.mxu0 %v4479_v37  ;;  %4197 = vmatprep.mubr.f32.mxu0 %v3912_v53 }
 0x95f   :  { %4555 = vmatprep.subr.mxu0 %v4478_v0  ;;  %4423 = vmatprep.mubr.f32.mxu1 %v3912_v53  ;;  %v3916_v33 = vpop.f32.mrf.mxu1 }
 0x960   :  { %4556 = vmatpush2.msra.mxu0 %v4477_v17  ;;  %4424 = vmatmul.mubr.f32.gmra.mxu1 %v10713_v59 }
 0x961   :  { %4198 = vmatmul.mubr.f32.gmra.mxu0 %v10713_v59  ;;  %4557 = vmatprep.subr.mxu0 %v4476_v55  ;;  %v3918_v6 = vpop.f32.mrf.mxu1 }
 0x962   :  { %4558 = vmatpush2.msra.mxu0 %v4475_v31  ;;  %4203 = vmatprep.mubr.f32.mxu0 %v3918_v6 }
 0x963   :  { %4559 = vmatprep.subr.mxu0 %v4474_v30  ;;  %4429 = vmatprep.mubr.f32.mxu1 %v3918_v6 }
 0x964   :  { %4560 = vmatpush2.msra.mxu0 %v4473_v43  ;;  %4430 = vmatmul.mubr.f32.gmra.mxu1 %v3916_v33 }
 0x965   :  { %4204 = vmatmul.mubr.f32.gmra.mxu0 %v3916_v33  ;;  %4561 = vmatprep.subr.mxu0 %v4472_v61 }
 0x966   :  { %4562 = vmatpush2.msra.mxu0 %v4471_v28  ;;  %4565 = vmatprep.mubr.f32.mxu0 %v10605_v4 }
 0x967   :  { %4563 = vmatprep.subr.mxu0 %v4470_v10  ;;  %5053 = vmatprep.mubr.f32.mxu1 %v12730_v8 }
 0x968   :  { %4564 = vmatpush2.msra.mxu0 %v4469_v38 }
 0x969   :  { %4566 = vmatmul.mubr.f32.vlgmr.msra.gmra.mxu0 %v10603_v24  ;;  %5203 = vmatprep.subr.mxu0 %v12730_v8 }
 0x96a   :  { %4571 = vmatprep.mubr.f32.mxu0 %v10613_v15 }
 0x96d   :  { %4572 = vmatmul.mubr.f32.gmra.mxu0 %v10609_v45 }
 0x96e   :  { %4577 = vmatprep.mubr.f32.mxu0 %v10621_v7 }
 0x971   :  { %4578 = vmatmul.mubr.f32.gmra.mxu0 %v10617_v56 }
 0x972   :  { %4583 = vmatprep.mubr.f32.mxu0 %v10629_v2 }
 0x975   :  { %4584 = vmatmul.mubr.f32.gmra.mxu0 %v10625_v41 }
 0x976   :  { %4589 = vmatprep.mubr.f32.mxu0 %v10637_v12 }
 0x979   :  { %4590 = vmatmul.mubr.f32.gmra.mxu0 %v10633_v50 }
 0x97a   :  { %4595 = vmatprep.mubr.f32.mxu0 %v10645_v21 }
 0x97d   :  { %4596 = vmatmul.mubr.f32.gmra.mxu0 %v10641_v14 }
 0x97e   :  { %4601 = vmatprep.mubr.f32.mxu0 %v10653_v36 }
 0x981   :  { %4602 = vmatmul.mubr.f32.gmra.mxu0 %v10649_v60 }
 0x982   :  { %4607 = vmatprep.mubr.f32.mxu0 %v10661_v25 }
 0x985   :  { %4608 = vmatmul.mubr.f32.gmra.mxu0 %v10657_v5 }
 0x986   :  { %4613 = vmatprep.mubr.f32.mxu0 %v10669_v20 }
 0x989   :  { %4614 = vmatmul.mubr.f32.gmra.mxu0 %v10665_v34 }
 0x98a   :  { %4619 = vmatprep.mubr.f32.mxu0 %v10677_v26 }
 0x98d   :  { %4620 = vmatmul.mubr.f32.gmra.mxu0 %v10673_v11 }
 0x98e   :  { %4625 = vmatprep.mubr.f32.mxu0 %v10685_v63 }
 0x991   :  { %4626 = vmatmul.mubr.f32.gmra.mxu0 %v10681_v1 }
 0x992   :  { %4631 = vmatprep.mubr.f32.mxu0 %v10693_v32 }
 0x995   :  { %4632 = vmatmul.mubr.f32.gmra.mxu0 %v10689_v27 }
 0x996   :  { %4637 = vmatprep.mubr.f32.mxu0 %v10701_v18 }
 0x999   :  { %4638 = vmatmul.mubr.f32.gmra.mxu0 %v10697_v35 }
 0x99a   :  { %4643 = vmatprep.mubr.f32.mxu0 %v10709_v29 }
 0x99d   :  { %4644 = vmatmul.mubr.f32.gmra.mxu0 %v10705_v47 }
 0x99e   :  { %4649 = vmatprep.mubr.f32.mxu0 %v3912_v53 }
 0x9a1   :  { %4650 = vmatmul.mubr.f32.gmra.mxu0 %v10713_v59 }
 0x9a2   :  { %4655 = vmatprep.mubr.f32.mxu0 %v3918_v6 }
 0x9a5   :  { %4656 = vmatmul.mubr.f32.gmra.mxu0 %v3916_v33 }
 0x9e7   :  { %v4115_v24 = vpop.f32.mrf.mxu0  ;;  %v4341_v4 = vpop.f32.mrf.mxu1 }
 0x9e8   :  { %v4694_v7 = vrot.slane %v4341_v4, 1 }
 0x9e9   :  { %v10750_v45 = vpop.f32.mrf.mxu0  ;;  %v10752_v15 = vpop.f32.mrf.mxu1 }
 0x9ea   :  { %12760 = vst [vmem:[#allocation89_spill] sm:$0xff] %v10750_v45  ;;  %12761 = vst [vmem:[#allocation79_spill] sm:$0xff] %v10752_v15  ;;  %v10945_v45 = vld [vmem:[#allocation20 + $0x18] sm:$0xff] }
 0x9eb   :  { %v4347_v56 = vpop.f32.mrf.mxu1  ;;  %12803 = vst [vmem:[#allocation64_spill] sm:$0xff] %v10945_v45 }
 0x9ec   :  { %v4121_v41 = vpop.f32.mrf.mxu0  ;;  %v4695_v2 = vrot.slane %v4347_v56, 1 }
 0x9ed   :  { %v10754_v50 = vpop.f32.mrf.mxu1 }
 0x9ee   :  { %12762 = vst [vmem:[#allocation90_spill] sm:$0xff] %v10754_v50  ;;  %v4696_v12 = vsel %vm2843_vm5, %v4694_v7, %v4695_v2  ;;  %v10757_v14 = vpop.f32.mrf.mxu0 }
 0x9ef   :  { %12763 = vst [vmem:[#allocation80_spill] sm:$0xff] %v10757_v14  ;;  %v10759_v21 = vadd.f32 %v4696_v12, %v4115_v24 }
 0x9f0   :  { %v4127_v60 = vpop.f32.mrf.mxu0  ;;  %v4353_v36 = vpop.f32.mrf.mxu1 }
 0x9f1   :  { %v4700_v5 = vrot.slane %v4353_v36, 1  ;;  %v10854_v36 = vld [vmem:[#allocation20 + $0x70] sm:$0xff] }
 0x9f2   :  { %v10761_v25 = vpop.f32.mrf.mxu0  ;;  %v10763_v34 = vpop.f32.mrf.mxu1  ;;  %12780 = vst [vmem:[#allocation54_spill] sm:$0xff] %v10854_v36 }
 0x9f3   :  { %12764 = vst [vmem:[#allocation91_spill] sm:$0xff] %v10761_v25  ;;  %12765 = vst [vmem:[#allocation82_spill] sm:$0xff] %v10763_v34  ;;  %v4701_v20 = vsel %vm2843_vm5, %v4695_v2, %v4700_v5 }
 0x9f4   :  { %v10766_v11 = vadd.f32 %v4701_v20, %v4121_v41  ;;  %v4359_v40 = vpop.f32.mrf.mxu1 }
 0x9f5   :  { %v4133_v26 = vpop.f32.mrf.mxu0  ;;  %v4704_v52 = vrot.slane %v4359_v40, 1 }
 0x9f6   :  { %v10768_v46 = vpop.f32.mrf.mxu1 }
 0x9f7   :  { %12766 = vst [vmem:[#allocation88_spill] sm:$0xff] %v10768_v46  ;;  %v4705_v1 = vsel %vm2843_vm5, %v4700_v5, %v4704_v52  ;;  %v10771_v13 = vpop.f32.mrf.mxu0 }
 0x9f8   :  { %12767 = vst [vmem:[#allocation78_spill] sm:$0xff] %v10771_v13  ;;  %v10773_v44 = vadd.f32 %v4705_v1, %v4127_v60  ;;  %v4365_v63 = vpop.f32.mrf.mxu1  ;;  %v10852_v60 = vld [vmem:[#allocation20 + $0x78] sm:$0xff] }
 0x9f9   :  { %v4139_v54 = vpop.f32.mrf.mxu0  ;;  %v4708_v49 = vrot.slane %v4365_v63, 1  ;;  %12779 = vst [vmem:[#allocation63_spill] sm:$0xff] %v10852_v60  ;;  %5204 = vmatpush1.msra.mxu0 %v10852_v60  ;;  %v10906_v60 = vld [vmem:[#allocation20 + $0x38] sm:$0xff] }
 0x9fa   :  { %v10775_v27 = vpop.f32.mrf.mxu1  ;;  %5205 = vmatprep.subr.mxu0 %v12730_v8  ;;  %12793 = vst [vmem:[#allocation52_spill] sm:$0xff] %v10906_v60 }
 0x9fb   :  { %12768 = vst [vmem:[#allocation87_spill] sm:$0xff] %v10775_v27  ;;  %v4709_v22 = vsel %vm2843_vm5, %v4704_v52, %v4708_v49  ;;  %v10778_v23 = vpop.f32.mrf.mxu0  ;;  %5206 = vmatpush1.msra.mxu0 %v10854_v36 }
 0x9fc   :  { %12769 = vst [vmem:[#allocation77_spill] sm:$0xff] %v10778_v23  ;;  %v10780_v32 = vadd.f32 %v4709_v22, %v4133_v26  ;;  %v10782_v16 = vpop.f32.mrf.mxu1  ;;  %v10858_v26 = vld [vmem:[#allocation20 + $0x68] sm:$0xff]  ;;  %5207 = vmatprep.subr.mxu0 %v12730_v8 }
 0x9fd   :  { %12770 = vst [vmem:[#allocation86_spill] sm:$0xff] %v10782_v16  ;;  %v10784_v9 = vpop.f32.mrf.mxu0  ;;  %v12584_v35 = vrot.slane %v10782_v16, 1  ;;  %12781 = vst [vmem:[#allocation49_spill] sm:$0xff] %v10858_v26  ;;  %5208 = vmatpush1.msra.mxu0 %v10858_v26  ;;  %v10890_v26 = vld [vmem:[#allocation20 + $0x48] sm:$0xff]  ;;  %v11040_v16 = vld [vmem:[#allocation20 + $0xa0] sm:$0xff] }
 0x9fe   :  { %12771 = vst [vmem:[#allocation76_spill] sm:$0xff] %v10784_v9  ;;  %v10808_v58 = vpop.f32.mrf.mxu1  ;;  %5209 = vmatprep.subr.mxu0 %v12730_v8  ;;  %12789 = vst [vmem:[#allocation47_spill] sm:$0xff] %v10890_v26 }
 0x9ff   :  { %v4713_v19 = vsel %vm2843_vm5, %v4708_v49, %v12584_v35  ;;  %v10790_v39 = vpop.f32.mrf.mxu0  ;;  %12816 = vst [vmem:[#allocation96_spill] sm:$0xff] %v11040_v16 }
 0xa00   :  { %12772 = vst [vmem:[#allocation85_spill] sm:$0xff] %v10790_v39  ;;  %v10792_v18 = vadd.f32 %v4713_v19, %v4139_v54  ;;  %v10814_v0 = vpop.f32.mrf.mxu1  ;;  %v10867_v54 = vld [vmem:[#allocation20 + $0x60] sm:$0xff] }
 0xa01   :  { %v10794_v3 = vpop.f32.mrf.mxu0  ;;  %12777 = vst [vmem:[#allocation68_spill] sm:$0xff] %v10814_v0  ;;  %12783 = vst [vmem:[#allocation40_spill] sm:$0xff] %v10867_v54  ;;  %5210 = vmatpush1.msra.mxu0 %v10867_v54 }
 0xa02   :  { %12773 = vst [vmem:[#allocation75_spill] sm:$0xff] %v10794_v3  ;;  %v10820_v55 = vpop.f32.mrf.mxu1  ;;  %5211 = vmatprep.subr.mxu0 %v12730_v8 }
 0xa03   :  { %v10796_v51 = vpop.f32.mrf.mxu0 }
 0xa04   :  { %12774 = vst [vmem:[#allocation84_spill] sm:$0xff] %v10796_v51  ;;  %v10826_v30 = vpop.f32.mrf.mxu1 }
 0xa05   :  { %v10798_v47 = vpop.f32.mrf.mxu0 }
 0xa06   :  { %12775 = vst [vmem:[#allocation73_spill] sm:$0xff] %v10798_v47  ;;  %v10832_v61 = vpop.f32.mrf.mxu1 }
 0xa07   :  { %v10800_v42 = vpop.f32.mrf.mxu0 }
 0xa08   :  { %12776 = vst [vmem:[#allocation83_spill] sm:$0xff] %v10800_v42  ;;  %v10838_v38 = vpop.f32.mrf.mxu1 }
 0xa09   :  { %v10802_v62 = vpop.f32.mrf.mxu0 }
 0xa0a   :  { %v10844_v56 = vpop.f32.mrf.mxu1 }
 0xa0b   :  { %v10804_v29 = vpop.f32.mrf.mxu0 }
 0xa0c   :  { %v10848_v2 = vpop.f32.mrf.mxu1 }
 0xa0d   :  { %v10806_v57 = vpop.f32.mrf.mxu0  ;;  %v4728_v42 = vrot.slane %v10848_v2, 1 }
 0xa0e   :  { %v10860_v52 = vpop.f32.mrf.mxu1 }
 0xa0f   :  { %v10810_v59 = vpop.f32.mrf.mxu0 }
 0xa11   :  { %v10812_v37 = vpop.f32.mrf.mxu0 }
 0xa13   :  { %v10816_v53 = vpop.f32.mrf.mxu0 }
 0xa15   :  { %v10818_v17 = vpop.f32.mrf.mxu0 }
 0xa17   :  { %v10822_v33 = vpop.f32.mrf.mxu0 }
 0xa19   :  { %v10824_v31 = vpop.f32.mrf.mxu0 }
 0xa1b   :  { %v10828_v6 = vpop.f32.mrf.mxu0 }
 0xa1d   :  { %v10830_v43 = vpop.f32.mrf.mxu0 }
 0xa1f   :  { %v10834_v28 = vpop.f32.mrf.mxu0 }
 0xa21   :  { %v10836_v10 = vpop.f32.mrf.mxu0 }
 0xa23   :  { %v10840_v24 = vpop.f32.mrf.mxu0 }
 0xa25   :  { %v10842_v4 = vpop.f32.mrf.mxu0 }
 0xa27   :  { %v10846_v7 = vpop.f32.mrf.mxu0 }
 0xa29   :  { %v4567_v41 = vpop.f32.mrf.mxu0 }
 0xa2a   :  { %v4852_v20 = vrot.slane %v4567_v41, 2  ;;  %v10874_v41 = vld [vmem:[#allocation20 + $0x58] sm:$0xff] }
 0xa2b   :  { %v10850_v12 = vpop.f32.mrf.mxu0  ;;  %12785 = vst [vmem:[#allocation42_spill] sm:$0xff] %v10874_v41  ;;  %5212 = vmatpush1.msra.mxu0 %v10874_v41 }
 0xa2c   :  { %12778 = vst [vmem:[#allocation81_spill] sm:$0xff] %v10850_v12  ;;  %5213 = vmatprep.subr.mxu0 %v12730_v8 }
 0xa2d   :  { %v4573_v5 = vpop.f32.mrf.mxu0 }
 0xa2e   :  { %v4853_v40 = vrot.slane %v4573_v5, 2  ;;  %v10876_v5 = vpop.f32.mrf.mxu1 }
 0xa2f   :  { %v10862_v1 = vpop.f32.mrf.mxu0 }
 0xa30   :  { %12782 = vst [vmem:[#allocation44_spill] sm:$0xff] %v10862_v1  ;;  %v4854_v63 = vsel %vm2932_vm6, %v4852_v20, %v4853_v40  ;;  %v10892_v36 = vpop.f32.mrf.mxu1 }
 0xa31   :  { %v10870_v49 = vadd.f32 %v4854_v63, %v10759_v21  ;;  %v4579_v22 = vpop.f32.mrf.mxu0  ;;  %v10883_v21 = vld [vmem:[#allocation20 + $0x50] sm:$0xff] }
 0xa32   :  { %v4858_v19 = vrot.slane %v4579_v22, 2  ;;  %12787 = vst [vmem:[#allocation45_spill] sm:$0xff] %v10883_v21  ;;  %5214 = vmatpush1.msra.mxu0 %v10883_v21 }
 0xa33   :  { %12784 = vst [vmem:[#allocation41_spill] sm:$0xff] %v10870_v49  ;;  %v10878_v35 = vpop.f32.mrf.mxu0  ;;  %5215 = vmatprep.subr.mxu0 %v12730_v8  ;;  %v10908_v49 = vpop.f32.mrf.mxu1 }
 0xa34   :  { %12786 = vst [vmem:[#allocation43_spill] sm:$0xff] %v10878_v35  ;;  %v4859_v20 = vsel %vm2932_vm6, %v4853_v40, %v4858_v19  ;;  %5216 = vmatpush1.msra.mxu0 %v10890_v26 }
 0xa35   :  { %v10886_v63 = vadd.f32 %v4859_v20, %v10766_v11  ;;  %v4585_v22 = vpop.f32.mrf.mxu0  ;;  %v10899_v11 = vld [vmem:[#allocation20 + $0x40] sm:$0xff]  ;;  %5217 = vmatprep.subr.mxu0 %v12730_v8 }
 0xa36   :  { %v4862_v48 = vrot.slane %v4585_v22, 2  ;;  %12791 = vst [vmem:[#allocation50_spill] sm:$0xff] %v10899_v11  ;;  %5218 = vmatpush1.msra.mxu0 %v10899_v11  ;;  %v10927_v11 = vpop.f32.mrf.mxu1 }
 0xa37   :  { %12788 = vst [vmem:[#allocation46_spill] sm:$0xff] %v10886_v63  ;;  %v10894_v54 = vpop.f32.mrf.mxu0  ;;  %5219 = vmatprep.subr.mxu0 %v12730_v8  ;;  %v10925_v63 = vld [vmem:[#allocation20 + $0x28] sm:$0xff] }
 0xa38   :  { %12790 = vst [vmem:[#allocation48_spill] sm:$0xff] %v10894_v54  ;;  %v4863_v40 = vsel %vm2932_vm6, %v4858_v19, %v4862_v48  ;;  %5220 = vmatpush1.msra.mxu0 %v10906_v60  ;;  %12798 = vst [vmem:[#allocation58_spill] sm:$0xff] %v10925_v63 }
 0xa39   :  { %v10902_v20 = vadd.f32 %v4863_v40, %v10773_v44  ;;  %v4591_v22 = vpop.f32.mrf.mxu0  ;;  %v10915_v44 = vld [vmem:[#allocation20 + $0x30] sm:$0xff]  ;;  %5221 = vmatprep.subr.mxu0 %v12730_v8 }
 0xa3a   :  { %v4866_v41 = vrot.slane %v4591_v22, 2  ;;  %12795 = vst [vmem:[#allocation55_spill] sm:$0xff] %v10915_v44  ;;  %5222 = vmatpush1.msra.mxu0 %v10915_v44  ;;  %v10947_v44 = vpop.f32.mrf.mxu1 }
 0xa3b   :  { %12792 = vst [vmem:[#allocation51_spill] sm:$0xff] %v10902_v20  ;;  %v10910_v21 = vpop.f32.mrf.mxu0  ;;  %5223 = vmatprep.subr.mxu0 %v12730_v8 }
 0xa3c   :  { %12794 = vst [vmem:[#allocation53_spill] sm:$0xff] %v10910_v21  ;;  %v4867_v19 = vsel %vm2932_vm6, %v4862_v48, %v4866_v41  ;;  %5224 = vmatpush1.msra.mxu0 %v10925_v63  ;;  %v4718_v21 = vrot.slane %v10820_v55, 1 }
 0xa3d   :  { %v10918_v40 = vadd.f32 %v4867_v19, %v10780_v32  ;;  %v10920_v22 = vpop.f32.mrf.mxu0  ;;  %v10936_v19 = vld [vmem:[#allocation20 + $0x20] sm:$0xff]  ;;  %5225 = vmatprep.subr.mxu0 %v12730_v8 }
 0xa3e   :  { %12797 = vst [vmem:[#allocation57_spill] sm:$0xff] %v10920_v22  ;;  %v12600_v26 = vrot.slane %v10920_v22, 2  ;;  %12800 = vst [vmem:[#allocation60_spill] sm:$0xff] %v10936_v19  ;;  %5226 = vmatpush1.msra.mxu0 %v10936_v19  ;;  %v10967_v19 = vld [vmem:[#allocation20] sm:$0xff]  ;;  %v4714_v22 = vrot.slane %v10808_v58, 1  ;;  %v4726_v58 = vrot.slane %v10844_v56, 1 }
 0xa3f   :  { %12796 = vst [vmem:[#allocation56_spill] sm:$0xff] %v10918_v40  ;;  %v10929_v48 = vpop.f32.mrf.mxu0  ;;  %5227 = vmatprep.subr.mxu0 %v12730_v8  ;;  %12806 = vst [vmem:[#allocation67_spill] sm:$0xff] %v10967_v19 }
 0xa40   :  { %12799 = vst [vmem:[#allocation59_spill] sm:$0xff] %v10929_v48  ;;  %v4871_v32 = vsel %vm2932_vm6, %v4866_v41, %v12600_v26  ;;  %v10953_v41 = vld [vmem:[#allocation20 + $0x10] sm:$0xff]  ;;  %5228 = vmatpush1.msra.mxu0 %v10945_v45  ;;  %v10961_v26 = vpop.f32.mrf.mxu1  ;;  %v10973_v45 = vld [vmem:[#allocation20 + $0xe8] sm:$0xff]  ;;  %v4722_v48 = vrot.slane %v10832_v61, 1 }
 0xa41   :  { %v10939_v60 = vadd.f32 %v4871_v32, %v10792_v18  ;;  %v10941_v20 = vpop.f32.mrf.mxu0  ;;  %12804 = vst [vmem:[#allocation65_spill] sm:$0xff] %v10953_v41  ;;  %5229 = vmatprep.subr.mxu0 %v12730_v8  ;;  %v10959_v32 = vld [vmem:[#allocation20 + $0x8] sm:$0xff]  ;;  %12807 = vst [vmem:[#allocation69_spill] sm:$0xff] %v10973_v45 }
 0xa42   :  { %12802 = vst [vmem:[#allocation62_spill] sm:$0xff] %v10941_v20  ;;  %12805 = vst [vmem:[#allocation66_spill] sm:$0xff] %v10959_v32  ;;  %5230 = vmatpush1.msra.mxu0 %v10953_v41  ;;  %v10981_v41 = vld [vmem:[#allocation20 + $0xe0] sm:$0xff]  ;;  %v11060_v20 = vsel %vm2843_vm5, %v4714_v22, %v4718_v21  ;;  %v11078_v56 = vsel %vm2843_vm5, %v4718_v21, %v4722_v48  ;;  %v11091_v21 = vsel %vm2843_vm5, %v4722_v48, %v4726_v58 }
 0xa43   :  { %12801 = vst [vmem:[#allocation61_spill] sm:$0xff] %v10939_v60  ;;  %v10949_v40 = vpop.f32.mrf.mxu0  ;;  %5231 = vmatprep.subr.mxu0 %v12730_v8  ;;  %v10975_v60 = vpop.f32.mrf.mxu1  ;;  %12808 = vst [vmem:[#allocation70_spill] sm:$0xff] %v10981_v41 }
 0xa44   :  { %5232 = vmatpush1.msra.mxu0 %v10959_v32  ;;  %v10987_v32 = vld [vmem:[#allocation20 + $0xd8] sm:$0xff]  ;;  %12819 = vst [vmem:[#allocation99_spill] sm:$0xff] %v11060_v20  ;;  %12823 = vst [vmem:[#allocation102_spill] sm:$0xff] %v11078_v56  ;;  %v4736_v20 = vrot.slane %v10908_v49, 1  ;;  %v4744_v48 = vrot.slane %v10975_v60, 1 }
 0xa45   :  { %v10955_v18 = vpop.f32.mrf.mxu0  ;;  %5233 = vmatprep.subr.mxu0 %v12730_v8  ;;  %12809 = vst [vmem:[#allocation71_spill] sm:$0xff] %v10987_v32  ;;  %v10989_v1 = vpop.f32.mrf.mxu1  ;;  %12825 = vst [vmem:[#allocation104_spill] sm:$0xff] %v11091_v21 }
 0xa46   :  { %5234 = vmatpush1.msra.mxu0 %v10967_v19  ;;  %v10995_v19 = vld [vmem:[#allocation20 + $0xd0] sm:$0xff]  ;;  %v4746_v49 = vrot.slane %v10989_v1, 1 }
 0xa47   :  { %v10963_v63 = vpop.f32.mrf.mxu0  ;;  %5239 = vmatprep.subr.mxu0 %v12730_v8  ;;  %12810 = vst [vmem:[#allocation72_spill] sm:$0xff] %v10995_v19  ;;  %v11003_v35 = vpop.f32.mrf.mxu1 }
 0xa48   :  { %5240 = vmatpush2.msra.mxu0 %v10973_v45  ;;  %v11001_v45 = vld [vmem:[#allocation20 + $0xc8] sm:$0xff] }
 0xa49   :  { %v10969_v14 = vpop.f32.mrf.mxu0  ;;  %5241 = vmatprep.subr.mxu0 %v12730_v8  ;;  %12811 = vst [vmem:[#allocation74_spill] sm:$0xff] %v11001_v45  ;;  %v11017_v54 = vpop.f32.mrf.mxu1 }
 0xa4a   :  { %5242 = vmatpush2.msra.mxu0 %v10981_v41  ;;  %v11009_v41 = vld [vmem:[#allocation20 + $0xc0] sm:$0xff] }
 0xa4b   :  { %v10977_v12 = vpop.f32.mrf.mxu0  ;;  %5243 = vmatprep.subr.mxu0 %v12730_v8  ;;  %12812 = vst [vmem:[#allocation92_spill] sm:$0xff] %v11009_v41  ;;  %v11033_v3 = vpop.f32.mrf.mxu1 }
 0xa4c   :  { %5244 = vmatpush2.msra.mxu0 %v10987_v32  ;;  %v11015_v32 = vld [vmem:[#allocation20 + $0xb8] sm:$0xff] }
 0xa4d   :  { %v10983_v25 = vpop.f32.mrf.mxu0  ;;  %5245 = vmatprep.subr.mxu0 %v12730_v8  ;;  %12813 = vst [vmem:[#allocation93_spill] sm:$0xff] %v11015_v32 }
 0xa4e   :  { %5246 = vmatpush2.msra.mxu0 %v10995_v19  ;;  %v11023_v19 = vld [vmem:[#allocation20 + $0xb0] sm:$0xff] }
 0xa4f   :  { %v10991_v15 = vpop.f32.mrf.mxu0  ;;  %5247 = vmatprep.subr.mxu0 %v12730_v8  ;;  %12814 = vst [vmem:[#allocation94_spill] sm:$0xff] %v11023_v19 }
 0xa50   :  { %5248 = vmatpush2.msra.mxu0 %v11001_v45  ;;  %v11029_v45 = vld [vmem:[#allocation20 + $0xa8] sm:$0xff] }
 0xa51   :  { %v10997_v13 = vpop.f32.mrf.mxu0  ;;  %5249 = vmatprep.subr.mxu0 %v12730_v8  ;;  %12815 = vst [vmem:[#allocation95_spill] sm:$0xff] %v11029_v45 }
 0xa52   :  { %5250 = vmatpush2.msra.mxu0 %v11009_v41  ;;  %v4720_v41 = vrot.slane %v10826_v30, 1  ;;  %v11051_v30 = vld [vmem:[#allocation20 + $0x98] sm:$0xff] }
 0xa53   :  { %v11005_v23 = vpop.f32.mrf.mxu0  ;;  %5251 = vmatprep.subr.mxu0 %v12730_v8  ;;  %12817 = vst [vmem:[#allocation97_spill] sm:$0xff] %v11051_v30 }
 0xa54   :  { %5252 = vmatpush2.msra.mxu0 %v11015_v32  ;;  %v12621_v32 = vrot.slane %v10775_v27, 1 }
 0xa55   :  { %v11011_v50 = vpop.f32.mrf.mxu0  ;;  %5253 = vmatprep.subr.mxu0 %v12730_v8 }
 0xa56   :  { %5254 = vmatpush2.msra.mxu0 %v11023_v19  ;;  %v4724_v19 = vrot.slane %v10838_v38, 1  ;;  %v11057_v61 = vsel %vm2843_vm5, %v12621_v32, %v4714_v22  ;;  %v12820_v38 = vrot.slane %v10814_v0, 1  ;;  %v4730_v32 = vrot.slane %v10860_v52, 1  ;;  %v11075_v22 = vld [vmem:[#allocation20 + $0x90] sm:$0xff] }
 0xa57   :  { %v11019_v9 = vpop.f32.mrf.mxu0  ;;  %5255 = vmatprep.subr.mxu0 %v12730_v8  ;;  %12818 = vst [vmem:[#allocation98_spill] sm:$0xff] %v11057_v61  ;;  %v4732_v61 = vrot.slane %v10876_v5, 1  ;;  %12822 = vst [vmem:[#allocation101_spill] sm:$0xff] %v11075_v22  ;;  %v4740_v52 = vrot.slane %v10947_v44, 1  ;;  %v4752_v5 = vrot.slane %v11033_v3, 1  ;;  %v4750_v44 = vrot.slane %v11017_v54, 1 }
 0xa58   :  { %5256 = vmatpush2.msra.mxu0 %v11029_v45  ;;  %v4433_v45 = vpop.f32.mrf.mxu1  ;;  %v11069_v34 = vsel %vm2843_vm5, %v12820_v38, %v4720_v41  ;;  %v4738_v38 = vrot.slane %v10927_v11, 1  ;;  %v11085_v2 = vsel %vm2843_vm5, %v4720_v41, %v4724_v19  ;;  %v4748_v11 = vrot.slane %v11003_v35, 1 }
 0xa59   :  { %v11025_v39 = vpop.f32.mrf.mxu0  ;;  %5257 = vmatprep.subr.mxu0 %v12730_v8  ;;  %12821 = vst [vmem:[#allocation100_spill] sm:$0xff] %v11069_v34  ;;  %12824 = vst [vmem:[#allocation103_spill] sm:$0xff] %v11085_v2  ;;  %v4754_v27 = vrot.slane %v4433_v45, 1  ;;  %v11098_v41 = vsel %vm2843_vm5, %v4724_v19, %v4728_v42  ;;  %v11101_v3 = vsel %vm2843_vm5, %v4726_v58, %v4730_v32 }
 0xa5a   :  { %5258 = vmatpush2.msra.mxu0 %v11040_v16  ;;  %v4734_v16 = vrot.slane %v10892_v36, 1  ;;  %v4742_v36 = vrot.slane %v10961_v26, 1  ;;  %v11104_v45 = vsel %vm2843_vm5, %v4728_v42, %v4732_v61  ;;  %v11112_v35 = vsel %vm2843_vm5, %v4732_v61, %v4736_v20 }
 0xa5b   :  { %v11035_v51 = vpop.f32.mrf.mxu0  ;;  %5259 = vmatprep.subr.mxu0 %v12730_v8  ;;  %v4741_v58 = vsel %vm2843_vm5, %v4736_v20, %v4740_v52  ;;  %v4753_v42 = vsel %vm2843_vm5, %v4748_v11, %v4752_v5  ;;  %v4749_v34 = vsel %vm2843_vm5, %v4744_v48, %v4748_v11  ;;  %v4819_v60 = vadd.f32 %v4754_v27, %v10846_v7 }
 0xa5c   :  { %5260 = vmatpush2.msra.mxu0 %v11051_v30  ;;  %v11109_v26 = vsel %vm2843_vm5, %v4730_v32, %v4734_v16  ;;  %v4739_v1 = vsel %vm2843_vm5, %v4734_v16, %v4738_v38  ;;  %v4747_v32 = vsel %vm2843_vm5, %v4742_v36, %v4746_v49  ;;  %v4751_v16 = vsel %vm2843_vm5, %v4746_v49, %v4750_v44 }
 0xa5d   :  { %v11044_v47 = vpop.f32.mrf.mxu0  ;;  %5261 = vmatprep.subr.mxu0 %v12730_v8  ;;  %v4816_v20 = vadd.f32 %v4753_v42, %v10836_v10  ;;  %v4818_v21 = vadd.f32 %v4752_v5, %v10842_v4  ;;  %v4745_v4 = vsel %vm2843_vm5, %v4740_v52, %v4744_v48 }
 0xa5e   :  { %5262 = vmatpush2.msra.mxu0 %v11075_v22  ;;  %v4755_v22 = vsel %vm2843_vm5, %v4750_v44, %v4754_v27  ;;  %v4900_v27 = vrot.slane %v11035_v51, 2  ;;  %v4896_v51 = vrot.slane %v11019_v9, 2  ;;  %v4892_v9 = vrot.slane %v11005_v23, 2 }
 0xa5f   :  { %v11063_v55 = vpop.f32.mrf.mxu0  ;;  %5263 = vmatprep.subr.mxu0 %v12730_v8  ;;  %v4743_v8 = vsel %vm2843_vm5, %v4738_v38, %v4742_v36  ;;  %v4817_v38 = vadd.f32 %v4755_v22, %v10840_v24  ;;  %v4902_v36 = vrot.slane %v11044_v47, 2  ;;  %v4898_v24 = vrot.slane %v11025_v39, 2 }
 0xa60   :  { %v4814_v22 = vadd.f32 %v4749_v34, %v10830_v43  ;;  %v4894_v39 = vrot.slane %v11011_v50, 2  ;;  %v4812_v34 = vadd.f32 %v4745_v4, %v10824_v31  ;;  %v4901_v5 = vsel %vm2932_vm6, %v4896_v51, %v4900_v27 }
 0xa61   :  { %v4651_v46 = vpop.f32.mrf.mxu0  ;;  %v4890_v50 = vrot.slane %v10997_v13, 2  ;;  %v4810_v31 = vadd.f32 %v4741_v58, %v10818_v17  ;;  %v4888_v23 = vrot.slane %v10991_v15, 2  ;;  %v4897_v42 = vsel %vm2932_vm6, %v4892_v9, %v4896_v51 }
 0xa62   :  { %v4906_v0 = vrot.slane %v4651_v46, 2  ;;  %v4886_v13 = vrot.slane %v10983_v25, 2  ;;  %v4808_v17 = vadd.f32 %v11112_v35, %v10812_v37  ;;  %v4884_v15 = vrot.slane %v10977_v12, 2 }
 0xa63   :  { %v4653_v30 = vpop.f32.mrf.mxu0  ;;  %v4893_v58 = vsel %vm2932_vm6, %v4888_v23, %v4892_v9  ;;  %v4882_v25 = vrot.slane %v10969_v14, 2  ;;  %v4806_v37 = vadd.f32 %v11104_v45, %v10806_v57  ;;  %v4880_v12 = vrot.slane %v10963_v63, 2  ;;  %v12838_v9 = vld [vmem:[#allocation75_spill] sm:$0xff] }
 0xa64   :  { %v4908_v61 = vrot.slane %v4653_v30, 2  ;;  %v4907_v47 = vsel %vm2932_vm6, %v4902_v36, %v4906_v0  ;;  %v4889_v14 = vsel %vm2932_vm6, %v4884_v15, %v4888_v23  ;;  %v4804_v57 = vadd.f32 %v11098_v41, %v10802_v62  ;;  %v12829_v62 = vld [vmem:[#allocation73_spill] sm:$0xff]  ;;  %v12830_v41 = vld [vmem:[#allocation103_spill] sm:$0xff] }
 0xa65   :  { %v4657_v19 = vpop.f32.mrf.mxu0  ;;  %v11160_v43 = vadd.f32 %v4907_v47, %v4814_v22  ;;  %v4876_v63 = vrot.slane %v10949_v40, 2  ;;  %v4802_v40 = vadd.f32 %v12830_v41, %v12829_v62  ;;  %v12855_v62 = vld [vmem:[#allocation82_spill] sm:$0xff] }
 0xa66   :  { %v4910_v54 = vrot.slane %v4657_v19, 2  ;;  %v4904_v19 = vrot.slane %v11063_v55, 2  ;;  %v4815_v55 = vadd.f32 %v4751_v16, %v10834_v28  ;;  %v4813_v28 = vadd.f32 %v4747_v32, %v10828_v6 }
 0xa67   :  { %v4659_v56 = vpop.f32.mrf.mxu0  ;;  %v4811_v6 = vadd.f32 %v4743_v8, %v10822_v33  ;;  %v4809_v8 = vadd.f32 %v4739_v1, %v10816_v53  ;;  %v4807_v53 = vadd.f32 %v11109_v26, %v10810_v59  ;;  %v4878_v1 = vrot.slane %v10955_v18, 2  ;;  %v12826_v26 = vld [vmem:[#allocation62_spill] sm:$0xff] }
 0xa68   :  { %v4912_v2 = vrot.slane %v4659_v56, 2  ;;  %v4911_v11 = vsel %vm2932_vm6, %v4906_v0, %v4910_v54  ;;  %v11134_v46 = vadd.f32 %v4910_v54, %v4818_v21  ;;  %v4909_v10 = vsel %vm2932_vm6, %v4904_v19, %v4908_v61 }
 0xa69   :  { %v11147_v56 = vadd.f32 %v4911_v11, %v4816_v20  ;;  %v4903_v0 = vsel %vm2932_vm6, %v4898_v24, %v4902_v36  ;;  %v11155_v52 = vadd.f32 %v4909_v10, %v4815_v55  ;;  %v4899_v21 = vsel %vm2932_vm6, %v4894_v39, %v4898_v24  ;;  %v12832_v24 = vld [vmem:[#allocation68_spill] sm:$0xff]  ;;  %v12834_v55 = vld [vmem:[#allocation86_spill] sm:$0xff] }
 0xa6a   :  { %v11130_v30 = vadd.f32 %v4912_v2, %v4819_v60  ;;  %v4913_v49 = vsel %vm2932_vm6, %v4908_v61, %v4912_v2  ;;  %v4905_v2 = vsel %vm2932_vm6, %v4900_v27, %v4904_v19  ;;  %v11172_v48 = vadd.f32 %v4903_v0, %v4812_v34  ;;  %v12836_v0 = vld [vmem:[#allocation84_spill] sm:$0xff] }
 0xa6b   :  { %v11136_v7 = vadd.f32 %v4913_v49, %v4817_v38  ;;  %v11167_v44 = vadd.f32 %v4905_v2, %v4813_v28  ;;  %v4895_v54 = vsel %vm2932_vm6, %v4890_v50, %v4894_v39  ;;  %v11179_v32 = vadd.f32 %v4901_v5, %v4811_v6  ;;  %v12831_v49 = vld [vmem:[#allocation59_spill] sm:$0xff]  ;;  %v12837_v28 = vld [vmem:[#allocation102_spill] sm:$0xff]  ;;  %v12839_v5 = vld [vmem:[#allocation100_spill] sm:$0xff] }
 0xa6c   :  { %8044 = vmatprep.subr.msk.mxu1 %vm2932_vm6, %v11130_v30  ;;  %v11185_v33 = vadd.f32 %v4899_v21, %v4810_v31  ;;  %v4891_v61 = vsel %vm2932_vm6, %v4886_v13, %v4890_v50  ;;  %v11192_v16 = vadd.f32 %v4897_v42, %v4809_v8  ;;  %v11199_v35 = vadd.f32 %v4895_v54, %v4808_v17  ;;  %v12840_v21 = vld [vmem:[#allocation53_spill] sm:$0xff]  ;;  %v12841_v42 = vld [vmem:[#allocation87_spill] sm:$0xff]  ;;  %v12843_v54 = vld [vmem:[#allocation88_spill] sm:$0xff] }
 0xa6d   :  { %8045 = vmatpush1.msk.msra.mxu1 %vm2932_vm6, %v11134_v46  ;;  %v4887_v60 = vsel %vm2932_vm6, %v4882_v25, %v4886_v13  ;;  %v11206_v20 = vadd.f32 %v4893_v58, %v4807_v53  ;;  %v4805_v59 = vadd.f32 %v11101_v3, %v10804_v29  ;;  %v11213_v45 = vadd.f32 %v4891_v61, %v4806_v37  ;;  %v12827_v29 = vld [vmem:[#allocation83_spill] sm:$0xff]  ;;  %v12828_v3 = vld [vmem:[#allocation104_spill] sm:$0xff]  ;;  %v12847_v53 = vld [vmem:[#allocation85_spill] sm:$0xff] }
 0xa6e   :  { %4991 = vmatprep.subr.mxu1 %v11136_v7  ;;  %v4885_v18 = vsel %vm2932_vm6, %v4880_v12, %v4884_v15  ;;  %v4874_v19 = vrot.slane %v12826_v26, 2  ;;  %v4883_v38 = vsel %vm2932_vm6, %v4878_v1, %v4882_v25  ;;  %v4803_v11 = vadd.f32 %v12828_v3, %v12827_v29  ;;  %v12845_v15 = vld [vmem:[#allocation57_spill] sm:$0xff]  ;;  %v12848_v37 = vld [vmem:[#allocation99_spill] sm:$0xff]  ;;  %v12853_v29 = vld [vmem:[#allocation98_spill] sm:$0xff] }
 0xa6f   :  { %4992 = vmatpush1.msra.mxu1 %v11147_v56  ;;  %v11220_v36 = vadd.f32 %v4889_v14, %v4805_v59  ;;  %v4872_v27 = vrot.slane %v12831_v49, 2  ;;  %v11227_v10 = vadd.f32 %v4887_v60, %v4804_v57  ;;  %v4881_v4 = vsel %vm2932_vm6, %v4876_v63, %v4880_v12  ;;  %v12849_v14 = vld [vmem:[#allocation76_spill] sm:$0xff]  ;;  %v12857_v49 = vld [vmem:[#allocation43_spill] sm:$0xff] }
 0xa70   :  { %4993 = vmatprep.subr.mxu1 %v11155_v52  ;;  %v12833_v47 = vrot.slane %v12832_v24, 1  ;;  %v12835_v22 = vrot.slane %v12834_v55, 1  ;;  %v4879_v2 = vsel %vm2932_vm6, %v4874_v19, %v4878_v1  ;;  %v11238_v39 = vadd.f32 %v4885_v18, %v4803_v11  ;;  %v12850_v60 = vld [vmem:[#allocation48_spill] sm:$0xff]  ;;  %v12851_v18 = vld [vmem:[#allocation90_spill] sm:$0xff] }
 0xa71   :  { %4994 = vmatpush1.msra.mxu1 %v11160_v43  ;;  %v4801_v34 = vadd.f32 %v12837_v28, %v12836_v0  ;;  %v4800_v50 = vadd.f32 %v12839_v5, %v12838_v9  ;;  %v4868_v6 = vrot.slane %v12840_v21, 2  ;;  %v11245_v31 = vadd.f32 %v4883_v38, %v4802_v40  ;;  %v12852_v38 = vld [vmem:[#allocation77_spill] sm:$0xff]  ;;  %v12858_v55 = vld [vmem:[#allocation78_spill] sm:$0xff]  ;;  %v12862_v21 = vld [vmem:[#allocation91_spill] sm:$0xff] }
 0xa72   :  { %4995 = vmatprep.subr.mxu1 %v11167_v44  ;;  %v4717_v51 = vsel %vm2843_vm5, %v12835_v22, %v12833_v47  ;;  %v4877_v23 = vsel %vm2932_vm6, %v4872_v27, %v4876_v63  ;;  %v12842_v13 = vrot.slane %v12841_v42, 1  ;;  %v12844_v8 = vrot.slane %v12843_v54, 1  ;;  %v12863_v42 = vld [vmem:[#allocation81_spill] sm:$0xff] }
 0xa73   :  { %4996 = vmatpush1.msra.mxu1 %v11172_v48  ;;  %v12846_v58 = vrot.slane %v12845_v15, 2  ;;  %v11258_v61 = vadd.f32 %v4881_v4, %v4801_v34  ;;  %v4799_v12 = vadd.f32 %v12848_v37, %v12847_v53  ;;  %v4798_v1 = vadd.f32 %v4717_v51, %v12849_v14  ;;  %v12859_v51 = vld [vmem:[#allocation79_spill] sm:$0xff]  ;;  %v12861_v34 = vld [vmem:[#allocation44_spill] sm:$0xff]  ;;  %v12864_v54 = vld [vmem:[#allocation61_spill] sm:$0xff] }
 0xa74   :  { %4997 = vmatprep.subr.mxu1 %v11179_v32  ;;  %v4711_v17 = vsel %vm2843_vm5, %v12844_v8, %v12842_v13  ;;  %v4864_v59 = vrot.slane %v12850_v60, 2  ;;  %v11264_v57 = vadd.f32 %v4879_v2, %v4800_v50  ;;  %v4873_v63 = vsel %vm2932_vm6, %v4868_v6, %v4872_v27  ;;  %v12865_v15 = vld [vmem:[#allocation80_spill] sm:$0xff] }
 0xa75   :  { %4998 = vmatpush1.msra.mxu1 %v11185_v33  ;;  %v4875_v25 = vsel %vm2932_vm6, %v12846_v58, %v4874_v19  ;;  %v4698_v26 = vrot.slane %v12851_v18, 1  ;;  %v11270_v19 = vadd.f32 %v4877_v23, %v4799_v12  ;;  %v4797_v3 = vadd.f32 %v12853_v29, %v12852_v38  ;;  %v12867_v12 = vld [vmem:[#allocation89_spill] sm:$0xff] }
 0xa76   :  { %4999 = vmatprep.subr.mxu1 %v11192_v16  ;;  %v12854_v11 = vmov %v12844_v8  ;;  %v12856_v41 = vrot.slane %v12855_v62, 1  ;;  %v4860_v4 = vrot.slane %v12857_v49, 2  ;;  %v11280_v24 = vadd.f32 %v4875_v25, %v4798_v1  ;;  %v12866_v25 = vld [vmem:[#allocation56_spill] sm:$0xff]  ;;  %v12868_v1 = vld [vmem:[#allocation51_spill] sm:$0xff]  ;;  %v12870_v38 = vld [vmem:[#allocation41_spill] sm:$0xff] }
 0xa77   :  { %5000 = vmatpush1.msra.mxu1 %v11199_v35  ;;  %v4869_v27 = vsel %vm2932_vm6, %v4864_v59, %v4868_v6  ;;  %v11285_v47 = vadd.f32 %v4873_v63, %v4797_v3  ;;  %v4795_v22 = vadd.f32 %v4711_v17, %v12858_v55  ;;  %v4697_v2 = vrot.slane %v12859_v51, 1  ;;  %v11318_v63 = vld [vmem:[#allocation27] sm:$0x1] }
 0xa78   :  { %5001 = vmatprep.subr.mxu1 %v11206_v20  ;;  %v4707_v40 = vsel %vm2843_vm5, %v12856_v41, %v12854_v11  ;;  %v12860_v0 = vmov %v12856_v41  ;;  %v4856_v9 = vrot.slane %v12861_v34, 2  ;;  %v4865_v5 = vsel %vm2932_vm6, %v4860_v4, %v4864_v59  ;;  %v12869_v59 = vld [vmem:[#allocation46_spill] sm:$0xff] }
 0xa79   :  { %5002 = vmatpush1.msra.mxu1 %v11213_v45  ;;  %v4703_v28 = vsel %vm2843_vm5, %v4698_v26, %v12860_v0  ;;  %v11296_v50 = vadd.f32 %v4869_v27, %v4795_v22  ;;  %v4793_v6 = vadd.f32 %v4707_v40, %v12862_v21  ;;  %v4699_v23 = vsel %vm2843_vm5, %v4697_v2, %v4698_v26 }
 0xa7a   :  { %5003 = vmatprep.subr.mxu1 %v11220_v36  ;;  %v4855_v13 = vrot.slane %v12863_v42, 2  ;;  %v4861_v8 = vsel %vm2932_vm6, %v4856_v9, %v4860_v4  ;;  %v4791_v58 = vadd.f32 %v4703_v28, %v12865_v15  ;;  %v4789_v14 = vadd.f32 %v4699_v23, %v12867_v12 }
 0xa7b   :  { %5004 = vmatpush1.msra.mxu1 %v11227_v10  ;;  %v11304_v17 = vadd.f32 %v4865_v5, %v4793_v6  ;;  %v5091_v18 = vmul.f32 %v11130_v30, %v11130_v30  ;;  %v5090_v26 = vmul.f32 %v11134_v46, %v11134_v46  ;;  %v5089_v29 = vmul.f32 %v11136_v7, %v11136_v7 }
 0xa7c   :  { %5005 = vmatprep.subr.mxu1 %v11238_v39  ;;  %v4857_v53 = vsel %vm2932_vm6, %v4855_v13, %v4856_v9  ;;  %v11310_v37 = vadd.f32 %v4861_v8, %v4791_v58  ;;  %v5088_v3 = vmul.f32 %v11147_v56, %v11147_v56  ;;  %v12871_v11 = vmov 0.0  }
 0xa7d   :  { %5006 = vmatpush1.msra.mxu1 %v11245_v31  ;;  %v11315_v60 = vadd.f32 %v4857_v53, %v4789_v14  ;;  %v5087_v62 = vmul.f32 %v11155_v52, %v11155_v52  ;;  %v5086_v41 = vmul.f32 %v11160_v43, %v11160_v43  ;;  %v5085_v40 = vmul.f32 %v11167_v44, %v11167_v44 }
 0xa7e   :  { %5007 = vmatprep.subr.mxu1 %v11258_v61  ;;  %v5084_v49 = vmul.f32 %v11172_v48, %v11172_v48  ;;  %v5083_v4 = vmul.f32 %v11179_v32, %v11179_v32  ;;  %v5082_v27 = vmul.f32 %v11185_v33, %v11185_v33  ;;  %v5081_v55 = vmul.f32 %v11192_v16, %v11192_v16 }
 0xa7f   :  { %5008 = vmatpush1.msra.mxu1 %v11264_v57  ;;  %v5080_v22 = vmul.f32 %v11199_v35, %v11199_v35  ;;  %v5079_v51 = vmul.f32 %v11206_v20, %v11206_v20  ;;  %v5078_v2 = vmul.f32 %v11213_v45, %v11213_v45  ;;  %v5077_v0 = vmul.f32 %v11220_v36, %v11220_v36 }
 0xa80   :  { %5009 = vmatprep.subr.mxu1 %v11270_v19  ;;  %v5076_v28 = vmul.f32 %v11227_v10, %v11227_v10  ;;  %v5075_v34 = vmul.f32 %v11238_v39, %v11238_v39  ;;  %v5074_v9 = vmul.f32 %v11245_v31, %v11245_v31  ;;  %v5073_v5 = vmul.f32 %v11258_v61, %v11258_v61 }
 0xa81   :  { %5010 = vmatpush1.msra.mxu1 %v11280_v24  ;;  %v5072_v21 = vmul.f32 %v11264_v57, %v11264_v57  ;;  %v5071_v6 = vmul.f32 %v11270_v19, %v11270_v19  ;;  %v5070_v23 = vmul.f32 %v11280_v24, %v11280_v24  ;;  %v5069_v42 = vmul.f32 %v11285_v47, %v11285_v47 }
 0xa82   :  { %5011 = vmatprep.subr.mxu1 %v11285_v47  ;;  %v5068_v13 = vmul.f32 %v12864_v54, %v12864_v54  ;;  %v5067_v8 = vmul.f32 %v11296_v50, %v11296_v50  ;;  %v5066_v15 = vmul.f32 %v12866_v25, %v12866_v25  ;;  %v5065_v58 = vmul.f32 %v11304_v17, %v11304_v17 }
 0xa83   :  { %5012 = vmatpush1.msra.mxu1 %v12864_v54  ;;  %v5064_v53 = vmul.f32 %v12868_v1, %v12868_v1  ;;  %v5063_v12 = vmul.f32 %v11310_v37, %v11310_v37  ;;  %v5062_v14 = vmul.f32 %v12869_v59, %v12869_v59 }
 0xa84   :  { %5013 = vmatprep.subr.mxu1 %v11296_v50 }
 0xa85   :  { %5014 = vmatpush1.msra.mxu1 %v12866_v25 }
 0xa86   :  { %5015 = vmatprep.subr.mxu1 %v11304_v17 }
 0xa87   :  { %5016 = vmatpush1.msra.mxu1 %v12868_v1 }
 0xa88   :  { %5017 = vmatprep.subr.mxu1 %v11310_v37 }
 0xa89   :  { %5018 = vmatpush1.msra.mxu1 %v12869_v59 }
 0xa8a   :  { %5019 = vmatprep.subr.mxu1 %v11315_v60 }
 0xa8b   :  { %5020 = vmatpush1.msra.mxu1 %v12870_v38 }
 0xa8c   :  { %8046 = vmatmul.mubr.msk.f32.vlgmr.msra.gmra.mxu1 %vm4979_vm9, %v11318_v63  ;;  %8047 = vmatprep.subr.msk.mxu1 %vm2932_vm6, %v5091_v18  ;;  %v5061_v18 = vmul.f32 %v11315_v60, %v11315_v60 }
 0xa8d   :  { %8048 = vmatpush1.msk.msra.mxu1 %vm2932_vm6, %v5090_v26  ;;  %5162 = vmatprep.mubr.f32.mxu1 %v12871_v11  ;;  %v5060_v26 = vmul.f32 %v12870_v38, %v12870_v38 }
 0xa8e   :  { %5100 = vmatprep.subr.mxu1 %v5089_v29  ;;  %v12872_v29 = vld [vmem:[#allocation63_spill] sm:$0xff] }
 0xa8f   :  { %5101 = vmatpush1.msra.mxu1 %v5088_v3  ;;  %v12873_v3 = vld [vmem:[#allocation54_spill] sm:$0xff] }
 0xa90   :  { %5102 = vmatprep.subr.mxu1 %v5087_v62  ;;  %v12874_v62 = vld [vmem:[#allocation49_spill] sm:$0xff] }
 0xa91   :  { %5103 = vmatpush1.msra.mxu1 %v5086_v41  ;;  %v12875_v41 = vld [vmem:[#allocation40_spill] sm:$0xff] }
 0xa92   :  { %5104 = vmatprep.subr.mxu1 %v5085_v40  ;;  %v12876_v40 = vld [vmem:[#allocation42_spill] sm:$0xff] }
 0xa93   :  { %5105 = vmatpush1.msra.mxu1 %v5084_v49  ;;  %v12878_v49 = vld [vmem:[#allocation47_spill] sm:$0xff] }
 0xa94   :  { %5106 = vmatprep.subr.mxu1 %v5083_v4  ;;  %v12879_v4 = vld [vmem:[#allocation50_spill] sm:$0xff] }
 0xa95   :  { %5107 = vmatpush1.msra.mxu1 %v5082_v27  ;;  %v12880_v27 = vld [vmem:[#allocation52_spill] sm:$0xff] }
 0xa96   :  { %5108 = vmatprep.subr.mxu1 %v5081_v55  ;;  %v12881_v55 = vld [vmem:[#allocation55_spill] sm:$0xff] }
 0xa97   :  { %5109 = vmatpush1.msra.mxu1 %v5080_v22  ;;  %v12882_v22 = vld [vmem:[#allocation58_spill] sm:$0xff] }
 0xa98   :  { %5110 = vmatprep.subr.mxu1 %v5079_v51  ;;  %v12883_v51 = vld [vmem:[#allocation60_spill] sm:$0xff] }
 0xa99   :  { %5111 = vmatpush1.msra.mxu1 %v5078_v2  ;;  %v12884_v2 = vld [vmem:[#allocation64_spill] sm:$0xff] }
 0xa9a   :  { %5112 = vmatprep.subr.mxu1 %v5077_v0  ;;  %v12885_v0 = vld [vmem:[#allocation65_spill] sm:$0xff] }
 0xa9b   :  { %5113 = vmatpush1.msra.mxu1 %v5076_v28  ;;  %v12886_v28 = vld [vmem:[#allocation66_spill] sm:$0xff] }
 0xa9c   :  { %5114 = vmatprep.subr.mxu1 %v5075_v34  ;;  %v12887_v34 = vld [vmem:[#allocation67_spill] sm:$0xff] }
 0xa9d   :  { %5115 = vmatpush1.msra.mxu1 %v5074_v9  ;;  %v5186_v9 = vld [vmem:[#allocation20 + $0x88] sm:$0xff] }
 0xa9e   :  { %5116 = vmatprep.subr.mxu1 %v5073_v5  ;;  %5264 = vmatpush2.msra.mxu0 %v5186_v9  ;;  %v12888_v5 = vld [vmem:[#allocation69_spill] sm:$0xff] }
 0xa9f   :  { %5117 = vmatpush1.msra.mxu1 %v5072_v21  ;;  %5265 = vmatprep.subr.mxu0 %v12871_v11  ;;  %v5185_v21 = vld [vmem:[#allocation20 + $0x80] sm:$0xff] }
 0xaa0   :  { %5118 = vmatprep.subr.mxu1 %v5071_v6  ;;  %5266 = vmatpush2.msra.mxu0 %v5185_v21  ;;  %v12889_v6 = vld [vmem:[#allocation70_spill] sm:$0xff] }
 0xaa1   :  { %5119 = vmatpush1.msra.mxu1 %v5070_v23  ;;  %v12890_v23 = vld [vmem:[#allocation71_spill] sm:$0xff] }
 0xaa2   :  { %5120 = vmatprep.subr.mxu1 %v5069_v42  ;;  %v12891_v42 = vld [vmem:[#allocation72_spill] sm:$0xff] }
 0xaa3   :  { %5121 = vmatpush1.msra.mxu1 %v5068_v13  ;;  %v12892_v13 = vld [vmem:[#allocation74_spill] sm:$0xff] }
 0xaa4   :  { %5122 = vmatprep.subr.mxu1 %v5067_v8  ;;  %v12893_v8 = vld [vmem:[#allocation92_spill] sm:$0xff] }
 0xaa5   :  { %5123 = vmatpush1.msra.mxu1 %v5066_v15  ;;  %v12894_v15 = vld [vmem:[#allocation93_spill] sm:$0xff] }
 0xaa6   :  { %5124 = vmatprep.subr.mxu1 %v5065_v58  ;;  %v12895_v58 = vld [vmem:[#allocation94_spill] sm:$0xff] }
 0xaa7   :  { %5125 = vmatpush1.msra.mxu1 %v5064_v53  ;;  %v12896_v53 = vld [vmem:[#allocation95_spill] sm:$0xff] }
 0xaa8   :  { %5126 = vmatprep.subr.mxu1 %v5063_v12  ;;  %v12897_v12 = vld [vmem:[#allocation96_spill] sm:$0xff] }
 0xaa9   :  { %5127 = vmatpush1.msra.mxu1 %v5062_v14  ;;  %v12898_v14 = vld [vmem:[#allocation97_spill] sm:$0xff] }
 0xaaa   :  { %5128 = vmatprep.subr.mxu1 %v5061_v18  ;;  %v12899_v18 = vld [vmem:[#allocation101_spill] sm:$0xff] }
 0xaab   :  { %5129 = vmatpush1.msra.mxu1 %v5060_v26 }
 0xaac   :  { %8049 = vmatmul.mubr.msk.f32.vlgmr.msra.gmra.mxu1 %vm4979_vm9, %v11318_v63  ;;  %5276 = vmatprep.subr.mxu1 %v12871_v11  ;;  %v12877_v63 = vld [vmem:[#allocation45_spill] sm:$0xff] }
 0xaad   :  { %5277 = vmatpush1.msra.mxu1 %v12872_v29 }
 0xaae   :  { %5278 = vmatprep.subr.mxu1 %v12871_v11 }
 0xaaf   :  { %5279 = vmatpush1.msra.mxu1 %v12873_v3 }
 0xab0   :  { %5280 = vmatprep.subr.mxu1 %v12871_v11 }
 0xab1   :  { %5281 = vmatpush1.msra.mxu1 %v12874_v62 }
 0xab2   :  { %5282 = vmatprep.subr.mxu1 %v12871_v11 }
 0xab3   :  { %5283 = vmatpush1.msra.mxu1 %v12875_v41  ;;  %v5362_v41 = vld [vmem:[%s12535_s12 + $0x8] sm:$0xff] }
 0xab4   :  { %5284 = vmatprep.subr.mxu1 %v12871_v11  ;;  %5396 = vmatprep.subr.mxu0 %v5362_v41 }
 0xab5   :  { %5285 = vmatpush1.msra.mxu1 %v12876_v40  ;;  %v5361_v40 = vld [vmem:[%s12535_s12] sm:$0xff] }
 0xab6   :  { %5286 = vmatprep.subr.mxu1 %v12871_v11 }
 0xab7   :  { %5287 = vmatpush1.msra.mxu1 %v12877_v63 }
 0xab8   :  { %5288 = vmatprep.subr.mxu1 %v12871_v11 }
 0xab9   :  { %5289 = vmatpush1.msra.mxu1 %v12878_v49 }
 0xaba   :  { %5290 = vmatprep.subr.mxu1 %v12871_v11 }
 0xabb   :  { %5291 = vmatpush1.msra.mxu1 %v12879_v4 }
 0xabc   :  { %5292 = vmatprep.subr.mxu1 %v12871_v11 }
 0xabd   :  { %5293 = vmatpush1.msra.mxu1 %v12880_v27 }
 0xabe   :  { %5294 = vmatprep.subr.mxu1 %v12871_v11 }
 0xabf   :  { %5295 = vmatpush1.msra.mxu1 %v12881_v55 }
 0xac0   :  { %5296 = vmatprep.subr.mxu1 %v12871_v11 }
 0xac1   :  { %5297 = vmatpush1.msra.mxu1 %v12882_v22 }
 0xac2   :  { %5298 = vmatprep.subr.mxu1 %v12871_v11 }
 0xac3   :  { %5299 = vmatpush1.msra.mxu1 %v12883_v51 }
 0xac4   :  { %5300 = vmatprep.subr.mxu1 %v12871_v11 }
 0xac5   :  { %5301 = vmatpush1.msra.mxu1 %v12884_v2 }
 0xac6   :  { %5302 = vmatprep.subr.mxu1 %v12871_v11 }
 0xac7   :  { %5303 = vmatpush1.msra.mxu1 %v12885_v0 }
 0xac8   :  { %5304 = vmatprep.subr.mxu1 %v12871_v11 }
 0xac9   :  { %5305 = vmatpush1.msra.mxu1 %v12886_v28 }
 0xaca   :  { %5306 = vmatprep.subr.mxu1 %v12871_v11 }
 0xacb   :  { %5307 = vmatpush1.msra.mxu1 %v12887_v34  ;;  %v5352_v34 = vld [vmem:[%s12541_s18] sm:$0x1] }
 0xacc   :  { %5312 = vmatprep.subr.mxu1 %v12871_v11 }
 0xacd   :  { %5313 = vmatpush2.msra.mxu1 %v12888_v5 }
 0xace   :  { %5314 = vmatprep.subr.mxu1 %v12871_v11 }
 0xacf   :  { %5315 = vmatpush2.msra.mxu1 %v12889_v6 }
 0xad0   :  { %5316 = vmatprep.subr.mxu1 %v12871_v11 }
 0xad1   :  { %5317 = vmatpush2.msra.mxu1 %v12890_v23  ;;  %v5358_v23 = vld [vmem:[%s12540_s17] sm:$0x1] }
 0xad2   :  { %5318 = vmatprep.subr.mxu1 %v12871_v11 }
 0xad3   :  { %5319 = vmatpush2.msra.mxu1 %v12891_v42 }
 0xad4   :  { %5320 = vmatprep.subr.mxu1 %v12871_v11 }
 0xad5   :  { %5321 = vmatpush2.msra.mxu1 %v12892_v13 }
 0xad6   :  { %5322 = vmatprep.subr.mxu1 %v12871_v11 }
 0xad7   :  { %5323 = vmatpush2.msra.mxu1 %v12893_v8 }
 0xad8   :  { %5324 = vmatprep.subr.mxu1 %v12871_v11 }
 0xad9   :  { %5325 = vmatpush2.msra.mxu1 %v12894_v15 }
 0xada   :  { %5326 = vmatprep.subr.mxu1 %v12871_v11 }
 0xadb   :  { %5327 = vmatpush2.msra.mxu1 %v12895_v58 }
 0xadc   :  { %5328 = vmatprep.subr.mxu1 %v12871_v11 }
 0xadd   :  { %5329 = vmatpush2.msra.mxu1 %v12896_v53 }
 0xade   :  { %5330 = vmatprep.subr.mxu1 %v12871_v11 }
 0xadf   :  { %5331 = vmatpush2.msra.mxu1 %v12897_v12 }
 0xae0   :  { %5332 = vmatprep.subr.mxu1 %v12871_v11 }
 0xae1   :  { %5333 = vmatpush2.msra.mxu1 %v12898_v14  ;;  %v12900_v14 = vld [vmem:[#allocation39_spill] sm:$0xff] }
 0xae2   :  { %5334 = vmatprep.subr.mxu1 %v12871_v11 }
 0xae3   :  { %5335 = vmatpush2.msra.mxu1 %v12899_v18 }
 0xae4   :  { %5336 = vmatprep.subr.mxu1 %v12871_v11 }
 0xae5   :  { %5337 = vmatpush2.msra.mxu1 %v5186_v9  ;;  %v5354_v9 = vld [vmem:[%s12539_s16] sm:$0x1]  ;;  %s9071_s16 = smov [#allocation29]  }
 0xae6   :  { %5338 = vmatprep.subr.mxu1 %v12871_v11  ;;  %s7914_s17 = sshll.u32 %s9071_s16, 4  ;;  %s7915_s17 = int_to_ptr.vmem [resolvable:$true] %s7914_s17 }
 0xae7   :  { %5339 = vmatpush2.msra.mxu1 %v5185_v21  ;;  %s9008_s18 = scalar_lea.vmem %s7915_s17, 3584  ;;  %p9013_p1 = scmp.lt.s32.totalorder %s7915_s17, %s7915_s17 }
 0xae8   :  { %6348 = vmatprep.subr.mxu1 %v12871_v11  ;;  %p9009_p0 = scmp.ne.s32.totalorder %s7915_s17, %s9008_s18  ;;  %p9014_p2 = scmp.lt.s32.totalorder %s9008_s18, %s9008_s18 }
 0xaea   :  { %p9015_p3 = por %p9014_p2, %p9013_p1 }
 0xaec   :  { %p9016_p4 = pnand %p9015_p3, %p9009_p0 }
 0xb4c   :  { %v5055_v26 = vpop.f32.mrf.mxu1 }
 0xb4e   :  { %v5057_v29 = vpop.f32.mrf.mxu1 }
 0xb4f   :  { %8050 = vmatprep.mubr.msk.f32.mxu0 %vm5199_vm10, %v5057_v29 }
 0xb50   :  { %5268 = vmatmul.mubr.f32.vlgmr.msra.gmra.mxu0 %v5055_v26 }
 0xb51   :  { %5430 = vmatprep.mubr.f32.mxu0 %v12871_v11  ;;  %5397 = vmatpush1.msra.mxu0 %v5361_v40 }
 0xb52   :  { %5470 = vmatprep.subr.mxu0 %v5362_v41 }
 0xb6c   :  { %v5164_v3 = vpop.f32.mrf.mxu1 }
 0xb6e   :  { %v5166_v62 = vpop.f32.mrf.mxu1 }
 0xb6f   :  { %8051 = vmatprep.mubr.msk.f32.mxu1 %vm5199_vm10, %v5166_v62 }
 0xb70   :  { %5341 = vmatmul.mubr.f32.vlgmr.msra.gmra.mxu1 %v5164_v3 }
 0xc10   :  { %v5269_v63 = vpop.f32.mrf.mxu0 }
 0xc11   :  { %v5347_v4 = vmul.f32 0.0006377551, %v5269_v63 }
 0xc12   :  { %v5271_v49 = vpop.f32.mrf.mxu0 }
 0xc13   :  { %v5349_v55 = vmul.f32 %v5347_v4, %v5347_v4  ;;  %v5353_v21 = vadd.f32 %v5352_v34, %v5347_v4 }
 0xc30   :  { %v5342_v27 = vpop.f32.mrf.mxu1 }
 0xc31   :  { %v5348_v22 = vmul.f32 0.0006377551, %v5342_v27 }
 0xc32   :  { %v5344_v51 = vpop.f32.mrf.mxu1 }
 0xc33   :  { %v5350_v2 = vsub.f32 %v5348_v22, %v5349_v55 }
 0xc35   :  { %v5351_v0 = vmax.f32 %v5350_v2, 0.0 }
 0xc37   :  { %v5355_v28 = vadd.f32 1e-05, %v5351_v0 }
 0xc39   :  { %8614 = vrsqrt.f32 %v5355_v28 }
 0xc46   :  { %v8615_v5 = vpop.eup %8614 }
 0xc47   :  { %v5357_v6 = vmul.f32 %v8615_v5, %v5354_v9 }
 0xc49   :  { %8052 = vmatmul.mubr.msk.f32.vlgmr.msra.gmra.mxu0 %vm794_vm3, %v5357_v6  ;;  %v5359_v42 = vmul.f32 %v5357_v6, %v5353_v21 }
 0xc4a   :  { %5471 = vmatpush1.msra.mxu0 %v5361_v40  ;;  %5504 = vmatprep.mubr.f32.mxu0 %v12871_v11 }
 0xc4b   :  { %v5360_v13 = vsub.f32 %v5358_v23, %v5359_v42  ;;  %5544 = vmatprep.subr.mxu0 %v5362_v41 }
 0xc4d   :  { %8053 = vmatmul.mubr.msk.f32.vlgmr.msra.gmra.mxu0 %vm794_vm3, %v5360_v13 }
 0xc4e   :  { %5545 = vmatpush1.msra.mxu0 %v5361_v40  ;;  %5578 = vmatprep.mubr.f32.mxu0 %v12871_v11 }
 0xc51   :  { %8054 = vmatmul.mubr.msk.f32.vlgmr.msra.gmra.mxu0 %vm794_vm3, %v5352_v34 }
 0xc52   :  { %5927 = vmatprep.mubr.f32.mxu0 %v12871_v11 }
 0xd09   :  { %v5432_v8 = vpop.f32.mrf.mxu0 }
 0xd0a   :  { %v11481_v26 = vrot.slane %v5432_v8, %v12900_v14 }
 0xd0b   :  { %v5434_v15 = vpop.f32.mrf.mxu0 }
 0xd0c   :  { %v11484_v29 = vrot.slane %v5434_v15, %v12900_v14 }
 0xd0d   :  { %v5506_v58 = vpop.f32.mrf.mxu0 }
 0xd0e   :  { %v11496_v49 = vrot.slane %v5506_v58, %v12900_v14 }
 0xd0f   :  { %v5508_v53 = vpop.f32.mrf.mxu0 }
 0xd10   :  { %v11499_v4 = vrot.slane %v5508_v53, %v12900_v14 }
 0xd11   :  { %v5580_v12 = vpop.f32.mrf.mxu0 }
 0xd12   :  { %v11478_v18 = vrot.slane %v5580_v12, %v12900_v14 }
 0xd13   :  { %v5582_v3 = vpop.f32.mrf.mxu0 }
 0xd14   :  { %v11487_v62 = vrot.slane %v5582_v3, %v12900_v14  ;;  %v5623_v41 = vadd.f32 %v11478_v18, %v11134_v46  ;;  %v5621_v40 = vadd.f32 %v11478_v18, %v11147_v56  ;;  %v5619_v63 = vadd.f32 %v11478_v18, %v11160_v43 }
 0xd15   :  { %v5617_v27 = vadd.f32 %v11478_v18, %v11172_v48  ;;  %v5615_v55 = vadd.f32 %v11478_v18, %v11185_v33  ;;  %v5611_v21 = vadd.f32 %v11478_v18, %v11213_v45 }
 0xd16   :  { %v5624_v46 = vadd.f32 %v11487_v62, %v11130_v30  ;;  %v5663_v56 = vmul.f32 %v11481_v26, %v5623_v41  ;;  %v5622_v43 = vadd.f32 %v11487_v62, %v11136_v7  ;;  %v5661_v22 = vmul.f32 %v11481_v26, %v5621_v40 }
 0xd17   :  { %v5620_v51 = vadd.f32 %v11487_v62, %v11155_v52  ;;  %v5659_v2 = vmul.f32 %v11481_v26, %v5619_v63  ;;  %v5618_v48 = vadd.f32 %v11487_v62, %v11167_v44  ;;  %v5657_v33 = vmul.f32 %v11481_v26, %v5617_v27 }
 0xd18   :  { %v5664_v0 = vmul.f32 %v11484_v29, %v5624_v46  ;;  %v5703_v30 = vadd.f32 %v11496_v49, %v5663_v56  ;;  %v5662_v28 = vmul.f32 %v11484_v29, %v5622_v43  ;;  %v5701_v7 = vadd.f32 %v11496_v49, %v5661_v22 }
 0xd19   :  { %v5660_v34 = vmul.f32 %v11484_v29, %v5620_v51  ;;  %v5658_v9 = vmul.f32 %v11484_v29, %v5618_v48  ;;  %v5613_v52 = vadd.f32 %v11478_v18, %v11199_v35  ;;  %v5699_v42 = vadd.f32 %v11496_v49, %v5659_v2 }
 0xd1a   :  { %v5704_v5 = vadd.f32 %v11499_v4, %v5664_v0  ;;  %v5702_v44 = vadd.f32 %v11499_v4, %v5662_v28  ;;  %v5735_v6 = vmax.f32 %v5703_v30, 0.0  ;;  %v5733_v23 = vmax.f32 %v5701_v7, 0.0 }
 0xd1b   :  { %v5697_v13 = vadd.f32 %v11496_v49, %v5657_v33  ;;  %v5700_v15 = vadd.f32 %v11499_v4, %v5660_v34  ;;  %v5616_v58 = vadd.f32 %v11487_v62, %v11179_v32  ;;  %v5655_v35 = vmul.f32 %v11481_v26, %v5615_v55 }
 0xd1c   :  { %v5736_v8 = vmax.f32 %v5704_v5, 0.0  ;;  %v5734_v53 = vmax.f32 %v5702_v44, 0.0  ;;  %v5698_v12 = vadd.f32 %v11499_v4, %v5658_v9  ;;  %v5614_v45 = vadd.f32 %v11487_v62, %v11192_v16 }
 0xd1d   :  { %v5653_v14 = vmul.f32 %v11481_v26, %v5613_v52  ;;  %v5656_v3 = vmul.f32 %v11484_v29, %v5616_v58  ;;  %v5695_v41 = vadd.f32 %v11496_v49, %v5655_v35  ;;  %v5612_v40 = vadd.f32 %v11487_v62, %v11206_v20 }
 0xd1e   :  { %8055 = vmatprep.subr.msk.mxu0 %vm2932_vm6, %v5736_v8  ;;  %v5651_v32 = vmul.f32 %v11481_v26, %v5611_v21  ;;  %v5654_v63 = vmul.f32 %v11484_v29, %v5614_v45  ;;  %v5610_v16 = vadd.f32 %v11487_v62, %v11220_v36  ;;  %v5609_v55 = vadd.f32 %v11478_v18, %v11227_v10 }
 0xd1f   :  { %8056 = vmatpush1.msk.msra.mxu0 %vm2932_vm6, %v5735_v6  ;;  %v5693_v27 = vadd.f32 %v11496_v49, %v5653_v14  ;;  %v5732_v46 = vmax.f32 %v5700_v15, 0.0  ;;  %v5696_v56 = vadd.f32 %v11499_v4, %v5656_v3  ;;  %v5652_v20 = vmul.f32 %v11484_v29, %v5612_v40 }
 0xd20   :  { %5865 = vmatprep.subr.mxu0 %v5734_v53  ;;  %v5731_v43 = vmax.f32 %v5699_v42, 0.0  ;;  %v5729_v22 = vmax.f32 %v5697_v13, 0.0  ;;  %v5694_v51 = vadd.f32 %v11499_v4, %v5654_v63  ;;  %v5650_v2 = vmul.f32 %v11484_v29, %v5610_v16 }
 0xd21   :  { %5866 = vmatpush1.msra.mxu0 %v5733_v23  ;;  %v5730_v48 = vmax.f32 %v5698_v12, 0.0  ;;  %v5727_v33 = vmax.f32 %v5695_v41, 0.0  ;;  %v5649_v36 = vmul.f32 %v11481_v26, %v5609_v55  ;;  %v5608_v10 = vadd.f32 %v11487_v62, %v11238_v39 }
 0xd22   :  { %5867 = vmatprep.subr.mxu0 %v5732_v46  ;;  %v5728_v0 = vmax.f32 %v5696_v56, 0.0  ;;  %v5725_v30 = vmax.f32 %v5693_v27, 0.0  ;;  %v5691_v28 = vadd.f32 %v11496_v49, %v5651_v32  ;;  %v5607_v7 = vadd.f32 %v11478_v18, %v11245_v31 }
 0xd23   :  { %5868 = vmatpush1.msra.mxu0 %v5731_v43  ;;  %v5692_v34 = vadd.f32 %v11499_v4, %v5652_v20  ;;  %v5648_v9 = vmul.f32 %v11484_v29, %v5608_v10  ;;  %v5606_v52 = vadd.f32 %v11487_v62, %v11258_v61  ;;  %v5605_v5 = vadd.f32 %v11478_v18, %v11264_v57 }
 0xd24   :  { %5869 = vmatprep.subr.mxu0 %v5730_v48  ;;  %v5726_v39 = vmax.f32 %v5694_v51, 0.0  ;;  %v5690_v44 = vadd.f32 %v11499_v4, %v5650_v2  ;;  %v5647_v21 = vmul.f32 %v11481_v26, %v5607_v7  ;;  %v5604_v31 = vadd.f32 %v11487_v62, %v11270_v19 }
 0xd25   :  { %5870 = vmatpush1.msra.mxu0 %v5729_v22  ;;  %v5689_v6 = vadd.f32 %v11496_v49, %v5649_v36  ;;  %v5646_v23 = vmul.f32 %v11484_v29, %v5606_v52  ;;  %v5645_v42 = vmul.f32 %v11481_v26, %v5605_v5  ;;  %v5603_v61 = vadd.f32 %v11478_v18, %v11280_v24  ;;  %v6241_v5 = vld [vmem:[#allocation17 + $0x68] sm:$0xff] }
 0xd26   :  { %5871 = vmatprep.subr.mxu0 %v5728_v0  ;;  %v5688_v57 = vadd.f32 %v11499_v4, %v5648_v9  ;;  %v5687_v13 = vadd.f32 %v11496_v49, %v5647_v21  ;;  %v5602_v8 = vadd.f32 %v11487_v62, %v11285_v47  ;;  %v5601_v19 = vadd.f32 %v11478_v18, %v12864_v54 }
 0xd27   :  { %5872 = vmatpush1.msra.mxu0 %v5727_v33  ;;  %v5724_v15 = vmax.f32 %v5692_v34, 0.0  ;;  %v5644_v58 = vmul.f32 %v11484_v29, %v5604_v31  ;;  %v5723_v35 = vmax.f32 %v5691_v28, 0.0  ;;  %v5722_v53 = vmax.f32 %v5690_v44, 0.0 }
 0xd28   :  { %5873 = vmatprep.subr.mxu0 %v5726_v39  ;;  %v5686_v24 = vadd.f32 %v11499_v4, %v5646_v23  ;;  %v5643_v12 = vmul.f32 %v11481_v26, %v5603_v61  ;;  %v5721_v45 = vmax.f32 %v5689_v6, 0.0  ;;  %v5685_v14 = vadd.f32 %v11496_v49, %v5645_v42  ;;  %v6239_v42 = vld [vmem:[#allocation17 + $0x58] sm:$0xff] }
 0xd29   :  { %5874 = vmatpush1.msra.mxu0 %v5725_v30  ;;  %v5642_v47 = vmul.f32 %v11484_v29, %v5602_v8  ;;  %v5600_v54 = vadd.f32 %v11487_v62, %v11296_v50  ;;  %v5720_v3 = vmax.f32 %v5688_v57, 0.0  ;;  %v5719_v41 = vmax.f32 %v5687_v13, 0.0  ;;  %v5737_v8 = vld [vmem:[#allocation23] sm:$0xff] }
 0xd2a   :  { %5875 = vmatprep.subr.mxu0 %v5724_v15  ;;  %v5641_v40 = vmul.f32 %v11481_v26, %v5601_v19  ;;  %v5599_v32 = vadd.f32 %v11478_v18, %v12866_v25  ;;  %v5684_v63 = vadd.f32 %v11499_v4, %v5644_v58  ;;  %v5598_v16 = vadd.f32 %v11487_v62, %v11304_v17  ;;  %v6578_v19 = vld [vmem:[#allocation17 + $0x160] sm:$0xff]  ;;  %v6237_v15 = vld [vmem:[#allocation17 + $0x48] sm:$0xff] }
 0xd2b   :  { %5876 = vmatpush1.msra.mxu0 %v5723_v35  ;;  %v5640_v27 = vmul.f32 %v11484_v29, %v5600_v54  ;;  %v5597_v55 = vadd.f32 %v11478_v18, %v12868_v1  ;;  %v5718_v50 = vmax.f32 %v5686_v24, 0.0  ;;  %v5683_v46 = vadd.f32 %v11496_v49, %v5643_v12  ;;  %v5738_v58 = vld [vmem:[#allocation23 + $0x8] sm:$0xff]  ;;  %v6577_v35 = vld [vmem:[#allocation17 + $0x158] sm:$0xff]  ;;  %v6236_v24 = vld [vmem:[#allocation17 + $0x40] sm:$0xff] }
 0xd2c   :  { %5877 = vmatprep.subr.mxu0 %v5722_v53  ;;  %v5639_v56 = vmul.f32 %v11481_v26, %v5599_v32  ;;  %v5596_v25 = vadd.f32 %v11487_v62, %v11310_v37  ;;  %v5717_v20 = vmax.f32 %v5685_v14, 0.0  ;;  %v5682_v43 = vadd.f32 %v11499_v4, %v5642_v47  ;;  %v6576_v53 = vld [vmem:[#allocation17 + $0x150] sm:$0xff]  ;;  %v6574_v14 = vld [vmem:[#allocation17 + $0x140] sm:$0xff]  ;;  %v6235_v47 = vld [vmem:[#allocation17 + $0x38] sm:$0xff] }
 0xd2d   :  { %5878 = vmatpush1.msra.mxu0 %v5721_v45  ;;  %v5638_v22 = vmul.f32 %v11484_v29, %v5598_v16  ;;  %v5595_v17 = vadd.f32 %v11478_v18, %v12869_v59  ;;  %v5681_v1 = vadd.f32 %v11496_v49, %v5641_v40  ;;  %v5637_v51 = vmul.f32 %v11481_v26, %v5597_v55  ;;  %v5739_v12 = vld [vmem:[#allocation23 + $0x10] sm:$0xff]  ;;  %v6575_v45 = vld [vmem:[#allocation17 + $0x148] sm:$0xff]  ;;  %v5740_v54 = vld [vmem:[#allocation23 + $0x18] sm:$0xff] }
 0xd2e   :  { %5879 = vmatprep.subr.mxu0 %v5720_v3  ;;  %v5594_v2 = vadd.f32 %v11487_v62, %v11315_v60  ;;  %v5593_v37 = vadd.f32 %v11478_v18, %v12870_v38  ;;  %v5716_v48 = vmax.f32 %v5684_v63, 0.0  ;;  %v5680_v33 = vadd.f32 %v11499_v4, %v5640_v27  ;;  %v6243_v62 = vld [vmem:[#allocation17 + $0x78] sm:$0xff]  ;;  %v6242_v38 = vld [vmem:[#allocation17 + $0x70] sm:$0xff]  ;;  %v5741_v32 = vld [vmem:[#allocation23 + $0x20] sm:$0xff] }
 0xd2f   :  { %5880 = vmatpush1.msra.mxu0 %v5719_v41  ;;  %v5636_v36 = vmul.f32 %v11484_v29, %v5596_v25  ;;  %v5715_v10 = vmax.f32 %v5683_v46, 0.0  ;;  %v5679_v59 = vadd.f32 %v11496_v49, %v5639_v56  ;;  %v5635_v0 = vmul.f32 %v11481_v26, %v5595_v17  ;;  %6349 = vmatpush1.msra.mxu1 %v6243_v62  ;;  %v6573_v3 = vld [vmem:[#allocation17 + $0x138] sm:$0xff]  ;;  %v6572_v41 = vld [vmem:[#allocation17 + $0x130] sm:$0xff]  ;;  %v6571_v63 = vld [vmem:[#allocation17 + $0x128] sm:$0xff] }
 0xd30   :  { %5881 = vmatprep.subr.mxu0 %v5718_v50  ;;  %v5714_v30 = vmax.f32 %v5682_v43, 0.0  ;;  %v5678_v28 = vadd.f32 %v11499_v4, %v5638_v22  ;;  %v5634_v60 = vmul.f32 %v11484_v29, %v5594_v2  ;;  %v5713_v18 = vmax.f32 %v5681_v1, 0.0  ;;  %6350 = vmatprep.subr.mxu1 %v12871_v11  ;;  %v6234_v40 = vld [vmem:[#allocation17 + $0x30] sm:$0xff]  ;;  %v6570_v27 = vld [vmem:[#allocation17 + $0x120] sm:$0xff]  ;;  %v6233_v16 = vld [vmem:[#allocation17 + $0x28] sm:$0xff] }
 0xd31   :  { %5882 = vmatpush1.msra.mxu0 %v5717_v20  ;;  %v5677_v7 = vadd.f32 %v11496_v49, %v5637_v51  ;;  %v5633_v34 = vmul.f32 %v11481_v26, %v5593_v37  ;;  %v5712_v9 = vmax.f32 %v5680_v33, 0.0  ;;  %v5676_v52 = vadd.f32 %v11499_v4, %v5636_v36  ;;  %6351 = vmatpush1.msra.mxu1 %v6242_v38  ;;  %v6240_v26 = vld [vmem:[#allocation17 + $0x60] sm:$0xff]  ;;  %v5742_v55 = vld [vmem:[#allocation23 + $0x28] sm:$0xff]  ;;  %v6569_v50 = vld [vmem:[#allocation17 + $0x118] sm:$0xff] }
 0xd32   :  { %5883 = vmatprep.subr.mxu0 %v5716_v48  ;;  %v5711_v39 = vmax.f32 %v5679_v59, 0.0  ;;  %v5675_v29 = vadd.f32 %v11496_v49, %v5635_v0  ;;  %v5710_v44 = vmax.f32 %v5678_v28, 0.0  ;;  %v5674_v21 = vadd.f32 %v11499_v4, %v5634_v60  ;;  %6352 = vmatprep.subr.mxu1 %v12871_v11  ;;  %v6238_v4 = vld [vmem:[#allocation17 + $0x50] sm:$0xff]  ;;  %v6232_v46 = vld [vmem:[#allocation17 + $0x20] sm:$0xff]  ;;  %v6231_v20 = vld [vmem:[#allocation17 + $0x18] sm:$0xff] }
 0xd33   :  { %5884 = vmatpush1.msra.mxu0 %v5715_v10  ;;  %v5709_v31 = vmax.f32 %v5677_v7, 0.0  ;;  %v5673_v6 = vadd.f32 %v11496_v49, %v5633_v34  ;;  %6353 = vmatpush1.msra.mxu1 %v6241_v5  ;;  %v5708_v23 = vmax.f32 %v5676_v52, 0.0  ;;  %v6579_v49 = vld [vmem:[#allocation17 + $0x168] sm:$0xff]  ;;  %v6568_v56 = vld [vmem:[#allocation17 + $0x110] sm:$0xff]  ;;  %v5744_v22 = vld [vmem:[#allocation23 + $0x38] sm:$0xff] }
 0xd34   :  { %5885 = vmatprep.subr.mxu0 %v5714_v30  ;;  %6354 = vmatprep.subr.mxu1 %v12871_v11  ;;  %v5707_v61 = vmax.f32 %v5675_v29, 0.0  ;;  %v5706_v57 = vmax.f32 %v5674_v21, 0.0  ;;  %v5743_v25 = vld [vmem:[#allocation23 + $0x30] sm:$0xff]  ;;  %v6567_v43 = vld [vmem:[#allocation17 + $0x108] sm:$0xff]  ;;  %v6566_v1 = vld [vmem:[#allocation17 + $0x100] sm:$0xff] }
 0xd35   :  { %5886 = vmatpush1.msra.mxu0 %v5713_v18  ;;  %6355 = vmatpush1.msra.mxu1 %v6240_v26  ;;  %v5705_v13 = vmax.f32 %v5673_v6, 0.0  ;;  %v6230_v17 = vld [vmem:[#allocation17 + $0x10] sm:$0xff]  ;;  %v6229_v51 = vld [vmem:[#allocation17 + $0x8] sm:$0xff]  ;;  %v6565_v2 = vld [vmem:[#allocation17 + $0xf8] sm:$0xff] }
 0xd36   :  { %5887 = vmatprep.subr.mxu0 %v5712_v9  ;;  %6356 = vmatprep.subr.mxu1 %v12871_v11  ;;  %v5745_v37 = vld [vmem:[#allocation23 + $0x40] sm:$0xff]  ;;  %v6564_v33 = vld [vmem:[#allocation17 + $0xf0] sm:$0xff]  ;;  %v5746_v36 = vld [vmem:[#allocation23 + $0x48] sm:$0xff] }
 0xd37   :  { %5888 = vmatpush1.msra.mxu0 %v5711_v39  ;;  %6357 = vmatpush1.msra.mxu1 %v6239_v42  ;;  %v6228_v48 = vld [vmem:[#allocation17] sm:$0xff]  ;;  %v6257_v10 = vld [vmem:[#allocation17 + $0xe8] sm:$0xff]  ;;  %v6593_v59 = vld [vmem:[#allocation17 + $0x1d8] sm:$0xff] }
 0xd38   :  { %5889 = vmatprep.subr.mxu0 %v5710_v44  ;;  %6358 = vmatprep.subr.mxu1 %v12871_v11  ;;  %v6256_v0 = vld [vmem:[#allocation17 + $0xe0] sm:$0xff]  ;;  %v6592_v30 = vld [vmem:[#allocation17 + $0x1d0] sm:$0xff]  ;;  %v6255_v60 = vld [vmem:[#allocation17 + $0xd8] sm:$0xff] }
 0xd39   :  { %5890 = vmatpush1.msra.mxu0 %v5709_v31  ;;  %6359 = vmatpush1.msra.mxu1 %v6238_v4  ;;  %v5747_v28 = vld [vmem:[#allocation23 + $0x50] sm:$0xff]  ;;  %v6591_v62 = vld [vmem:[#allocation17 + $0x1c8] sm:$0xff]  ;;  %v5748_v38 = vld [vmem:[#allocation23 + $0x58] sm:$0xff] }
 0xd3a   :  { %5891 = vmatprep.subr.mxu0 %v5708_v23  ;;  %6360 = vmatprep.subr.mxu1 %v12871_v11  ;;  %v6254_v18 = vld [vmem:[#allocation17 + $0xd0] sm:$0xff]  ;;  %v6590_v7 = vld [vmem:[#allocation17 + $0x1c0] sm:$0xff]  ;;  %v6253_v34 = vld [vmem:[#allocation17 + $0xc8] sm:$0xff] }
 0xd3b   :  { %5892 = vmatpush1.msra.mxu0 %v5707_v61  ;;  %6361 = vmatpush1.msra.mxu1 %v6237_v15  ;;  %v6589_v9 = vld [vmem:[#allocation17 + $0x1b8] sm:$0xff]  ;;  %v5749_v52 = vld [vmem:[#allocation23 + $0x60] sm:$0xff]  ;;  %v6588_v39 = vld [vmem:[#allocation17 + $0x1b0] sm:$0xff] }
 0xd3c   :  { %5893 = vmatprep.subr.mxu0 %v5706_v57  ;;  %6362 = vmatprep.subr.mxu1 %v12871_v11  ;;  %v6252_v5 = vld [vmem:[#allocation17 + $0xc0] sm:$0xff]  ;;  %v5750_v29 = vld [vmem:[#allocation23 + $0x68] sm:$0xff]  ;;  %v6251_v44 = vld [vmem:[#allocation17 + $0xb8] sm:$0xff] }
 0xd3d   :  { %5894 = vmatpush1.msra.mxu0 %v5705_v13  ;;  %6363 = vmatpush1.msra.mxu1 %v6236_v24  ;;  %v6587_v21 = vld [vmem:[#allocation17 + $0x1a8] sm:$0xff]  ;;  %v6250_v26 = vld [vmem:[#allocation17 + $0xb0] sm:$0xff]  ;;  %v6586_v31 = vld [vmem:[#allocation17 + $0x1a0] sm:$0xff] }
 0xd3e   :  { %8057 = vmatmul.mubr.msk.f32.vlgmr.msra.gmra.mxu0 %vm4979_vm9, %v5737_v8  ;;  %6594 = vmatprep.subr.mxu0 %v12871_v11  ;;  %v5751_v6 = vld [vmem:[#allocation23 + $0x70] sm:$0xff]  ;;  %v5752_v23 = vld [vmem:[#allocation23 + $0x78] sm:$0xff]  ;;  %v5753_v42 = vld [vmem:[#allocation23 + $0x80] sm:$0xff] }
 0xd3f   :  { %5933 = vmatprep.mubr.f32.mxu0 %v12871_v11  ;;  %6595 = vmatpush1.msra.mxu0 %v6579_v49  ;;  %v5754_v61 = vld [vmem:[#allocation23 + $0x88] sm:$0xff]  ;;  %v6585_v4 = vld [vmem:[#allocation17 + $0x198] sm:$0xff]  ;;  %v6248_v13 = vld [vmem:[#allocation17 + $0xa0] sm:$0xff] }
 0xd40   :  { %6596 = vmatprep.subr.mxu0 %v12871_v11  ;;  %6364 = vmatprep.subr.mxu1 %v12871_v11  ;;  %v6249_v57 = vld [vmem:[#allocation17 + $0xa8] sm:$0xff]  ;;  %v6584_v8 = vld [vmem:[#allocation17 + $0x190] sm:$0xff] }
 0xd41   :  { %6597 = vmatpush1.msra.mxu0 %v6578_v19  ;;  %6365 = vmatpush1.msra.mxu1 %v6235_v47  ;;  %v5755_v49 = vld [vmem:[#allocation23 + $0x90] sm:$0xff]  ;;  %v6247_v19 = vld [vmem:[#allocation17 + $0x98] sm:$0xff]  ;;  %v6583_v15 = vld [vmem:[#allocation17 + $0x188] sm:$0xff] }
 0xd42   :  { %8058 = vmatmul.mubr.msk.f32.gmra.mxu0 %vm4979_vm9, %v5738_v58  ;;  %6598 = vmatprep.subr.mxu0 %v12871_v11  ;;  %v6246_v58 = vld [vmem:[#allocation17 + $0x90] sm:$0xff]  ;;  %v6245_v24 = vld [vmem:[#allocation17 + $0x88] sm:$0xff]  ;;  %v5757_v47 = vld [vmem:[#allocation23 + $0xa0] sm:$0xff] }
 0xd43   :  { %5939 = vmatprep.mubr.f32.mxu0 %v12871_v11  ;;  %6599 = vmatpush1.msra.mxu0 %v6577_v35  ;;  %v6582_v35 = vld [vmem:[#allocation17 + $0x180] sm:$0xff] }
 0xd44   :  { %6600 = vmatprep.subr.mxu0 %v12871_v11  ;;  %6366 = vmatprep.subr.mxu1 %v12871_v11 }
 0xd45   :  { %6601 = vmatpush1.msra.mxu0 %v6576_v53  ;;  %6367 = vmatpush1.msra.mxu1 %v6234_v40  ;;  %v5756_v53 = vld [vmem:[#allocation23 + $0x98] sm:$0xff]  ;;  %v5761_v40 = vld [vmem:[#allocation23 + $0xc0] sm:$0xff] }
 0xd46   :  { %8059 = vmatmul.mubr.msk.f32.gmra.mxu0 %vm4979_vm9, %v5739_v12  ;;  %6602 = vmatprep.subr.mxu0 %v12871_v11  ;;  %v6581_v12 = vld [vmem:[#allocation17 + $0x178] sm:$0xff] }
 0xd47   :  { %5945 = vmatprep.mubr.f32.mxu0 %v12871_v11  ;;  %6603 = vmatpush1.msra.mxu0 %v6575_v45  ;;  %v6244_v45 = vld [vmem:[#allocation17 + $0x80] sm:$0xff] }
 0xd48   :  { %6604 = vmatprep.subr.mxu0 %v12871_v11  ;;  %6368 = vmatprep.subr.mxu1 %v12871_v11 }
 0xd49   :  { %6605 = vmatpush1.msra.mxu0 %v6574_v14  ;;  %6369 = vmatpush1.msra.mxu1 %v6233_v16  ;;  %v6580_v14 = vld [vmem:[#allocation17 + $0x170] sm:$0xff]  ;;  %v5765_v16 = vld [vmem:[#allocation23 + $0xe0] sm:$0xff] }
 0xd4a   :  { %8060 = vmatmul.mubr.msk.f32.gmra.mxu0 %vm4979_vm9, %v5740_v54  ;;  %6606 = vmatprep.subr.mxu0 %v12871_v11  ;;  %v5758_v54 = vld [vmem:[#allocation23 + $0xa8] sm:$0xff] }
 0xd4b   :  { %5951 = vmatprep.mubr.f32.mxu0 %v12871_v11  ;;  %6607 = vmatpush1.msra.mxu0 %v6573_v3  ;;  %v5759_v3 = vld [vmem:[#allocation23 + $0xb0] sm:$0xff] }
 0xd4c   :  { %6608 = vmatprep.subr.mxu0 %v12871_v11  ;;  %6370 = vmatprep.subr.mxu1 %v12871_v11 }
 0xd4d   :  { %6609 = vmatpush1.msra.mxu0 %v6572_v41  ;;  %6371 = vmatpush1.msra.mxu1 %v6232_v46  ;;  %v5760_v41 = vld [vmem:[#allocation23 + $0xb8] sm:$0xff] }
 0xd4e   :  { %8061 = vmatmul.mubr.msk.f32.gmra.mxu0 %vm4979_vm9, %v5741_v32  ;;  %6610 = vmatprep.subr.mxu0 %v12871_v11  ;;  %v5762_v32 = vld [vmem:[#allocation23 + $0xc8] sm:$0xff] }
 0xd4f   :  { %5957 = vmatprep.mubr.f32.mxu0 %v12871_v11  ;;  %6611 = vmatpush1.msra.mxu0 %v6571_v63  ;;  %v5763_v63 = vld [vmem:[#allocation23 + $0xd0] sm:$0xff] }
 0xd50   :  { %6612 = vmatprep.subr.mxu0 %v12871_v11  ;;  %6372 = vmatprep.subr.mxu1 %v12871_v11 }
 0xd51   :  { %6613 = vmatpush1.msra.mxu0 %v6570_v27  ;;  %6373 = vmatpush1.msra.mxu1 %v6231_v20  ;;  %v5764_v27 = vld [vmem:[#allocation23 + $0xd8] sm:$0xff] }
 0xd52   :  { %8062 = vmatmul.mubr.msk.f32.gmra.mxu0 %vm4979_vm9, %v5742_v55  ;;  %6614 = vmatprep.subr.mxu0 %v12871_v11  ;;  %v5766_v55 = vld [vmem:[#allocation23 + $0xe8] sm:$0xff] }
 0xd53   :  { %5963 = vmatprep.mubr.f32.mxu0 %v12871_v11  ;;  %6615 = vmatpush1.msra.mxu0 %v6569_v50 }
 0xd54   :  { %6616 = vmatprep.subr.mxu0 %v12871_v11  ;;  %6374 = vmatprep.subr.mxu1 %v12871_v11 }
 0xd55   :  { %6617 = vmatpush1.msra.mxu0 %v6568_v56  ;;  %6375 = vmatpush1.msra.mxu1 %v6230_v17  ;;  %v6825_v17 = vld [vmem:[#allocation17 + $0x258] sm:$0xff] }
 0xd56   :  { %8063 = vmatmul.mubr.msk.f32.gmra.mxu0 %vm4979_vm9, %v5743_v25  ;;  %6618 = vmatprep.subr.mxu0 %v12871_v11 }
 0xd57   :  { %5969 = vmatprep.mubr.f32.mxu0 %v12871_v11  ;;  %6619 = vmatpush1.msra.mxu0 %v6567_v43 }
 0xd58   :  { %6620 = vmatprep.subr.mxu0 %v12871_v11  ;;  %6376 = vmatprep.subr.mxu1 %v12871_v11 }
 0xd59   :  { %6621 = vmatpush1.msra.mxu0 %v6566_v1  ;;  %6377 = vmatpush1.msra.mxu1 %v6229_v51 }
 0xd5a   :  { %8064 = vmatmul.mubr.msk.f32.gmra.mxu0 %vm4979_vm9, %v5744_v22  ;;  %6622 = vmatprep.subr.mxu0 %v12871_v11 }
 0xd5b   :  { %5975 = vmatprep.mubr.f32.mxu0 %v12871_v11  ;;  %6623 = vmatpush1.msra.mxu0 %v6565_v2 }
 0xd5c   :  { %6378 = vmatprep.subr.mxu1 %v12871_v11  ;;  %6624 = vmatprep.subr.mxu0 %v12871_v11 }
 0xd5d   :  { %6379 = vmatpush1.msra.mxu1 %v6228_v48  ;;  %6625 = vmatpush1.msra.mxu0 %v6564_v33 }
 0xd5e   :  { %8065 = vmatmul.mubr.msk.f32.gmra.mxu0 %vm4979_vm9, %v5745_v37  ;;  %6384 = vmatprep.subr.mxu1 %v12871_v11  ;;  %v6824_v37 = vld [vmem:[#allocation17 + $0x250] sm:$0xff] }
 0xd5f   :  { %5981 = vmatprep.mubr.f32.mxu0 %v12871_v11  ;;  %6630 = vmatprep.subr.mxu0 %v12871_v11 }
 0xd60   :  { %6385 = vmatpush2.msra.mxu1 %v6257_v10  ;;  %6631 = vmatpush2.msra.mxu0 %v6593_v59  ;;  %v6823_v10 = vld [vmem:[#allocation17 + $0x248] sm:$0xff] }
 0xd61   :  { %6386 = vmatprep.subr.mxu1 %v12871_v11  ;;  %6632 = vmatprep.subr.mxu0 %v12871_v11 }
 0xd62   :  { %8066 = vmatmul.mubr.msk.f32.gmra.mxu0 %vm4979_vm9, %v5746_v36  ;;  %6387 = vmatpush2.msra.mxu1 %v6256_v0 }
 0xd63   :  { %5987 = vmatprep.mubr.f32.mxu0 %v12871_v11  ;;  %6633 = vmatpush2.msra.mxu0 %v6592_v30 }
 0xd64   :  { %6388 = vmatprep.subr.mxu1 %v12871_v11  ;;  %6634 = vmatprep.subr.mxu0 %v12871_v11 }
 0xd65   :  { %6389 = vmatpush2.msra.mxu1 %v6255_v60  ;;  %6635 = vmatpush2.msra.mxu0 %v6591_v62 }
 0xd66   :  { %8067 = vmatmul.mubr.msk.f32.gmra.mxu0 %vm4979_vm9, %v5747_v28  ;;  %6390 = vmatprep.subr.mxu1 %v12871_v11  ;;  %v6822_v28 = vld [vmem:[#allocation17 + $0x240] sm:$0xff] }
 0xd67   :  { %5993 = vmatprep.mubr.f32.mxu0 %v12871_v11  ;;  %6636 = vmatprep.subr.mxu0 %v12871_v11 }
 0xd68   :  { %6391 = vmatpush2.msra.mxu1 %v6254_v18  ;;  %6637 = vmatpush2.msra.mxu0 %v6590_v7  ;;  %v6821_v18 = vld [vmem:[#allocation17 + $0x238] sm:$0xff] }
 0xd69   :  { %6392 = vmatprep.subr.mxu1 %v12871_v11  ;;  %6638 = vmatprep.subr.mxu0 %v12871_v11 }
 0xd6a   :  { %8068 = vmatmul.mubr.msk.f32.gmra.mxu0 %vm4979_vm9, %v5748_v38  ;;  %6393 = vmatpush2.msra.mxu1 %v6253_v34 }
 0xd6b   :  { %5999 = vmatprep.mubr.f32.mxu0 %v12871_v11  ;;  %6639 = vmatpush2.msra.mxu0 %v6589_v9 }
 0xd6c   :  { %6394 = vmatprep.subr.mxu1 %v12871_v11  ;;  %6640 = vmatprep.subr.mxu0 %v12871_v11 }
 0xd6d   :  { %6395 = vmatpush2.msra.mxu1 %v6252_v5  ;;  %6641 = vmatpush2.msra.mxu0 %v6588_v39 }
 0xd6e   :  { %8069 = vmatmul.mubr.msk.f32.gmra.mxu0 %vm4979_vm9, %v5749_v52  ;;  %6396 = vmatprep.subr.mxu1 %v12871_v11  ;;  %v6820_v52 = vld [vmem:[#allocation17 + $0x230] sm:$0xff] }
 0xd6f   :  { %6005 = vmatprep.mubr.f32.mxu0 %v12871_v11  ;;  %6642 = vmatprep.subr.mxu0 %v12871_v11 }
 0xd70   :  { %6397 = vmatpush2.msra.mxu1 %v6251_v44  ;;  %6643 = vmatpush2.msra.mxu0 %v6587_v21  ;;  %v6819_v44 = vld [vmem:[#allocation17 + $0x228] sm:$0xff] }
 0xd71   :  { %6398 = vmatprep.subr.mxu1 %v12871_v11  ;;  %6644 = vmatprep.subr.mxu0 %v12871_v11 }
 0xd72   :  { %8070 = vmatmul.mubr.msk.f32.gmra.mxu0 %vm4979_vm9, %v5750_v29  ;;  %6399 = vmatpush2.msra.mxu1 %v6250_v26 }
 0xd73   :  { %6011 = vmatprep.mubr.f32.mxu0 %v12871_v11  ;;  %6645 = vmatpush2.msra.mxu0 %v6586_v31 }
 0xd74   :  { %6400 = vmatprep.subr.mxu1 %v12871_v11  ;;  %6646 = vmatprep.subr.mxu0 %v12871_v11 }
 0xd75   :  { %6401 = vmatpush2.msra.mxu1 %v6249_v57  ;;  %6647 = vmatpush2.msra.mxu0 %v6585_v4  ;;  %v6817_v57 = vld [vmem:[#allocation17 + $0x218] sm:$0xff] }
 0xd76   :  { %8071 = vmatmul.mubr.msk.f32.gmra.mxu0 %vm4979_vm9, %v5751_v6  ;;  %6402 = vmatprep.subr.mxu1 %v12871_v11  ;;  %v6818_v6 = vld [vmem:[#allocation17 + $0x220] sm:$0xff] }
 0xd77   :  { %6017 = vmatprep.mubr.f32.mxu0 %v12871_v11  ;;  %6648 = vmatprep.subr.mxu0 %v12871_v11 }
 0xd78   :  { %6403 = vmatpush2.msra.mxu1 %v6248_v13  ;;  %6649 = vmatpush2.msra.mxu0 %v6584_v8 }
 0xd79   :  { %6404 = vmatprep.subr.mxu1 %v12871_v11  ;;  %6650 = vmatprep.subr.mxu0 %v12871_v11 }
 0xd7a   :  { %8072 = vmatmul.mubr.msk.f32.gmra.mxu0 %vm4979_vm9, %v5752_v23  ;;  %6405 = vmatpush2.msra.mxu1 %v6247_v19 }
 0xd7b   :  { %6023 = vmatprep.mubr.f32.mxu0 %v12871_v11  ;;  %6651 = vmatpush2.msra.mxu0 %v6583_v15 }
 0xd7c   :  { %6406 = vmatprep.subr.mxu1 %v12871_v11  ;;  %6652 = vmatprep.subr.mxu0 %v12871_v11 }
 0xd7d   :  { %6407 = vmatpush2.msra.mxu1 %v6246_v58  ;;  %6653 = vmatpush2.msra.mxu0 %v6582_v35  ;;  %v6815_v35 = vld [vmem:[#allocation17 + $0x208] sm:$0xff] }
 0xd7e   :  { %8073 = vmatmul.mubr.msk.f32.gmra.mxu0 %vm4979_vm9, %v5753_v42  ;;  %6408 = vmatprep.subr.mxu1 %v12871_v11 }
 0xd7f   :  { %6029 = vmatprep.mubr.f32.mxu0 %v12871_v11  ;;  %6654 = vmatprep.subr.mxu0 %v12871_v11 }
 0xd80   :  { %6409 = vmatpush2.msra.mxu1 %v6245_v24  ;;  %6655 = vmatpush2.msra.mxu0 %v6581_v12 }
 0xd81   :  { %6410 = vmatprep.subr.mxu1 %v12871_v11  ;;  %6656 = vmatprep.subr.mxu0 %v12871_v11 }
 0xd82   :  { %8074 = vmatmul.mubr.msk.f32.gmra.mxu0 %vm4979_vm9, %v5754_v61  ;;  %6411 = vmatpush2.msra.mxu1 %v6244_v45  ;;  %v6814_v45 = vld [vmem:[#allocation17 + $0x200] sm:$0xff] }
 0xd83   :  { %6035 = vmatprep.mubr.f32.mxu0 %v12871_v11  ;;  %6657 = vmatpush2.msra.mxu0 %v6580_v14 }
 0xd84   :  { %6840 = vmatprep.subr.mxu1 %v12871_v11  ;;  %7507 = vmatprep.subr.mxu0 %v12871_v11 }
 0xd86   :  { %8075 = vmatmul.mubr.msk.f32.gmra.mxu0 %vm4979_vm9, %v5755_v49  ;;  %v6816_v49 = vld [vmem:[#allocation17 + $0x210] sm:$0xff] }
 0xd87   :  { %6041 = vmatprep.mubr.f32.mxu0 %v12871_v11 }
 0xd8a   :  { %8076 = vmatmul.mubr.msk.f32.gmra.mxu0 %vm4979_vm9, %v5756_v53 }
 0xd8b   :  { %6047 = vmatprep.mubr.f32.mxu0 %v12871_v11 }
 0xd8e   :  { %8077 = vmatmul.mubr.msk.f32.gmra.mxu0 %vm4979_vm9, %v5757_v47 }
 0xd8f   :  { %6053 = vmatprep.mubr.f32.mxu0 %v12871_v11 }
 0xd92   :  { %8078 = vmatmul.mubr.msk.f32.gmra.mxu0 %vm4979_vm9, %v5758_v54 }
 0xd93   :  { %6059 = vmatprep.mubr.f32.mxu0 %v12871_v11 }
 0xd96   :  { %8079 = vmatmul.mubr.msk.f32.gmra.mxu0 %vm4979_vm9, %v5759_v3  ;;  %v6813_v3 = vld [vmem:[#allocation17 + $0x1f8] sm:$0xff] }
 0xd97   :  { %6065 = vmatprep.mubr.f32.mxu0 %v12871_v11 }
 0xd9a   :  { %8080 = vmatmul.mubr.msk.f32.gmra.mxu0 %vm4979_vm9, %v5760_v41 }
 0xd9b   :  { %6071 = vmatprep.mubr.f32.mxu0 %v12871_v11 }
 0xd9e   :  { %8081 = vmatmul.mubr.msk.f32.gmra.mxu0 %vm4979_vm9, %v5761_v40 }
 0xd9f   :  { %6077 = vmatprep.mubr.f32.mxu0 %v12871_v11 }
 0xda2   :  { %8082 = vmatmul.mubr.msk.f32.gmra.mxu0 %vm4979_vm9, %v5762_v32 }
 0xda3   :  { %6083 = vmatprep.mubr.f32.mxu0 %v12871_v11 }
 0xda6   :  { %8083 = vmatmul.mubr.msk.f32.gmra.mxu0 %vm4979_vm9, %v5763_v63  ;;  %v6812_v63 = vld [vmem:[#allocation17 + $0x1f0] sm:$0xff] }
 0xda7   :  { %6089 = vmatprep.mubr.f32.mxu0 %v12871_v11 }
 0xdaa   :  { %8084 = vmatmul.mubr.msk.f32.gmra.mxu0 %vm4979_vm9, %v5764_v27 }
 0xdab   :  { %6095 = vmatprep.mubr.f32.mxu0 %v12871_v11 }
 0xdae   :  { %8085 = vmatmul.mubr.msk.f32.gmra.mxu0 %vm4979_vm9, %v5765_v16 }
 0xdaf   :  { %6101 = vmatprep.mubr.f32.mxu0 %v12871_v11 }
 0xdb2   :  { %8086 = vmatmul.mubr.msk.f32.gmra.mxu0 %vm4979_vm9, %v5766_v55 }
 0xdfe   :  { %v11745_v50 = vpop.f32.mrf.mxu0 }
 0xe00   :  { %v5931_v46 = vpop.f32.mrf.mxu0 }
 0xe01   :  { %6109 = vst.msk [vmem:[#allocation4 + $0x8] sm:$0xff] %vm5199_vm10, %v5931_v46  ;;  %v6811_v46 = vld [vmem:[#allocation17 + $0x1e8] sm:$0xff] }
 0xe02   :  { %v11748_v56 = vpop.f32.mrf.mxu0 }
 0xe04   :  { %v5937_v25 = vpop.f32.mrf.mxu0 }
 0xe05   :  { %6111 = vst.msk [vmem:[#allocation4 + $0x18] sm:$0xff] %vm5199_vm10, %v5937_v25 }
 0xe06   :  { %v11751_v20 = vpop.f32.mrf.mxu0 }
 0xe08   :  { %v5943_v43 = vpop.f32.mrf.mxu0  ;;  %v11753_v22 = vld [vmem:[#allocation4 + $0x8] sm:$0xff] }
 0xe09   :  { %6113 = vst.msk [vmem:[#allocation4 + $0x28] sm:$0xff] %vm5199_vm10, %v5943_v43  ;;  %8087 = vmatprep.mubr.msk.f32.mxu1 %vm5199_vm10, %v11753_v22  ;;  %8117 = vmatprep.mubr.msk.f32.mxu0 %vm5199_vm10, %v11753_v22 }
 0xe0a   :  { %v11760_v1 = vpop.f32.mrf.mxu0  ;;  %6413 = vmatmul.mubr.f32.vlgmr.msra.gmra.mxu1 %v11745_v50  ;;  %6659 = vmatmul.mubr.f32.vlgmr.msra.gmra.mxu0 %v11745_v50 }
 0xe0b   :  { %6841 = vmatpush1.msra.mxu1 %v6825_v17 }
 0xe0c   :  { %v5949_v51 = vpop.f32.mrf.mxu0  ;;  %v11764_v2 = vld [vmem:[#allocation4 + $0x18] sm:$0xff]  ;;  %6842 = vmatprep.subr.mxu1 %v12871_v11 }
 0xe0d   :  { %6115 = vst.msk [vmem:[#allocation4 + $0x38] sm:$0xff] %vm5199_vm10, %v5949_v51  ;;  %8088 = vmatprep.mubr.msk.f32.mxu1 %vm5199_vm10, %v11764_v2  ;;  %8118 = vmatprep.mubr.msk.f32.mxu0 %vm5199_vm10, %v11764_v2  ;;  %v6810_v51 = vld [vmem:[#allocation17 + $0x1e0] sm:$0xff] }
 0xe0e   :  { %v11772_v48 = vpop.f32.mrf.mxu0  ;;  %6418 = vmatmul.mubr.f32.gmra.mxu1 %v11748_v56  ;;  %6664 = vmatmul.mubr.f32.gmra.mxu0 %v11748_v56 }
 0xe0f   :  { %6843 = vmatpush1.msra.mxu1 %v6824_v37 }
 0xe10   :  { %v5955_v33 = vpop.f32.mrf.mxu0  ;;  %v11776_v36 = vld [vmem:[#allocation4 + $0x28] sm:$0xff]  ;;  %6844 = vmatprep.subr.mxu1 %v12871_v11 }
 0xe11   :  { %6117 = vst.msk [vmem:[#allocation4 + $0x48] sm:$0xff] %vm5199_vm10, %v5955_v33  ;;  %8089 = vmatprep.mubr.msk.f32.mxu1 %vm5199_vm10, %v11776_v36  ;;  %8119 = vmatprep.mubr.msk.f32.mxu0 %vm5199_vm10, %v11776_v36 }
 0xe12   :  { %v11784_v59 = vpop.f32.mrf.mxu0  ;;  %6423 = vmatmul.mubr.f32.gmra.mxu1 %v11751_v20  ;;  %6669 = vmatmul.mubr.f32.gmra.mxu0 %v11751_v20 }
 0xe13   :  { %6845 = vmatpush1.msra.mxu1 %v6823_v10 }
 0xe14   :  { %v5961_v0 = vpop.f32.mrf.mxu0  ;;  %v11788_v30 = vld [vmem:[#allocation4 + $0x38] sm:$0xff]  ;;  %6846 = vmatprep.subr.mxu1 %v12871_v11 }
 0xe15   :  { %6119 = vst.msk [vmem:[#allocation4 + $0x58] sm:$0xff] %vm5199_vm10, %v5961_v0  ;;  %8090 = vmatprep.mubr.msk.f32.mxu1 %vm5199_vm10, %v11788_v30  ;;  %8120 = vmatprep.mubr.msk.f32.mxu0 %vm5199_vm10, %v11788_v30  ;;  %v6839_v0 = vld [vmem:[#allocation17 + $0x2c8] sm:$0xff] }
 0xe16   :  { %v11796_v60 = vpop.f32.mrf.mxu0  ;;  %6428 = vmatmul.mubr.f32.gmra.mxu1 %v11760_v1  ;;  %6674 = vmatmul.mubr.f32.gmra.mxu0 %v11760_v1 }
 0xe17   :  { %6847 = vmatpush1.msra.mxu1 %v6822_v28 }
 0xe18   :  { %v5967_v62 = vpop.f32.mrf.mxu0  ;;  %v11800_v38 = vld [vmem:[#allocation4 + $0x48] sm:$0xff]  ;;  %6848 = vmatprep.subr.mxu1 %v12871_v11 }
 0xe19   :  { %6121 = vst.msk [vmem:[#allocation4 + $0x68] sm:$0xff] %vm5199_vm10, %v5967_v62  ;;  %8091 = vmatprep.mubr.msk.f32.mxu1 %vm5199_vm10, %v11800_v38  ;;  %8121 = vmatprep.mubr.msk.f32.mxu0 %vm5199_vm10, %v11800_v38 }
 0xe1a   :  { %v11808_v7 = vpop.f32.mrf.mxu0  ;;  %6433 = vmatmul.mubr.f32.gmra.mxu1 %v11772_v48  ;;  %6679 = vmatmul.mubr.f32.gmra.mxu0 %v11772_v48 }
 0xe1b   :  { %6849 = vmatpush1.msra.mxu1 %v6821_v18 }
 0xe1c   :  { %v5973_v34 = vpop.f32.mrf.mxu0  ;;  %v11812_v9 = vld [vmem:[#allocation4 + $0x58] sm:$0xff]  ;;  %6850 = vmatprep.subr.mxu1 %v12871_v11 }
 0xe1d   :  { %6123 = vst.msk [vmem:[#allocation4 + $0x78] sm:$0xff] %vm5199_vm10, %v5973_v34  ;;  %8092 = vmatprep.mubr.msk.f32.mxu1 %vm5199_vm10, %v11812_v9  ;;  %8122 = vmatprep.mubr.msk.f32.mxu0 %vm5199_vm10, %v11812_v9  ;;  %v6838_v34 = vld [vmem:[#allocation17 + $0x2c0] sm:$0xff] }
 0xe1e   :  { %v11820_v5 = vpop.f32.mrf.mxu0  ;;  %6438 = vmatmul.mubr.f32.gmra.mxu1 %v11784_v59  ;;  %6684 = vmatmul.mubr.f32.gmra.mxu0 %v11784_v59 }
 0xe1f   :  { %6851 = vmatpush1.msra.mxu1 %v6820_v52 }
 0xe20   :  { %v5979_v39 = vpop.f32.mrf.mxu0  ;;  %v11824_v29 = vld [vmem:[#allocation4 + $0x68] sm:$0xff]  ;;  %6852 = vmatprep.subr.mxu1 %v12871_v11 }
 0xe21   :  { %6125 = vst.msk [vmem:[#allocation4 + $0x88] sm:$0xff] %vm5199_vm10, %v5979_v39  ;;  %8093 = vmatprep.mubr.msk.f32.mxu1 %vm5199_vm10, %v11824_v29  ;;  %8123 = vmatprep.mubr.msk.f32.mxu0 %vm5199_vm10, %v11824_v29 }
 0xe22   :  { %v11832_v21 = vpop.f32.mrf.mxu0  ;;  %6443 = vmatmul.mubr.f32.gmra.mxu1 %v11796_v60  ;;  %6689 = vmatmul.mubr.f32.gmra.mxu0 %v11796_v60 }
 0xe23   :  { %6853 = vmatpush1.msra.mxu1 %v6819_v44 }
 0xe24   :  { %v5985_v26 = vpop.f32.mrf.mxu0  ;;  %v11836_v31 = vld [vmem:[#allocation4 + $0x78] sm:$0xff]  ;;  %6854 = vmatprep.subr.mxu1 %v12871_v11 }
 0xe25   :  { %6127 = vst.msk [vmem:[#allocation4 + $0x98] sm:$0xff] %vm5199_vm10, %v5985_v26  ;;  %8094 = vmatprep.mubr.msk.f32.mxu1 %vm5199_vm10, %v11836_v31  ;;  %8124 = vmatprep.mubr.msk.f32.mxu0 %vm5199_vm10, %v11836_v31  ;;  %v6837_v26 = vld [vmem:[#allocation17 + $0x2b8] sm:$0xff] }
 0xe26   :  { %v11844_v23 = vpop.f32.mrf.mxu0  ;;  %6448 = vmatmul.mubr.f32.gmra.mxu1 %v11808_v7  ;;  %6694 = vmatmul.mubr.f32.gmra.mxu0 %v11808_v7 }
 0xe27   :  { %6855 = vmatpush1.msra.mxu1 %v6818_v6 }
 0xe28   :  { %v5991_v42 = vpop.f32.mrf.mxu0  ;;  %v11848_v61 = vld [vmem:[#allocation4 + $0x88] sm:$0xff]  ;;  %6856 = vmatprep.subr.mxu1 %v12871_v11 }
 0xe29   :  { %6129 = vst.msk [vmem:[#allocation4 + $0xa8] sm:$0xff] %vm5199_vm10, %v5991_v42  ;;  %8095 = vmatprep.mubr.msk.f32.mxu1 %vm5199_vm10, %v11848_v61  ;;  %8125 = vmatprep.mubr.msk.f32.mxu0 %vm5199_vm10, %v11848_v61 }
 0xe2a   :  { %v11856_v4 = vpop.f32.mrf.mxu0  ;;  %6453 = vmatmul.mubr.f32.gmra.mxu1 %v11820_v5  ;;  %6699 = vmatmul.mubr.f32.gmra.mxu0 %v11820_v5 }
 0xe2b   :  { %6857 = vmatpush1.msra.mxu1 %v6817_v57 }
 0xe2c   :  { %v5997_v13 = vpop.f32.mrf.mxu0  ;;  %v11860_v8 = vld [vmem:[#allocation4 + $0x98] sm:$0xff]  ;;  %6858 = vmatprep.subr.mxu1 %v12871_v11 }
 0xe2d   :  { %6131 = vst.msk [vmem:[#allocation4 + $0xb8] sm:$0xff] %vm5199_vm10, %v5997_v13  ;;  %8096 = vmatprep.mubr.msk.f32.mxu1 %vm5199_vm10, %v11860_v8  ;;  %8126 = vmatprep.mubr.msk.f32.mxu0 %vm5199_vm10, %v11860_v8  ;;  %v6836_v13 = vld [vmem:[#allocation17 + $0x2b0] sm:$0xff] }
 0xe2e   :  { %v11868_v19 = vpop.f32.mrf.mxu0  ;;  %6458 = vmatmul.mubr.f32.gmra.mxu1 %v11832_v21  ;;  %6704 = vmatmul.mubr.f32.gmra.mxu0 %v11832_v21 }
 0xe2f   :  { %6859 = vmatpush1.msra.mxu1 %v6816_v49 }
 0xe30   :  { %v6003_v15 = vpop.f32.mrf.mxu0  ;;  %v11872_v58 = vld [vmem:[#allocation4 + $0xa8] sm:$0xff]  ;;  %6860 = vmatprep.subr.mxu1 %v12871_v11 }
 0xe31   :  { %6133 = vst.msk [vmem:[#allocation4 + $0xc8] sm:$0xff] %vm5199_vm10, %v6003_v15  ;;  %8097 = vmatprep.mubr.msk.f32.mxu1 %vm5199_vm10, %v11872_v58  ;;  %8127 = vmatprep.mubr.msk.f32.mxu0 %vm5199_vm10, %v11872_v58 }
 0xe32   :  { %v11880_v53 = vpop.f32.mrf.mxu0  ;;  %6463 = vmatmul.mubr.f32.gmra.mxu1 %v11844_v23  ;;  %6709 = vmatmul.mubr.f32.gmra.mxu0 %v11844_v23 }
 0xe33   :  { %6861 = vmatpush1.msra.mxu1 %v6815_v35 }
 0xe34   :  { %v6009_v24 = vpop.f32.mrf.mxu0  ;;  %v11884_v12 = vld [vmem:[#allocation4 + $0xb8] sm:$0xff]  ;;  %6862 = vmatprep.subr.mxu1 %v12871_v11 }
 0xe35   :  { %6135 = vst.msk [vmem:[#allocation4 + $0xd8] sm:$0xff] %vm5199_vm10, %v6009_v24  ;;  %8098 = vmatprep.mubr.msk.f32.mxu1 %vm5199_vm10, %v11884_v12  ;;  %8128 = vmatprep.mubr.msk.f32.mxu0 %vm5199_vm10, %v11884_v12  ;;  %v6835_v24 = vld [vmem:[#allocation17 + $0x2a8] sm:$0xff] }
 0xe36   :  { %v11892_v14 = vpop.f32.mrf.mxu0  ;;  %6468 = vmatmul.mubr.f32.gmra.mxu1 %v11856_v4  ;;  %6714 = vmatmul.mubr.f32.gmra.mxu0 %v11856_v4 }
 0xe37   :  { %6863 = vmatpush1.msra.mxu1 %v6814_v45 }
 0xe38   :  { %v6015_v47 = vpop.f32.mrf.mxu0  ;;  %v11896_v54 = vld [vmem:[#allocation4 + $0xc8] sm:$0xff]  ;;  %6864 = vmatprep.subr.mxu1 %v12871_v11 }
 0xe39   :  { %6137 = vst.msk [vmem:[#allocation4 + $0xe8] sm:$0xff] %vm5199_vm10, %v6015_v47  ;;  %8099 = vmatprep.mubr.msk.f32.mxu1 %vm5199_vm10, %v11896_v54  ;;  %8129 = vmatprep.mubr.msk.f32.mxu0 %vm5199_vm10, %v11896_v54 }
 0xe3a   :  { %v11904_v41 = vpop.f32.mrf.mxu0  ;;  %6473 = vmatmul.mubr.f32.gmra.mxu1 %v11868_v19  ;;  %6719 = vmatmul.mubr.f32.gmra.mxu0 %v11868_v19 }
 0xe3b   :  { %6865 = vmatpush1.msra.mxu1 %v6813_v3 }
 0xe3c   :  { %v6021_v40 = vpop.f32.mrf.mxu0  ;;  %v11908_v32 = vld [vmem:[#allocation4 + $0xd8] sm:$0xff]  ;;  %6866 = vmatprep.subr.mxu1 %v12871_v11 }
 0xe3d   :  { %6139 = vst.msk [vmem:[#allocation4 + $0xf8] sm:$0xff] %vm5199_vm10, %v6021_v40  ;;  %8100 = vmatprep.mubr.msk.f32.mxu1 %vm5199_vm10, %v11908_v32  ;;  %8130 = vmatprep.mubr.msk.f32.mxu0 %vm5199_vm10, %v11908_v32  ;;  %v6834_v40 = vld [vmem:[#allocation17 + $0x2a0] sm:$0xff] }
 0xe3e   :  { %v11916_v27 = vpop.f32.mrf.mxu0  ;;  %6478 = vmatmul.mubr.f32.gmra.mxu1 %v11880_v53  ;;  %6724 = vmatmul.mubr.f32.gmra.mxu0 %v11880_v53 }
 0xe3f   :  { %6867 = vmatpush1.msra.mxu1 %v6812_v63 }
 0xe40   :  { %v6027_v16 = vpop.f32.mrf.mxu0  ;;  %v11920_v55 = vld [vmem:[#allocation4 + $0xe8] sm:$0xff]  ;;  %6868 = vmatprep.subr.mxu1 %v12871_v11 }
 0xe41   :  { %6141 = vst.msk [vmem:[#allocation4 + $0x108] sm:$0xff] %vm5199_vm10, %v6027_v16  ;;  %8101 = vmatprep.mubr.msk.f32.mxu1 %vm5199_vm10, %v11920_v55  ;;  %8131 = vmatprep.mubr.msk.f32.mxu0 %vm5199_vm10, %v11920_v55 }
 0xe42   :  { %v11928_v25 = vpop.f32.mrf.mxu0  ;;  %6483 = vmatmul.mubr.f32.gmra.mxu1 %v11892_v14  ;;  %6729 = vmatmul.mubr.f32.gmra.mxu0 %v11892_v14 }
 0xe43   :  { %6869 = vmatpush1.msra.mxu1 %v6811_v46 }
 0xe44   :  { %v6033_v43 = vpop.f32.mrf.mxu0  ;;  %v11932_v17 = vld [vmem:[#allocation4 + $0xf8] sm:$0xff]  ;;  %6870 = vmatprep.subr.mxu1 %v12871_v11 }
 0xe45   :  { %6143 = vst.msk [vmem:[#allocation4 + $0x118] sm:$0xff] %vm5199_vm10, %v6033_v43  ;;  %8102 = vmatprep.mubr.msk.f32.mxu1 %vm5199_vm10, %v11932_v17  ;;  %8132 = vmatprep.mubr.msk.f32.mxu0 %vm5199_vm10, %v11932_v17  ;;  %v6833_v43 = vld [vmem:[#allocation17 + $0x298] sm:$0xff] }
 0xe46   :  { %v11940_v37 = vpop.f32.mrf.mxu0  ;;  %6488 = vmatmul.mubr.f32.gmra.mxu1 %v11904_v41  ;;  %6734 = vmatmul.mubr.f32.gmra.mxu0 %v11904_v41 }
 0xe47   :  { %6871 = vmatpush1.msra.mxu1 %v6810_v51 }
 0xe48   :  { %v6039_v33 = vpop.f32.mrf.mxu0  ;;  %v11944_v10 = vld [vmem:[#allocation4 + $0x108] sm:$0xff]  ;;  %6876 = vmatprep.subr.mxu1 %v12871_v11 }
 0xe49   :  { %6145 = vst.msk [vmem:[#allocation4 + $0x128] sm:$0xff] %vm5199_vm10, %v6039_v33  ;;  %8103 = vmatprep.mubr.msk.f32.mxu1 %vm5199_vm10, %v11944_v10  ;;  %8133 = vmatprep.mubr.msk.f32.mxu0 %vm5199_vm10, %v11944_v10 }
 0xe4a   :  { %v11952_v28 = vpop.f32.mrf.mxu0  ;;  %6493 = vmatmul.mubr.f32.gmra.mxu1 %v11916_v27  ;;  %6739 = vmatmul.mubr.f32.gmra.mxu0 %v11916_v27 }
 0xe4b   :  { %6877 = vmatpush2.msra.mxu1 %v6839_v0 }
 0xe4c   :  { %v6045_v62 = vpop.f32.mrf.mxu0  ;;  %v11956_v18 = vld [vmem:[#allocation4 + $0x118] sm:$0xff]  ;;  %6878 = vmatprep.subr.mxu1 %v12871_v11 }
 0xe4d   :  { %6147 = vst.msk [vmem:[#allocation4 + $0x138] sm:$0xff] %vm5199_vm10, %v6045_v62  ;;  %8104 = vmatprep.mubr.msk.f32.mxu1 %vm5199_vm10, %v11956_v18  ;;  %8134 = vmatprep.mubr.msk.f32.mxu0 %vm5199_vm10, %v11956_v18  ;;  %v6832_v62 = vld [vmem:[#allocation17 + $0x290] sm:$0xff] }
 0xe4e   :  { %v11964_v52 = vpop.f32.mrf.mxu0  ;;  %6498 = vmatmul.mubr.f32.gmra.mxu1 %v11928_v25  ;;  %6744 = vmatmul.mubr.f32.gmra.mxu0 %v11928_v25 }
 0xe4f   :  { %6879 = vmatpush2.msra.mxu1 %v6838_v34 }
 0xe50   :  { %v6051_v39 = vpop.f32.mrf.mxu0  ;;  %v11968_v44 = vld [vmem:[#allocation4 + $0x128] sm:$0xff]  ;;  %6880 = vmatprep.subr.mxu1 %v12871_v11 }
 0xe51   :  { %6149 = vst.msk [vmem:[#allocation4 + $0x148] sm:$0xff] %vm5199_vm10, %v6051_v39  ;;  %8105 = vmatprep.mubr.msk.f32.mxu1 %vm5199_vm10, %v11968_v44  ;;  %8135 = vmatprep.mubr.msk.f32.mxu0 %vm5199_vm10, %v11968_v44 }
 0xe52   :  { %v11976_v6 = vpop.f32.mrf.mxu0  ;;  %6503 = vmatmul.mubr.f32.gmra.mxu1 %v11940_v37  ;;  %6749 = vmatmul.mubr.f32.gmra.mxu0 %v11940_v37 }
 0xe53   :  { %6881 = vmatpush2.msra.mxu1 %v6837_v26 }
 0xe54   :  { %v6057_v42 = vpop.f32.mrf.mxu0  ;;  %v11980_v57 = vld [vmem:[#allocation4 + $0x138] sm:$0xff]  ;;  %6882 = vmatprep.subr.mxu1 %v12871_v11 }
 0xe55   :  { %6151 = vst.msk [vmem:[#allocation4 + $0x158] sm:$0xff] %vm5199_vm10, %v6057_v42  ;;  %8106 = vmatprep.mubr.msk.f32.mxu1 %vm5199_vm10, %v11980_v57  ;;  %8136 = vmatprep.mubr.msk.f32.mxu0 %vm5199_vm10, %v11980_v57  ;;  %v6831_v42 = vld [vmem:[#allocation17 + $0x288] sm:$0xff] }
 0xe56   :  { %v11988_v49 = vpop.f32.mrf.mxu0  ;;  %6508 = vmatmul.mubr.f32.gmra.mxu1 %v11952_v28  ;;  %6754 = vmatmul.mubr.f32.gmra.mxu0 %v11952_v28 }
 0xe57   :  { %6883 = vmatpush2.msra.mxu1 %v6836_v13 }
 0xe58   :  { %v6063_v15 = vpop.f32.mrf.mxu0  ;;  %v11992_v35 = vld [vmem:[#allocation4 + $0x148] sm:$0xff]  ;;  %6884 = vmatprep.subr.mxu1 %v12871_v11 }
 0xe59   :  { %6153 = vst.msk [vmem:[#allocation4 + $0x168] sm:$0xff] %vm5199_vm10, %v6063_v15  ;;  %8107 = vmatprep.mubr.msk.f32.mxu1 %vm5199_vm10, %v11992_v35  ;;  %8137 = vmatprep.mubr.msk.f32.mxu0 %vm5199_vm10, %v11992_v35 }
 0xe5a   :  { %v12000_v45 = vpop.f32.mrf.mxu0  ;;  %6513 = vmatmul.mubr.f32.gmra.mxu1 %v11964_v52  ;;  %6759 = vmatmul.mubr.f32.gmra.mxu0 %v11964_v52 }
 0xe5b   :  { %6885 = vmatpush2.msra.mxu1 %v6835_v24 }
 0xe5c   :  { %v6069_v47 = vpop.f32.mrf.mxu0  ;;  %v12004_v3 = vld [vmem:[#allocation4 + $0x158] sm:$0xff]  ;;  %6886 = vmatprep.subr.mxu1 %v12871_v11 }
 0xe5d   :  { %6155 = vst.msk [vmem:[#allocation4 + $0x178] sm:$0xff] %vm5199_vm10, %v6069_v47  ;;  %8108 = vmatprep.mubr.msk.f32.mxu1 %vm5199_vm10, %v12004_v3  ;;  %8138 = vmatprep.mubr.msk.f32.mxu0 %vm5199_vm10, %v12004_v3  ;;  %v6830_v47 = vld [vmem:[#allocation17 + $0x280] sm:$0xff] }
 0xe5e   :  { %v12012_v63 = vpop.f32.mrf.mxu0  ;;  %6518 = vmatmul.mubr.f32.gmra.mxu1 %v11976_v6  ;;  %6764 = vmatmul.mubr.f32.gmra.mxu0 %v11976_v6 }
 0xe5f   :  { %6887 = vmatpush2.msra.mxu1 %v6834_v40 }
 0xe60   :  { %v6075_v16 = vpop.f32.mrf.mxu0  ;;  %v12016_v46 = vld [vmem:[#allocation4 + $0x168] sm:$0xff]  ;;  %6888 = vmatprep.subr.mxu1 %v12871_v11 }
 0xe61   :  { %6157 = vst.msk [vmem:[#allocation4 + $0x188] sm:$0xff] %vm5199_vm10, %v6075_v16  ;;  %8109 = vmatprep.mubr.msk.f32.mxu1 %vm5199_vm10, %v12016_v46  ;;  %8139 = vmatprep.mubr.msk.f32.mxu0 %vm5199_vm10, %v12016_v46 }
 0xe62   :  { %v12024_v51 = vpop.f32.mrf.mxu0  ;;  %6523 = vmatmul.mubr.f32.gmra.mxu1 %v11988_v49  ;;  %6769 = vmatmul.mubr.f32.gmra.mxu0 %v11988_v49 }
 0xe63   :  { %6889 = vmatpush2.msra.mxu1 %v6833_v43 }
 0xe64   :  { %v6081_v33 = vpop.f32.mrf.mxu0  ;;  %v12028_v0 = vld [vmem:[#allocation4 + $0x178] sm:$0xff]  ;;  %6890 = vmatprep.subr.mxu1 %v12871_v11 }
 0xe65   :  { %6159 = vst.msk [vmem:[#allocation4 + $0x198] sm:$0xff] %vm5199_vm10, %v6081_v33  ;;  %8110 = vmatprep.mubr.msk.f32.mxu1 %vm5199_vm10, %v12028_v0  ;;  %8140 = vmatprep.mubr.msk.f32.mxu0 %vm5199_vm10, %v12028_v0  ;;  %v6829_v33 = vld [vmem:[#allocation17 + $0x278] sm:$0xff] }
 0xe66   :  { %v12036_v34 = vpop.f32.mrf.mxu0  ;;  %6528 = vmatmul.mubr.f32.gmra.mxu1 %v12000_v45  ;;  %6774 = vmatmul.mubr.f32.gmra.mxu0 %v12000_v45 }
 0xe67   :  { %6891 = vmatpush2.msra.mxu1 %v6832_v62 }
 0xe68   :  { %v6087_v39 = vpop.f32.mrf.mxu0  ;;  %v12040_v26 = vld [vmem:[#allocation4 + $0x188] sm:$0xff]  ;;  %6892 = vmatprep.subr.mxu1 %v12871_v11 }
 0xe69   :  { %6161 = vst.msk [vmem:[#allocation4 + $0x1a8] sm:$0xff] %vm5199_vm10, %v6087_v39  ;;  %8111 = vmatprep.mubr.msk.f32.mxu1 %vm5199_vm10, %v12040_v26  ;;  %8141 = vmatprep.mubr.msk.f32.mxu0 %vm5199_vm10, %v12040_v26 }
 0xe6a   :  { %v12048_v13 = vpop.f32.mrf.mxu0  ;;  %6533 = vmatmul.mubr.f32.gmra.mxu1 %v12012_v63  ;;  %6779 = vmatmul.mubr.f32.gmra.mxu0 %v12012_v63 }
 0xe6b   :  { %6893 = vmatpush2.msra.mxu1 %v6831_v42 }
 0xe6c   :  { %v6093_v15 = vpop.f32.mrf.mxu0  ;;  %v12052_v24 = vld [vmem:[#allocation4 + $0x198] sm:$0xff]  ;;  %6894 = vmatprep.subr.mxu1 %v12871_v11 }
 0xe6d   :  { %6163 = vst.msk [vmem:[#allocation4 + $0x1b8] sm:$0xff] %vm5199_vm10, %v6093_v15  ;;  %8112 = vmatprep.mubr.msk.f32.mxu1 %vm5199_vm10, %v12052_v24  ;;  %8142 = vmatprep.mubr.msk.f32.mxu0 %vm5199_vm10, %v12052_v24  ;;  %v6828_v15 = vld [vmem:[#allocation17 + $0x270] sm:$0xff] }
 0xe6e   :  { %v12060_v40 = vpop.f32.mrf.mxu0  ;;  %6538 = vmatmul.mubr.f32.gmra.mxu1 %v12024_v51  ;;  %6784 = vmatmul.mubr.f32.gmra.mxu0 %v12024_v51 }
 0xe6f   :  { %6895 = vmatpush2.msra.mxu1 %v6830_v47 }
 0xe70   :  { %v6099_v16 = vpop.f32.mrf.mxu0  ;;  %v12064_v43 = vld [vmem:[#allocation4 + $0x1a8] sm:$0xff]  ;;  %6896 = vmatprep.subr.mxu1 %v12871_v11 }
 0xe71   :  { %6165 = vst.msk [vmem:[#allocation4 + $0x1c8] sm:$0xff] %vm5199_vm10, %v6099_v16  ;;  %8113 = vmatprep.mubr.msk.f32.mxu1 %vm5199_vm10, %v12064_v43  ;;  %8143 = vmatprep.mubr.msk.f32.mxu0 %vm5199_vm10, %v12064_v43  ;;  %v6827_v16 = vld [vmem:[#allocation17 + $0x268] sm:$0xff] }
 0xe72   :  { %v12072_v62 = vpop.f32.mrf.mxu0  ;;  %6543 = vmatmul.mubr.f32.gmra.mxu1 %v12036_v34  ;;  %6789 = vmatmul.mubr.f32.gmra.mxu0 %v12036_v34 }
 0xe73   :  { %6897 = vmatpush2.msra.mxu1 %v6829_v33 }
 0xe74   :  { %v6105_v39 = vpop.f32.mrf.mxu0  ;;  %v12076_v42 = vld [vmem:[#allocation4 + $0x1b8] sm:$0xff]  ;;  %6898 = vmatprep.subr.mxu1 %v12871_v11 }
 0xe75   :  { %6167 = vst.msk [vmem:[#allocation4 + $0x1d8] sm:$0xff] %vm5199_vm10, %v6105_v39  ;;  %8114 = vmatprep.mubr.msk.f32.mxu1 %vm5199_vm10, %v12076_v42  ;;  %8144 = vmatprep.mubr.msk.f32.mxu0 %vm5199_vm10, %v12076_v42  ;;  %v6826_v39 = vld [vmem:[#allocation17 + $0x260] sm:$0xff] }
 0xe76   :  { %6548 = vmatmul.mubr.f32.gmra.mxu1 %v12048_v13  ;;  %6794 = vmatmul.mubr.f32.gmra.mxu0 %v12048_v13 }
 0xe77   :  { %6899 = vmatpush2.msra.mxu1 %v6828_v15 }
 0xe78   :  { %v12086_v47 = vld [vmem:[#allocation4 + $0x1c8] sm:$0xff]  ;;  %6900 = vmatprep.subr.mxu1 %v12871_v11 }
 0xe79   :  { %8115 = vmatprep.mubr.msk.f32.mxu1 %vm5199_vm10, %v12086_v47  ;;  %8145 = vmatprep.mubr.msk.f32.mxu0 %vm5199_vm10, %v12086_v47 }
 0xe7a   :  { %6553 = vmatmul.mubr.f32.gmra.mxu1 %v12060_v40  ;;  %6799 = vmatmul.mubr.f32.gmra.mxu0 %v12060_v40 }
 0xe7b   :  { %6901 = vmatpush2.msra.mxu1 %v6827_v16 }
 0xe7c   :  { %v12095_v33 = vld [vmem:[#allocation4 + $0x1d8] sm:$0xff]  ;;  %6902 = vmatprep.subr.mxu1 %v12871_v11 }
 0xe7d   :  { %8116 = vmatprep.mubr.msk.f32.mxu1 %vm5199_vm10, %v12095_v33  ;;  %8146 = vmatprep.mubr.msk.f32.mxu0 %vm5199_vm10, %v12095_v33 }
 0xe7e   :  { %6558 = vmatmul.mubr.f32.gmra.mxu1 %v12072_v62  ;;  %6804 = vmatmul.mubr.f32.gmra.mxu0 %v12072_v62 }
 0xe7f   :  { %8147 = vmatprep.mubr.msk.f32.mxu1 %vm5199_vm10, %v11753_v22  ;;  %6903 = vmatpush2.msra.mxu1 %v6826_v39 }
 0xe82   :  { %6905 = vmatmul.mubr.f32.vlgmr.msra.gmra.mxu1 %v11745_v50 }
 0xe83   :  { %8148 = vmatprep.mubr.msk.f32.mxu1 %vm5199_vm10, %v11764_v2 }
 0xe86   :  { %6910 = vmatmul.mubr.f32.gmra.mxu1 %v11748_v56 }
 0xe87   :  { %8149 = vmatprep.mubr.msk.f32.mxu1 %vm5199_vm10, %v11776_v36 }
 0xe8a   :  { %6915 = vmatmul.mubr.f32.gmra.mxu1 %v11751_v20 }
 0xe8b   :  { %8150 = vmatprep.mubr.msk.f32.mxu1 %vm5199_vm10, %v11788_v30 }
 0xe8e   :  { %6920 = vmatmul.mubr.f32.gmra.mxu1 %v11760_v1 }
 0xe8f   :  { %8151 = vmatprep.mubr.msk.f32.mxu1 %vm5199_vm10, %v11800_v38 }
 0xe92   :  { %6925 = vmatmul.mubr.f32.gmra.mxu1 %v11772_v48 }
 0xe93   :  { %8152 = vmatprep.mubr.msk.f32.mxu1 %vm5199_vm10, %v11812_v9 }
 0xe96   :  { %6930 = vmatmul.mubr.f32.gmra.mxu1 %v11784_v59 }
 0xe97   :  { %8153 = vmatprep.mubr.msk.f32.mxu1 %vm5199_vm10, %v11824_v29 }
 0xe9a   :  { %6935 = vmatmul.mubr.f32.gmra.mxu1 %v11796_v60 }
 0xe9b   :  { %8154 = vmatprep.mubr.msk.f32.mxu1 %vm5199_vm10, %v11836_v31 }
 0xe9e   :  { %6940 = vmatmul.mubr.f32.gmra.mxu1 %v11808_v7 }
 0xe9f   :  { %8155 = vmatprep.mubr.msk.f32.mxu1 %vm5199_vm10, %v11848_v61 }
 0xea2   :  { %6945 = vmatmul.mubr.f32.gmra.mxu1 %v11820_v5 }
 0xea3   :  { %8156 = vmatprep.mubr.msk.f32.mxu1 %vm5199_vm10, %v11860_v8 }
 0xea6   :  { %6950 = vmatmul.mubr.f32.gmra.mxu1 %v11832_v21 }
 0xea7   :  { %8157 = vmatprep.mubr.msk.f32.mxu1 %vm5199_vm10, %v11872_v58 }
 0xeaa   :  { %6955 = vmatmul.mubr.f32.gmra.mxu1 %v11844_v23 }
 0xeab   :  { %8158 = vmatprep.mubr.msk.f32.mxu1 %vm5199_vm10, %v11884_v12 }
 0xeae   :  { %6960 = vmatmul.mubr.f32.gmra.mxu1 %v11856_v4 }
 0xeaf   :  { %8159 = vmatprep.mubr.msk.f32.mxu1 %vm5199_vm10, %v11896_v54 }
 0xeb2   :  { %6965 = vmatmul.mubr.f32.gmra.mxu1 %v11868_v19 }
 0xeb3   :  { %8160 = vmatprep.mubr.msk.f32.mxu1 %vm5199_vm10, %v11908_v32 }
 0xeb6   :  { %6970 = vmatmul.mubr.f32.gmra.mxu1 %v11880_v53 }
 0xeb7   :  { %8161 = vmatprep.mubr.msk.f32.mxu1 %vm5199_vm10, %v11920_v55 }
 0xeba   :  { %6975 = vmatmul.mubr.f32.gmra.mxu1 %v11892_v14 }
 0xebb   :  { %8162 = vmatprep.mubr.msk.f32.mxu1 %vm5199_vm10, %v11932_v17 }
 0xebe   :  { %6980 = vmatmul.mubr.f32.gmra.mxu1 %v11904_v41 }
 0xebf   :  { %8163 = vmatprep.mubr.msk.f32.mxu1 %vm5199_vm10, %v11944_v10 }
 0xec2   :  { %6985 = vmatmul.mubr.f32.gmra.mxu1 %v11916_v27 }
 0xec3   :  { %8164 = vmatprep.mubr.msk.f32.mxu1 %vm5199_vm10, %v11956_v18 }
 0xec6   :  { %6990 = vmatmul.mubr.f32.gmra.mxu1 %v11928_v25 }
 0xec7   :  { %8165 = vmatprep.mubr.msk.f32.mxu1 %vm5199_vm10, %v11968_v44 }
 0xeca   :  { %v6414_v50 = vpop.f32.mrf.mxu1  ;;  %v6660_v56 = vpop.f32.mrf.mxu0  ;;  %6995 = vmatmul.mubr.f32.gmra.mxu1 %v11940_v37 }
 0xecb   :  { %8166 = vmatprep.mubr.msk.f32.mxu1 %vm5199_vm10, %v11980_v57  ;;  %v7085_v48 = vrot.slane %v6660_v56, 1 }
 0xecc   :  { %v6416_v20 = vpop.f32.mrf.mxu1  ;;  %v6662_v22 = vpop.f32.mrf.mxu0 }
 0xece   :  { %v6419_v1 = vpop.f32.mrf.mxu1  ;;  %v6665_v2 = vpop.f32.mrf.mxu0  ;;  %7000 = vmatmul.mubr.f32.gmra.mxu1 %v11952_v28 }
 0xecf   :  { %v7086_v36 = vrot.slane %v6665_v2, 1  ;;  %8167 = vmatprep.mubr.msk.f32.mxu1 %vm5199_vm10, %v11992_v35 }
 0xed0   :  { %v6421_v59 = vpop.f32.mrf.mxu1  ;;  %v6667_v30 = vpop.f32.mrf.mxu0 }
 0xed1   :  { %v7087_v60 = vsel %vm2843_vm5, %v7085_v48, %v7086_v36 }
 0xed2   :  { %v12167_v38 = vadd.f32 %v7087_v60, %v6414_v50  ;;  %v6424_v7 = vpop.f32.mrf.mxu1  ;;  %v6670_v9 = vpop.f32.mrf.mxu0  ;;  %7005 = vmatmul.mubr.f32.gmra.mxu1 %v11964_v52 }
 0xed3   :  { %v7088_v5 = vrot.slane %v6670_v9, 1  ;;  %8168 = vmatprep.mubr.msk.f32.mxu1 %vm5199_vm10, %v12004_v3 }
 0xed4   :  { %v6426_v29 = vpop.f32.mrf.mxu1  ;;  %v6672_v21 = vpop.f32.mrf.mxu0 }
 0xed5   :  { %v7089_v31 = vsel %vm2843_vm5, %v7086_v36, %v7088_v5 }
 0xed6   :  { %v12173_v23 = vadd.f32 %v7089_v31, %v6419_v1  ;;  %v6429_v61 = vpop.f32.mrf.mxu1  ;;  %v6675_v4 = vpop.f32.mrf.mxu0  ;;  %7010 = vmatmul.mubr.f32.gmra.mxu1 %v11976_v6 }
 0xed7   :  { %v7090_v8 = vrot.slane %v6675_v4, 1  ;;  %8169 = vmatprep.mubr.msk.f32.mxu1 %vm5199_vm10, %v12016_v46 }
 0xed8   :  { %v6431_v19 = vpop.f32.mrf.mxu1  ;;  %v6677_v58 = vpop.f32.mrf.mxu0 }
 0xed9   :  { %v7091_v53 = vsel %vm2843_vm5, %v7088_v5, %v7090_v8 }
 0xeda   :  { %v12179_v12 = vadd.f32 %v7091_v53, %v6424_v7  ;;  %v6434_v14 = vpop.f32.mrf.mxu1  ;;  %v6680_v54 = vpop.f32.mrf.mxu0  ;;  %7015 = vmatmul.mubr.f32.gmra.mxu1 %v11988_v49 }
 0xedb   :  { %v7092_v41 = vrot.slane %v6680_v54, 1  ;;  %8170 = vmatprep.mubr.msk.f32.mxu1 %vm5199_vm10, %v12028_v0 }
 0xedc   :  { %v6436_v32 = vpop.f32.mrf.mxu1  ;;  %v6682_v27 = vpop.f32.mrf.mxu0 }
 0xedd   :  { %v7093_v55 = vsel %vm2843_vm5, %v7090_v8, %v7092_v41 }
 0xede   :  { %v12185_v25 = vadd.f32 %v7093_v55, %v6429_v61  ;;  %v6439_v17 = vpop.f32.mrf.mxu1  ;;  %v6685_v37 = vpop.f32.mrf.mxu0  ;;  %7020 = vmatmul.mubr.f32.gmra.mxu1 %v12000_v45 }
 0xedf   :  { %v7094_v10 = vrot.slane %v6685_v37, 1  ;;  %8171 = vmatprep.mubr.msk.f32.mxu1 %vm5199_vm10, %v12040_v26 }
 0xee0   :  { %v6441_v28 = vpop.f32.mrf.mxu1  ;;  %v6687_v18 = vpop.f32.mrf.mxu0 }
 0xee1   :  { %v7095_v52 = vsel %vm2843_vm5, %v7092_v41, %v7094_v10 }
 0xee2   :  { %v12191_v44 = vadd.f32 %v7095_v52, %v6434_v14  ;;  %v6444_v6 = vpop.f32.mrf.mxu1  ;;  %v6690_v57 = vpop.f32.mrf.mxu0  ;;  %7025 = vmatmul.mubr.f32.gmra.mxu1 %v12012_v63 }
 0xee3   :  { %v7096_v49 = vrot.slane %v6690_v57, 1  ;;  %8172 = vmatprep.mubr.msk.f32.mxu1 %vm5199_vm10, %v12052_v24 }
 0xee4   :  { %v6446_v35 = vpop.f32.mrf.mxu1  ;;  %v6692_v45 = vpop.f32.mrf.mxu0 }
 0xee5   :  { %v7097_v3 = vsel %vm2843_vm5, %v7094_v10, %v7096_v49 }
 0xee6   :  { %v12197_v46 = vadd.f32 %v7097_v3, %v6439_v17  ;;  %v6449_v0 = vpop.f32.mrf.mxu1  ;;  %v6695_v26 = vpop.f32.mrf.mxu0  ;;  %7030 = vmatmul.mubr.f32.gmra.mxu1 %v12024_v51 }
 0xee7   :  { %v7098_v15 = vrot.slane %v6695_v26, 1  ;;  %8173 = vmatprep.mubr.msk.f32.mxu1 %vm5199_vm10, %v12064_v43 }
 0xee8   :  { %v6451_v16 = vpop.f32.mrf.mxu1  ;;  %v6697_v63 = vpop.f32.mrf.mxu0 }
 0xee9   :  { %v7099_v39 = vsel %vm2843_vm5, %v7096_v49, %v7098_v15 }
 0xeea   :  { %v12203_v50 = vadd.f32 %v7099_v39, %v6444_v6  ;;  %v6454_v24 = vpop.f32.mrf.mxu1  ;;  %v6700_v56 = vpop.f32.mrf.mxu0  ;;  %7035 = vmatmul.mubr.f32.gmra.mxu1 %v12036_v34 }
 0xeeb   :  { %v7100_v20 = vrot.slane %v6700_v56, 1  ;;  %8174 = vmatprep.mubr.msk.f32.mxu1 %vm5199_vm10, %v12076_v42 }
 0xeec   :  { %v6456_v22 = vpop.f32.mrf.mxu1  ;;  %v6702_v51 = vpop.f32.mrf.mxu0 }
 0xeed   :  { %v7101_v1 = vsel %vm2843_vm5, %v7098_v15, %v7100_v20 }
 0xeee   :  { %v12209_v2 = vadd.f32 %v7101_v1, %v6449_v0  ;;  %v6459_v43 = vpop.f32.mrf.mxu1  ;;  %v6705_v48 = vpop.f32.mrf.mxu0  ;;  %7040 = vmatmul.mubr.f32.gmra.mxu1 %v12048_v13 }
 0xeef   :  { %v7102_v36 = vrot.slane %v6705_v48, 1  ;;  %8175 = vmatprep.mubr.msk.f32.mxu1 %vm5199_vm10, %v12086_v47 }
 0xef0   :  { %v6461_v59 = vpop.f32.mrf.mxu1  ;;  %v6707_v34 = vpop.f32.mrf.mxu0 }
 0xef1   :  { %v7103_v30 = vsel %vm2843_vm5, %v7100_v20, %v7102_v36 }
 0xef2   :  { %v12215_v60 = vadd.f32 %v7103_v30, %v6454_v24  ;;  %v6464_v42 = vpop.f32.mrf.mxu1  ;;  %v6710_v7 = vpop.f32.mrf.mxu0  ;;  %7045 = vmatmul.mubr.f32.gmra.mxu1 %v12060_v40 }
 0xef3   :  { %v7104_v9 = vrot.slane %v6710_v7, 1  ;;  %8176 = vmatprep.mubr.msk.f32.mxu1 %vm5199_vm10, %v12095_v33 }
 0xef4   :  { %v6466_v5 = vpop.f32.mrf.mxu1  ;;  %v6712_v13 = vpop.f32.mrf.mxu0 }
 0xef5   :  { %v7105_v29 = vsel %vm2843_vm5, %v7102_v36, %v7104_v9 }
 0xef6   :  { %v12221_v21 = vadd.f32 %v7105_v29, %v6459_v43  ;;  %v6469_v47 = vpop.f32.mrf.mxu1  ;;  %v6715_v31 = vpop.f32.mrf.mxu0  ;;  %7050 = vmatmul.mubr.f32.gmra.mxu1 %v12072_v62 }
 0xef7   :  { %v7106_v61 = vrot.slane %v6715_v31, 1 }
 0xef8   :  { %v6471_v4 = vpop.f32.mrf.mxu1  ;;  %v6717_v8 = vpop.f32.mrf.mxu0 }
 0xef9   :  { %v7107_v19 = vsel %vm2843_vm5, %v7104_v9, %v7106_v61 }
 0xefa   :  { %v12225_v40 = vadd.f32 %v7107_v19, %v6464_v42  ;;  %v6474_v58 = vpop.f32.mrf.mxu1  ;;  %v6720_v53 = vpop.f32.mrf.mxu0 }
 0xefb   :  { %v7108_v33 = vrot.slane %v6720_v53, 1 }
 0xefc   :  { %v6476_v14 = vpop.f32.mrf.mxu1  ;;  %v6722_v54 = vpop.f32.mrf.mxu0 }
 0xefd   :  { %v7109_v41 = vsel %vm2843_vm5, %v7106_v61, %v7108_v33 }
 0xefe   :  { %v12228_v32 = vadd.f32 %v7109_v41, %v6469_v47  ;;  %v6479_v27 = vpop.f32.mrf.mxu1  ;;  %v6725_v55 = vpop.f32.mrf.mxu0 }
 0xeff   :  { %v7110_v17 = vrot.slane %v6725_v55, 1 }
 0xf00   :  { %v6481_v62 = vpop.f32.mrf.mxu1  ;;  %v6727_v37 = vpop.f32.mrf.mxu0 }
 0xf01   :  { %v7111_v10 = vsel %vm2843_vm5, %v7108_v33, %v7110_v17 }
 0xf02   :  { %v12231_v28 = vadd.f32 %v7111_v10, %v6474_v58  ;;  %v6484_v18 = vpop.f32.mrf.mxu1  ;;  %v6730_v52 = vpop.f32.mrf.mxu0 }
 0xf03   :  { %v7112_v6 = vrot.slane %v6730_v52, 1 }
 0xf04   :  { %v6486_v57 = vpop.f32.mrf.mxu1  ;;  %v6732_v49 = vpop.f32.mrf.mxu0 }
 0xf05   :  { %v7113_v35 = vsel %vm2843_vm5, %v7110_v17, %v7112_v6 }
 0xf06   :  { %v12234_v45 = vadd.f32 %v7113_v35, %v6479_v27  ;;  %v6489_v3 = vpop.f32.mrf.mxu1  ;;  %v6735_v0 = vpop.f32.mrf.mxu0 }
 0xf07   :  { %v7114_v26 = vrot.slane %v6735_v0, 1 }
 0xf08   :  { %v6491_v15 = vpop.f32.mrf.mxu1  ;;  %v6737_v16 = vpop.f32.mrf.mxu0 }
 0xf09   :  { %v7115_v63 = vsel %vm2843_vm5, %v7112_v6, %v7114_v26 }
 0xf0a   :  { %v12237_v39 = vadd.f32 %v7115_v63, %v6484_v18  ;;  %v6494_v24 = vpop.f32.mrf.mxu1  ;;  %v6740_v56 = vpop.f32.mrf.mxu0 }
 0xf0b   :  { %v7116_v20 = vrot.slane %v6740_v56, 1 }
 0xf0c   :  { %v6496_v22 = vpop.f32.mrf.mxu1  ;;  %v6742_v51 = vpop.f32.mrf.mxu0 }
 0xf0d   :  { %v7117_v1 = vsel %vm2843_vm5, %v7114_v26, %v7116_v20 }
 0xf0e   :  { %v12240_v43 = vadd.f32 %v7117_v1, %v6489_v3  ;;  %v6499_v48 = vpop.f32.mrf.mxu1  ;;  %v6745_v36 = vpop.f32.mrf.mxu0 }
 0xf0f   :  { %v7118_v59 = vrot.slane %v6745_v36, 1 }
 0xf10   :  { %v6501_v34 = vpop.f32.mrf.mxu1  ;;  %v6747_v30 = vpop.f32.mrf.mxu0 }
 0xf11   :  { %v7119_v42 = vsel %vm2843_vm5, %v7116_v20, %v7118_v59 }
 0xf12   :  { %v12243_v7 = vadd.f32 %v7119_v42, %v6494_v24  ;;  %v6504_v9 = vpop.f32.mrf.mxu1  ;;  %v6750_v5 = vpop.f32.mrf.mxu0 }
 0xf13   :  { %v7120_v13 = vrot.slane %v6750_v5, 1 }
 0xf14   :  { %v6506_v29 = vpop.f32.mrf.mxu1  ;;  %v6752_v47 = vpop.f32.mrf.mxu0 }
 0xf15   :  { %v7121_v31 = vsel %vm2843_vm5, %v7118_v59, %v7120_v13 }
 0xf16   :  { %v12246_v61 = vadd.f32 %v7121_v31, %v6499_v48  ;;  %v6509_v4 = vpop.f32.mrf.mxu1  ;;  %v6755_v8 = vpop.f32.mrf.mxu0 }
 0xf17   :  { %v7122_v19 = vrot.slane %v6755_v8, 1 }
 0xf18   :  { %v6511_v58 = vpop.f32.mrf.mxu1  ;;  %v6757_v53 = vpop.f32.mrf.mxu0 }
 0xf19   :  { %v7123_v33 = vsel %vm2843_vm5, %v7120_v13, %v7122_v19 }
 0xf1a   :  { %v12249_v14 = vadd.f32 %v7123_v33, %v6504_v9  ;;  %v6514_v54 = vpop.f32.mrf.mxu1  ;;  %v6760_v41 = vpop.f32.mrf.mxu0 }
 0xf1b   :  { %v7124_v27 = vrot.slane %v6760_v41, 1 }
 0xf1c   :  { %v6516_v55 = vpop.f32.mrf.mxu1  ;;  %v6762_v17 = vpop.f32.mrf.mxu0 }
 0xf1d   :  { %v7125_v62 = vsel %vm2843_vm5, %v7122_v19, %v7124_v27 }
 0xf1e   :  { %v12252_v37 = vadd.f32 %v7125_v62, %v6509_v4  ;;  %v6519_v10 = vpop.f32.mrf.mxu1  ;;  %v6765_v18 = vpop.f32.mrf.mxu0 }
 0xf1f   :  { %v7126_v52 = vrot.slane %v6765_v18, 1 }
 0xf20   :  { %v6521_v6 = vpop.f32.mrf.mxu1  ;;  %v6767_v57 = vpop.f32.mrf.mxu0 }
 0xf21   :  { %v7127_v49 = vsel %vm2843_vm5, %v7124_v27, %v7126_v52 }
 0xf22   :  { %v12255_v35 = vadd.f32 %v7127_v49, %v6514_v54  ;;  %v6524_v3 = vpop.f32.mrf.mxu1  ;;  %v6770_v0 = vpop.f32.mrf.mxu0 }
 0xf23   :  { %v7128_v26 = vrot.slane %v6770_v0, 1 }
 0xf24   :  { %v6526_v15 = vpop.f32.mrf.mxu1  ;;  %v6772_v16 = vpop.f32.mrf.mxu0 }
 0xf25   :  { %v7129_v63 = vsel %vm2843_vm5, %v7126_v52, %v7128_v26 }
 0xf26   :  { %v12258_v24 = vadd.f32 %v7129_v63, %v6519_v10  ;;  %v6529_v56 = vpop.f32.mrf.mxu1  ;;  %v6775_v20 = vpop.f32.mrf.mxu0 }
 0xf27   :  { %v7130_v22 = vrot.slane %v6775_v20, 1 }
 0xf28   :  { %v6531_v51 = vpop.f32.mrf.mxu1  ;;  %v6777_v1 = vpop.f32.mrf.mxu0 }
 0xf29   :  { %v7131_v48 = vsel %vm2843_vm5, %v7128_v26, %v7130_v22 }
 0xf2a   :  { %v12261_v36 = vadd.f32 %v7131_v48, %v6524_v3  ;;  %v6534_v59 = vpop.f32.mrf.mxu1  ;;  %v6780_v34 = vpop.f32.mrf.mxu0 }
 0xf2b   :  { %v7132_v30 = vrot.slane %v6780_v34, 1 }
 0xf2c   :  { %v6536_v42 = vpop.f32.mrf.mxu1  ;;  %v6782_v9 = vpop.f32.mrf.mxu0 }
 0xf2d   :  { %v7133_v5 = vsel %vm2843_vm5, %v7130_v22, %v7132_v30 }
 0xf2e   :  { %v12264_v13 = vadd.f32 %v7133_v5, %v6529_v56  ;;  %v6539_v29 = vpop.f32.mrf.mxu1  ;;  %v6785_v47 = vpop.f32.mrf.mxu0 }
 0xf2f   :  { %v7134_v31 = vrot.slane %v6785_v47, 1 }
 0xf30   :  { %v6541_v4 = vpop.f32.mrf.mxu1  ;;  %v6787_v8 = vpop.f32.mrf.mxu0 }
 0xf31   :  { %v7135_v19 = vsel %vm2843_vm5, %v7132_v30, %v7134_v31 }
 0xf32   :  { %v12267_v58 = vadd.f32 %v7135_v19, %v6534_v59  ;;  %v6544_v53 = vpop.f32.mrf.mxu1  ;;  %v6790_v33 = vpop.f32.mrf.mxu0 }
 0xf33   :  { %v7136_v54 = vrot.slane %v6790_v33, 1 }
 0xf34   :  { %v6546_v41 = vpop.f32.mrf.mxu1  ;;  %v6792_v27 = vpop.f32.mrf.mxu0 }
 0xf35   :  { %v7137_v55 = vsel %vm2843_vm5, %v7134_v31, %v7136_v54 }
 0xf36   :  { %v12270_v17 = vadd.f32 %v7137_v55, %v6539_v29  ;;  %v6549_v62 = vpop.f32.mrf.mxu1  ;;  %v6795_v10 = vpop.f32.mrf.mxu0 }
 0xf37   :  { %v7138_v18 = vrot.slane %v6795_v10, 1 }
 0xf38   :  { %v6551_v52 = vpop.f32.mrf.mxu1  ;;  %v6797_v6 = vpop.f32.mrf.mxu0 }
 0xf39   :  { %v7139_v57 = vsel %vm2843_vm5, %v7136_v54, %v7138_v18 }
 0xf3a   :  { %v12273_v49 = vadd.f32 %v7139_v57, %v6544_v53  ;;  %v6554_v3 = vpop.f32.mrf.mxu1  ;;  %v6800_v0 = vpop.f32.mrf.mxu0 }
 0xf3b   :  { %v7140_v26 = vrot.slane %v6800_v0, 1 }
 0xf3c   :  { %v6556_v15 = vpop.f32.mrf.mxu1  ;;  %v6802_v16 = vpop.f32.mrf.mxu0 }
 0xf3d   :  { %v7141_v63 = vsel %vm2843_vm5, %v7138_v18, %v7140_v26 }
 0xf3e   :  { %v12276_v56 = vadd.f32 %v7141_v63, %v6549_v62  ;;  %v6559_v20 = vpop.f32.mrf.mxu1  ;;  %v6805_v22 = vpop.f32.mrf.mxu0 }
 0xf3f   :  { %v7142_v51 = vrot.slane %v6805_v22, 1 }
 0xf40   :  { %v6561_v1 = vpop.f32.mrf.mxu1  ;;  %v6807_v48 = vpop.f32.mrf.mxu0 }
 0xf41   :  { %v7143_v59 = vsel %vm2843_vm5, %v7140_v26, %v7142_v51  ;;  %v12279_v34 = vadd.f32 %v7142_v51, %v6559_v20 }
 0xf42   :  { %v12281_v30 = vadd.f32 %v7143_v59, %v6554_v3  ;;  %v6906_v42 = vpop.f32.mrf.mxu1  ;;  %v7354_v3 = vld [vmem:[#allocation24 + $0x8] sm:$0xff] }
 0xf43   :  { %v7234_v29 = vrot.slane %v6906_v42, 2  ;;  %8179 = vmatprep.mubr.msk.f32.mxu0 %vm7419_vm11, %v7354_v3 }
 0xf44   :  { %v6908_v9 = vpop.f32.mrf.mxu1 }
 0xf46   :  { %v6911_v5 = vpop.f32.mrf.mxu1 }
 0xf47   :  { %v7235_v47 = vrot.slane %v6911_v5, 2 }
 0xf48   :  { %v6913_v31 = vpop.f32.mrf.mxu1 }
 0xf49   :  { %v7236_v4 = vsel %vm2932_vm6, %v7234_v29, %v7235_v47 }
 0xf4a   :  { %v12285_v8 = vadd.f32 %v7236_v4, %v12167_v38  ;;  %v6916_v19 = vpop.f32.mrf.mxu1 }
 0xf4b   :  { %v7237_v53 = vrot.slane %v6916_v19, 2 }
 0xf4c   :  { %v6918_v33 = vpop.f32.mrf.mxu1 }
 0xf4d   :  { %v7238_v54 = vsel %vm2932_vm6, %v7235_v47, %v7237_v53 }
 0xf4e   :  { %v12289_v41 = vadd.f32 %v7238_v54, %v12173_v23  ;;  %v6921_v27 = vpop.f32.mrf.mxu1 }
 0xf4f   :  { %v7239_v55 = vrot.slane %v6921_v27, 2 }
 0xf50   :  { %v6923_v62 = vpop.f32.mrf.mxu1 }
 0xf51   :  { %v7240_v10 = vsel %vm2932_vm6, %v7237_v53, %v7239_v55 }
 0xf52   :  { %v12293_v18 = vadd.f32 %v7240_v10, %v12179_v12  ;;  %v6926_v52 = vpop.f32.mrf.mxu1 }
 0xf53   :  { %v7241_v6 = vrot.slane %v6926_v52, 2 }
 0xf54   :  { %v6928_v38 = vpop.f32.mrf.mxu1 }
 0xf55   :  { %v7242_v57 = vsel %vm2932_vm6, %v7239_v55, %v7241_v6 }
 0xf56   :  { %v12297_v0 = vadd.f32 %v7242_v57, %v12185_v25  ;;  %v6931_v23 = vpop.f32.mrf.mxu1 }
 0xf57   :  { %v7243_v26 = vrot.slane %v6931_v23, 2 }
 0xf58   :  { %v6933_v15 = vpop.f32.mrf.mxu1 }
 0xf59   :  { %v7244_v16 = vsel %vm2932_vm6, %v7241_v6, %v7243_v26 }
 0xf5a   :  { %v12302_v12 = vadd.f32 %v7244_v16, %v12191_v44  ;;  %v12304_v63 = vpop.f32.mrf.mxu1 }
 0xf5b   :  { %v7245_v20 = vrot.slane %v12304_v63, 2  ;;  %v8177_v63 = vld [vmem:[#allocation5] ss:$0 sm:$0xff] }
 0xf5c   :  { %v6938_v22 = vpop.f32.mrf.mxu1 }
 0xf5d   :  { %v7246_v25 = vsel %vm2932_vm6, %v7243_v26, %v7245_v20 }
 0xf5e   :  { %v12311_v51 = vadd.f32 %v7246_v25, %v12197_v46  ;;  %v12313_v1 = vpop.f32.mrf.mxu1 }
 0xf60   :  { %v6943_v48 = vpop.f32.mrf.mxu1 }
 0xf62   :  { %v12315_v59 = vpop.f32.mrf.mxu1 }
 0xf64   :  { %v6948_v42 = vpop.f32.mrf.mxu1 }
 0xf66   :  { %v12317_v44 = vpop.f32.mrf.mxu1 }
 0xf68   :  { %v6953_v9 = vpop.f32.mrf.mxu1 }
 0xf6a   :  { %v6956_v5 = vpop.f32.mrf.mxu1 }
 0xf6c   :  { %v6958_v29 = vpop.f32.mrf.mxu1 }
 0xf6e   :  { %v6961_v47 = vpop.f32.mrf.mxu1 }
 0xf6f   :  { %v7255_v9 = vrot.slane %v6961_v47, 2 }
 0xf70   :  { %v6963_v31 = vpop.f32.mrf.mxu1 }
 0xf72   :  { %v6966_v4 = vpop.f32.mrf.mxu1 }
 0xf73   :  { %v7257_v16 = vrot.slane %v6966_v4, 2 }
 0xf74   :  { %v6968_v19 = vpop.f32.mrf.mxu1 }
 0xf76   :  { %v6971_v53 = vpop.f32.mrf.mxu1 }
 0xf77   :  { %v7259_v57 = vrot.slane %v6971_v53, 2  ;;  %v7253_v53 = vrot.slane %v6956_v5, 2 }
 0xf78   :  { %v6973_v33 = vpop.f32.mrf.mxu1 }
 0xf79   :  { %v7260_v29 = vsel %vm2932_vm6, %v7257_v16, %v7259_v57  ;;  %v7258_v33 = vsel %vm2932_vm6, %v7255_v9, %v7257_v16 }
 0xf7a   :  { %v6976_v54 = vpop.f32.mrf.mxu1  ;;  %v7335_v47 = vadd.f32 %v7260_v29, %v12231_v28  ;;  %v7249_v28 = vrot.slane %v12315_v59, 2 }
 0xf7b   :  { %v7261_v52 = vrot.slane %v6976_v54, 2 }
 0xf7c   :  { %v6978_v46 = vpop.f32.mrf.mxu1 }
 0xf7d   :  { %v7262_v22 = vsel %vm2932_vm6, %v7259_v57, %v7261_v52  ;;  %v7251_v46 = vrot.slane %v12317_v44, 2 }
 0xf7e   :  { %v6981_v27 = vpop.f32.mrf.mxu1  ;;  %v7336_v19 = vadd.f32 %v7262_v22, %v12234_v45 }
 0xf7f   :  { %v7263_v62 = vrot.slane %v6981_v27, 2  ;;  %v7256_v27 = vsel %vm2932_vm6, %v7253_v53, %v7255_v9 }
 0xf80   :  { %v6983_v55 = vpop.f32.mrf.mxu1 }
 0xf81   :  { %v7264_v3 = vsel %vm2932_vm6, %v7261_v52, %v7263_v62 }
 0xf82   :  { %v6986_v10 = vpop.f32.mrf.mxu1  ;;  %v7337_v48 = vadd.f32 %v7264_v3, %v12237_v39 }
 0xf83   :  { %v7265_v6 = vrot.slane %v6986_v10, 2  ;;  %v7333_v10 = vadd.f32 %v7256_v27, %v12225_v40 }
 0xf84   :  { %v6988_v38 = vpop.f32.mrf.mxu1 }
 0xf85   :  { %v7266_v23 = vsel %vm2932_vm6, %v7263_v62, %v7265_v6  ;;  %v7254_v62 = vsel %vm2932_vm6, %v7251_v46, %v7253_v53 }
 0xf86   :  { %v7338_v26 = vadd.f32 %v7266_v23, %v12240_v43  ;;  %v6991_v15 = vpop.f32.mrf.mxu1  ;;  %v7332_v59 = vadd.f32 %v7254_v62, %v12221_v21 }
 0xf87   :  { %v7267_v25 = vrot.slane %v6991_v15, 2 }
 0xf88   :  { %v6993_v42 = vpop.f32.mrf.mxu1  ;;  %7508 = vmatpush1.msra.mxu0 %v7338_v26 }
 0xf89   :  { %v7268_v31 = vsel %vm2932_vm6, %v7265_v6, %v7267_v25  ;;  %7509 = vmatprep.subr.mxu0 %v12871_v11 }
 0xf8a   :  { %v12329_v43 = vadd.f32 %v7268_v31, %v12243_v7  ;;  %v6996_v4 = vpop.f32.mrf.mxu1  ;;  %7510 = vmatpush1.msra.mxu0 %v7337_v48  ;;  %v7334_v7 = vadd.f32 %v7258_v33, %v12228_v32  ;;  %v7247_v32 = vrot.slane %v12313_v1, 2 }
 0xf8b   :  { %v7269_v39 = vrot.slane %v6996_v4, 2  ;;  %7511 = vmatprep.subr.mxu0 %v12871_v11 }
 0xf8c   :  { %v6998_v54 = vpop.f32.mrf.mxu1  ;;  %7512 = vmatpush1.msra.mxu0 %v7336_v19  ;;  %v7250_v40 = vsel %vm2932_vm6, %v7247_v32, %v7249_v28  ;;  %v7248_v23 = vsel %vm2932_vm6, %v7245_v20, %v7247_v32  ;;  %v9070_v20 = vmov 0  }
 0xf8d   :  { %v7270_v45 = vsel %vm2932_vm6, %v7267_v25, %v7269_v39  ;;  %7513 = vmatprep.subr.mxu0 %v12871_v11  ;;  %v7330_v21 = vadd.f32 %v7250_v40, %v12209_v2  ;;  %v7329_v26 = vadd.f32 %v7248_v23, %v12203_v50  ;;  %8611 = vset.pattern.permute.xlu0 %v9070_v20  ;;  %v7363_v23 = vld [vmem:[#allocation24 + $0x50] sm:$0xff]  ;;  %v7372_v20 = vld [vmem:[#allocation24 + $0x98] sm:$0xff] }
 0xf8e   :  { %v12340_v5 = vadd.f32 %v7270_v45, %v12246_v61  ;;  %v12342_v55 = vpop.f32.mrf.mxu1  ;;  %7514 = vmatpush1.msra.mxu0 %v7335_v47  ;;  %v7252_v61 = vsel %vm2932_vm6, %v7249_v28, %v7251_v46  ;;  %7416 = vperm.xlu0 %8611, %v8177_v63   ;;  %v7369_v63 = vld [vmem:[#allocation24 + $0x80] sm:$0xff] }
 0xf8f   :  { %v7271_v44 = vrot.slane %v12342_v55, 2  ;;  %7515 = vmatprep.subr.mxu0 %v12871_v11  ;;  %v7331_v1 = vadd.f32 %v7252_v61, %v12215_v60  ;;  %v7358_v55 = vld [vmem:[#allocation24 + $0x28] sm:$0xff] }
 0xf90   :  { %v7003_v52 = vpop.f32.mrf.mxu1  ;;  %7516 = vmatpush1.msra.mxu0 %v7334_v7 }
 0xf91   :  { %v7272_v6 = vsel %vm2932_vm6, %v7269_v39, %v7271_v44  ;;  %7517 = vmatprep.subr.mxu0 %v12871_v11 }
 0xf92   :  { %v12357_v38 = vadd.f32 %v7272_v6, %v12249_v14  ;;  %v12359_v57 = vpop.f32.mrf.mxu1  ;;  %7518 = vmatpush1.msra.mxu0 %v7333_v10 }
 0xf93   :  { %7519 = vmatprep.subr.mxu0 %v12871_v11 }
 0xf94   :  { %v7008_v3 = vpop.f32.mrf.mxu1  ;;  %7520 = vmatpush1.msra.mxu0 %v7332_v59 }
 0xf95   :  { %7521 = vmatprep.subr.mxu0 %v12871_v11  ;;  %v7362_v3 = vld [vmem:[#allocation24 + $0x48] sm:$0xff] }
 0xf96   :  { %v12369_v14 = vpop.f32.mrf.mxu1  ;;  %7522 = vmatpush1.msra.mxu0 %v7331_v1 }
 0xf97   :  { %7523 = vmatprep.subr.mxu0 %v12871_v11 }
 0xf98   :  { %v7013_v15 = vpop.f32.mrf.mxu1  ;;  %7524 = vmatpush1.msra.mxu0 %v7330_v21  ;;  %v7366_v21 = vld [vmem:[#allocation24 + $0x68] sm:$0xff] }
 0xf99   :  { %7525 = vmatprep.subr.mxu0 %v12871_v11  ;;  %v7367_v15 = vld [vmem:[#allocation24 + $0x70] sm:$0xff] }
 0xf9a   :  { %v12374_v60 = vpop.f32.mrf.mxu1  ;;  %7526 = vmatpush1.msra.mxu0 %v7329_v26  ;;  %v7368_v26 = vld [vmem:[#allocation24 + $0x78] sm:$0xff] }
 0xf9b   :  { %7527 = vmatprep.subr.mxu0 %v12871_v11  ;;  %v7277_v52 = vrot.slane %v12374_v60, 2  ;;  %v7370_v60 = vld [vmem:[#allocation24 + $0x88] sm:$0xff] }
 0xf9c   :  { %v7018_v2 = vpop.f32.mrf.mxu1  ;;  %7528 = vmatpush1.msra.mxu0 %v12311_v51 }
 0xf9d   :  { %7529 = vmatprep.subr.mxu0 %v12871_v11  ;;  %v7371_v2 = vld [vmem:[#allocation24 + $0x90] sm:$0xff] }
 0xf9e   :  { %v7021_v16 = vpop.f32.mrf.mxu1  ;;  %7530 = vmatpush1.msra.mxu0 %v12302_v12 }
 0xf9f   :  { %7531 = vmatprep.subr.mxu0 %v12871_v11  ;;  %v7279_v62 = vrot.slane %v7021_v16, 2  ;;  %v7374_v16 = vld [vmem:[#allocation24 + $0xa8] sm:$0xff] }
 0xfa0   :  { %v7023_v50 = vpop.f32.mrf.mxu1  ;;  %7532 = vmatpush1.msra.mxu0 %v12297_v0 }
 0xfa1   :  { %7533 = vmatprep.subr.mxu0 %v12871_v11  ;;  %v7280_v61 = vsel %vm2932_vm6, %v7277_v52, %v7279_v62  ;;  %v7373_v50 = vld [vmem:[#allocation24 + $0xa0] sm:$0xff] }
 0xfa2   :  { %v7026_v22 = vpop.f32.mrf.mxu1  ;;  %7534 = vmatpush1.msra.mxu0 %v12293_v18  ;;  %v7345_v40 = vadd.f32 %v7280_v61, %v12261_v36  ;;  %v7407_v61 = vld [vmem:[#allocation24 + $0x1b0] sm:$0xff] }
 0xfa3   :  { %7535 = vmatprep.subr.mxu0 %v12871_v11  ;;  %v7281_v7 = vrot.slane %v7026_v22, 2  ;;  %v7376_v22 = vld [vmem:[#allocation24 + $0xb8] sm:$0xff] }
 0xfa4   :  { %v7028_v25 = vpop.f32.mrf.mxu1  ;;  %7536 = vmatpush1.msra.mxu0 %v12289_v41 }
 0xfa5   :  { %7537 = vmatprep.subr.mxu0 %v12871_v11  ;;  %v7375_v25 = vld [vmem:[#allocation24 + $0xb0] sm:$0xff] }
 0xfa6   :  { %v7031_v51 = vpop.f32.mrf.mxu1  ;;  %7538 = vmatpush1.msra.mxu0 %v12285_v8 }
 0xfa7   :  { %7543 = vmatprep.subr.mxu0 %v12871_v11  ;;  %v7283_v46 = vrot.slane %v7031_v51, 2  ;;  %v7378_v51 = vld [vmem:[#allocation24 + $0xc8] sm:$0xff] }
 0xfa8   :  { %v7033_v12 = vpop.f32.mrf.mxu1 }
 0xfa9   :  { %v7377_v12 = vld [vmem:[#allocation24 + $0xc0] sm:$0xff] }
 0xfaa   :  { %v7036_v48 = vpop.f32.mrf.mxu1 }
 0xfab   :  { %v7285_v47 = vrot.slane %v7036_v48, 2  ;;  %v7380_v48 = vld [vmem:[#allocation24 + $0xd8] sm:$0xff] }
 0xfac   :  { %v7038_v0 = vpop.f32.mrf.mxu1 }
 0xfad   :  { %v7286_v28 = vsel %vm2932_vm6, %v7283_v46, %v7285_v47  ;;  %v7379_v0 = vld [vmem:[#allocation24 + $0xd0] sm:$0xff] }
 0xfae   :  { %v7041_v42 = vpop.f32.mrf.mxu1  ;;  %v7348_v10 = vadd.f32 %v7286_v28, %v12270_v17  ;;  %v7273_v17 = vrot.slane %v12359_v57, 2  ;;  %v7400_v28 = vld [vmem:[#allocation24 + $0x178] sm:$0xff] }
 0xfaf   :  { %v7287_v53 = vrot.slane %v7041_v42, 2  ;;  %v7382_v42 = vld [vmem:[#allocation24 + $0xe8] sm:$0xff] }
 0xfb0   :  { %v7043_v9 = vpop.f32.mrf.mxu1 }
 0xfb1   :  { %v7288_v27 = vsel %vm2932_vm6, %v7285_v47, %v7287_v53  ;;  %v7381_v9 = vld [vmem:[#allocation24 + $0xe0] sm:$0xff]  ;;  %v7391_v47 = vld [vmem:[#allocation24 + $0x130] sm:$0xff] }
 0xfb2   :  { %v7046_v29 = vpop.f32.mrf.mxu1 }
 0xfb3   :  { %v7289_v18 = vrot.slane %v7046_v29, 2  ;;  %v7384_v29 = vld [vmem:[#allocation24 + $0xf8] sm:$0xff] }
 0xfb4   :  { %v7048_v31 = vpop.f32.mrf.mxu1 }
 0xfb5   :  { %v7290_v8 = vsel %vm2932_vm6, %v7287_v53, %v7289_v18  ;;  %v7383_v31 = vld [vmem:[#allocation24 + $0xf0] sm:$0xff] }
 0xfb6   :  { %v7051_v19 = vpop.f32.mrf.mxu1  ;;  %v7350_v45 = vadd.f32 %v7290_v8, %v12276_v56  ;;  %v7282_v56 = vsel %vm2932_vm6, %v7279_v62, %v7281_v7  ;;  %v7387_v53 = vld [vmem:[#allocation24 + $0x110] sm:$0xff]  ;;  %v7394_v8 = vld [vmem:[#allocation24 + $0x148] sm:$0xff] }
 0xfb7   :  { %v7291_v4 = vrot.slane %v7051_v19, 2  ;;  %v7346_v6 = vadd.f32 %v7282_v56, %v12264_v13  ;;  %v7274_v13 = vsel %vm2932_vm6, %v7271_v44, %v7273_v17  ;;  %v7357_v44 = vld [vmem:[#allocation24 + $0x20] sm:$0xff]  ;;  %v7402_v62 = vld [vmem:[#allocation24 + $0x188] sm:$0xff] }
 0xfb8   :  { %v7053_v33 = vpop.f32.mrf.mxu1  ;;  %v7342_v36 = vadd.f32 %v7274_v13, %v12252_v37  ;;  %v7355_v37 = vld [vmem:[#allocation24 + $0x10] sm:$0xff]  ;;  %v7385_v19 = vld [vmem:[#allocation24 + $0x100] sm:$0xff]  ;;  %v7406_v56 = vld [vmem:[#allocation24 + $0x1a8] sm:$0xff] }
 0xfb9   :  { %v7292_v41 = vsel %vm2932_vm6, %v7289_v18, %v7291_v4  ;;  %v7352_v39 = vadd.f32 %v7291_v4, %v12279_v34  ;;  %v7349_v34 = vadd.f32 %v7288_v27, %v12273_v49  ;;  %v7275_v49 = vrot.slane %v12369_v14, 2  ;;  %v7365_v14 = vld [vmem:[#allocation24 + $0x60] sm:$0xff]  ;;  %v7386_v18 = vld [vmem:[#allocation24 + $0x108] sm:$0xff]  ;;  %v7388_v4 = vld [vmem:[#allocation24 + $0x118] sm:$0xff] }
 0xfba   :  { %v7351_v54 = vadd.f32 %v7292_v41, %v12281_v30  ;;  %v7284_v30 = vsel %vm2932_vm6, %v7281_v7, %v7283_v46  ;;  %v7390_v33 = vld [vmem:[#allocation24 + $0x128] sm:$0xff]  ;;  %v7389_v41 = vld [vmem:[#allocation24 + $0x120] sm:$0xff]  ;;  %v7396_v46 = vld [vmem:[#allocation24 + $0x158] sm:$0xff] }
 0xfbb   :  { %8178 = vmatpush2.msk.msra.mxu0 %vm2932_vm6, %v7352_v39  ;;  %v7347_v32 = vadd.f32 %v7284_v30, %v12267_v58  ;;  %v7278_v59 = vsel %vm2932_vm6, %v7275_v49, %v7277_v52  ;;  %v7276_v58 = vsel %vm2932_vm6, %v7273_v17, %v7275_v49  ;;  %v7392_v39 = vld [vmem:[#allocation24 + $0x138] sm:$0xff]  ;;  %v7395_v27 = vld [vmem:[#allocation24 + $0x150] sm:$0xff]  ;;  %v7397_v7 = vld [vmem:[#allocation24 + $0x160] sm:$0xff] }
 0xfbc   :  { %7545 = vmatprep.subr.mxu0 %v12871_v11  ;;  %v7344_v1 = vadd.f32 %v7278_v59, %v12258_v24  ;;  %v7343_v57 = vadd.f32 %v7276_v58, %v12255_v35  ;;  %v7353_v24 = vld [vmem:[#allocation24] sm:$0xff]  ;;  %v7356_v35 = vld [vmem:[#allocation24 + $0x18] sm:$0xff]  ;;  %v7403_v52 = vld [vmem:[#allocation24 + $0x190] sm:$0xff] }
 0xfbd   :  { %7546 = vmatpush2.msra.mxu0 %v7351_v54  ;;  %v7393_v54 = vld [vmem:[#allocation24 + $0x140] sm:$0xff]  ;;  %v7408_v49 = vld [vmem:[#allocation24 + $0x1b8] sm:$0xff] }
 0xfbe   :  { %7547 = vmatprep.subr.mxu0 %v12871_v11  ;;  %v7401_v30 = vld [vmem:[#allocation24 + $0x180] sm:$0xff] }
 0xfbf   :  { %7548 = vmatpush2.msra.mxu0 %v7350_v45  ;;  %v7398_v45 = vld [vmem:[#allocation24 + $0x168] sm:$0xff] }
 0xfc0   :  { %7549 = vmatprep.subr.mxu0 %v12871_v11 }
 0xfc1   :  { %7550 = vmatpush2.msra.mxu0 %v7349_v34  ;;  %v7399_v34 = vld [vmem:[#allocation24 + $0x170] sm:$0xff] }
 0xfc2   :  { %7551 = vmatprep.subr.mxu0 %v12871_v11 }
 0xfc3   :  { %7552 = vmatpush2.msra.mxu0 %v7348_v10  ;;  %v7404_v10 = vld [vmem:[#allocation24 + $0x198] sm:$0xff] }
 0xfc4   :  { %7553 = vmatprep.subr.mxu0 %v12871_v11 }
 0xfc5   :  { %7554 = vmatpush2.msra.mxu0 %v7347_v32  ;;  %v7405_v32 = vld [vmem:[#allocation24 + $0x1a0] sm:$0xff] }
 0xfc6   :  { %7555 = vmatprep.subr.mxu0 %v12871_v11 }
 0xfc7   :  { %7556 = vmatpush2.msra.mxu0 %v7346_v6 }
 0xfc8   :  { %7557 = vmatprep.subr.mxu0 %v12871_v11 }
 0xfc9   :  { %7558 = vmatpush2.msra.mxu0 %v7345_v40 }
 0xfca   :  { %7559 = vmatprep.subr.mxu0 %v12871_v11 }
 0xfcb   :  { %7560 = vmatpush2.msra.mxu0 %v7344_v1 }
 0xfcc   :  { %7561 = vmatprep.subr.mxu0 %v12871_v11 }
 0xfcd   :  { %7562 = vmatpush2.msra.mxu0 %v7343_v57 }
 0xfce   :  { %7563 = vmatprep.subr.mxu0 %v12871_v11 }
 0xfcf   :  { %7564 = vmatpush2.msra.mxu0 %v7342_v36 }
 0xfd0   :  { %7565 = vmatprep.subr.mxu0 %v12871_v11 }
 0xfd1   :  { %7566 = vmatpush2.msra.mxu0 %v12357_v38  ;;  %v7360_v38 = vld [vmem:[#allocation24 + $0x38] sm:$0xff] }
 0xfd2   :  { %7567 = vmatprep.subr.mxu0 %v12871_v11 }
 0xfd3   :  { %7568 = vmatpush2.msra.mxu0 %v12340_v5  ;;  %v7359_v5 = vld [vmem:[#allocation24 + $0x30] sm:$0xff] }
 0xfd4   :  { %7569 = vmatprep.subr.mxu0 %v12871_v11  ;;  %v7361_v11 = vld [vmem:[#allocation24 + $0x40] sm:$0xff] }
 0xfd5   :  { %7570 = vmatpush2.msra.mxu0 %v12329_v43  ;;  %v7364_v43 = vld [vmem:[#allocation24 + $0x58] sm:$0xff] }
 0xfd6   :  { %7572 = vmatmul.mubr.f32.vlgmr.msra.gmra.mxu0 %v7353_v24 }
 0xfd7   :  { %8180 = vmatprep.mubr.msk.f32.mxu0 %vm7419_vm11, %v7356_v35 }
 0xfda   :  { %7577 = vmatmul.mubr.f32.gmra.mxu0 %v7355_v37 }
 0xfdb   :  { %8181 = vmatprep.mubr.msk.f32.mxu0 %vm7419_vm11, %v7358_v55 }
 0xfde   :  { %7582 = vmatmul.mubr.f32.gmra.mxu0 %v7357_v44 }
 0xfdf   :  { %8182 = vmatprep.mubr.msk.f32.mxu0 %vm7419_vm11, %v7360_v38 }
 0xfe2   :  { %7587 = vmatmul.mubr.f32.gmra.mxu0 %v7359_v5 }
 0xfe3   :  { %8183 = vmatprep.mubr.msk.f32.mxu0 %vm7419_vm11, %v7362_v3 }
 0xfe6   :  { %7592 = vmatmul.mubr.f32.gmra.mxu0 %v7361_v11 }
 0xfe7   :  { %8184 = vmatprep.mubr.msk.f32.mxu0 %vm7419_vm11, %v7364_v43 }
 0xfea   :  { %7597 = vmatmul.mubr.f32.gmra.mxu0 %v7363_v23 }
 0xfeb   :  { %8185 = vmatprep.mubr.msk.f32.mxu0 %vm7419_vm11, %v7366_v21 }
 0xfee   :  { %7602 = vmatmul.mubr.f32.gmra.mxu0 %v7365_v14 }
 0xfef   :  { %8186 = vmatprep.mubr.msk.f32.mxu0 %vm7419_vm11, %v7368_v26 }
 0xff2   :  { %7607 = vmatmul.mubr.f32.gmra.mxu0 %v7367_v15 }
 0xff3   :  { %8187 = vmatprep.mubr.msk.f32.mxu0 %vm7419_vm11, %v7370_v60 }
 0xff6   :  { %7612 = vmatmul.mubr.f32.gmra.mxu0 %v7369_v63 }
 0xff7   :  { %8188 = vmatprep.mubr.msk.f32.mxu0 %vm7419_vm11, %v7372_v20 }
 0xffa   :  { %7617 = vmatmul.mubr.f32.gmra.mxu0 %v7371_v2 }
 0xffb   :  { %8189 = vmatprep.mubr.msk.f32.mxu0 %vm7419_vm11, %v7374_v16 }
 0xffe   :  { %7622 = vmatmul.mubr.f32.gmra.mxu0 %v7373_v50 }
 0xfff   :  { %8190 = vmatprep.mubr.msk.f32.mxu0 %vm7419_vm11, %v7376_v22 }
0x1002   :  { %7627 = vmatmul.mubr.f32.gmra.mxu0 %v7375_v25 }
0x1003   :  { %8191 = vmatprep.mubr.msk.f32.mxu0 %vm7419_vm11, %v7378_v51 }
0x1006   :  { %7632 = vmatmul.mubr.f32.gmra.mxu0 %v7377_v12 }
0x1007   :  { %8192 = vmatprep.mubr.msk.f32.mxu0 %vm7419_vm11, %v7380_v48 }
0x1009   :  { %v12459_v6 = vpop.permute.xlu0 %7416 }
0x100a   :  { %7637 = vmatmul.mubr.f32.gmra.mxu0 %v7379_v0 }
0x100b   :  { %8193 = vmatprep.mubr.msk.f32.mxu0 %vm7419_vm11, %v7382_v42 }
0x100e   :  { %7642 = vmatmul.mubr.f32.gmra.mxu0 %v7381_v9 }
0x100f   :  { %8194 = vmatprep.mubr.msk.f32.mxu0 %vm7419_vm11, %v7384_v29 }
0x1012   :  { %7647 = vmatmul.mubr.f32.gmra.mxu0 %v7383_v31 }
0x1013   :  { %8195 = vmatprep.mubr.msk.f32.mxu0 %vm7419_vm11, %v7386_v18 }
0x1016   :  { %7652 = vmatmul.mubr.f32.gmra.mxu0 %v7385_v19 }
0x1017   :  { %8196 = vmatprep.mubr.msk.f32.mxu0 %vm7419_vm11, %v7388_v4 }
0x101a   :  { %7657 = vmatmul.mubr.f32.gmra.mxu0 %v7387_v53 }
0x101b   :  { %8197 = vmatprep.mubr.msk.f32.mxu0 %vm7419_vm11, %v7390_v33 }
0x101e   :  { %7662 = vmatmul.mubr.f32.gmra.mxu0 %v7389_v41 }
0x101f   :  { %8198 = vmatprep.mubr.msk.f32.mxu0 %vm7419_vm11, %v7392_v39 }
0x1022   :  { %7667 = vmatmul.mubr.f32.gmra.mxu0 %v7391_v47 }
0x1023   :  { %8199 = vmatprep.mubr.msk.f32.mxu0 %vm7419_vm11, %v7394_v8 }
0x1026   :  { %7672 = vmatmul.mubr.f32.gmra.mxu0 %v7393_v54 }
0x1027   :  { %8200 = vmatprep.mubr.msk.f32.mxu0 %vm7419_vm11, %v7396_v46 }
0x102a   :  { %7677 = vmatmul.mubr.f32.gmra.mxu0 %v7395_v27 }
0x102b   :  { %8201 = vmatprep.mubr.msk.f32.mxu0 %vm7419_vm11, %v7398_v45 }
0x102e   :  { %7682 = vmatmul.mubr.f32.gmra.mxu0 %v7397_v7 }
0x102f   :  { %8202 = vmatprep.mubr.msk.f32.mxu0 %vm7419_vm11, %v7400_v28 }
0x1032   :  { %7687 = vmatmul.mubr.f32.gmra.mxu0 %v7399_v34 }
0x1033   :  { %8203 = vmatprep.mubr.msk.f32.mxu0 %vm7419_vm11, %v7402_v62 }
0x1036   :  { %7692 = vmatmul.mubr.f32.gmra.mxu0 %v7401_v30 }
0x1037   :  { %8204 = vmatprep.mubr.msk.f32.mxu0 %vm7419_vm11, %v7404_v10 }
0x103a   :  { %7697 = vmatmul.mubr.f32.gmra.mxu0 %v7403_v52 }
0x103b   :  { %8205 = vmatprep.mubr.msk.f32.mxu0 %vm7419_vm11, %v7406_v56 }
0x103e   :  { %7702 = vmatmul.mubr.f32.gmra.mxu0 %v7405_v32 }
0x103f   :  { %8206 = vmatprep.mubr.msk.f32.mxu0 %vm7419_vm11, %v7408_v49 }
0x1042   :  { %7707 = vmatmul.mubr.f32.gmra.mxu0 %v7407_v61 }
0x1096   :  { %v7573_v17 = vpop.f32.mrf.mxu0 }
0x1097   :  { %v7574_v59 = vadd.f32 %v7573_v17, %v12459_v6 }
0x1098   :  { %v7575_v40 = vpop.f32.mrf.mxu0 }
0x1099   :  { %v8207_v58 = vmul.f32 -1.442695, %v7574_v59 }
0x109a   :  { %v7578_v1 = vpop.f32.mrf.mxu0 }
0x109b   :  { %8616 = vpow2.f32 %v8207_v58  ;;  %v7579_v13 = vadd.f32 %v7578_v1, %v12459_v6 }
0x109c   :  { %v7580_v57 = vpop.f32.mrf.mxu0 }
0x109d   :  { %v8208_v36 = vmul.f32 -1.442695, %v7579_v13 }
0x109e   :  { %v7583_v24 = vpop.f32.mrf.mxu0 }
0x109f   :  { %8618 = vpow2.f32 %v8208_v36  ;;  %v7584_v35 = vadd.f32 %v7583_v24, %v12459_v6 }
0x10a0   :  { %v7585_v37 = vpop.f32.mrf.mxu0 }
0x10a1   :  { %v8209_v55 = vmul.f32 -1.442695, %v7584_v35 }
0x10a2   :  { %v7588_v44 = vpop.f32.mrf.mxu0 }
0x10a3   :  { %8620 = vpow2.f32 %v8209_v55  ;;  %v7589_v38 = vadd.f32 %v7588_v44, %v12459_v6 }
0x10a4   :  { %v7590_v5 = vpop.f32.mrf.mxu0 }
0x10a5   :  { %v8210_v3 = vmul.f32 -1.442695, %v7589_v38 }
0x10a6   :  { %v7593_v11 = vpop.f32.mrf.mxu0 }
0x10a7   :  { %8622 = vpow2.f32 %v8210_v3  ;;  %v7594_v43 = vadd.f32 %v7593_v11, %v12459_v6 }
0x10a8   :  { %v8617_v23 = vpop.eup %8616  ;;  %v7595_v21 = vpop.f32.mrf.mxu0 }
0x10a9   :  { %v7796_v14 = vadd.f32 1.0, %v8617_v23  ;;  %v8211_v26 = vmul.f32 -1.442695, %v7594_v43 }
0x10aa   :  { %v7598_v15 = vpop.f32.mrf.mxu0 }
0x10ab   :  { %8624 = vrcp.f32 %v7796_v14  ;;  %v7599_v60 = vadd.f32 %v7598_v15, %v12459_v6 }
0x10ac   :  { %v8619_v63 = vpop.eup %8618  ;;  %8626 = vpow2.f32 %v8211_v26  ;;  %v7600_v20 = vpop.f32.mrf.mxu0 }
0x10ad   :  { %v7797_v2 = vadd.f32 1.0, %v8619_v63  ;;  %v8212_v16 = vmul.f32 -1.442695, %v7599_v60 }
0x10ae   :  { %v7603_v50 = vpop.f32.mrf.mxu0 }
0x10af   :  { %8628 = vrcp.f32 %v7797_v2  ;;  %v7604_v22 = vadd.f32 %v7603_v50, %v12459_v6 }
0x10b0   :  { %v8621_v25 = vpop.eup %8620  ;;  %8630 = vpow2.f32 %v8212_v16  ;;  %v7605_v51 = vpop.f32.mrf.mxu0 }
0x10b1   :  { %v7798_v12 = vadd.f32 1.0, %v8621_v25  ;;  %v8213_v48 = vmul.f32 -1.442695, %v7604_v22 }
0x10b2   :  { %v7608_v0 = vpop.f32.mrf.mxu0 }
0x10b3   :  { %8632 = vrcp.f32 %v7798_v12  ;;  %v7609_v42 = vadd.f32 %v7608_v0, %v12459_v6 }
0x10b4   :  { %v8623_v9 = vpop.eup %8622  ;;  %8634 = vpow2.f32 %v8213_v48  ;;  %v7610_v29 = vpop.f32.mrf.mxu0 }
0x10b5   :  { %v7799_v31 = vadd.f32 1.0, %v8623_v9  ;;  %v8214_v18 = vmul.f32 -1.442695, %v7609_v42 }
0x10b6   :  { %v7613_v19 = vpop.f32.mrf.mxu0 }
0x10b7   :  { %8636 = vrcp.f32 %v7799_v31  ;;  %v7614_v4 = vadd.f32 %v7613_v19, %v12459_v6 }
0x10b8   :  { %v8625_v53 = vpop.eup %8624  ;;  %8638 = vpow2.f32 %v8214_v18  ;;  %v7615_v33 = vpop.f32.mrf.mxu0 }
0x10b9   :  { %v8627_v41 = vpop.eup %8626  ;;  %7881 = vst.msk [vmem:[#allocation29] sm:$0xff] %vm7880_vm12, %v8625_v53  ;;  %v8215_v39 = vmul.f32 -1.442695, %v7614_v4 }
0x10ba   :  { %v7800_v47 = vadd.f32 1.0, %v8627_v41  ;;  %v7618_v8 = vpop.f32.mrf.mxu0 }
0x10bb   :  { %8640 = vpow2.f32 %v8215_v39  ;;  %v7619_v54 = vadd.f32 %v7618_v8, %v12459_v6 }
0x10bc   :  { %v8629_v46 = vpop.eup %8628  ;;  %8642 = vrcp.f32 %v7800_v47  ;;  %v7620_v27 = vpop.f32.mrf.mxu0 }
0x10bd   :  { %v8631_v45 = vpop.eup %8630  ;;  %7882 = vst.msk [vmem:[#allocation29 + $0x8] sm:$0xff] %vm7880_vm12, %v8629_v46  ;;  %v8216_v7 = vmul.f32 -1.442695, %v7619_v54 }
0x10be   :  { %v7801_v28 = vadd.f32 1.0, %v8631_v45  ;;  %v7623_v34 = vpop.f32.mrf.mxu0 }
0x10bf   :  { %8644 = vpow2.f32 %v8216_v7  ;;  %v7624_v62 = vadd.f32 %v7623_v34, %v12459_v6 }
0x10c0   :  { %v8633_v30 = vpop.eup %8632  ;;  %8646 = vrcp.f32 %v7801_v28  ;;  %v7625_v10 = vpop.f32.mrf.mxu0 }
0x10c1   :  { %v8635_v52 = vpop.eup %8634  ;;  %7883 = vst.msk [vmem:[#allocation29 + $0x10] sm:$0xff] %vm7880_vm12, %v8633_v30  ;;  %v8217_v56 = vmul.f32 -1.442695, %v7624_v62 }
0x10c2   :  { %v7802_v32 = vadd.f32 1.0, %v8635_v52  ;;  %v7628_v49 = vpop.f32.mrf.mxu0 }
0x10c3   :  { %8648 = vpow2.f32 %v8217_v56  ;;  %v7629_v61 = vadd.f32 %v7628_v49, %v12459_v6 }
0x10c4   :  { %v8637_v17 = vpop.eup %8636  ;;  %8650 = vrcp.f32 %v7802_v32  ;;  %v7630_v59 = vpop.f32.mrf.mxu0 }
0x10c5   :  { %v8639_v40 = vpop.eup %8638  ;;  %7884 = vst.msk [vmem:[#allocation29 + $0x18] sm:$0xff] %vm7880_vm12, %v8637_v17  ;;  %v8218_v58 = vmul.f32 -1.442695, %v7629_v61 }
0x10c6   :  { %v7803_v1 = vadd.f32 1.0, %v8639_v40  ;;  %v7633_v13 = vpop.f32.mrf.mxu0 }
0x10c7   :  { %8652 = vpow2.f32 %v8218_v58  ;;  %v7634_v57 = vadd.f32 %v7633_v13, %v12459_v6 }
0x10c8   :  { %v8641_v36 = vpop.eup %8640  ;;  %8654 = vrcp.f32 %v7803_v1  ;;  %v7635_v24 = vpop.f32.mrf.mxu0 }
0x10c9   :  { %v8643_v35 = vpop.eup %8642  ;;  %v7804_v37 = vadd.f32 1.0, %v8641_v36  ;;  %v8219_v55 = vmul.f32 -1.442695, %v7634_v57 }
0x10ca   :  { %7885 = vst.msk [vmem:[#allocation29 + $0x20] sm:$0xff] %vm7880_vm12, %v8643_v35  ;;  %v7638_v44 = vpop.f32.mrf.mxu0 }
0x10cb   :  { %8656 = vrcp.f32 %v7804_v37  ;;  %v7639_v38 = vadd.f32 %v7638_v44, %v12459_v6 }
0x10cc   :  { %v8645_v5 = vpop.eup %8644  ;;  %8658 = vpow2.f32 %v8219_v55  ;;  %v7640_v3 = vpop.f32.mrf.mxu0 }
0x10cd   :  { %v8647_v11 = vpop.eup %8646  ;;  %v7805_v43 = vadd.f32 1.0, %v8645_v5  ;;  %v8220_v23 = vmul.f32 -1.442695, %v7639_v38 }
0x10ce   :  { %7886 = vst.msk [vmem:[#allocation29 + $0x28] sm:$0xff] %vm7880_vm12, %v8647_v11  ;;  %v7643_v21 = vpop.f32.mrf.mxu0 }
0x10cf   :  { %8660 = vrcp.f32 %v7805_v43  ;;  %v7644_v14 = vadd.f32 %v7643_v21, %v12459_v6 }
0x10d0   :  { %v8649_v26 = vpop.eup %8648  ;;  %8662 = vpow2.f32 %v8220_v23  ;;  %v7645_v15 = vpop.f32.mrf.mxu0 }
0x10d1   :  { %v8651_v60 = vpop.eup %8650  ;;  %v7806_v63 = vadd.f32 1.0, %v8649_v26  ;;  %v8221_v20 = vmul.f32 -1.442695, %v7644_v14 }
0x10d2   :  { %7887 = vst.msk [vmem:[#allocation29 + $0x30] sm:$0xff] %vm7880_vm12, %v8651_v60  ;;  %v7648_v2 = vpop.f32.mrf.mxu0 }
0x10d3   :  { %8664 = vrcp.f32 %v7806_v63  ;;  %v7649_v16 = vadd.f32 %v7648_v2, %v12459_v6 }
0x10d4   :  { %v8653_v50 = vpop.eup %8652  ;;  %8666 = vpow2.f32 %v8221_v20  ;;  %v7650_v22 = vpop.f32.mrf.mxu0 }
0x10d5   :  { %v8655_v25 = vpop.eup %8654  ;;  %v7807_v51 = vadd.f32 1.0, %v8653_v50  ;;  %v8222_v12 = vmul.f32 -1.442695, %v7649_v16 }
0x10d6   :  { %7888 = vst.msk [vmem:[#allocation29 + $0x38] sm:$0xff] %vm7880_vm12, %v8655_v25  ;;  %v7653_v48 = vpop.f32.mrf.mxu0 }
0x10d7   :  { %8668 = vrcp.f32 %v7807_v51  ;;  %v7654_v0 = vadd.f32 %v7653_v48, %v12459_v6 }
0x10d8   :  { %v8657_v42 = vpop.eup %8656  ;;  %8670 = vpow2.f32 %v8222_v12  ;;  %v7655_v9 = vpop.f32.mrf.mxu0 }
0x10d9   :  { %v8659_v29 = vpop.eup %8658  ;;  %7889 = vst.msk [vmem:[#allocation29 + $0x40] sm:$0xff] %vm7880_vm12, %v8657_v42  ;;  %v8223_v31 = vmul.f32 -1.442695, %v7654_v0 }
0x10da   :  { %v7808_v18 = vadd.f32 1.0, %v8659_v29  ;;  %v7658_v19 = vpop.f32.mrf.mxu0 }
0x10db   :  { %8672 = vpow2.f32 %v8223_v31  ;;  %v7659_v4 = vadd.f32 %v7658_v19, %v12459_v6 }
0x10dc   :  { %v8661_v53 = vpop.eup %8660  ;;  %8674 = vrcp.f32 %v7808_v18  ;;  %v7660_v33 = vpop.f32.mrf.mxu0 }
0x10dd   :  { %v8663_v41 = vpop.eup %8662  ;;  %7890 = vst.msk [vmem:[#allocation29 + $0x48] sm:$0xff] %vm7880_vm12, %v8661_v53  ;;  %v8224_v39 = vmul.f32 -1.442695, %v7659_v4 }
0x10de   :  { %v7809_v47 = vadd.f32 1.0, %v8663_v41  ;;  %v7663_v8 = vpop.f32.mrf.mxu0 }
0x10df   :  { %8676 = vpow2.f32 %v8224_v39  ;;  %v7664_v54 = vadd.f32 %v7663_v8, %v12459_v6 }
0x10e0   :  { %v8665_v46 = vpop.eup %8664  ;;  %8678 = vrcp.f32 %v7809_v47  ;;  %v7665_v27 = vpop.f32.mrf.mxu0 }
0x10e1   :  { %v8667_v45 = vpop.eup %8666  ;;  %7891 = vst.msk [vmem:[#allocation29 + $0x50] sm:$0xff] %vm7880_vm12, %v8665_v46  ;;  %v8225_v7 = vmul.f32 -1.442695, %v7664_v54 }
0x10e2   :  { %v7810_v28 = vadd.f32 1.0, %v8667_v45  ;;  %v7668_v34 = vpop.f32.mrf.mxu0 }
0x10e3   :  { %8680 = vpow2.f32 %v8225_v7  ;;  %v7669_v62 = vadd.f32 %v7668_v34, %v12459_v6 }
0x10e4   :  { %v8669_v30 = vpop.eup %8668  ;;  %8682 = vrcp.f32 %v7810_v28  ;;  %v7670_v10 = vpop.f32.mrf.mxu0 }
0x10e5   :  { %v8671_v52 = vpop.eup %8670  ;;  %7892 = vst.msk [vmem:[#allocation29 + $0x58] sm:$0xff] %vm7880_vm12, %v8669_v30  ;;  %v8226_v56 = vmul.f32 -1.442695, %v7669_v62 }
0x10e6   :  { %v7811_v32 = vadd.f32 1.0, %v8671_v52  ;;  %v7673_v49 = vpop.f32.mrf.mxu0 }
0x10e7   :  { %8684 = vpow2.f32 %v8226_v56  ;;  %v7674_v61 = vadd.f32 %v7673_v49, %v12459_v6 }
0x10e8   :  { %v8673_v17 = vpop.eup %8672  ;;  %8686 = vrcp.f32 %v7811_v32  ;;  %v7675_v59 = vpop.f32.mrf.mxu0 }
0x10e9   :  { %v8675_v40 = vpop.eup %8674  ;;  %v7812_v58 = vadd.f32 1.0, %v8673_v17  ;;  %v8227_v1 = vmul.f32 -1.442695, %v7674_v61 }
0x10ea   :  { %7893 = vst.msk [vmem:[#allocation29 + $0x60] sm:$0xff] %vm7880_vm12, %v8675_v40  ;;  %v7678_v13 = vpop.f32.mrf.mxu0 }
0x10eb   :  { %8688 = vrcp.f32 %v7812_v58  ;;  %v7679_v57 = vadd.f32 %v7678_v13, %v12459_v6 }
0x10ec   :  { %v8677_v36 = vpop.eup %8676  ;;  %8690 = vpow2.f32 %v8227_v1  ;;  %v7680_v24 = vpop.f32.mrf.mxu0 }
0x10ed   :  { %v8679_v35 = vpop.eup %8678  ;;  %v7813_v37 = vadd.f32 1.0, %v8677_v36  ;;  %v8228_v55 = vmul.f32 -1.442695, %v7679_v57 }
0x10ee   :  { %7894 = vst.msk [vmem:[#allocation29 + $0x68] sm:$0xff] %vm7880_vm12, %v8679_v35  ;;  %v7683_v44 = vpop.f32.mrf.mxu0 }
0x10ef   :  { %8692 = vrcp.f32 %v7813_v37  ;;  %v7684_v38 = vadd.f32 %v7683_v44, %v12459_v6 }
0x10f0   :  { %v8681_v5 = vpop.eup %8680  ;;  %8694 = vpow2.f32 %v8228_v55  ;;  %v7685_v3 = vpop.f32.mrf.mxu0 }
0x10f1   :  { %v8683_v11 = vpop.eup %8682  ;;  %v7814_v43 = vadd.f32 1.0, %v8681_v5  ;;  %v8229_v23 = vmul.f32 -1.442695, %v7684_v38 }
0x10f2   :  { %7895 = vst.msk [vmem:[#allocation29 + $0x70] sm:$0xff] %vm7880_vm12, %v8683_v11  ;;  %v7688_v21 = vpop.f32.mrf.mxu0 }
0x10f3   :  { %8696 = vrcp.f32 %v7814_v43  ;;  %v7689_v14 = vadd.f32 %v7688_v21, %v12459_v6 }
0x10f4   :  { %v8685_v26 = vpop.eup %8684  ;;  %8698 = vpow2.f32 %v8229_v23  ;;  %v7690_v15 = vpop.f32.mrf.mxu0 }
0x10f5   :  { %v8687_v60 = vpop.eup %8686  ;;  %v7815_v63 = vadd.f32 1.0, %v8685_v26  ;;  %v8230_v20 = vmul.f32 -1.442695, %v7689_v14 }
0x10f6   :  { %7896 = vst.msk [vmem:[#allocation29 + $0x78] sm:$0xff] %vm7880_vm12, %v8687_v60  ;;  %v7693_v2 = vpop.f32.mrf.mxu0 }
0x10f7   :  { %8700 = vrcp.f32 %v7815_v63  ;;  %v7694_v16 = vadd.f32 %v7693_v2, %v12459_v6 }
0x10f8   :  { %v8689_v50 = vpop.eup %8688  ;;  %8702 = vpow2.f32 %v8230_v20  ;;  %v7695_v22 = vpop.f32.mrf.mxu0 }
0x10f9   :  { %v8691_v25 = vpop.eup %8690  ;;  %7897 = vst.msk [vmem:[#allocation29 + $0x80] sm:$0xff] %vm7880_vm12, %v8689_v50  ;;  %v8231_v51 = vmul.f32 -1.442695, %v7694_v16 }
0x10fa   :  { %v7816_v12 = vadd.f32 1.0, %v8691_v25  ;;  %v7698_v48 = vpop.f32.mrf.mxu0 }
0x10fb   :  { %8704 = vpow2.f32 %v8231_v51  ;;  %v7699_v0 = vadd.f32 %v7698_v48, %v12459_v6 }
0x10fc   :  { %v8693_v42 = vpop.eup %8692  ;;  %8706 = vrcp.f32 %v7816_v12  ;;  %v7700_v9 = vpop.f32.mrf.mxu0 }
0x10fd   :  { %v8695_v29 = vpop.eup %8694  ;;  %7898 = vst.msk [vmem:[#allocation29 + $0x88] sm:$0xff] %vm7880_vm12, %v8693_v42  ;;  %v8232_v31 = vmul.f32 -1.442695, %v7699_v0 }
0x10fe   :  { %v7817_v18 = vadd.f32 1.0, %v8695_v29  ;;  %v7703_v19 = vpop.f32.mrf.mxu0 }
0x10ff   :  { %8708 = vpow2.f32 %v8232_v31  ;;  %v7704_v4 = vadd.f32 %v7703_v19, %v12459_v6 }
0x1100   :  { %v8697_v53 = vpop.eup %8696  ;;  %8710 = vrcp.f32 %v7817_v18  ;;  %v7705_v33 = vpop.f32.mrf.mxu0 }
0x1101   :  { %v8699_v41 = vpop.eup %8698  ;;  %7899 = vst.msk [vmem:[#allocation29 + $0x90] sm:$0xff] %vm7880_vm12, %v8697_v53  ;;  %v8233_v39 = vmul.f32 -1.442695, %v7704_v4 }
0x1102   :  { %v7818_v47 = vadd.f32 1.0, %v8699_v41  ;;  %v7708_v8 = vpop.f32.mrf.mxu0 }
0x1103   :  { %8712 = vpow2.f32 %v8233_v39  ;;  %v7709_v54 = vadd.f32 %v7708_v8, %v12459_v6 }
0x1104   :  { %v8701_v46 = vpop.eup %8700  ;;  %8714 = vrcp.f32 %v7818_v47  ;;  %v7710_v27 = vpop.f32.mrf.mxu0 }
0x1105   :  { %v8703_v45 = vpop.eup %8702  ;;  %7900 = vst.msk [vmem:[#allocation29 + $0x98] sm:$0xff] %vm7880_vm12, %v8701_v46  ;;  %v8234_v7 = vmul.f32 -1.442695, %v7709_v54 }
0x1106   :  { %v7819_v28 = vadd.f32 1.0, %v8703_v45 }
0x1107   :  { %8716 = vpow2.f32 %v8234_v7 }
0x1108   :  { %v8705_v34 = vpop.eup %8704  ;;  %8718 = vrcp.f32 %v7819_v28 }
0x1109   :  { %v8707_v62 = vpop.eup %8706  ;;  %v7820_v30 = vadd.f32 1.0, %v8705_v34 }
0x110a   :  { %7901 = vst.msk [vmem:[#allocation29 + $0xa0] sm:$0xff] %vm7880_vm12, %v8707_v62 }
0x110b   :  { %8720 = vrcp.f32 %v7820_v30 }
0x110c   :  { %v8709_v10 = vpop.eup %8708 }
0x110d   :  { %v8711_v52 = vpop.eup %8710  ;;  %v7821_v56 = vadd.f32 1.0, %v8709_v10 }
0x110e   :  { %7902 = vst.msk [vmem:[#allocation29 + $0xa8] sm:$0xff] %vm7880_vm12, %v8711_v52 }
0x110f   :  { %8722 = vrcp.f32 %v7821_v56 }
0x1110   :  { %v8713_v6 = vpop.eup %8712 }
0x1111   :  { %v8715_v32 = vpop.eup %8714  ;;  %v7822_v49 = vadd.f32 1.0, %v8713_v6 }
0x1112   :  { %7903 = vst.msk [vmem:[#allocation29 + $0xb0] sm:$0xff] %vm7880_vm12, %v8715_v32 }
0x1113   :  { %8724 = vrcp.f32 %v7822_v49 }
0x1114   :  { %v8717_v61 = vpop.eup %8716 }
0x1115   :  { %v8719_v17 = vpop.eup %8718  ;;  %v7823_v59 = vadd.f32 1.0, %v8717_v61 }
0x1116   :  { %7904 = vst.msk [vmem:[#allocation29 + $0xb8] sm:$0xff] %vm7880_vm12, %v8719_v17 }
0x1117   :  { %8726 = vrcp.f32 %v7823_v59 }
0x1118   :  { %v8721_v40 = vpop.eup %8720 }
0x1119   :  { %7905 = vst.msk [vmem:[#allocation29 + $0xc0] sm:$0xff] %vm7880_vm12, %v8721_v40 }
0x111c   :  { %v8723_v58 = vpop.eup %8722 }
0x111d   :  { %7906 = vst.msk [vmem:[#allocation29 + $0xc8] sm:$0xff] %vm7880_vm12, %v8723_v58 }
0x1120   :  { %v8725_v1 = vpop.eup %8724 }
0x1121   :  { %7907 = vst.msk [vmem:[#allocation29 + $0xd0] sm:$0xff] %vm7880_vm12, %v8725_v1 }
0x1124   :  { %v8727_v13 = vpop.eup %8726 }
0x1125   :  { %7908 = vst.msk [vmem:[#allocation29 + $0xd8] sm:$0xff] %vm7880_vm12, %v8727_v13 }
0x1126   :  { %9019 = shalt.err (!%p9016_p4)
}
0x1127   :  { %s12901_s9 = sld [smem:[#allocation115_spill]] }
0x112d   :  { %7920 = dma.vmem_to_hbm [thread:$0]  %s7915_s17, 3584, %s12901_s9, [#allocation8], %s12648_s8, %s12648_s8, %s9051_s5  }
0x112e   :  { %9044 = dma.done.wait [#allocation8], 3584  }
0x112f   :  { %9045 = vsyncadd [#allocation8], 4294963712 }
0x1130   :  { %7924 = vsyncpa [#allocation7], 1 }
0x1131   :  { %7925 = vsyncpa [#allocation10], 1 }
0x1132   :  { %7926 = vsyncpa [#allocation13], 1 }
0x1133   :  { %7927 = vsyncpa [#allocation16], 1 }
0x1134   :  { %7928 = vsyncpa [#allocation19], 1 }
0x1135   :  { %7929 = vsyncpa [#allocation22], 1 }
0x1136   :  { %7930 = vsyncpa [#allocation25], 1 }
0x1137   :  { %7931 = vsyncpa [#allocation28], 1 }
0x1138   :  { %7932 = vsyncpa [#allocation8], 1 }

</bundles_post_ra>
